<compile_context>
chip_gen: v7x
topology: tpu7x:2x2x1
jax: 0.10.0
libtpu: 0.0.40
codegen_flags: <defaults>
</compile_context>

<pallas_src>
import functools

import jax
import jax.numpy as jnp
from jax.experimental import pallas as pl
from jax.experimental.pallas import tpu as pltpu

CPAD = 128          # channel padding -> lane-dense (128-wide) loads/stores everywhere
_EPS = 1e-5


# ----------------------------------------------------------------------------
# Fused whole-network kernel
# ----------------------------------------------------------------------------
def _make_fused_kernel(strides, spatial):
    """Build the fused kernel body.

    strides : per-block conv stride (static python ints)
    spatial : per-block input (H, W) (static python ints)

    Refs:
      x_ref  : (1, P0, Hp0, Wp0, CPAD) bf16  block-0 input for one batch element,
                                             pre-padded (4 parity planes if stride 2).
      w_ref  : (9*nblk, CPAD, CPAD) bf16     fused 3x3 weights, tap-major, resident.
      b_ref  : (nblk, 1, CPAD) f32           fused biases, resident.
      wh_ref : (CPAD, CPAD) bf16             head Linear weight (C, classes-padded).
      bh_ref : (1, CPAD) f32                 head bias.
      o_ref  : (1, 1, CPAD) f32              logits for this batch element.
      bufs   : VMEM scratch = input buffer of block k (k >= 1):
                 stride-2 consumer -> (4, H/2+1, W/2+1, CPAD) parity planes of padded input
                 stride-1 consumer -> (H+2, W+2, CPAD) plain padded input
    """
    nblk = len(strides)

    def kernel(x_ref, w_ref, b_ref, wh_ref, bh_ref, o_ref, *bufs):
        # Zero the (tiny) scratch buffers: their borders are the conv zero-padding, the
        # interiors are fully overwritten below.  Done every grid step so the kernel is
        # correct under megacore 'parallel' splitting of the batch grid.
        for buf in bufs:
            buf[...] = jnp.zeros_like(buf)

        feat = None
        for blk in range(nblk):
            hi, wi = spatial[blk]
            s = strides[blk]
            ho, wo = hi // s, wi // s
            m = ho * wo

            def patch(kh, kw, blk=blk, s=s, ho=ho, wo=wo):
                # One 3x3 tap as a contiguous (ho, wo, C) slice -> (ho*wo, C) MXU operand.
                if s == 2:
                    p, dh, dw = (kh % 2) * 2 + (kw % 2), kh // 2, kw // 2
                else:
                    p, dh, dw = 0, kh, kw
                if blk == 0:
                    v = x_ref[0, p, dh:dh + ho, dw:dw + wo, :]
                elif s == 2:
                    v = bufs[blk - 1][p, dh:dh + ho, dw:dw + wo, :]
                else:
                    v = bufs[blk - 1][dh:dh + ho, dw:dw + wo, :]
                return v.reshape(ho * wo, CPAD)

            # Bias folded into the accumulator init; 9 big-M MXU dots, f32 accumulation.
            acc = jnp.broadcast_to(b_ref[blk], (m, CPAD))
            for kh in range(3):
                for kw in range(3):
                    acc = acc + jnp.dot(patch(kh, kw),
                                        w_ref[blk * 9 + kh * 3 + kw],
                                        preferred_element_type=jnp.float32)
            out = jnp.maximum(acc, 0.0).astype(jnp.bfloat16)            # ReLU, (m, CPAD)

            if blk + 1 == nblk:
                feat = out
                break

            nbuf = bufs[blk]
            if strides[blk + 1] == 2:
                # Next block is stride 2: scatter this output into its 4 parity planes
                # (space-to-depth of the zero-padded input) so every tap there is again
                # a contiguous slice.  Uses only reshapes + unit-stride slices.
                ho2, wo2 = ho // 2, wo // 2
                rows = out.reshape(ho2, 2, wo, CPAD)
                for ri in range(2):
                    cols = rows[:, ri, :, :].reshape(ho2, wo2, 2, CPAD)
                    for ci in range(2):
                        piece = cols[:, :, ci, :]                        # (ho2, wo2, C)
                        p = (1 - ri) * 2 + (1 - ci)
                        nbuf[p, ri:ri + ho2, ci:ci + wo2, :] = piece
            else:
                # Next block is stride 1: plain padded buffer, interior store.
                nbuf[1:1 + ho, 1:1 + wo, :] = out.reshape(ho, wo, CPAD)

        # Head: AdaptiveAvgPool2d(1) + flatten + Linear, fused (bf16 dot, f32 accum).
        pooled = jnp.mean(feat.astype(jnp.float32), axis=0, keepdims=True)   # (1, C)
        logits = jnp.dot(pooled.astype(jnp.bfloat16), wh_ref[...],
                         preferred_element_type=jnp.float32) + bh_ref[...]
        o_ref[0] = logits

    return kernel


@functools.partial(jax.jit, static_argnames=("strides", "num_classes"))
def repvgg_forward(x_nchw, w_all, b_all, w_head, b_head, *, strides, num_classes):
    """Full RepVGG forward: NCHW input -> (N, num_classes) logits, one pallas_call."""
    N, cin, H, W = x_nchw.shape
    nblk = len(strides)
    assert cin <= CPAD

    # ---- one-time XLA prep of the network input (single tiny relayout pass) ----
    x = jnp.transpose(x_nchw, (0, 2, 3, 1)).astype(jnp.float32)          # NCHW -> NHWC
    x = jnp.pad(x, ((0, 0), (1, 1), (1, 1), (0, CPAD - cin)))            # spatial+chan pad
    if strides[0] == 2:
        assert H % 2 == 0 and W % 2 == 0
        hp, wp, p0 = H // 2 + 1, W // 2 + 1, 4
        xk = (x.reshape(N, hp, 2, wp, 2, CPAD)
                .transpose(0, 2, 4, 1, 3, 5)
                .reshape(N, 4, hp, wp, CPAD))                            # parity planes
    else:
        hp, wp, p0 = H + 2, W + 2, 1
        xk = x.reshape(N, 1, hp, wp, CPAD)
    xk = xk.astype(jnp.bfloat16)

    # Per-block input spatial sizes + per-block VMEM input buffers (block k >= 1).
    spatial, scratch = [], []
    h, w = H, W
    for k, s in enumerate(strides):
        if s == 2:
            assert h % 2 == 0 and w % 2 == 0
        spatial.append((h, w))
        if k > 0:
            if s == 2:
                scratch.append(pltpu.VMEM((4, h // 2 + 1, w // 2 + 1, CPAD), jnp.bfloat16))
            else:
                scratch.append(pltpu.VMEM((h + 2, w + 2, CPAD), jnp.bfloat16))
        h, w = h // s, w // s

    kernel = _make_fused_kernel(tuple(strides), tuple(spatial))

    out = pl.pallas_call(
        kernel,
        out_shape=jax.ShapeDtypeStruct((N, 1, CPAD), jnp.float32),
        grid=(N,),
        in_specs=[
            pl.BlockSpec((1, p0, hp, wp, CPAD), lambda n: (n, 0, 0, 0, 0)),
            pl.BlockSpec((9 * nblk, CPAD, CPAD), lambda n: (0, 0, 0)),   # resident weights
            pl.BlockSpec((nblk, 1, CPAD), lambda n: (0, 0, 0)),          # resident biases
            pl.BlockSpec((CPAD, CPAD), lambda n: (0, 0)),                # head weight
            pl.BlockSpec((1, CPAD), lambda n: (0, 0)),                   # head bias
        ],
        out_specs=pl.BlockSpec((1, 1, CPAD), lambda n: (n, 0, 0)),
        scratch_shapes=scratch,
        compiler_params=pltpu.CompilerParams(
            dimension_semantics=("parallel",),          # v7x: one batch element per TC
            vmem_limit_bytes=32 * 1024 * 1024),
    )(xk, w_all, b_all, w_head, b_head)

    return out.reshape(N, CPAD)[:, :num_classes]


# ----------------------------------------------------------------------------
# Deterministic parameter construction (conv + BN branches, fused exactly)
# ----------------------------------------------------------------------------
def _bn_params(key, n):
    a, b, c, d = jax.random.split(key, 4)
    gamma = jax.random.uniform(a, (n,), jnp.float32, 0.8, 1.2)
    beta = 0.1 * jax.random.normal(b, (n,), jnp.float32)
    mean = 0.1 * jax.random.normal(c, (n,), jnp.float32)
    var = jax.random.uniform(d, (n,), jnp.float32, 0.5, 1.5)
    return gamma, beta, mean, var


def _fuse_conv_bn(kernel, gamma, beta, mean, var):
    t = gamma / jnp.sqrt(var + _EPS)
    return kernel * t[:, None, None, None], beta - mean * t


def make_block_params(key, cin, cout, stride):
    """Exact RepVGG get_equivalent_kernel_bias (eval-mode BN), packed for the kernel."""
    k_w3, k_w1, k_bn3, k_bn1, k_bnid = jax.random.split(key, 5)
    w3 = 0.1 * jax.random.normal(k_w3, (cout, cin, 3, 3), jnp.float32)
    w1 = 0.1 * jax.random.normal(k_w1, (cout, cin, 1, 1), jnp.float32)

    k3f, b3 = _fuse_conv_bn(w3, *_bn_params(k_bn3, cout))
    k1f, b1 = _fuse_conv_bn(w1, *_bn_params(k_bn1, cout))
    kernel = k3f + jnp.pad(k1f, ((0, 0), (0, 0), (1, 1), (1, 1)))
    bias = b3 + b1

    if cin == cout and stride == 1:                 # rbr_identity = BatchNorm2d(cin)
        idx = jnp.arange(cin)
        id_k = jnp.zeros((cin, cin, 3, 3), jnp.float32).at[idx, idx, 1, 1].set(1.0)
        kidf, bid = _fuse_conv_bn(id_k, *_bn_params(k_bnid, cin))
        kernel = kernel + kidf
        bias = bias + bid

    # (Cout, Cin, 3, 3) -> (9, Cin, Cout), zero-padded to 128 lanes; precomputed in bf16.
    wtap = jnp.transpose(kernel, (2, 3, 1, 0)).reshape(9, cin, cout)
    wtap = jnp.pad(wtap, ((0, 0), (0, CPAD - cin), (0, CPAD - cout))).astype(jnp.bfloat16)
    bpad = jnp.pad(bias, (0, CPAD - cout)).reshape(1, CPAD).astype(jnp.float32)
    return wtap, bpad, stride


def build_repvgg_params(key, num_blocks=(1, 2, 1, 1), num_classes=10,
                        width_multiplier=(0.25, 0.25, 0.25, 0.25)):
    assert len(width_multiplier) == 4
    blocks = []
    in_planes = min(64, int(64 * width_multiplier[0]))

    key, sub = jax.random.split(key)
    blocks.append(make_block_params(sub, 3, in_planes, 2))              # stage0
    cur = in_planes

    planes_list = [int(64 * width_multiplier[0]), int(128 * width_multiplier[1]),
                   int(256 * width_multiplier[2]), int(512 * width_multiplier[3])]
    for planes, nb in zip(planes_list, num_blocks):                     # stages 1..4
        for s in [2] + [1] * (nb - 1):
            key, sub = jax.random.split(key)
            blocks.append(make_block_params(sub, cur, planes, s))
            cur = planes

    key, kw, kb = jax.random.split(key, 3)
    w_lin = 0.05 * jax.random.normal(kw, (num_classes, cur), jnp.float32)
    b_lin = 0.05 * jax.random.normal(kb, (num_classes,), jnp.float32)
    # w_lin.T zero-padded to (128, 128), bf16 (f32 accumulation in-kernel).
    w_head = jnp.pad(w_lin.T, ((0, CPAD - cur), (0, CPAD - num_classes))).astype(jnp.bfloat16)
    b_head = jnp.pad(b_lin, (0, CPAD - num_classes)).reshape(1, CPAD).astype(jnp.float32)
    return blocks, (w_head, b_head)


if __name__ == "__main__":
    key = jax.random.PRNGKey(0)
    kx, kp = jax.random.split(key)

    x = jax.random.normal(kx, (2, 3, 32, 32), jnp.float32)               # NCHW, like PyTorch
    blocks, (w_head, b_head) = build_repvgg_params(kp)

    w_all = jnp.concatenate([b[0] for b in blocks], axis=0)              # (6*9, 128, 128)
    b_all = jnp.stack([b[1] for b in blocks], axis=0)                    # (6, 1, 128)
    strides = tuple(int(b[2]) for b in blocks)                           # static python ints

    out = repvgg_forward(x, w_all, b_all, w_head, b_head,
                         strides=strides, num_classes=10)
    out = jax.block_until_ready(out)
    assert out.shape == (2, 10), out.shape
    print("KERNEL_OK")
</pallas_src>

<mosaic_0001>
module attributes {stable_mosaic.version = 11 : i64} {
  func.func @kernel(%arg0: i32, %arg1: memref<1x4x17x17x128xbf16, #tpu.memory_space<vmem>>, %arg2: memref<54x128x128xbf16, #tpu.memory_space<vmem>>, %arg3: memref<6x1x128xf32, #tpu.memory_space<vmem>>, %arg4: memref<128x128xbf16, #tpu.memory_space<vmem>>, %arg5: memref<1x128xf32, #tpu.memory_space<vmem>>, %arg6: memref<1x1x128xf32, #tpu.memory_space<vmem>>, %arg7: memref<4x9x9x128xbf16, #tpu.memory_space<vmem>>, %arg8: memref<4x5x5x128xbf16, #tpu.memory_space<vmem>>, %arg9: memref<6x6x128xbf16, #tpu.memory_space<vmem>>, %arg10: memref<4x3x3x128xbf16, #tpu.memory_space<vmem>>, %arg11: memref<4x2x2x128xbf16, #tpu.memory_space<vmem>>) attributes {dimension_semantics = [#tpu.dimension_semantics<parallel>], iteration_bounds = array<i64: 2>, scalar_prefetch = 0 : i64, scratch_operands = 5 : i64, tpu.core_type = #tpu.core_type<tc>, window_params = [{transform_indices = @transform_0, window_bounds = array<i64: 1, 4, 17, 17, 128>}, {pipeline_mode = #tpu.pipeline_mode<synchronous>, transform_indices = @transform_1, window_bounds = array<i64: 54, 128, 128>}, {pipeline_mode = #tpu.pipeline_mode<synchronous>, transform_indices = @transform_2, window_bounds = array<i64: 6, 1, 128>}, {pipeline_mode = #tpu.pipeline_mode<synchronous>, transform_indices = @transform_3, window_bounds = array<i64: 128, 128>}, {pipeline_mode = #tpu.pipeline_mode<synchronous>, transform_indices = @transform_4, window_bounds = array<i64: 1, 128>}, {transform_indices = @transform_5, window_bounds = array<i64: 1, 1, 128>}]} {
    %cst = arith.constant 0.000000e+00 : bf16
    %0 = vector.broadcast %cst : bf16 to vector<4x9x9x128xbf16>
    %c0 = arith.constant 0 : index
    %c0_0 = arith.constant 0 : index
    %c0_1 = arith.constant 0 : index
    %c0_2 = arith.constant 0 : index
    %1 = vector.load %arg7[%c0, %c0_0, %c0_1, %c0_2] : memref<4x9x9x128xbf16, #tpu.memory_space<vmem>>, vector<4x9x9x128xbf16>
    tpu.vector_store %arg7[%c0, %c0_0, %c0_1, %c0_2], %0 {strides = array<i32>} : memref<4x9x9x128xbf16, #tpu.memory_space<vmem>>, vector<4x9x9x128xbf16>,
    %cst_3 = arith.constant 0.000000e+00 : bf16
    %2 = vector.broadcast %cst_3 : bf16 to vector<4x5x5x128xbf16>
    %c0_4 = arith.constant 0 : index
    %c0_5 = arith.constant 0 : index
    %c0_6 = arith.constant 0 : index
    %c0_7 = arith.constant 0 : index
    %3 = vector.load %arg8[%c0_4, %c0_5, %c0_6, %c0_7] : memref<4x5x5x128xbf16, #tpu.memory_space<vmem>>, vector<4x5x5x128xbf16>
    tpu.vector_store %arg8[%c0_4, %c0_5, %c0_6, %c0_7], %2 {strides = array<i32>} : memref<4x5x5x128xbf16, #tpu.memory_space<vmem>>, vector<4x5x5x128xbf16>,
    %cst_8 = arith.constant 0.000000e+00 : bf16
    %4 = vector.broadcast %cst_8 : bf16 to vector<6x6x128xbf16>
    %c0_9 = arith.constant 0 : index
    %c0_10 = arith.constant 0 : index
    %c0_11 = arith.constant 0 : index
    %5 = vector.load %arg9[%c0_9, %c0_10, %c0_11] : memref<6x6x128xbf16, #tpu.memory_space<vmem>>, vector<6x6x128xbf16>
    tpu.vector_store %arg9[%c0_9, %c0_10, %c0_11], %4 {strides = array<i32>} : memref<6x6x128xbf16, #tpu.memory_space<vmem>>, vector<6x6x128xbf16>,
    %cst_12 = arith.constant 0.000000e+00 : bf16
    %6 = vector.broadcast %cst_12 : bf16 to vector<4x3x3x128xbf16>
    %c0_13 = arith.constant 0 : index
    %c0_14 = arith.constant 0 : index
    %c0_15 = arith.constant 0 : index
    %c0_16 = arith.constant 0 : index
    %7 = vector.load %arg10[%c0_13, %c0_14, %c0_15, %c0_16] : memref<4x3x3x128xbf16, #tpu.memory_space<vmem>>, vector<4x3x3x128xbf16>
    tpu.vector_store %arg10[%c0_13, %c0_14, %c0_15, %c0_16], %6 {strides = array<i32>} : memref<4x3x3x128xbf16, #tpu.memory_space<vmem>>, vector<4x3x3x128xbf16>,
    %cst_17 = arith.constant 0.000000e+00 : bf16
    %8 = vector.broadcast %cst_17 : bf16 to vector<4x2x2x128xbf16>
    %c0_18 = arith.constant 0 : index
    %c0_19 = arith.constant 0 : index
    %c0_20 = arith.constant 0 : index
    %c0_21 = arith.constant 0 : index
    %9 = vector.load %arg11[%c0_18, %c0_19, %c0_20, %c0_21] : memref<4x2x2x128xbf16, #tpu.memory_space<vmem>>, vector<4x2x2x128xbf16>
    tpu.vector_store %arg11[%c0_18, %c0_19, %c0_20, %c0_21], %8 {strides = array<i32>} : memref<4x2x2x128xbf16, #tpu.memory_space<vmem>>, vector<4x2x2x128xbf16>,
    %c0_22 = arith.constant 0 : index
    %c0_23 = arith.constant 0 : index
    %c0_24 = arith.constant 0 : index
    %10 = vector.load %arg3[%c0_22, %c0_23, %c0_24] : memref<6x1x128xf32, #tpu.memory_space<vmem>>, vector<1x1x128xf32>
    %11 = vector.shape_cast %10 : vector<1x1x128xf32> to vector<1x128xf32>
    %12 = vector.shape_cast %11 : vector<1x128xf32> to vector<1x128xf32>
    %13 = vector.broadcast %12 : vector<1x128xf32> to vector<256x128xf32>
    %c0_25 = arith.constant 0 : index
    %c0_26 = arith.constant 0 : index
    %c0_27 = arith.constant 0 : index
    %c0_28 = arith.constant 0 : index
    %c0_29 = arith.constant 0 : index
    %14 = vector.load %arg1[%c0_25, %c0_26, %c0_27, %c0_28, %c0_29] : memref<1x4x17x17x128xbf16, #tpu.memory_space<vmem>>, vector<1x1x16x16x128xbf16>
    %15 = vector.shape_cast %14 : vector<1x1x16x16x128xbf16> to vector<16x16x128xbf16>
    %16 = vector.shape_cast %15 : vector<16x16x128xbf16> to vector<256x128xbf16>
    %c0_30 = arith.constant 0 : index
    %c0_31 = arith.constant 0 : index
    %c0_32 = arith.constant 0 : index
    %17 = vector.load %arg2[%c0_30, %c0_31, %c0_32] : memref<54x128x128xbf16, #tpu.memory_space<vmem>>, vector<1x128x128xbf16>
    %18 = vector.shape_cast %17 : vector<1x128x128xbf16> to vector<128x128xbf16>
    %cst_33 = arith.constant dense<0.000000e+00> : vector<256x128xf32>
    %19 = tpu.matmul %16, %18, %cst_33 {dimension_numbers = #tpu.dot_dimension_numbers<[1], [0], [0], [1], [0, 0, 1, 1], [], []>} : vector<256x128xbf16>, vector<128x128xbf16>, vector<256x128xf32> -> vector<256x128xf32>
    %20 = arith.addf %13, %19 : vector<256x128xf32>
    %c0_34 = arith.constant 0 : index
    %c1 = arith.constant 1 : index
    %c0_35 = arith.constant 0 : index
    %c0_36 = arith.constant 0 : index
    %c0_37 = arith.constant 0 : index
    %21 = vector.load %arg1[%c0_34, %c1, %c0_35, %c0_36, %c0_37] : memref<1x4x17x17x128xbf16, #tpu.memory_space<vmem>>, vector<1x1x16x16x128xbf16>
    %22 = vector.shape_cast %21 : vector<1x1x16x16x128xbf16> to vector<16x16x128xbf16>
    %23 = vector.shape_cast %22 : vector<16x16x128xbf16> to vector<256x128xbf16>
    %c1_38 = arith.constant 1 : index
    %c0_39 = arith.constant 0 : index
    %c0_40 = arith.constant 0 : index
    %24 = vector.load %arg2[%c1_38, %c0_39, %c0_40] : memref<54x128x128xbf16, #tpu.memory_space<vmem>>, vector<1x128x128xbf16>
    %25 = vector.shape_cast %24 : vector<1x128x128xbf16> to vector<128x128xbf16>
    %cst_41 = arith.constant dense<0.000000e+00> : vector<256x128xf32>
    %26 = tpu.matmul %23, %25, %cst_41 {dimension_numbers = #tpu.dot_dimension_numbers<[1], [0], [0], [1], [0, 0, 1, 1], [], []>} : vector<256x128xbf16>, vector<128x128xbf16>, vector<256x128xf32> -> vector<256x128xf32>
    %27 = arith.addf %20, %26 : vector<256x128xf32>
    %c0_42 = arith.constant 0 : index
    %c0_43 = arith.constant 0 : index
    %c0_44 = arith.constant 0 : index
    %c1_45 = arith.constant 1 : index
    %c0_46 = arith.constant 0 : index
    %28 = vector.load %arg1[%c0_42, %c0_43, %c0_44, %c1_45, %c0_46] : memref<1x4x17x17x128xbf16, #tpu.memory_space<vmem>>, vector<1x1x16x16x128xbf16>
    %29 = vector.shape_cast %28 : vector<1x1x16x16x128xbf16> to vector<16x16x128xbf16>
    %30 = vector.shape_cast %29 : vector<16x16x128xbf16> to vector<256x128xbf16>
    %c2 = arith.constant 2 : index
    %c0_47 = arith.constant 0 : index
    %c0_48 = arith.constant 0 : index
    %31 = vector.load %arg2[%c2, %c0_47, %c0_48] : memref<54x128x128xbf16, #tpu.memory_space<vmem>>, vector<1x128x128xbf16>
    %32 = vector.shape_cast %31 : vector<1x128x128xbf16> to vector<128x128xbf16>
    %cst_49 = arith.constant dense<0.000000e+00> : vector<256x128xf32>
    %33 = tpu.matmul %30, %32, %cst_49 {dimension_numbers = #tpu.dot_dimension_numbers<[1], [0], [0], [1], [0, 0, 1, 1], [], []>} : vector<256x128xbf16>, vector<128x128xbf16>, vector<256x128xf32> -> vector<256x128xf32>
    %34 = arith.addf %27, %33 : vector<256x128xf32>
    %c0_50 = arith.constant 0 : index
    %c2_51 = arith.constant 2 : index
    %c0_52 = arith.constant 0 : index
    %c0_53 = arith.constant 0 : index
    %c0_54 = arith.constant 0 : index
    %35 = vector.load %arg1[%c0_50, %c2_51, %c0_52, %c0_53, %c0_54] : memref<1x4x17x17x128xbf16, #tpu.memory_space<vmem>>, vector<1x1x16x16x128xbf16>
    %36 = vector.shape_cast %35 : vector<1x1x16x16x128xbf16> to vector<16x16x128xbf16>
    %37 = vector.shape_cast %36 : vector<16x16x128xbf16> to vector<256x128xbf16>
    %c3 = arith.constant 3 : index
    %c0_55 = arith.constant 0 : index
    %c0_56 = arith.constant 0 : index
    %38 = vector.load %arg2[%c3, %c0_55, %c0_56] : memref<54x128x128xbf16, #tpu.memory_space<vmem>>, vector<1x128x128xbf16>
    %39 = vector.shape_cast %38 : vector<1x128x128xbf16> to vector<128x128xbf16>
    %cst_57 = arith.constant dense<0.000000e+00> : vector<256x128xf32>
    %40 = tpu.matmul %37, %39, %cst_57 {dimension_numbers = #tpu.dot_dimension_numbers<[1], [0], [0], [1], [0, 0, 1, 1], [], []>} : vector<256x128xbf16>, vector<128x128xbf16>, vector<256x128xf32> -> vector<256x128xf32>
    %41 = arith.addf %34, %40 : vector<256x128xf32>
    %c0_58 = arith.constant 0 : index
    %c3_59 = arith.constant 3 : index
    %c0_60 = arith.constant 0 : index
    %c0_61 = arith.constant 0 : index
    %c0_62 = arith.constant 0 : index
    %42 = vector.load %arg1[%c0_58, %c3_59, %c0_60, %c0_61, %c0_62] : memref<1x4x17x17x128xbf16, #tpu.memory_space<vmem>>, vector<1x1x16x16x128xbf16>
    %43 = vector.shape_cast %42 : vector<1x1x16x16x128xbf16> to vector<16x16x128xbf16>
    %44 = vector.shape_cast %43 : vector<16x16x128xbf16> to vector<256x128xbf16>
    %c4 = arith.constant 4 : index
    %c0_63 = arith.constant 0 : index
    %c0_64 = arith.constant 0 : index
    %45 = vector.load %arg2[%c4, %c0_63, %c0_64] : memref<54x128x128xbf16, #tpu.memory_space<vmem>>, vector<1x128x128xbf16>
    %46 = vector.shape_cast %45 : vector<1x128x128xbf16> to vector<128x128xbf16>
    %cst_65 = arith.constant dense<0.000000e+00> : vector<256x128xf32>
    %47 = tpu.matmul %44, %46, %cst_65 {dimension_numbers = #tpu.dot_dimension_numbers<[1], [0], [0], [1], [0, 0, 1, 1], [], []>} : vector<256x128xbf16>, vector<128x128xbf16>, vector<256x128xf32> -> vector<256x128xf32>
    %48 = arith.addf %41, %47 : vector<256x128xf32>
    %c0_66 = arith.constant 0 : index
    %c2_67 = arith.constant 2 : index
    %c0_68 = arith.constant 0 : index
    %c1_69 = arith.constant 1 : index
    %c0_70 = arith.constant 0 : index
    %49 = vector.load %arg1[%c0_66, %c2_67, %c0_68, %c1_69, %c0_70] : memref<1x4x17x17x128xbf16, #tpu.memory_space<vmem>>, vector<1x1x16x16x128xbf16>
    %50 = vector.shape_cast %49 : vector<1x1x16x16x128xbf16> to vector<16x16x128xbf16>
    %51 = vector.shape_cast %50 : vector<16x16x128xbf16> to vector<256x128xbf16>
    %c5 = arith.constant 5 : index
    %c0_71 = arith.constant 0 : index
    %c0_72 = arith.constant 0 : index
    %52 = vector.load %arg2[%c5, %c0_71, %c0_72] : memref<54x128x128xbf16, #tpu.memory_space<vmem>>, vector<1x128x128xbf16>
    %53 = vector.shape_cast %52 : vector<1x128x128xbf16> to vector<128x128xbf16>
    %cst_73 = arith.constant dense<0.000000e+00> : vector<256x128xf32>
    %54 = tpu.matmul %51, %53, %cst_73 {dimension_numbers = #tpu.dot_dimension_numbers<[1], [0], [0], [1], [0, 0, 1, 1], [], []>} : vector<256x128xbf16>, vector<128x128xbf16>, vector<256x128xf32> -> vector<256x128xf32>
    %55 = arith.addf %48, %54 : vector<256x128xf32>
    %c0_74 = arith.constant 0 : index
    %c0_75 = arith.constant 0 : index
    %c1_76 = arith.constant 1 : index
    %c0_77 = arith.constant 0 : index
    %c0_78 = arith.constant 0 : index
    %56 = vector.load %arg1[%c0_74, %c0_75, %c1_76, %c0_77, %c0_78] : memref<1x4x17x17x128xbf16, #tpu.memory_space<vmem>>, vector<1x1x16x16x128xbf16>
    %57 = vector.shape_cast %56 : vector<1x1x16x16x128xbf16> to vector<16x16x128xbf16>
    %58 = vector.shape_cast %57 : vector<16x16x128xbf16> to vector<256x128xbf16>
    %c6 = arith.constant 6 : index
    %c0_79 = arith.constant 0 : index
    %c0_80 = arith.constant 0 : index
    %59 = vector.load %arg2[%c6, %c0_79, %c0_80] : memref<54x128x128xbf16, #tpu.memory_space<vmem>>, vector<1x128x128xbf16>
    %60 = vector.shape_cast %59 : vector<1x128x128xbf16> to vector<128x128xbf16>
    %cst_81 = arith.constant dense<0.000000e+00> : vector<256x128xf32>
    %61 = tpu.matmul %58, %60, %cst_81 {dimension_numbers = #tpu.dot_dimension_numbers<[1], [0], [0], [1], [0, 0, 1, 1], [], []>} : vector<256x128xbf16>, vector<128x128xbf16>, vector<256x128xf32> -> vector<256x128xf32>
    %62 = arith.addf %55, %61 : vector<256x128xf32>
    %c0_82 = arith.constant 0 : index
    %c1_83 = arith.constant 1 : index
    %c1_84 = arith.constant 1 : index
    %c0_85 = arith.constant 0 : index
    %c0_86 = arith.constant 0 : index
    %63 = vector.load %arg1[%c0_82, %c1_83, %c1_84, %c0_85, %c0_86] : memref<1x4x17x17x128xbf16, #tpu.memory_space<vmem>>, vector<1x1x16x16x128xbf16>
    %64 = vector.shape_cast %63 : vector<1x1x16x16x128xbf16> to vector<16x16x128xbf16>
    %65 = vector.shape_cast %64 : vector<16x16x128xbf16> to vector<256x128xbf16>
    %c7 = arith.constant 7 : index
    %c0_87 = arith.constant 0 : index
    %c0_88 = arith.constant 0 : index
    %66 = vector.load %arg2[%c7, %c0_87, %c0_88] : memref<54x128x128xbf16, #tpu.memory_space<vmem>>, vector<1x128x128xbf16>
    %67 = vector.shape_cast %66 : vector<1x128x128xbf16> to vector<128x128xbf16>
    %cst_89 = arith.constant dense<0.000000e+00> : vector<256x128xf32>
    %68 = tpu.matmul %65, %67, %cst_89 {dimension_numbers = #tpu.dot_dimension_numbers<[1], [0], [0], [1], [0, 0, 1, 1], [], []>} : vector<256x128xbf16>, vector<128x128xbf16>, vector<256x128xf32> -> vector<256x128xf32>
    %69 = arith.addf %62, %68 : vector<256x128xf32>
    %c0_90 = arith.constant 0 : index
    %c0_91 = arith.constant 0 : index
    %c1_92 = arith.constant 1 : index
    %c1_93 = arith.constant 1 : index
    %c0_94 = arith.constant 0 : index
    %70 = vector.load %arg1[%c0_90, %c0_91, %c1_92, %c1_93, %c0_94] : memref<1x4x17x17x128xbf16, #tpu.memory_space<vmem>>, vector<1x1x16x16x128xbf16>
    %71 = vector.shape_cast %70 : vector<1x1x16x16x128xbf16> to vector<16x16x128xbf16>
    %72 = vector.shape_cast %71 : vector<16x16x128xbf16> to vector<256x128xbf16>
    %c8 = arith.constant 8 : index
    %c0_95 = arith.constant 0 : index
    %c0_96 = arith.constant 0 : index
    %73 = vector.load %arg2[%c8, %c0_95, %c0_96] : memref<54x128x128xbf16, #tpu.memory_space<vmem>>, vector<1x128x128xbf16>
    %74 = vector.shape_cast %73 : vector<1x128x128xbf16> to vector<128x128xbf16>
    %cst_97 = arith.constant dense<0.000000e+00> : vector<256x128xf32>
    %75 = tpu.matmul %72, %74, %cst_97 {dimension_numbers = #tpu.dot_dimension_numbers<[1], [0], [0], [1], [0, 0, 1, 1], [], []>} : vector<256x128xbf16>, vector<128x128xbf16>, vector<256x128xf32> -> vector<256x128xf32>
    %76 = arith.addf %69, %75 : vector<256x128xf32>
    %cst_98 = arith.constant 0.000000e+00 : f32
    %77 = vector.broadcast %cst_98 : f32 to vector<256x128xf32>
    %78 = arith.maximumf %76, %77 : vector<256x128xf32>
    %79 = arith.truncf %78 : vector<256x128xf32> to vector<256x128xbf16>
    %80 = vector.shape_cast %79 : vector<256x128xbf16> to vector<8x2x16x128xbf16>
    %81 = vector.extract_strided_slice %80 {offsets = [0, 0, 0, 0], sizes = [8, 1, 16, 128], strides = [1, 1, 1, 1]} : vector<8x2x16x128xbf16> to vector<8x1x16x128xbf16>
    %82 = vector.shape_cast %81 : vector<8x1x16x128xbf16> to vector<8x16x128xbf16>
    %83 = vector.shape_cast %82 : vector<8x16x128xbf16> to vector<8x8x2x128xbf16>
    %84 = vector.extract_strided_slice %83 {offsets = [0, 0, 0, 0], sizes = [8, 8, 1, 128], strides = [1, 1, 1, 1]} : vector<8x8x2x128xbf16> to vector<8x8x1x128xbf16>
    %85 = vector.shape_cast %84 : vector<8x8x1x128xbf16> to vector<8x8x128xbf16>
    %c3_99 = arith.constant 3 : index
    %c0_100 = arith.constant 0 : index
    %c0_101 = arith.constant 0 : index
    %c0_102 = arith.constant 0 : index
    %86 = vector.load %arg7[%c3_99, %c0_100, %c0_101, %c0_102] : memref<4x9x9x128xbf16, #tpu.memory_space<vmem>>, vector<1x8x8x128xbf16>
    %87 = vector.shape_cast %86 : vector<1x8x8x128xbf16> to vector<8x8x128xbf16>
    %88 = vector.shape_cast %85 : vector<8x8x128xbf16> to vector<1x8x8x128xbf16>
    tpu.vector_store %arg7[%c3_99, %c0_100, %c0_101, %c0_102], %88 {strides = array<i32>} : memref<4x9x9x128xbf16, #tpu.memory_space<vmem>>, vector<1x8x8x128xbf16>,
    %89 = vector.extract_strided_slice %83 {offsets = [0, 0, 1, 0], sizes = [8, 8, 1, 128], strides = [1, 1, 1, 1]} : vector<8x8x2x128xbf16> to vector<8x8x1x128xbf16>
    %90 = vector.shape_cast %89 : vector<8x8x1x128xbf16> to vector<8x8x128xbf16>
    %c2_103 = arith.constant 2 : index
    %c0_104 = arith.constant 0 : index
    %c1_105 = arith.constant 1 : index
    %c0_106 = arith.constant 0 : index
    %91 = vector.load %arg7[%c2_103, %c0_104, %c1_105, %c0_106] : memref<4x9x9x128xbf16, #tpu.memory_space<vmem>>, vector<1x8x8x128xbf16>
    %92 = vector.shape_cast %91 : vector<1x8x8x128xbf16> to vector<8x8x128xbf16>
    %93 = vector.shape_cast %90 : vector<8x8x128xbf16> to vector<1x8x8x128xbf16>
    tpu.vector_store %arg7[%c2_103, %c0_104, %c1_105, %c0_106], %93 {strides = array<i32>} : memref<4x9x9x128xbf16, #tpu.memory_space<vmem>>, vector<1x8x8x128xbf16>,
    %94 = vector.extract_strided_slice %80 {offsets = [0, 1, 0, 0], sizes = [8, 1, 16, 128], strides = [1, 1, 1, 1]} : vector<8x2x16x128xbf16> to vector<8x1x16x128xbf16>
    %95 = vector.shape_cast %94 : vector<8x1x16x128xbf16> to vector<8x16x128xbf16>
    %96 = vector.shape_cast %95 : vector<8x16x128xbf16> to vector<8x8x2x128xbf16>
    %97 = vector.extract_strided_slice %96 {offsets = [0, 0, 0, 0], sizes = [8, 8, 1, 128], strides = [1, 1, 1, 1]} : vector<8x8x2x128xbf16> to vector<8x8x1x128xbf16>
    %98 = vector.shape_cast %97 : vector<8x8x1x128xbf16> to vector<8x8x128xbf16>
    %c1_107 = arith.constant 1 : index
    %c1_108 = arith.constant 1 : index
    %c0_109 = arith.constant 0 : index
    %c0_110 = arith.constant 0 : index
    %99 = vector.load %arg7[%c1_107, %c1_108, %c0_109, %c0_110] : memref<4x9x9x128xbf16, #tpu.memory_space<vmem>>, vector<1x8x8x128xbf16>
    %100 = vector.shape_cast %99 : vector<1x8x8x128xbf16> to vector<8x8x128xbf16>
    %101 = vector.shape_cast %98 : vector<8x8x128xbf16> to vector<1x8x8x128xbf16>
    tpu.vector_store %arg7[%c1_107, %c1_108, %c0_109, %c0_110], %101 {strides = array<i32>} : memref<4x9x9x128xbf16, #tpu.memory_space<vmem>>, vector<1x8x8x128xbf16>,
    %102 = vector.extract_strided_slice %96 {offsets = [0, 0, 1, 0], sizes = [8, 8, 1, 128], strides = [1, 1, 1, 1]} : vector<8x8x2x128xbf16> to vector<8x8x1x128xbf16>
    %103 = vector.shape_cast %102 : vector<8x8x1x128xbf16> to vector<8x8x128xbf16>
    %c0_111 = arith.constant 0 : index
    %c1_112 = arith.constant 1 : index
    %c1_113 = arith.constant 1 : index
    %c0_114 = arith.constant 0 : index
    %104 = vector.load %arg7[%c0_111, %c1_112, %c1_113, %c0_114] : memref<4x9x9x128xbf16, #tpu.memory_space<vmem>>, vector<1x8x8x128xbf16>
    %105 = vector.shape_cast %104 : vector<1x8x8x128xbf16> to vector<8x8x128xbf16>
    %106 = vector.shape_cast %103 : vector<8x8x128xbf16> to vector<1x8x8x128xbf16>
    tpu.vector_store %arg7[%c0_111, %c1_112, %c1_113, %c0_114], %106 {strides = array<i32>} : memref<4x9x9x128xbf16, #tpu.memory_space<vmem>>, vector<1x8x8x128xbf16>,
    %c1_115 = arith.constant 1 : index
    %c0_116 = arith.constant 0 : index
    %c0_117 = arith.constant 0 : index
    %107 = vector.load %arg3[%c1_115, %c0_116, %c0_117] : memref<6x1x128xf32, #tpu.memory_space<vmem>>, vector<1x1x128xf32>
    %108 = vector.shape_cast %107 : vector<1x1x128xf32> to vector<1x128xf32>
    %109 = vector.shape_cast %108 : vector<1x128xf32> to vector<1x128xf32>
    %110 = vector.broadcast %109 : vector<1x128xf32> to vector<64x128xf32>
    %c0_118 = arith.constant 0 : index
    %c0_119 = arith.constant 0 : index
    %c0_120 = arith.constant 0 : index
    %c0_121 = arith.constant 0 : index
    %111 = vector.load %arg7[%c0_118, %c0_119, %c0_120, %c0_121] : memref<4x9x9x128xbf16, #tpu.memory_space<vmem>>, vector<1x8x8x128xbf16>
    %112 = vector.shape_cast %111 : vector<1x8x8x128xbf16> to vector<8x8x128xbf16>
    %113 = vector.shape_cast %112 : vector<8x8x128xbf16> to vector<64x128xbf16>
    %c9 = arith.constant 9 : index
    %c0_122 = arith.constant 0 : index
    %c0_123 = arith.constant 0 : index
    %114 = vector.load %arg2[%c9, %c0_122, %c0_123] : memref<54x128x128xbf16, #tpu.memory_space<vmem>>, vector<1x128x128xbf16>
    %115 = vector.shape_cast %114 : vector<1x128x128xbf16> to vector<128x128xbf16>
    %cst_124 = arith.constant dense<0.000000e+00> : vector<64x128xf32>
    %116 = tpu.matmul %113, %115, %cst_124 {dimension_numbers = #tpu.dot_dimension_numbers<[1], [0], [0], [1], [0, 0, 1, 1], [], []>} : vector<64x128xbf16>, vector<128x128xbf16>, vector<64x128xf32> -> vector<64x128xf32>
    %117 = arith.addf %110, %116 : vector<64x128xf32>
    %c1_125 = arith.constant 1 : index
    %c0_126 = arith.constant 0 : index
    %c0_127 = arith.constant 0 : index
    %c0_128 = arith.constant 0 : index
    %118 = vector.load %arg7[%c1_125, %c0_126, %c0_127, %c0_128] : memref<4x9x9x128xbf16, #tpu.memory_space<vmem>>, vector<1x8x8x128xbf16>
    %119 = vector.shape_cast %118 : vector<1x8x8x128xbf16> to vector<8x8x128xbf16>
    %120 = vector.shape_cast %119 : vector<8x8x128xbf16> to vector<64x128xbf16>
    %c10 = arith.constant 10 : index
    %c0_129 = arith.constant 0 : index
    %c0_130 = arith.constant 0 : index
    %121 = vector.load %arg2[%c10, %c0_129, %c0_130] : memref<54x128x128xbf16, #tpu.memory_space<vmem>>, vector<1x128x128xbf16>
    %122 = vector.shape_cast %121 : vector<1x128x128xbf16> to vector<128x128xbf16>
    %cst_131 = arith.constant dense<0.000000e+00> : vector<64x128xf32>
    %123 = tpu.matmul %120, %122, %cst_131 {dimension_numbers = #tpu.dot_dimension_numbers<[1], [0], [0], [1], [0, 0, 1, 1], [], []>} : vector<64x128xbf16>, vector<128x128xbf16>, vector<64x128xf32> -> vector<64x128xf32>
    %124 = arith.addf %117, %123 : vector<64x128xf32>
    %c0_132 = arith.constant 0 : index
    %c0_133 = arith.constant 0 : index
    %c1_134 = arith.constant 1 : index
    %c0_135 = arith.constant 0 : index
    %125 = vector.load %arg7[%c0_132, %c0_133, %c1_134, %c0_135] : memref<4x9x9x128xbf16, #tpu.memory_space<vmem>>, vector<1x8x8x128xbf16>
    %126 = vector.shape_cast %125 : vector<1x8x8x128xbf16> to vector<8x8x128xbf16>
    %127 = vector.shape_cast %126 : vector<8x8x128xbf16> to vector<64x128xbf16>
    %c11 = arith.constant 11 : index
    %c0_136 = arith.constant 0 : index
    %c0_137 = arith.constant 0 : index
    %128 = vector.load %arg2[%c11, %c0_136, %c0_137] : memref<54x128x128xbf16, #tpu.memory_space<vmem>>, vector<1x128x128xbf16>
    %129 = vector.shape_cast %128 : vector<1x128x128xbf16> to vector<128x128xbf16>
    %cst_138 = arith.constant dense<0.000000e+00> : vector<64x128xf32>
    %130 = tpu.matmul %127, %129, %cst_138 {dimension_numbers = #tpu.dot_dimension_numbers<[1], [0], [0], [1], [0, 0, 1, 1], [], []>} : vector<64x128xbf16>, vector<128x128xbf16>, vector<64x128xf32> -> vector<64x128xf32>
    %131 = arith.addf %124, %130 : vector<64x128xf32>
    %c2_139 = arith.constant 2 : index
    %c0_140 = arith.constant 0 : index
    %c0_141 = arith.constant 0 : index
    %c0_142 = arith.constant 0 : index
    %132 = vector.load %arg7[%c2_139, %c0_140, %c0_141, %c0_142] : memref<4x9x9x128xbf16, #tpu.memory_space<vmem>>, vector<1x8x8x128xbf16>
    %133 = vector.shape_cast %132 : vector<1x8x8x128xbf16> to vector<8x8x128xbf16>
    %134 = vector.shape_cast %133 : vector<8x8x128xbf16> to vector<64x128xbf16>
    %c12 = arith.constant 12 : index
    %c0_143 = arith.constant 0 : index
    %c0_144 = arith.constant 0 : index
    %135 = vector.load %arg2[%c12, %c0_143, %c0_144] : memref<54x128x128xbf16, #tpu.memory_space<vmem>>, vector<1x128x128xbf16>
    %136 = vector.shape_cast %135 : vector<1x128x128xbf16> to vector<128x128xbf16>
    %cst_145 = arith.constant dense<0.000000e+00> : vector<64x128xf32>
    %137 = tpu.matmul %134, %136, %cst_145 {dimension_numbers = #tpu.dot_dimension_numbers<[1], [0], [0], [1], [0, 0, 1, 1], [], []>} : vector<64x128xbf16>, vector<128x128xbf16>, vector<64x128xf32> -> vector<64x128xf32>
    %138 = arith.addf %131, %137 : vector<64x128xf32>
    %c3_146 = arith.constant 3 : index
    %c0_147 = arith.constant 0 : index
    %c0_148 = arith.constant 0 : index
    %c0_149 = arith.constant 0 : index
    %139 = vector.load %arg7[%c3_146, %c0_147, %c0_148, %c0_149] : memref<4x9x9x128xbf16, #tpu.memory_space<vmem>>, vector<1x8x8x128xbf16>
    %140 = vector.shape_cast %139 : vector<1x8x8x128xbf16> to vector<8x8x128xbf16>
    %141 = vector.shape_cast %140 : vector<8x8x128xbf16> to vector<64x128xbf16>
    %c13 = arith.constant 13 : index
    %c0_150 = arith.constant 0 : index
    %c0_151 = arith.constant 0 : index
    %142 = vector.load %arg2[%c13, %c0_150, %c0_151] : memref<54x128x128xbf16, #tpu.memory_space<vmem>>, vector<1x128x128xbf16>
    %143 = vector.shape_cast %142 : vector<1x128x128xbf16> to vector<128x128xbf16>
    %cst_152 = arith.constant dense<0.000000e+00> : vector<64x128xf32>
    %144 = tpu.matmul %141, %143, %cst_152 {dimension_numbers = #tpu.dot_dimension_numbers<[1], [0], [0], [1], [0, 0, 1, 1], [], []>} : vector<64x128xbf16>, vector<128x128xbf16>, vector<64x128xf32> -> vector<64x128xf32>
    %145 = arith.addf %138, %144 : vector<64x128xf32>
    %c2_153 = arith.constant 2 : index
    %c0_154 = arith.constant 0 : index
    %c1_155 = arith.constant 1 : index
    %c0_156 = arith.constant 0 : index
    %146 = vector.load %arg7[%c2_153, %c0_154, %c1_155, %c0_156] : memref<4x9x9x128xbf16, #tpu.memory_space<vmem>>, vector<1x8x8x128xbf16>
    %147 = vector.shape_cast %146 : vector<1x8x8x128xbf16> to vector<8x8x128xbf16>
    %148 = vector.shape_cast %147 : vector<8x8x128xbf16> to vector<64x128xbf16>
    %c14 = arith.constant 14 : index
    %c0_157 = arith.constant 0 : index
    %c0_158 = arith.constant 0 : index
    %149 = vector.load %arg2[%c14, %c0_157, %c0_158] : memref<54x128x128xbf16, #tpu.memory_space<vmem>>, vector<1x128x128xbf16>
    %150 = vector.shape_cast %149 : vector<1x128x128xbf16> to vector<128x128xbf16>
    %cst_159 = arith.constant dense<0.000000e+00> : vector<64x128xf32>
    %151 = tpu.matmul %148, %150, %cst_159 {dimension_numbers = #tpu.dot_dimension_numbers<[1], [0], [0], [1], [0, 0, 1, 1], [], []>} : vector<64x128xbf16>, vector<128x128xbf16>, vector<64x128xf32> -> vector<64x128xf32>
    %152 = arith.addf %145, %151 : vector<64x128xf32>
    %c0_160 = arith.constant 0 : index
    %c1_161 = arith.constant 1 : index
    %c0_162 = arith.constant 0 : index
    %c0_163 = arith.constant 0 : index
    %153 = vector.load %arg7[%c0_160, %c1_161, %c0_162, %c0_163] : memref<4x9x9x128xbf16, #tpu.memory_space<vmem>>, vector<1x8x8x128xbf16>
    %154 = vector.shape_cast %153 : vector<1x8x8x128xbf16> to vector<8x8x128xbf16>
    %155 = vector.shape_cast %154 : vector<8x8x128xbf16> to vector<64x128xbf16>
    %c15 = arith.constant 15 : index
    %c0_164 = arith.constant 0 : index
    %c0_165 = arith.constant 0 : index
    %156 = vector.load %arg2[%c15, %c0_164, %c0_165] : memref<54x128x128xbf16, #tpu.memory_space<vmem>>, vector<1x128x128xbf16>
    %157 = vector.shape_cast %156 : vector<1x128x128xbf16> to vector<128x128xbf16>
    %cst_166 = arith.constant dense<0.000000e+00> : vector<64x128xf32>
    %158 = tpu.matmul %155, %157, %cst_166 {dimension_numbers = #tpu.dot_dimension_numbers<[1], [0], [0], [1], [0, 0, 1, 1], [], []>} : vector<64x128xbf16>, vector<128x128xbf16>, vector<64x128xf32> -> vector<64x128xf32>
    %159 = arith.addf %152, %158 : vector<64x128xf32>
    %c1_167 = arith.constant 1 : index
    %c1_168 = arith.constant 1 : index
    %c0_169 = arith.constant 0 : index
    %c0_170 = arith.constant 0 : index
    %160 = vector.load %arg7[%c1_167, %c1_168, %c0_169, %c0_170] : memref<4x9x9x128xbf16, #tpu.memory_space<vmem>>, vector<1x8x8x128xbf16>
    %161 = vector.shape_cast %160 : vector<1x8x8x128xbf16> to vector<8x8x128xbf16>
    %162 = vector.shape_cast %161 : vector<8x8x128xbf16> to vector<64x128xbf16>
    %c16 = arith.constant 16 : index
    %c0_171 = arith.constant 0 : index
    %c0_172 = arith.constant 0 : index
    %163 = vector.load %arg2[%c16, %c0_171, %c0_172] : memref<54x128x128xbf16, #tpu.memory_space<vmem>>, vector<1x128x128xbf16>
    %164 = vector.shape_cast %163 : vector<1x128x128xbf16> to vector<128x128xbf16>
    %cst_173 = arith.constant dense<0.000000e+00> : vector<64x128xf32>
    %165 = tpu.matmul %162, %164, %cst_173 {dimension_numbers = #tpu.dot_dimension_numbers<[1], [0], [0], [1], [0, 0, 1, 1], [], []>} : vector<64x128xbf16>, vector<128x128xbf16>, vector<64x128xf32> -> vector<64x128xf32>
    %166 = arith.addf %159, %165 : vector<64x128xf32>
    %c0_174 = arith.constant 0 : index
    %c1_175 = arith.constant 1 : index
    %c1_176 = arith.constant 1 : index
    %c0_177 = arith.constant 0 : index
    %167 = vector.load %arg7[%c0_174, %c1_175, %c1_176, %c0_177] : memref<4x9x9x128xbf16, #tpu.memory_space<vmem>>, vector<1x8x8x128xbf16>
    %168 = vector.shape_cast %167 : vector<1x8x8x128xbf16> to vector<8x8x128xbf16>
    %169 = vector.shape_cast %168 : vector<8x8x128xbf16> to vector<64x128xbf16>
    %c17 = arith.constant 17 : index
    %c0_178 = arith.constant 0 : index
    %c0_179 = arith.constant 0 : index
    %170 = vector.load %arg2[%c17, %c0_178, %c0_179] : memref<54x128x128xbf16, #tpu.memory_space<vmem>>, vector<1x128x128xbf16>
    %171 = vector.shape_cast %170 : vector<1x128x128xbf16> to vector<128x128xbf16>
    %cst_180 = arith.constant dense<0.000000e+00> : vector<64x128xf32>
    %172 = tpu.matmul %169, %171, %cst_180 {dimension_numbers = #tpu.dot_dimension_numbers<[1], [0], [0], [1], [0, 0, 1, 1], [], []>} : vector<64x128xbf16>, vector<128x128xbf16>, vector<64x128xf32> -> vector<64x128xf32>
    %173 = arith.addf %166, %172 : vector<64x128xf32>
    %cst_181 = arith.constant 0.000000e+00 : f32
    %174 = vector.broadcast %cst_181 : f32 to vector<64x128xf32>
    %175 = arith.maximumf %173, %174 : vector<64x128xf32>
    %176 = arith.truncf %175 : vector<64x128xf32> to vector<64x128xbf16>
    %177 = vector.shape_cast %176 : vector<64x128xbf16> to vector<4x2x8x128xbf16>
    %178 = vector.extract_strided_slice %177 {offsets = [0, 0, 0, 0], sizes = [4, 1, 8, 128], strides = [1, 1, 1, 1]} : vector<4x2x8x128xbf16> to vector<4x1x8x128xbf16>
    %179 = vector.shape_cast %178 : vector<4x1x8x128xbf16> to vector<4x8x128xbf16>
    %180 = vector.shape_cast %179 : vector<4x8x128xbf16> to vector<4x4x2x128xbf16>
    %181 = vector.extract_strided_slice %180 {offsets = [0, 0, 0, 0], sizes = [4, 4, 1, 128], strides = [1, 1, 1, 1]} : vector<4x4x2x128xbf16> to vector<4x4x1x128xbf16>
    %182 = vector.shape_cast %181 : vector<4x4x1x128xbf16> to vector<4x4x128xbf16>
    %c3_182 = arith.constant 3 : index
    %c0_183 = arith.constant 0 : index
    %c0_184 = arith.constant 0 : index
    %c0_185 = arith.constant 0 : index
    %183 = vector.load %arg8[%c3_182, %c0_183, %c0_184, %c0_185] : memref<4x5x5x128xbf16, #tpu.memory_space<vmem>>, vector<1x4x4x128xbf16>
    %184 = vector.shape_cast %183 : vector<1x4x4x128xbf16> to vector<4x4x128xbf16>
    %185 = vector.shape_cast %182 : vector<4x4x128xbf16> to vector<1x4x4x128xbf16>
    tpu.vector_store %arg8[%c3_182, %c0_183, %c0_184, %c0_185], %185 {strides = array<i32>} : memref<4x5x5x128xbf16, #tpu.memory_space<vmem>>, vector<1x4x4x128xbf16>,
    %186 = vector.extract_strided_slice %180 {offsets = [0, 0, 1, 0], sizes = [4, 4, 1, 128], strides = [1, 1, 1, 1]} : vector<4x4x2x128xbf16> to vector<4x4x1x128xbf16>
    %187 = vector.shape_cast %186 : vector<4x4x1x128xbf16> to vector<4x4x128xbf16>
    %c2_186 = arith.constant 2 : index
    %c0_187 = arith.constant 0 : index
    %c1_188 = arith.constant 1 : index
    %c0_189 = arith.constant 0 : index
    %188 = vector.load %arg8[%c2_186, %c0_187, %c1_188, %c0_189] : memref<4x5x5x128xbf16, #tpu.memory_space<vmem>>, vector<1x4x4x128xbf16>
    %189 = vector.shape_cast %188 : vector<1x4x4x128xbf16> to vector<4x4x128xbf16>
    %190 = vector.shape_cast %187 : vector<4x4x128xbf16> to vector<1x4x4x128xbf16>
    tpu.vector_store %arg8[%c2_186, %c0_187, %c1_188, %c0_189], %190 {strides = array<i32>} : memref<4x5x5x128xbf16, #tpu.memory_space<vmem>>, vector<1x4x4x128xbf16>,
    %191 = vector.extract_strided_slice %177 {offsets = [0, 1, 0, 0], sizes = [4, 1, 8, 128], strides = [1, 1, 1, 1]} : vector<4x2x8x128xbf16> to vector<4x1x8x128xbf16>
    %192 = vector.shape_cast %191 : vector<4x1x8x128xbf16> to vector<4x8x128xbf16>
    %193 = vector.shape_cast %192 : vector<4x8x128xbf16> to vector<4x4x2x128xbf16>
    %194 = vector.extract_strided_slice %193 {offsets = [0, 0, 0, 0], sizes = [4, 4, 1, 128], strides = [1, 1, 1, 1]} : vector<4x4x2x128xbf16> to vector<4x4x1x128xbf16>
    %195 = vector.shape_cast %194 : vector<4x4x1x128xbf16> to vector<4x4x128xbf16>
    %c1_190 = arith.constant 1 : index
    %c1_191 = arith.constant 1 : index
    %c0_192 = arith.constant 0 : index
    %c0_193 = arith.constant 0 : index
    %196 = vector.load %arg8[%c1_190, %c1_191, %c0_192, %c0_193] : memref<4x5x5x128xbf16, #tpu.memory_space<vmem>>, vector<1x4x4x128xbf16>
    %197 = vector.shape_cast %196 : vector<1x4x4x128xbf16> to vector<4x4x128xbf16>
    %198 = vector.shape_cast %195 : vector<4x4x128xbf16> to vector<1x4x4x128xbf16>
    tpu.vector_store %arg8[%c1_190, %c1_191, %c0_192, %c0_193], %198 {strides = array<i32>} : memref<4x5x5x128xbf16, #tpu.memory_space<vmem>>, vector<1x4x4x128xbf16>,
    %199 = vector.extract_strided_slice %193 {offsets = [0, 0, 1, 0], sizes = [4, 4, 1, 128], strides = [1, 1, 1, 1]} : vector<4x4x2x128xbf16> to vector<4x4x1x128xbf16>
    %200 = vector.shape_cast %199 : vector<4x4x1x128xbf16> to vector<4x4x128xbf16>
    %c0_194 = arith.constant 0 : index
    %c1_195 = arith.constant 1 : index
    %c1_196 = arith.constant 1 : index
    %c0_197 = arith.constant 0 : index
    %201 = vector.load %arg8[%c0_194, %c1_195, %c1_196, %c0_197] : memref<4x5x5x128xbf16, #tpu.memory_space<vmem>>, vector<1x4x4x128xbf16>
    %202 = vector.shape_cast %201 : vector<1x4x4x128xbf16> to vector<4x4x128xbf16>
    %203 = vector.shape_cast %200 : vector<4x4x128xbf16> to vector<1x4x4x128xbf16>
    tpu.vector_store %arg8[%c0_194, %c1_195, %c1_196, %c0_197], %203 {strides = array<i32>} : memref<4x5x5x128xbf16, #tpu.memory_space<vmem>>, vector<1x4x4x128xbf16>,
    %c2_198 = arith.constant 2 : index
    %c0_199 = arith.constant 0 : index
    %c0_200 = arith.constant 0 : index
    %204 = vector.load %arg3[%c2_198, %c0_199, %c0_200] : memref<6x1x128xf32, #tpu.memory_space<vmem>>, vector<1x1x128xf32>
    %205 = vector.shape_cast %204 : vector<1x1x128xf32> to vector<1x128xf32>
    %206 = vector.shape_cast %205 : vector<1x128xf32> to vector<1x128xf32>
    %207 = vector.broadcast %206 : vector<1x128xf32> to vector<16x128xf32>
    %c0_201 = arith.constant 0 : index
    %c0_202 = arith.constant 0 : index
    %c0_203 = arith.constant 0 : index
    %c0_204 = arith.constant 0 : index
    %208 = vector.load %arg8[%c0_201, %c0_202, %c0_203, %c0_204] : memref<4x5x5x128xbf16, #tpu.memory_space<vmem>>, vector<1x4x4x128xbf16>
    %209 = vector.shape_cast %208 : vector<1x4x4x128xbf16> to vector<4x4x128xbf16>
    %210 = vector.shape_cast %209 : vector<4x4x128xbf16> to vector<16x128xbf16>
    %c18 = arith.constant 18 : index
    %c0_205 = arith.constant 0 : index
    %c0_206 = arith.constant 0 : index
    %211 = vector.load %arg2[%c18, %c0_205, %c0_206] : memref<54x128x128xbf16, #tpu.memory_space<vmem>>, vector<1x128x128xbf16>
    %212 = vector.shape_cast %211 : vector<1x128x128xbf16> to vector<128x128xbf16>
    %cst_207 = arith.constant dense<0.000000e+00> : vector<16x128xf32>
    %213 = tpu.matmul %210, %212, %cst_207 {dimension_numbers = #tpu.dot_dimension_numbers<[1], [0], [0], [1], [0, 0, 1, 1], [], []>} : vector<16x128xbf16>, vector<128x128xbf16>, vector<16x128xf32> -> vector<16x128xf32>
    %214 = arith.addf %207, %213 : vector<16x128xf32>
    %c1_208 = arith.constant 1 : index
    %c0_209 = arith.constant 0 : index
    %c0_210 = arith.constant 0 : index
    %c0_211 = arith.constant 0 : index
    %215 = vector.load %arg8[%c1_208, %c0_209, %c0_210, %c0_211] : memref<4x5x5x128xbf16, #tpu.memory_space<vmem>>, vector<1x4x4x128xbf16>
    %216 = vector.shape_cast %215 : vector<1x4x4x128xbf16> to vector<4x4x128xbf16>
    %217 = vector.shape_cast %216 : vector<4x4x128xbf16> to vector<16x128xbf16>
    %c19 = arith.constant 19 : index
    %c0_212 = arith.constant 0 : index
    %c0_213 = arith.constant 0 : index
    %218 = vector.load %arg2[%c19, %c0_212, %c0_213] : memref<54x128x128xbf16, #tpu.memory_space<vmem>>, vector<1x128x128xbf16>
    %219 = vector.shape_cast %218 : vector<1x128x128xbf16> to vector<128x128xbf16>
    %cst_214 = arith.constant dense<0.000000e+00> : vector<16x128xf32>
    %220 = tpu.matmul %217, %219, %cst_214 {dimension_numbers = #tpu.dot_dimension_numbers<[1], [0], [0], [1], [0, 0, 1, 1], [], []>} : vector<16x128xbf16>, vector<128x128xbf16>, vector<16x128xf32> -> vector<16x128xf32>
    %221 = arith.addf %214, %220 : vector<16x128xf32>
    %c0_215 = arith.constant 0 : index
    %c0_216 = arith.constant 0 : index
    %c1_217 = arith.constant 1 : index
    %c0_218 = arith.constant 0 : index
    %222 = vector.load %arg8[%c0_215, %c0_216, %c1_217, %c0_218] : memref<4x5x5x128xbf16, #tpu.memory_space<vmem>>, vector<1x4x4x128xbf16>
    %223 = vector.shape_cast %222 : vector<1x4x4x128xbf16> to vector<4x4x128xbf16>
    %224 = vector.shape_cast %223 : vector<4x4x128xbf16> to vector<16x128xbf16>
    %c20 = arith.constant 20 : index
    %c0_219 = arith.constant 0 : index
    %c0_220 = arith.constant 0 : index
    %225 = vector.load %arg2[%c20, %c0_219, %c0_220] : memref<54x128x128xbf16, #tpu.memory_space<vmem>>, vector<1x128x128xbf16>
    %226 = vector.shape_cast %225 : vector<1x128x128xbf16> to vector<128x128xbf16>
    %cst_221 = arith.constant dense<0.000000e+00> : vector<16x128xf32>
    %227 = tpu.matmul %224, %226, %cst_221 {dimension_numbers = #tpu.dot_dimension_numbers<[1], [0], [0], [1], [0, 0, 1, 1], [], []>} : vector<16x128xbf16>, vector<128x128xbf16>, vector<16x128xf32> -> vector<16x128xf32>
    %228 = arith.addf %221, %227 : vector<16x128xf32>
    %c2_222 = arith.constant 2 : index
    %c0_223 = arith.constant 0 : index
    %c0_224 = arith.constant 0 : index
    %c0_225 = arith.constant 0 : index
    %229 = vector.load %arg8[%c2_222, %c0_223, %c0_224, %c0_225] : memref<4x5x5x128xbf16, #tpu.memory_space<vmem>>, vector<1x4x4x128xbf16>
    %230 = vector.shape_cast %229 : vector<1x4x4x128xbf16> to vector<4x4x128xbf16>
    %231 = vector.shape_cast %230 : vector<4x4x128xbf16> to vector<16x128xbf16>
    %c21 = arith.constant 21 : index
    %c0_226 = arith.constant 0 : index
    %c0_227 = arith.constant 0 : index
    %232 = vector.load %arg2[%c21, %c0_226, %c0_227] : memref<54x128x128xbf16, #tpu.memory_space<vmem>>, vector<1x128x128xbf16>
    %233 = vector.shape_cast %232 : vector<1x128x128xbf16> to vector<128x128xbf16>
    %cst_228 = arith.constant dense<0.000000e+00> : vector<16x128xf32>
    %234 = tpu.matmul %231, %233, %cst_228 {dimension_numbers = #tpu.dot_dimension_numbers<[1], [0], [0], [1], [0, 0, 1, 1], [], []>} : vector<16x128xbf16>, vector<128x128xbf16>, vector<16x128xf32> -> vector<16x128xf32>
    %235 = arith.addf %228, %234 : vector<16x128xf32>
    %c3_229 = arith.constant 3 : index
    %c0_230 = arith.constant 0 : index
    %c0_231 = arith.constant 0 : index
    %c0_232 = arith.constant 0 : index
    %236 = vector.load %arg8[%c3_229, %c0_230, %c0_231, %c0_232] : memref<4x5x5x128xbf16, #tpu.memory_space<vmem>>, vector<1x4x4x128xbf16>
    %237 = vector.shape_cast %236 : vector<1x4x4x128xbf16> to vector<4x4x128xbf16>
    %238 = vector.shape_cast %237 : vector<4x4x128xbf16> to vector<16x128xbf16>
    %c22 = arith.constant 22 : index
    %c0_233 = arith.constant 0 : index
    %c0_234 = arith.constant 0 : index
    %239 = vector.load %arg2[%c22, %c0_233, %c0_234] : memref<54x128x128xbf16, #tpu.memory_space<vmem>>, vector<1x128x128xbf16>
    %240 = vector.shape_cast %239 : vector<1x128x128xbf16> to vector<128x128xbf16>
    %cst_235 = arith.constant dense<0.000000e+00> : vector<16x128xf32>
    %241 = tpu.matmul %238, %240, %cst_235 {dimension_numbers = #tpu.dot_dimension_numbers<[1], [0], [0], [1], [0, 0, 1, 1], [], []>} : vector<16x128xbf16>, vector<128x128xbf16>, vector<16x128xf32> -> vector<16x128xf32>
    %242 = arith.addf %235, %241 : vector<16x128xf32>
    %c2_236 = arith.constant 2 : index
    %c0_237 = arith.constant 0 : index
    %c1_238 = arith.constant 1 : index
    %c0_239 = arith.constant 0 : index
    %243 = vector.load %arg8[%c2_236, %c0_237, %c1_238, %c0_239] : memref<4x5x5x128xbf16, #tpu.memory_space<vmem>>, vector<1x4x4x128xbf16>
    %244 = vector.shape_cast %243 : vector<1x4x4x128xbf16> to vector<4x4x128xbf16>
    %245 = vector.shape_cast %244 : vector<4x4x128xbf16> to vector<16x128xbf16>
    %c23 = arith.constant 23 : index
    %c0_240 = arith.constant 0 : index
    %c0_241 = arith.constant 0 : index
    %246 = vector.load %arg2[%c23, %c0_240, %c0_241] : memref<54x128x128xbf16, #tpu.memory_space<vmem>>, vector<1x128x128xbf16>
    %247 = vector.shape_cast %246 : vector<1x128x128xbf16> to vector<128x128xbf16>
    %cst_242 = arith.constant dense<0.000000e+00> : vector<16x128xf32>
    %248 = tpu.matmul %245, %247, %cst_242 {dimension_numbers = #tpu.dot_dimension_numbers<[1], [0], [0], [1], [0, 0, 1, 1], [], []>} : vector<16x128xbf16>, vector<128x128xbf16>, vector<16x128xf32> -> vector<16x128xf32>
    %249 = arith.addf %242, %248 : vector<16x128xf32>
    %c0_243 = arith.constant 0 : index
    %c1_244 = arith.constant 1 : index
    %c0_245 = arith.constant 0 : index
    %c0_246 = arith.constant 0 : index
    %250 = vector.load %arg8[%c0_243, %c1_244, %c0_245, %c0_246] : memref<4x5x5x128xbf16, #tpu.memory_space<vmem>>, vector<1x4x4x128xbf16>
    %251 = vector.shape_cast %250 : vector<1x4x4x128xbf16> to vector<4x4x128xbf16>
    %252 = vector.shape_cast %251 : vector<4x4x128xbf16> to vector<16x128xbf16>
    %c24 = arith.constant 24 : index
    %c0_247 = arith.constant 0 : index
    %c0_248 = arith.constant 0 : index
    %253 = vector.load %arg2[%c24, %c0_247, %c0_248] : memref<54x128x128xbf16, #tpu.memory_space<vmem>>, vector<1x128x128xbf16>
    %254 = vector.shape_cast %253 : vector<1x128x128xbf16> to vector<128x128xbf16>
    %cst_249 = arith.constant dense<0.000000e+00> : vector<16x128xf32>
    %255 = tpu.matmul %252, %254, %cst_249 {dimension_numbers = #tpu.dot_dimension_numbers<[1], [0], [0], [1], [0, 0, 1, 1], [], []>} : vector<16x128xbf16>, vector<128x128xbf16>, vector<16x128xf32> -> vector<16x128xf32>
    %256 = arith.addf %249, %255 : vector<16x128xf32>
    %c1_250 = arith.constant 1 : index
    %c1_251 = arith.constant 1 : index
    %c0_252 = arith.constant 0 : index
    %c0_253 = arith.constant 0 : index
    %257 = vector.load %arg8[%c1_250, %c1_251, %c0_252, %c0_253] : memref<4x5x5x128xbf16, #tpu.memory_space<vmem>>, vector<1x4x4x128xbf16>
    %258 = vector.shape_cast %257 : vector<1x4x4x128xbf16> to vector<4x4x128xbf16>
    %259 = vector.shape_cast %258 : vector<4x4x128xbf16> to vector<16x128xbf16>
    %c25 = arith.constant 25 : index
    %c0_254 = arith.constant 0 : index
    %c0_255 = arith.constant 0 : index
    %260 = vector.load %arg2[%c25, %c0_254, %c0_255] : memref<54x128x128xbf16, #tpu.memory_space<vmem>>, vector<1x128x128xbf16>
    %261 = vector.shape_cast %260 : vector<1x128x128xbf16> to vector<128x128xbf16>
    %cst_256 = arith.constant dense<0.000000e+00> : vector<16x128xf32>
    %262 = tpu.matmul %259, %261, %cst_256 {dimension_numbers = #tpu.dot_dimension_numbers<[1], [0], [0], [1], [0, 0, 1, 1], [], []>} : vector<16x128xbf16>, vector<128x128xbf16>, vector<16x128xf32> -> vector<16x128xf32>
    %263 = arith.addf %256, %262 : vector<16x128xf32>
    %c0_257 = arith.constant 0 : index
    %c1_258 = arith.constant 1 : index
    %c1_259 = arith.constant 1 : index
    %c0_260 = arith.constant 0 : index
    %264 = vector.load %arg8[%c0_257, %c1_258, %c1_259, %c0_260] : memref<4x5x5x128xbf16, #tpu.memory_space<vmem>>, vector<1x4x4x128xbf16>
    %265 = vector.shape_cast %264 : vector<1x4x4x128xbf16> to vector<4x4x128xbf16>
    %266 = vector.shape_cast %265 : vector<4x4x128xbf16> to vector<16x128xbf16>
    %c26 = arith.constant 26 : index
    %c0_261 = arith.constant 0 : index
    %c0_262 = arith.constant 0 : index
    %267 = vector.load %arg2[%c26, %c0_261, %c0_262] : memref<54x128x128xbf16, #tpu.memory_space<vmem>>, vector<1x128x128xbf16>
    %268 = vector.shape_cast %267 : vector<1x128x128xbf16> to vector<128x128xbf16>
    %cst_263 = arith.constant dense<0.000000e+00> : vector<16x128xf32>
    %269 = tpu.matmul %266, %268, %cst_263 {dimension_numbers = #tpu.dot_dimension_numbers<[1], [0], [0], [1], [0, 0, 1, 1], [], []>} : vector<16x128xbf16>, vector<128x128xbf16>, vector<16x128xf32> -> vector<16x128xf32>
    %270 = arith.addf %263, %269 : vector<16x128xf32>
    %cst_264 = arith.constant 0.000000e+00 : f32
    %271 = vector.broadcast %cst_264 : f32 to vector<16x128xf32>
    %272 = arith.maximumf %270, %271 : vector<16x128xf32>
    %273 = arith.truncf %272 : vector<16x128xf32> to vector<16x128xbf16>
    %274 = vector.shape_cast %273 : vector<16x128xbf16> to vector<4x4x128xbf16>
    %c1_265 = arith.constant 1 : index
    %c1_266 = arith.constant 1 : index
    %c0_267 = arith.constant 0 : index
    %275 = vector.load %arg9[%c1_265, %c1_266, %c0_267] : memref<6x6x128xbf16, #tpu.memory_space<vmem>>, vector<4x4x128xbf16>
    tpu.vector_store %arg9[%c1_265, %c1_266, %c0_267], %274 {strides = array<i32>} : memref<6x6x128xbf16, #tpu.memory_space<vmem>>, vector<4x4x128xbf16>,
    %c3_268 = arith.constant 3 : index
    %c0_269 = arith.constant 0 : index
    %c0_270 = arith.constant 0 : index
    %276 = vector.load %arg3[%c3_268, %c0_269, %c0_270] : memref<6x1x128xf32, #tpu.memory_space<vmem>>, vector<1x1x128xf32>
    %277 = vector.shape_cast %276 : vector<1x1x128xf32> to vector<1x128xf32>
    %278 = vector.shape_cast %277 : vector<1x128xf32> to vector<1x128xf32>
    %279 = vector.broadcast %278 : vector<1x128xf32> to vector<16x128xf32>
    %c0_271 = arith.constant 0 : index
    %c0_272 = arith.constant 0 : index
    %c0_273 = arith.constant 0 : index
    %280 = vector.load %arg9[%c0_271, %c0_272, %c0_273] : memref<6x6x128xbf16, #tpu.memory_space<vmem>>, vector<4x4x128xbf16>
    %281 = vector.shape_cast %280 : vector<4x4x128xbf16> to vector<16x128xbf16>
    %c27 = arith.constant 27 : index
    %c0_274 = arith.constant 0 : index
    %c0_275 = arith.constant 0 : index
    %282 = vector.load %arg2[%c27, %c0_274, %c0_275] : memref<54x128x128xbf16, #tpu.memory_space<vmem>>, vector<1x128x128xbf16>
    %283 = vector.shape_cast %282 : vector<1x128x128xbf16> to vector<128x128xbf16>
    %cst_276 = arith.constant dense<0.000000e+00> : vector<16x128xf32>
    %284 = tpu.matmul %281, %283, %cst_276 {dimension_numbers = #tpu.dot_dimension_numbers<[1], [0], [0], [1], [0, 0, 1, 1], [], []>} : vector<16x128xbf16>, vector<128x128xbf16>, vector<16x128xf32> -> vector<16x128xf32>
    %285 = arith.addf %279, %284 : vector<16x128xf32>
    %c0_277 = arith.constant 0 : index
    %c1_278 = arith.constant 1 : index
    %c0_279 = arith.constant 0 : index
    %286 = vector.load %arg9[%c0_277, %c1_278, %c0_279] : memref<6x6x128xbf16, #tpu.memory_space<vmem>>, vector<4x4x128xbf16>
    %287 = vector.shape_cast %286 : vector<4x4x128xbf16> to vector<16x128xbf16>
    %c28 = arith.constant 28 : index
    %c0_280 = arith.constant 0 : index
    %c0_281 = arith.constant 0 : index
    %288 = vector.load %arg2[%c28, %c0_280, %c0_281] : memref<54x128x128xbf16, #tpu.memory_space<vmem>>, vector<1x128x128xbf16>
    %289 = vector.shape_cast %288 : vector<1x128x128xbf16> to vector<128x128xbf16>
    %cst_282 = arith.constant dense<0.000000e+00> : vector<16x128xf32>
    %290 = tpu.matmul %287, %289, %cst_282 {dimension_numbers = #tpu.dot_dimension_numbers<[1], [0], [0], [1], [0, 0, 1, 1], [], []>} : vector<16x128xbf16>, vector<128x128xbf16>, vector<16x128xf32> -> vector<16x128xf32>
    %291 = arith.addf %285, %290 : vector<16x128xf32>
    %c0_283 = arith.constant 0 : index
    %c2_284 = arith.constant 2 : index
    %c0_285 = arith.constant 0 : index
    %292 = vector.load %arg9[%c0_283, %c2_284, %c0_285] : memref<6x6x128xbf16, #tpu.memory_space<vmem>>, vector<4x4x128xbf16>
    %293 = vector.shape_cast %292 : vector<4x4x128xbf16> to vector<16x128xbf16>
    %c29 = arith.constant 29 : index
    %c0_286 = arith.constant 0 : index
    %c0_287 = arith.constant 0 : index
    %294 = vector.load %arg2[%c29, %c0_286, %c0_287] : memref<54x128x128xbf16, #tpu.memory_space<vmem>>, vector<1x128x128xbf16>
    %295 = vector.shape_cast %294 : vector<1x128x128xbf16> to vector<128x128xbf16>
    %cst_288 = arith.constant dense<0.000000e+00> : vector<16x128xf32>
    %296 = tpu.matmul %293, %295, %cst_288 {dimension_numbers = #tpu.dot_dimension_numbers<[1], [0], [0], [1], [0, 0, 1, 1], [], []>} : vector<16x128xbf16>, vector<128x128xbf16>, vector<16x128xf32> -> vector<16x128xf32>
    %297 = arith.addf %291, %296 : vector<16x128xf32>
    %c1_289 = arith.constant 1 : index
    %c0_290 = arith.constant 0 : index
    %c0_291 = arith.constant 0 : index
    %298 = vector.load %arg9[%c1_289, %c0_290, %c0_291] : memref<6x6x128xbf16, #tpu.memory_space<vmem>>, vector<4x4x128xbf16>
    %299 = vector.shape_cast %298 : vector<4x4x128xbf16> to vector<16x128xbf16>
    %c30 = arith.constant 30 : index
    %c0_292 = arith.constant 0 : index
    %c0_293 = arith.constant 0 : index
    %300 = vector.load %arg2[%c30, %c0_292, %c0_293] : memref<54x128x128xbf16, #tpu.memory_space<vmem>>, vector<1x128x128xbf16>
    %301 = vector.shape_cast %300 : vector<1x128x128xbf16> to vector<128x128xbf16>
    %cst_294 = arith.constant dense<0.000000e+00> : vector<16x128xf32>
    %302 = tpu.matmul %299, %301, %cst_294 {dimension_numbers = #tpu.dot_dimension_numbers<[1], [0], [0], [1], [0, 0, 1, 1], [], []>} : vector<16x128xbf16>, vector<128x128xbf16>, vector<16x128xf32> -> vector<16x128xf32>
    %303 = arith.addf %297, %302 : vector<16x128xf32>
    %c1_295 = arith.constant 1 : index
    %c1_296 = arith.constant 1 : index
    %c0_297 = arith.constant 0 : index
    %304 = vector.load %arg9[%c1_295, %c1_296, %c0_297] : memref<6x6x128xbf16, #tpu.memory_space<vmem>>, vector<4x4x128xbf16>
    %305 = vector.shape_cast %304 : vector<4x4x128xbf16> to vector<16x128xbf16>
    %c31 = arith.constant 31 : index
    %c0_298 = arith.constant 0 : index
    %c0_299 = arith.constant 0 : index
    %306 = vector.load %arg2[%c31, %c0_298, %c0_299] : memref<54x128x128xbf16, #tpu.memory_space<vmem>>, vector<1x128x128xbf16>
    %307 = vector.shape_cast %306 : vector<1x128x128xbf16> to vector<128x128xbf16>
    %cst_300 = arith.constant dense<0.000000e+00> : vector<16x128xf32>
    %308 = tpu.matmul %305, %307, %cst_300 {dimension_numbers = #tpu.dot_dimension_numbers<[1], [0], [0], [1], [0, 0, 1, 1], [], []>} : vector<16x128xbf16>, vector<128x128xbf16>, vector<16x128xf32> -> vector<16x128xf32>
    %309 = arith.addf %303, %308 : vector<16x128xf32>
    %c1_301 = arith.constant 1 : index
    %c2_302 = arith.constant 2 : index
    %c0_303 = arith.constant 0 : index
    %310 = vector.load %arg9[%c1_301, %c2_302, %c0_303] : memref<6x6x128xbf16, #tpu.memory_space<vmem>>, vector<4x4x128xbf16>
    %311 = vector.shape_cast %310 : vector<4x4x128xbf16> to vector<16x128xbf16>
    %c32 = arith.constant 32 : index
    %c0_304 = arith.constant 0 : index
    %c0_305 = arith.constant 0 : index
    %312 = vector.load %arg2[%c32, %c0_304, %c0_305] : memref<54x128x128xbf16, #tpu.memory_space<vmem>>, vector<1x128x128xbf16>
    %313 = vector.shape_cast %312 : vector<1x128x128xbf16> to vector<128x128xbf16>
    %cst_306 = arith.constant dense<0.000000e+00> : vector<16x128xf32>
    %314 = tpu.matmul %311, %313, %cst_306 {dimension_numbers = #tpu.dot_dimension_numbers<[1], [0], [0], [1], [0, 0, 1, 1], [], []>} : vector<16x128xbf16>, vector<128x128xbf16>, vector<16x128xf32> -> vector<16x128xf32>
    %315 = arith.addf %309, %314 : vector<16x128xf32>
    %c2_307 = arith.constant 2 : index
    %c0_308 = arith.constant 0 : index
    %c0_309 = arith.constant 0 : index
    %316 = vector.load %arg9[%c2_307, %c0_308, %c0_309] : memref<6x6x128xbf16, #tpu.memory_space<vmem>>, vector<4x4x128xbf16>
    %317 = vector.shape_cast %316 : vector<4x4x128xbf16> to vector<16x128xbf16>
    %c33 = arith.constant 33 : index
    %c0_310 = arith.constant 0 : index
    %c0_311 = arith.constant 0 : index
    %318 = vector.load %arg2[%c33, %c0_310, %c0_311] : memref<54x128x128xbf16, #tpu.memory_space<vmem>>, vector<1x128x128xbf16>
    %319 = vector.shape_cast %318 : vector<1x128x128xbf16> to vector<128x128xbf16>
    %cst_312 = arith.constant dense<0.000000e+00> : vector<16x128xf32>
    %320 = tpu.matmul %317, %319, %cst_312 {dimension_numbers = #tpu.dot_dimension_numbers<[1], [0], [0], [1], [0, 0, 1, 1], [], []>} : vector<16x128xbf16>, vector<128x128xbf16>, vector<16x128xf32> -> vector<16x128xf32>
    %321 = arith.addf %315, %320 : vector<16x128xf32>
    %c2_313 = arith.constant 2 : index
    %c1_314 = arith.constant 1 : index
    %c0_315 = arith.constant 0 : index
    %322 = vector.load %arg9[%c2_313, %c1_314, %c0_315] : memref<6x6x128xbf16, #tpu.memory_space<vmem>>, vector<4x4x128xbf16>
    %323 = vector.shape_cast %322 : vector<4x4x128xbf16> to vector<16x128xbf16>
    %c34 = arith.constant 34 : index
    %c0_316 = arith.constant 0 : index
    %c0_317 = arith.constant 0 : index
    %324 = vector.load %arg2[%c34, %c0_316, %c0_317] : memref<54x128x128xbf16, #tpu.memory_space<vmem>>, vector<1x128x128xbf16>
    %325 = vector.shape_cast %324 : vector<1x128x128xbf16> to vector<128x128xbf16>
    %cst_318 = arith.constant dense<0.000000e+00> : vector<16x128xf32>
    %326 = tpu.matmul %323, %325, %cst_318 {dimension_numbers = #tpu.dot_dimension_numbers<[1], [0], [0], [1], [0, 0, 1, 1], [], []>} : vector<16x128xbf16>, vector<128x128xbf16>, vector<16x128xf32> -> vector<16x128xf32>
    %327 = arith.addf %321, %326 : vector<16x128xf32>
    %c2_319 = arith.constant 2 : index
    %c2_320 = arith.constant 2 : index
    %c0_321 = arith.constant 0 : index
    %328 = vector.load %arg9[%c2_319, %c2_320, %c0_321] : memref<6x6x128xbf16, #tpu.memory_space<vmem>>, vector<4x4x128xbf16>
    %329 = vector.shape_cast %328 : vector<4x4x128xbf16> to vector<16x128xbf16>
    %c35 = arith.constant 35 : index
    %c0_322 = arith.constant 0 : index
    %c0_323 = arith.constant 0 : index
    %330 = vector.load %arg2[%c35, %c0_322, %c0_323] : memref<54x128x128xbf16, #tpu.memory_space<vmem>>, vector<1x128x128xbf16>
    %331 = vector.shape_cast %330 : vector<1x128x128xbf16> to vector<128x128xbf16>
    %cst_324 = arith.constant dense<0.000000e+00> : vector<16x128xf32>
    %332 = tpu.matmul %329, %331, %cst_324 {dimension_numbers = #tpu.dot_dimension_numbers<[1], [0], [0], [1], [0, 0, 1, 1], [], []>} : vector<16x128xbf16>, vector<128x128xbf16>, vector<16x128xf32> -> vector<16x128xf32>
    %333 = arith.addf %327, %332 : vector<16x128xf32>
    %cst_325 = arith.constant 0.000000e+00 : f32
    %334 = vector.broadcast %cst_325 : f32 to vector<16x128xf32>
    %335 = arith.maximumf %333, %334 : vector<16x128xf32>
    %336 = arith.truncf %335 : vector<16x128xf32> to vector<16x128xbf16>
    %337 = vector.shape_cast %336 : vector<16x128xbf16> to vector<2x2x4x128xbf16>
    %338 = vector.extract_strided_slice %337 {offsets = [0, 0, 0, 0], sizes = [2, 1, 4, 128], strides = [1, 1, 1, 1]} : vector<2x2x4x128xbf16> to vector<2x1x4x128xbf16>
    %339 = vector.shape_cast %338 : vector<2x1x4x128xbf16> to vector<2x4x128xbf16>
    %340 = vector.shape_cast %339 : vector<2x4x128xbf16> to vector<2x2x2x128xbf16>
    %341 = vector.extract_strided_slice %340 {offsets = [0, 0, 0, 0], sizes = [2, 2, 1, 128], strides = [1, 1, 1, 1]} : vector<2x2x2x128xbf16> to vector<2x2x1x128xbf16>
    %342 = vector.shape_cast %341 : vector<2x2x1x128xbf16> to vector<2x2x128xbf16>
    %c3_326 = arith.constant 3 : index
    %c0_327 = arith.constant 0 : index
    %c0_328 = arith.constant 0 : index
    %c0_329 = arith.constant 0 : index
    %343 = vector.load %arg10[%c3_326, %c0_327, %c0_328, %c0_329] : memref<4x3x3x128xbf16, #tpu.memory_space<vmem>>, vector<1x2x2x128xbf16>
    %344 = vector.shape_cast %343 : vector<1x2x2x128xbf16> to vector<2x2x128xbf16>
    %345 = vector.shape_cast %342 : vector<2x2x128xbf16> to vector<1x2x2x128xbf16>
    tpu.vector_store %arg10[%c3_326, %c0_327, %c0_328, %c0_329], %345 {strides = array<i32>} : memref<4x3x3x128xbf16, #tpu.memory_space<vmem>>, vector<1x2x2x128xbf16>,
    %346 = vector.extract_strided_slice %340 {offsets = [0, 0, 1, 0], sizes = [2, 2, 1, 128], strides = [1, 1, 1, 1]} : vector<2x2x2x128xbf16> to vector<2x2x1x128xbf16>
    %347 = vector.shape_cast %346 : vector<2x2x1x128xbf16> to vector<2x2x128xbf16>
    %c2_330 = arith.constant 2 : index
    %c0_331 = arith.constant 0 : index
    %c1_332 = arith.constant 1 : index
    %c0_333 = arith.constant 0 : index
    %348 = vector.load %arg10[%c2_330, %c0_331, %c1_332, %c0_333] : memref<4x3x3x128xbf16, #tpu.memory_space<vmem>>, vector<1x2x2x128xbf16>
    %349 = vector.shape_cast %348 : vector<1x2x2x128xbf16> to vector<2x2x128xbf16>
    %350 = vector.shape_cast %347 : vector<2x2x128xbf16> to vector<1x2x2x128xbf16>
    tpu.vector_store %arg10[%c2_330, %c0_331, %c1_332, %c0_333], %350 {strides = array<i32>} : memref<4x3x3x128xbf16, #tpu.memory_space<vmem>>, vector<1x2x2x128xbf16>,
    %351 = vector.extract_strided_slice %337 {offsets = [0, 1, 0, 0], sizes = [2, 1, 4, 128], strides = [1, 1, 1, 1]} : vector<2x2x4x128xbf16> to vector<2x1x4x128xbf16>
    %352 = vector.shape_cast %351 : vector<2x1x4x128xbf16> to vector<2x4x128xbf16>
    %353 = vector.shape_cast %352 : vector<2x4x128xbf16> to vector<2x2x2x128xbf16>
    %354 = vector.extract_strided_slice %353 {offsets = [0, 0, 0, 0], sizes = [2, 2, 1, 128], strides = [1, 1, 1, 1]} : vector<2x2x2x128xbf16> to vector<2x2x1x128xbf16>
    %355 = vector.shape_cast %354 : vector<2x2x1x128xbf16> to vector<2x2x128xbf16>
    %c1_334 = arith.constant 1 : index
    %c1_335 = arith.constant 1 : index
    %c0_336 = arith.constant 0 : index
    %c0_337 = arith.constant 0 : index
    %356 = vector.load %arg10[%c1_334, %c1_335, %c0_336, %c0_337] : memref<4x3x3x128xbf16, #tpu.memory_space<vmem>>, vector<1x2x2x128xbf16>
    %357 = vector.shape_cast %356 : vector<1x2x2x128xbf16> to vector<2x2x128xbf16>
    %358 = vector.shape_cast %355 : vector<2x2x128xbf16> to vector<1x2x2x128xbf16>
    tpu.vector_store %arg10[%c1_334, %c1_335, %c0_336, %c0_337], %358 {strides = array<i32>} : memref<4x3x3x128xbf16, #tpu.memory_space<vmem>>, vector<1x2x2x128xbf16>,
    %359 = vector.extract_strided_slice %353 {offsets = [0, 0, 1, 0], sizes = [2, 2, 1, 128], strides = [1, 1, 1, 1]} : vector<2x2x2x128xbf16> to vector<2x2x1x128xbf16>
    %360 = vector.shape_cast %359 : vector<2x2x1x128xbf16> to vector<2x2x128xbf16>
    %c0_338 = arith.constant 0 : index
    %c1_339 = arith.constant 1 : index
    %c1_340 = arith.constant 1 : index
    %c0_341 = arith.constant 0 : index
    %361 = vector.load %arg10[%c0_338, %c1_339, %c1_340, %c0_341] : memref<4x3x3x128xbf16, #tpu.memory_space<vmem>>, vector<1x2x2x128xbf16>
    %362 = vector.shape_cast %361 : vector<1x2x2x128xbf16> to vector<2x2x128xbf16>
    %363 = vector.shape_cast %360 : vector<2x2x128xbf16> to vector<1x2x2x128xbf16>
    tpu.vector_store %arg10[%c0_338, %c1_339, %c1_340, %c0_341], %363 {strides = array<i32>} : memref<4x3x3x128xbf16, #tpu.memory_space<vmem>>, vector<1x2x2x128xbf16>,
    %c4_342 = arith.constant 4 : index
    %c0_343 = arith.constant 0 : index
    %c0_344 = arith.constant 0 : index
    %364 = vector.load %arg3[%c4_342, %c0_343, %c0_344] : memref<6x1x128xf32, #tpu.memory_space<vmem>>, vector<1x1x128xf32>
    %365 = vector.shape_cast %364 : vector<1x1x128xf32> to vector<1x128xf32>
    %366 = vector.shape_cast %365 : vector<1x128xf32> to vector<1x128xf32>
    %367 = vector.broadcast %366 : vector<1x128xf32> to vector<4x128xf32>
    %c0_345 = arith.constant 0 : index
    %c0_346 = arith.constant 0 : index
    %c0_347 = arith.constant 0 : index
    %c0_348 = arith.constant 0 : index
    %368 = vector.load %arg10[%c0_345, %c0_346, %c0_347, %c0_348] : memref<4x3x3x128xbf16, #tpu.memory_space<vmem>>, vector<1x2x2x128xbf16>
    %369 = vector.shape_cast %368 : vector<1x2x2x128xbf16> to vector<2x2x128xbf16>
    %370 = vector.shape_cast %369 : vector<2x2x128xbf16> to vector<4x128xbf16>
    %c36 = arith.constant 36 : index
    %c0_349 = arith.constant 0 : index
    %c0_350 = arith.constant 0 : index
    %371 = vector.load %arg2[%c36, %c0_349, %c0_350] : memref<54x128x128xbf16, #tpu.memory_space<vmem>>, vector<1x128x128xbf16>
    %372 = vector.shape_cast %371 : vector<1x128x128xbf16> to vector<128x128xbf16>
    %cst_351 = arith.constant dense<0.000000e+00> : vector<4x128xf32>
    %373 = tpu.matmul %370, %372, %cst_351 {dimension_numbers = #tpu.dot_dimension_numbers<[1], [0], [0], [1], [0, 0, 1, 1], [], []>} : vector<4x128xbf16>, vector<128x128xbf16>, vector<4x128xf32> -> vector<4x128xf32>
    %374 = arith.addf %367, %373 : vector<4x128xf32>
    %c1_352 = arith.constant 1 : index
    %c0_353 = arith.constant 0 : index
    %c0_354 = arith.constant 0 : index
    %c0_355 = arith.constant 0 : index
    %375 = vector.load %arg10[%c1_352, %c0_353, %c0_354, %c0_355] : memref<4x3x3x128xbf16, #tpu.memory_space<vmem>>, vector<1x2x2x128xbf16>
    %376 = vector.shape_cast %375 : vector<1x2x2x128xbf16> to vector<2x2x128xbf16>
    %377 = vector.shape_cast %376 : vector<2x2x128xbf16> to vector<4x128xbf16>
    %c37 = arith.constant 37 : index
    %c0_356 = arith.constant 0 : index
    %c0_357 = arith.constant 0 : index
    %378 = vector.load %arg2[%c37, %c0_356, %c0_357] : memref<54x128x128xbf16, #tpu.memory_space<vmem>>, vector<1x128x128xbf16>
    %379 = vector.shape_cast %378 : vector<1x128x128xbf16> to vector<128x128xbf16>
    %cst_358 = arith.constant dense<0.000000e+00> : vector<4x128xf32>
    %380 = tpu.matmul %377, %379, %cst_358 {dimension_numbers = #tpu.dot_dimension_numbers<[1], [0], [0], [1], [0, 0, 1, 1], [], []>} : vector<4x128xbf16>, vector<128x128xbf16>, vector<4x128xf32> -> vector<4x128xf32>
    %381 = arith.addf %374, %380 : vector<4x128xf32>
    %c0_359 = arith.constant 0 : index
    %c0_360 = arith.constant 0 : index
    %c1_361 = arith.constant 1 : index
    %c0_362 = arith.constant 0 : index
    %382 = vector.load %arg10[%c0_359, %c0_360, %c1_361, %c0_362] : memref<4x3x3x128xbf16, #tpu.memory_space<vmem>>, vector<1x2x2x128xbf16>
    %383 = vector.shape_cast %382 : vector<1x2x2x128xbf16> to vector<2x2x128xbf16>
    %384 = vector.shape_cast %383 : vector<2x2x128xbf16> to vector<4x128xbf16>
    %c38 = arith.constant 38 : index
    %c0_363 = arith.constant 0 : index
    %c0_364 = arith.constant 0 : index
    %385 = vector.load %arg2[%c38, %c0_363, %c0_364] : memref<54x128x128xbf16, #tpu.memory_space<vmem>>, vector<1x128x128xbf16>
    %386 = vector.shape_cast %385 : vector<1x128x128xbf16> to vector<128x128xbf16>
    %cst_365 = arith.constant dense<0.000000e+00> : vector<4x128xf32>
    %387 = tpu.matmul %384, %386, %cst_365 {dimension_numbers = #tpu.dot_dimension_numbers<[1], [0], [0], [1], [0, 0, 1, 1], [], []>} : vector<4x128xbf16>, vector<128x128xbf16>, vector<4x128xf32> -> vector<4x128xf32>
    %388 = arith.addf %381, %387 : vector<4x128xf32>
    %c2_366 = arith.constant 2 : index
    %c0_367 = arith.constant 0 : index
    %c0_368 = arith.constant 0 : index
    %c0_369 = arith.constant 0 : index
    %389 = vector.load %arg10[%c2_366, %c0_367, %c0_368, %c0_369] : memref<4x3x3x128xbf16, #tpu.memory_space<vmem>>, vector<1x2x2x128xbf16>
    %390 = vector.shape_cast %389 : vector<1x2x2x128xbf16> to vector<2x2x128xbf16>
    %391 = vector.shape_cast %390 : vector<2x2x128xbf16> to vector<4x128xbf16>
    %c39 = arith.constant 39 : index
    %c0_370 = arith.constant 0 : index
    %c0_371 = arith.constant 0 : index
    %392 = vector.load %arg2[%c39, %c0_370, %c0_371] : memref<54x128x128xbf16, #tpu.memory_space<vmem>>, vector<1x128x128xbf16>
    %393 = vector.shape_cast %392 : vector<1x128x128xbf16> to vector<128x128xbf16>
    %cst_372 = arith.constant dense<0.000000e+00> : vector<4x128xf32>
    %394 = tpu.matmul %391, %393, %cst_372 {dimension_numbers = #tpu.dot_dimension_numbers<[1], [0], [0], [1], [0, 0, 1, 1], [], []>} : vector<4x128xbf16>, vector<128x128xbf16>, vector<4x128xf32> -> vector<4x128xf32>
    %395 = arith.addf %388, %394 : vector<4x128xf32>
    %c3_373 = arith.constant 3 : index
    %c0_374 = arith.constant 0 : index
    %c0_375 = arith.constant 0 : index
    %c0_376 = arith.constant 0 : index
    %396 = vector.load %arg10[%c3_373, %c0_374, %c0_375, %c0_376] : memref<4x3x3x128xbf16, #tpu.memory_space<vmem>>, vector<1x2x2x128xbf16>
    %397 = vector.shape_cast %396 : vector<1x2x2x128xbf16> to vector<2x2x128xbf16>
    %398 = vector.shape_cast %397 : vector<2x2x128xbf16> to vector<4x128xbf16>
    %c40 = arith.constant 40 : index
    %c0_377 = arith.constant 0 : index
    %c0_378 = arith.constant 0 : index
    %399 = vector.load %arg2[%c40, %c0_377, %c0_378] : memref<54x128x128xbf16, #tpu.memory_space<vmem>>, vector<1x128x128xbf16>
    %400 = vector.shape_cast %399 : vector<1x128x128xbf16> to vector<128x128xbf16>
    %cst_379 = arith.constant dense<0.000000e+00> : vector<4x128xf32>
    %401 = tpu.matmul %398, %400, %cst_379 {dimension_numbers = #tpu.dot_dimension_numbers<[1], [0], [0], [1], [0, 0, 1, 1], [], []>} : vector<4x128xbf16>, vector<128x128xbf16>, vector<4x128xf32> -> vector<4x128xf32>
    %402 = arith.addf %395, %401 : vector<4x128xf32>
    %c2_380 = arith.constant 2 : index
    %c0_381 = arith.constant 0 : index
    %c1_382 = arith.constant 1 : index
    %c0_383 = arith.constant 0 : index
    %403 = vector.load %arg10[%c2_380, %c0_381, %c1_382, %c0_383] : memref<4x3x3x128xbf16, #tpu.memory_space<vmem>>, vector<1x2x2x128xbf16>
    %404 = vector.shape_cast %403 : vector<1x2x2x128xbf16> to vector<2x2x128xbf16>
    %405 = vector.shape_cast %404 : vector<2x2x128xbf16> to vector<4x128xbf16>
    %c41 = arith.constant 41 : index
    %c0_384 = arith.constant 0 : index
    %c0_385 = arith.constant 0 : index
    %406 = vector.load %arg2[%c41, %c0_384, %c0_385] : memref<54x128x128xbf16, #tpu.memory_space<vmem>>, vector<1x128x128xbf16>
    %407 = vector.shape_cast %406 : vector<1x128x128xbf16> to vector<128x128xbf16>
    %cst_386 = arith.constant dense<0.000000e+00> : vector<4x128xf32>
    %408 = tpu.matmul %405, %407, %cst_386 {dimension_numbers = #tpu.dot_dimension_numbers<[1], [0], [0], [1], [0, 0, 1, 1], [], []>} : vector<4x128xbf16>, vector<128x128xbf16>, vector<4x128xf32> -> vector<4x128xf32>
    %409 = arith.addf %402, %408 : vector<4x128xf32>
    %c0_387 = arith.constant 0 : index
    %c1_388 = arith.constant 1 : index
    %c0_389 = arith.constant 0 : index
    %c0_390 = arith.constant 0 : index
    %410 = vector.load %arg10[%c0_387, %c1_388, %c0_389, %c0_390] : memref<4x3x3x128xbf16, #tpu.memory_space<vmem>>, vector<1x2x2x128xbf16>
    %411 = vector.shape_cast %410 : vector<1x2x2x128xbf16> to vector<2x2x128xbf16>
    %412 = vector.shape_cast %411 : vector<2x2x128xbf16> to vector<4x128xbf16>
    %c42 = arith.constant 42 : index
    %c0_391 = arith.constant 0 : index
    %c0_392 = arith.constant 0 : index
    %413 = vector.load %arg2[%c42, %c0_391, %c0_392] : memref<54x128x128xbf16, #tpu.memory_space<vmem>>, vector<1x128x128xbf16>
    %414 = vector.shape_cast %413 : vector<1x128x128xbf16> to vector<128x128xbf16>
    %cst_393 = arith.constant dense<0.000000e+00> : vector<4x128xf32>
    %415 = tpu.matmul %412, %414, %cst_393 {dimension_numbers = #tpu.dot_dimension_numbers<[1], [0], [0], [1], [0, 0, 1, 1], [], []>} : vector<4x128xbf16>, vector<128x128xbf16>, vector<4x128xf32> -> vector<4x128xf32>
    %416 = arith.addf %409, %415 : vector<4x128xf32>
    %c1_394 = arith.constant 1 : index
    %c1_395 = arith.constant 1 : index
    %c0_396 = arith.constant 0 : index
    %c0_397 = arith.constant 0 : index
    %417 = vector.load %arg10[%c1_394, %c1_395, %c0_396, %c0_397] : memref<4x3x3x128xbf16, #tpu.memory_space<vmem>>, vector<1x2x2x128xbf16>
    %418 = vector.shape_cast %417 : vector<1x2x2x128xbf16> to vector<2x2x128xbf16>
    %419 = vector.shape_cast %418 : vector<2x2x128xbf16> to vector<4x128xbf16>
    %c43 = arith.constant 43 : index
    %c0_398 = arith.constant 0 : index
    %c0_399 = arith.constant 0 : index
    %420 = vector.load %arg2[%c43, %c0_398, %c0_399] : memref<54x128x128xbf16, #tpu.memory_space<vmem>>, vector<1x128x128xbf16>
    %421 = vector.shape_cast %420 : vector<1x128x128xbf16> to vector<128x128xbf16>
    %cst_400 = arith.constant dense<0.000000e+00> : vector<4x128xf32>
    %422 = tpu.matmul %419, %421, %cst_400 {dimension_numbers = #tpu.dot_dimension_numbers<[1], [0], [0], [1], [0, 0, 1, 1], [], []>} : vector<4x128xbf16>, vector<128x128xbf16>, vector<4x128xf32> -> vector<4x128xf32>
    %423 = arith.addf %416, %422 : vector<4x128xf32>
    %c0_401 = arith.constant 0 : index
    %c1_402 = arith.constant 1 : index
    %c1_403 = arith.constant 1 : index
    %c0_404 = arith.constant 0 : index
    %424 = vector.load %arg10[%c0_401, %c1_402, %c1_403, %c0_404] : memref<4x3x3x128xbf16, #tpu.memory_space<vmem>>, vector<1x2x2x128xbf16>
    %425 = vector.shape_cast %424 : vector<1x2x2x128xbf16> to vector<2x2x128xbf16>
    %426 = vector.shape_cast %425 : vector<2x2x128xbf16> to vector<4x128xbf16>
    %c44 = arith.constant 44 : index
    %c0_405 = arith.constant 0 : index
    %c0_406 = arith.constant 0 : index
    %427 = vector.load %arg2[%c44, %c0_405, %c0_406] : memref<54x128x128xbf16, #tpu.memory_space<vmem>>, vector<1x128x128xbf16>
    %428 = vector.shape_cast %427 : vector<1x128x128xbf16> to vector<128x128xbf16>
    %cst_407 = arith.constant dense<0.000000e+00> : vector<4x128xf32>
    %429 = tpu.matmul %426, %428, %cst_407 {dimension_numbers = #tpu.dot_dimension_numbers<[1], [0], [0], [1], [0, 0, 1, 1], [], []>} : vector<4x128xbf16>, vector<128x128xbf16>, vector<4x128xf32> -> vector<4x128xf32>
    %430 = arith.addf %423, %429 : vector<4x128xf32>
    %cst_408 = arith.constant 0.000000e+00 : f32
    %431 = vector.broadcast %cst_408 : f32 to vector<4x128xf32>
    %432 = arith.maximumf %430, %431 : vector<4x128xf32>
    %433 = arith.truncf %432 : vector<4x128xf32> to vector<4x128xbf16>
    %434 = vector.shape_cast %433 : vector<4x128xbf16> to vector<1x2x2x128xbf16>
    %435 = vector.extract_strided_slice %434 {offsets = [0, 0, 0, 0], sizes = [1, 1, 2, 128], strides = [1, 1, 1, 1]} : vector<1x2x2x128xbf16> to vector<1x1x2x128xbf16>
    %436 = vector.shape_cast %435 : vector<1x1x2x128xbf16> to vector<1x2x128xbf16>
    %437 = vector.shape_cast %436 : vector<1x2x128xbf16> to vector<1x1x2x128xbf16>
    %438 = vector.extract_strided_slice %437 {offsets = [0, 0, 0, 0], sizes = [1, 1, 1, 128], strides = [1, 1, 1, 1]} : vector<1x1x2x128xbf16> to vector<1x1x1x128xbf16>
    %439 = vector.shape_cast %438 : vector<1x1x1x128xbf16> to vector<1x1x128xbf16>
    %c3_409 = arith.constant 3 : index
    %c0_410 = arith.constant 0 : index
    %c0_411 = arith.constant 0 : index
    %c0_412 = arith.constant 0 : index
    %440 = vector.load %arg11[%c3_409, %c0_410, %c0_411, %c0_412] : memref<4x2x2x128xbf16, #tpu.memory_space<vmem>>, vector<1x1x1x128xbf16>
    %441 = vector.shape_cast %440 : vector<1x1x1x128xbf16> to vector<1x1x128xbf16>
    %442 = vector.shape_cast %439 : vector<1x1x128xbf16> to vector<1x1x1x128xbf16>
    tpu.vector_store %arg11[%c3_409, %c0_410, %c0_411, %c0_412], %442 {strides = array<i32>} : memref<4x2x2x128xbf16, #tpu.memory_space<vmem>>, vector<1x1x1x128xbf16>,
    %443 = vector.extract_strided_slice %437 {offsets = [0, 0, 1, 0], sizes = [1, 1, 1, 128], strides = [1, 1, 1, 1]} : vector<1x1x2x128xbf16> to vector<1x1x1x128xbf16>
    %444 = vector.shape_cast %443 : vector<1x1x1x128xbf16> to vector<1x1x128xbf16>
    %c2_413 = arith.constant 2 : index
    %c0_414 = arith.constant 0 : index
    %c1_415 = arith.constant 1 : index
    %c0_416 = arith.constant 0 : index
    %445 = vector.load %arg11[%c2_413, %c0_414, %c1_415, %c0_416] : memref<4x2x2x128xbf16, #tpu.memory_space<vmem>>, vector<1x1x1x128xbf16>
    %446 = vector.shape_cast %445 : vector<1x1x1x128xbf16> to vector<1x1x128xbf16>
    %447 = vector.shape_cast %444 : vector<1x1x128xbf16> to vector<1x1x1x128xbf16>
    tpu.vector_store %arg11[%c2_413, %c0_414, %c1_415, %c0_416], %447 {strides = array<i32>} : memref<4x2x2x128xbf16, #tpu.memory_space<vmem>>, vector<1x1x1x128xbf16>,
    %448 = vector.extract_strided_slice %434 {offsets = [0, 1, 0, 0], sizes = [1, 1, 2, 128], strides = [1, 1, 1, 1]} : vector<1x2x2x128xbf16> to vector<1x1x2x128xbf16>
    %449 = vector.shape_cast %448 : vector<1x1x2x128xbf16> to vector<1x2x128xbf16>
    %450 = vector.shape_cast %449 : vector<1x2x128xbf16> to vector<1x1x2x128xbf16>
    %451 = vector.extract_strided_slice %450 {offsets = [0, 0, 0, 0], sizes = [1, 1, 1, 128], strides = [1, 1, 1, 1]} : vector<1x1x2x128xbf16> to vector<1x1x1x128xbf16>
    %452 = vector.shape_cast %451 : vector<1x1x1x128xbf16> to vector<1x1x128xbf16>
    %c1_417 = arith.constant 1 : index
    %c1_418 = arith.constant 1 : index
    %c0_419 = arith.constant 0 : index
    %c0_420 = arith.constant 0 : index
    %453 = vector.load %arg11[%c1_417, %c1_418, %c0_419, %c0_420] : memref<4x2x2x128xbf16, #tpu.memory_space<vmem>>, vector<1x1x1x128xbf16>
    %454 = vector.shape_cast %453 : vector<1x1x1x128xbf16> to vector<1x1x128xbf16>
    %455 = vector.shape_cast %452 : vector<1x1x128xbf16> to vector<1x1x1x128xbf16>
    tpu.vector_store %arg11[%c1_417, %c1_418, %c0_419, %c0_420], %455 {strides = array<i32>} : memref<4x2x2x128xbf16, #tpu.memory_space<vmem>>, vector<1x1x1x128xbf16>,
    %456 = vector.extract_strided_slice %450 {offsets = [0, 0, 1, 0], sizes = [1, 1, 1, 128], strides = [1, 1, 1, 1]} : vector<1x1x2x128xbf16> to vector<1x1x1x128xbf16>
    %457 = vector.shape_cast %456 : vector<1x1x1x128xbf16> to vector<1x1x128xbf16>
    %c0_421 = arith.constant 0 : index
    %c1_422 = arith.constant 1 : index
    %c1_423 = arith.constant 1 : index
    %c0_424 = arith.constant 0 : index
    %458 = vector.load %arg11[%c0_421, %c1_422, %c1_423, %c0_424] : memref<4x2x2x128xbf16, #tpu.memory_space<vmem>>, vector<1x1x1x128xbf16>
    %459 = vector.shape_cast %458 : vector<1x1x1x128xbf16> to vector<1x1x128xbf16>
    %460 = vector.shape_cast %457 : vector<1x1x128xbf16> to vector<1x1x1x128xbf16>
    tpu.vector_store %arg11[%c0_421, %c1_422, %c1_423, %c0_424], %460 {strides = array<i32>} : memref<4x2x2x128xbf16, #tpu.memory_space<vmem>>, vector<1x1x1x128xbf16>,
    %c5_425 = arith.constant 5 : index
    %c0_426 = arith.constant 0 : index
    %c0_427 = arith.constant 0 : index
    %461 = vector.load %arg3[%c5_425, %c0_426, %c0_427] : memref<6x1x128xf32, #tpu.memory_space<vmem>>, vector<1x1x128xf32>
    %462 = vector.shape_cast %461 : vector<1x1x128xf32> to vector<1x128xf32>
    %c0_428 = arith.constant 0 : index
    %c0_429 = arith.constant 0 : index
    %c0_430 = arith.constant 0 : index
    %c0_431 = arith.constant 0 : index
    %463 = vector.load %arg11[%c0_428, %c0_429, %c0_430, %c0_431] : memref<4x2x2x128xbf16, #tpu.memory_space<vmem>>, vector<1x1x1x128xbf16>
    %464 = vector.shape_cast %463 : vector<1x1x1x128xbf16> to vector<1x1x128xbf16>
    %465 = vector.shape_cast %464 : vector<1x1x128xbf16> to vector<1x128xbf16>
    %c45 = arith.constant 45 : index
    %c0_432 = arith.constant 0 : index
    %c0_433 = arith.constant 0 : index
    %466 = vector.load %arg2[%c45, %c0_432, %c0_433] : memref<54x128x128xbf16, #tpu.memory_space<vmem>>, vector<1x128x128xbf16>
    %467 = vector.shape_cast %466 : vector<1x128x128xbf16> to vector<128x128xbf16>
    %cst_434 = arith.constant dense<0.000000e+00> : vector<1x128xf32>
    %468 = tpu.matmul %465, %467, %cst_434 {dimension_numbers = #tpu.dot_dimension_numbers<[1], [0], [0], [1], [0, 0, 1, 1], [], []>} : vector<1x128xbf16>, vector<128x128xbf16>, vector<1x128xf32> -> vector<1x128xf32>
    %469 = arith.addf %462, %468 : vector<1x128xf32>
    %c1_435 = arith.constant 1 : index
    %c0_436 = arith.constant 0 : index
    %c0_437 = arith.constant 0 : index
    %c0_438 = arith.constant 0 : index
    %470 = vector.load %arg11[%c1_435, %c0_436, %c0_437, %c0_438] : memref<4x2x2x128xbf16, #tpu.memory_space<vmem>>, vector<1x1x1x128xbf16>
    %471 = vector.shape_cast %470 : vector<1x1x1x128xbf16> to vector<1x1x128xbf16>
    %472 = vector.shape_cast %471 : vector<1x1x128xbf16> to vector<1x128xbf16>
    %c46 = arith.constant 46 : index
    %c0_439 = arith.constant 0 : index
    %c0_440 = arith.constant 0 : index
    %473 = vector.load %arg2[%c46, %c0_439, %c0_440] : memref<54x128x128xbf16, #tpu.memory_space<vmem>>, vector<1x128x128xbf16>
    %474 = vector.shape_cast %473 : vector<1x128x128xbf16> to vector<128x128xbf16>
    %cst_441 = arith.constant dense<0.000000e+00> : vector<1x128xf32>
    %475 = tpu.matmul %472, %474, %cst_441 {dimension_numbers = #tpu.dot_dimension_numbers<[1], [0], [0], [1], [0, 0, 1, 1], [], []>} : vector<1x128xbf16>, vector<128x128xbf16>, vector<1x128xf32> -> vector<1x128xf32>
    %476 = arith.addf %469, %475 : vector<1x128xf32>
    %c0_442 = arith.constant 0 : index
    %c0_443 = arith.constant 0 : index
    %c1_444 = arith.constant 1 : index
    %c0_445 = arith.constant 0 : index
    %477 = vector.load %arg11[%c0_442, %c0_443, %c1_444, %c0_445] : memref<4x2x2x128xbf16, #tpu.memory_space<vmem>>, vector<1x1x1x128xbf16>
    %478 = vector.shape_cast %477 : vector<1x1x1x128xbf16> to vector<1x1x128xbf16>
    %479 = vector.shape_cast %478 : vector<1x1x128xbf16> to vector<1x128xbf16>
    %c47 = arith.constant 47 : index
    %c0_446 = arith.constant 0 : index
    %c0_447 = arith.constant 0 : index
    %480 = vector.load %arg2[%c47, %c0_446, %c0_447] : memref<54x128x128xbf16, #tpu.memory_space<vmem>>, vector<1x128x128xbf16>
    %481 = vector.shape_cast %480 : vector<1x128x128xbf16> to vector<128x128xbf16>
    %cst_448 = arith.constant dense<0.000000e+00> : vector<1x128xf32>
    %482 = tpu.matmul %479, %481, %cst_448 {dimension_numbers = #tpu.dot_dimension_numbers<[1], [0], [0], [1], [0, 0, 1, 1], [], []>} : vector<1x128xbf16>, vector<128x128xbf16>, vector<1x128xf32> -> vector<1x128xf32>
    %483 = arith.addf %476, %482 : vector<1x128xf32>
    %c2_449 = arith.constant 2 : index
    %c0_450 = arith.constant 0 : index
    %c0_451 = arith.constant 0 : index
    %c0_452 = arith.constant 0 : index
    %484 = vector.load %arg11[%c2_449, %c0_450, %c0_451, %c0_452] : memref<4x2x2x128xbf16, #tpu.memory_space<vmem>>, vector<1x1x1x128xbf16>
    %485 = vector.shape_cast %484 : vector<1x1x1x128xbf16> to vector<1x1x128xbf16>
    %486 = vector.shape_cast %485 : vector<1x1x128xbf16> to vector<1x128xbf16>
    %c48 = arith.constant 48 : index
    %c0_453 = arith.constant 0 : index
    %c0_454 = arith.constant 0 : index
    %487 = vector.load %arg2[%c48, %c0_453, %c0_454] : memref<54x128x128xbf16, #tpu.memory_space<vmem>>, vector<1x128x128xbf16>
    %488 = vector.shape_cast %487 : vector<1x128x128xbf16> to vector<128x128xbf16>
    %cst_455 = arith.constant dense<0.000000e+00> : vector<1x128xf32>
    %489 = tpu.matmul %486, %488, %cst_455 {dimension_numbers = #tpu.dot_dimension_numbers<[1], [0], [0], [1], [0, 0, 1, 1], [], []>} : vector<1x128xbf16>, vector<128x128xbf16>, vector<1x128xf32> -> vector<1x128xf32>
    %490 = arith.addf %483, %489 : vector<1x128xf32>
    %c3_456 = arith.constant 3 : index
    %c0_457 = arith.constant 0 : index
    %c0_458 = arith.constant 0 : index
    %c0_459 = arith.constant 0 : index
    %491 = vector.load %arg11[%c3_456, %c0_457, %c0_458, %c0_459] : memref<4x2x2x128xbf16, #tpu.memory_space<vmem>>, vector<1x1x1x128xbf16>
    %492 = vector.shape_cast %491 : vector<1x1x1x128xbf16> to vector<1x1x128xbf16>
    %493 = vector.shape_cast %492 : vector<1x1x128xbf16> to vector<1x128xbf16>
    %c49 = arith.constant 49 : index
    %c0_460 = arith.constant 0 : index
    %c0_461 = arith.constant 0 : index
    %494 = vector.load %arg2[%c49, %c0_460, %c0_461] : memref<54x128x128xbf16, #tpu.memory_space<vmem>>, vector<1x128x128xbf16>
    %495 = vector.shape_cast %494 : vector<1x128x128xbf16> to vector<128x128xbf16>
    %cst_462 = arith.constant dense<0.000000e+00> : vector<1x128xf32>
    %496 = tpu.matmul %493, %495, %cst_462 {dimension_numbers = #tpu.dot_dimension_numbers<[1], [0], [0], [1], [0, 0, 1, 1], [], []>} : vector<1x128xbf16>, vector<128x128xbf16>, vector<1x128xf32> -> vector<1x128xf32>
    %497 = arith.addf %490, %496 : vector<1x128xf32>
    %c2_463 = arith.constant 2 : index
    %c0_464 = arith.constant 0 : index
    %c1_465 = arith.constant 1 : index
    %c0_466 = arith.constant 0 : index
    %498 = vector.load %arg11[%c2_463, %c0_464, %c1_465, %c0_466] : memref<4x2x2x128xbf16, #tpu.memory_space<vmem>>, vector<1x1x1x128xbf16>
    %499 = vector.shape_cast %498 : vector<1x1x1x128xbf16> to vector<1x1x128xbf16>
    %500 = vector.shape_cast %499 : vector<1x1x128xbf16> to vector<1x128xbf16>
    %c50 = arith.constant 50 : index
    %c0_467 = arith.constant 0 : index
    %c0_468 = arith.constant 0 : index
    %501 = vector.load %arg2[%c50, %c0_467, %c0_468] : memref<54x128x128xbf16, #tpu.memory_space<vmem>>, vector<1x128x128xbf16>
    %502 = vector.shape_cast %501 : vector<1x128x128xbf16> to vector<128x128xbf16>
    %cst_469 = arith.constant dense<0.000000e+00> : vector<1x128xf32>
    %503 = tpu.matmul %500, %502, %cst_469 {dimension_numbers = #tpu.dot_dimension_numbers<[1], [0], [0], [1], [0, 0, 1, 1], [], []>} : vector<1x128xbf16>, vector<128x128xbf16>, vector<1x128xf32> -> vector<1x128xf32>
    %504 = arith.addf %497, %503 : vector<1x128xf32>
    %c0_470 = arith.constant 0 : index
    %c1_471 = arith.constant 1 : index
    %c0_472 = arith.constant 0 : index
    %c0_473 = arith.constant 0 : index
    %505 = vector.load %arg11[%c0_470, %c1_471, %c0_472, %c0_473] : memref<4x2x2x128xbf16, #tpu.memory_space<vmem>>, vector<1x1x1x128xbf16>
    %506 = vector.shape_cast %505 : vector<1x1x1x128xbf16> to vector<1x1x128xbf16>
    %507 = vector.shape_cast %506 : vector<1x1x128xbf16> to vector<1x128xbf16>
    %c51 = arith.constant 51 : index
    %c0_474 = arith.constant 0 : index
    %c0_475 = arith.constant 0 : index
    %508 = vector.load %arg2[%c51, %c0_474, %c0_475] : memref<54x128x128xbf16, #tpu.memory_space<vmem>>, vector<1x128x128xbf16>
    %509 = vector.shape_cast %508 : vector<1x128x128xbf16> to vector<128x128xbf16>
    %cst_476 = arith.constant dense<0.000000e+00> : vector<1x128xf32>
    %510 = tpu.matmul %507, %509, %cst_476 {dimension_numbers = #tpu.dot_dimension_numbers<[1], [0], [0], [1], [0, 0, 1, 1], [], []>} : vector<1x128xbf16>, vector<128x128xbf16>, vector<1x128xf32> -> vector<1x128xf32>
    %511 = arith.addf %504, %510 : vector<1x128xf32>
    %c1_477 = arith.constant 1 : index
    %c1_478 = arith.constant 1 : index
    %c0_479 = arith.constant 0 : index
    %c0_480 = arith.constant 0 : index
    %512 = vector.load %arg11[%c1_477, %c1_478, %c0_479, %c0_480] : memref<4x2x2x128xbf16, #tpu.memory_space<vmem>>, vector<1x1x1x128xbf16>
    %513 = vector.shape_cast %512 : vector<1x1x1x128xbf16> to vector<1x1x128xbf16>
    %514 = vector.shape_cast %513 : vector<1x1x128xbf16> to vector<1x128xbf16>
    %c52 = arith.constant 52 : index
    %c0_481 = arith.constant 0 : index
    %c0_482 = arith.constant 0 : index
    %515 = vector.load %arg2[%c52, %c0_481, %c0_482] : memref<54x128x128xbf16, #tpu.memory_space<vmem>>, vector<1x128x128xbf16>
    %516 = vector.shape_cast %515 : vector<1x128x128xbf16> to vector<128x128xbf16>
    %cst_483 = arith.constant dense<0.000000e+00> : vector<1x128xf32>
    %517 = tpu.matmul %514, %516, %cst_483 {dimension_numbers = #tpu.dot_dimension_numbers<[1], [0], [0], [1], [0, 0, 1, 1], [], []>} : vector<1x128xbf16>, vector<128x128xbf16>, vector<1x128xf32> -> vector<1x128xf32>
    %518 = arith.addf %511, %517 : vector<1x128xf32>
    %c0_484 = arith.constant 0 : index
    %c1_485 = arith.constant 1 : index
    %c1_486 = arith.constant 1 : index
    %c0_487 = arith.constant 0 : index
    %519 = vector.load %arg11[%c0_484, %c1_485, %c1_486, %c0_487] : memref<4x2x2x128xbf16, #tpu.memory_space<vmem>>, vector<1x1x1x128xbf16>
    %520 = vector.shape_cast %519 : vector<1x1x1x128xbf16> to vector<1x1x128xbf16>
    %521 = vector.shape_cast %520 : vector<1x1x128xbf16> to vector<1x128xbf16>
    %c53 = arith.constant 53 : index
    %c0_488 = arith.constant 0 : index
    %c0_489 = arith.constant 0 : index
    %522 = vector.load %arg2[%c53, %c0_488, %c0_489] : memref<54x128x128xbf16, #tpu.memory_space<vmem>>, vector<1x128x128xbf16>
    %523 = vector.shape_cast %522 : vector<1x128x128xbf16> to vector<128x128xbf16>
    %cst_490 = arith.constant dense<0.000000e+00> : vector<1x128xf32>
    %524 = tpu.matmul %521, %523, %cst_490 {dimension_numbers = #tpu.dot_dimension_numbers<[1], [0], [0], [1], [0, 0, 1, 1], [], []>} : vector<1x128xbf16>, vector<128x128xbf16>, vector<1x128xf32> -> vector<1x128xf32>
    %525 = arith.addf %518, %524 : vector<1x128xf32>
    %cst_491 = arith.constant 0.000000e+00 : f32
    %526 = vector.broadcast %cst_491 : f32 to vector<1x128xf32>
    %527 = arith.maximumf %525, %526 : vector<1x128xf32>
    %528 = arith.truncf %527 : vector<1x128xf32> to vector<1x128xbf16>
    %529 = arith.extf %528 : vector<1x128xbf16> to vector<1x128xf32>
    %cst_492 = arith.constant dense<0.000000e+00> : vector<128xf32>
    %530 = vector.multi_reduction <add>, %529, %cst_492 [0] : vector<1x128xf32> to vector<128xf32>
    %531 = vector.shape_cast %530 : vector<128xf32> to vector<1x128xf32>
    %cst_493 = arith.constant 1.000000e+00 : f32
    %532 = vector.broadcast %cst_493 : f32 to vector<1x128xf32>
    %533 = arith.divf %531, %532 : vector<1x128xf32>
    %534 = arith.truncf %533 : vector<1x128xf32> to vector<1x128xbf16>
    %c0_494 = arith.constant 0 : index
    %c0_495 = arith.constant 0 : index
    %535 = vector.load %arg4[%c0_494, %c0_495] : memref<128x128xbf16, #tpu.memory_space<vmem>>, vector<128x128xbf16>
    %cst_496 = arith.constant dense<0.000000e+00> : vector<1x128xf32>
    %536 = tpu.matmul %534, %535, %cst_496 {dimension_numbers = #tpu.dot_dimension_numbers<[1], [0], [0], [1], [0, 0, 1, 1], [], []>} : vector<1x128xbf16>, vector<128x128xbf16>, vector<1x128xf32> -> vector<1x128xf32>
    %c0_497 = arith.constant 0 : index
    %c0_498 = arith.constant 0 : index
    %537 = vector.load %arg5[%c0_497, %c0_498] : memref<1x128xf32, #tpu.memory_space<vmem>>, vector<1x128xf32>
    %538 = arith.addf %536, %537 : vector<1x128xf32>
    %c0_499 = arith.constant 0 : index
    %c0_500 = arith.constant 0 : index
    %c0_501 = arith.constant 0 : index
    %539 = vector.load %arg6[%c0_499, %c0_500, %c0_501] : memref<1x1x128xf32, #tpu.memory_space<vmem>>, vector<1x1x128xf32>
    %540 = vector.shape_cast %539 : vector<1x1x128xf32> to vector<1x128xf32>
    %541 = vector.shape_cast %538 : vector<1x128xf32> to vector<1x1x128xf32>
    tpu.vector_store %arg6[%c0_499, %c0_500, %c0_501], %541 {strides = array<i32>} : memref<1x1x128xf32, #tpu.memory_space<vmem>>, vector<1x1x128xf32>,
    return
  }
  func.func @transform_0(%arg0: i32) -> (i32, i32, i32, i32, i32) {
    %c0_i32 = arith.constant 0 : i32
    %c0_i32_0 = arith.constant 0 : i32
    %c0_i32_1 = arith.constant 0 : i32
    %c0_i32_2 = arith.constant 0 : i32
    %c0_i32_3 = arith.constant 0 : i32
    return %arg0, %c0_i32, %c0_i32_0, %c0_i32_1, %c0_i32_2 : i32, i32, i32, i32, i32
  }
  func.func @transform_1(%arg0: i32) -> (i32, i32, i32) {
    %c0_i32 = arith.constant 0 : i32
    %c0_i32_0 = arith.constant 0 : i32
    %c0_i32_1 = arith.constant 0 : i32
    %c0_i32_2 = arith.constant 0 : i32
    return %c0_i32, %c0_i32_0, %c0_i32_1 : i32, i32, i32
  }
  func.func @transform_2(%arg0: i32) -> (i32, i32, i32) {
    %c0_i32 = arith.constant 0 : i32
    %c0_i32_0 = arith.constant 0 : i32
    %c0_i32_1 = arith.constant 0 : i32
    %c0_i32_2 = arith.constant 0 : i32
    return %c0_i32, %c0_i32_0, %c0_i32_1 : i32, i32, i32
  }
  func.func @transform_3(%arg0: i32) -> (i32, i32) {
    %c0_i32 = arith.constant 0 : i32
    %c0_i32_0 = arith.constant 0 : i32
    %c0_i32_1 = arith.constant 0 : i32
    return %c0_i32, %c0_i32_0 : i32, i32
  }
  func.func @transform_4(%arg0: i32) -> (i32, i32) {
    %c0_i32 = arith.constant 0 : i32
    %c0_i32_0 = arith.constant 0 : i32
    %c0_i32_1 = arith.constant 0 : i32
    return %c0_i32, %c0_i32_0 : i32, i32
  }
  func.func @transform_5(%arg0: i32) -> (i32, i32, i32) {
    %c0_i32 = arith.constant 0 : i32
    %c0_i32_0 = arith.constant 0 : i32
    %c0_i32_1 = arith.constant 0 : i32
    return %arg0, %c0_i32, %c0_i32_0 : i32, i32, i32
  }
}

</mosaic_0001>

<bundles_post_ra>
// kernel: repvgg_forward.1
= control target key start
LH: loop header
LB: loop body
LE: loop exit
PB: predicated region body
PF: predicated region fallthrough
CT: control target
= control target key end

     0   :  { %10 = vsyncpa [#allocation8], 0  ;;  %s26609_s0 = inlined_call_operand.vmem [shape: bf16[2,4,17,17,128], index: 0, kind: input, shape index: {}]   ;;  %s26610_s1 = inlined_call_operand.vmem [shape: bf16[54,128,128], index: 1, kind: input, shape index: {}]   ;;  %s26611_s2 = inlined_call_operand.vmem [shape: f32[6,1,128], index: 2, kind: input, shape index: {}]   ;;  %s26612_s3 = inlined_call_operand.vmem [shape: bf16[128,128], index: 3, kind: input, shape index: {}]   ;;  %s26613_s4 = inlined_call_operand.vmem [shape: f32[1,128], index: 4, kind: input, shape index: {}]   ;;  %s26614_s5 = inlined_call_operand.hbm [shape: f32[2,1,128], index: 5, kind: output, shape index: {}]  }
   0x1   :  { %12 = vsyncpa [#allocation8 + $0x1], 0  ;;  %s22213_s18 = smov 0   ;;  %s22215_s19 = smov 0  }
   0x2   :  { %s22217_s20 = smov 0   ;;  %s22219_s21 = smov 0  }
   0x3 LB: > { %s22234_s22 = sadd.s32 4294967295, %s22174_s21   ;;  %s17090_s23 = sadd.s32 4294967294, %s22174_s21   ;;  %s22174_s21 = sphi %s22219_s21, %s26702_s21   ;;  %s22170_s20 = sphi %s22217_s20, %s26701_s20   ;;  %s22166_s19 = sphi %s22215_s19, %s26700_s19   ;;  %s22162_s18 = sphi %s22213_s18, %s26699_s18  }
   0x4   : > { %s22238_s24 = sadd.s32 1, %s22174_s21   ;;  %s135_s25 = sadd.s32 1, %s22170_s20 }
   0x5   : > { %s132_s26 = ssub.s32 %s22174_s21, %s22238_s24  ;;  %p145_p0 = scmp.ne.s32.totalorder %s22170_s20, %s22166_s19 }
   0x6   : > { %p133_p1 = scmp.eq.s32.totalorder %s132_s26, 0  ;;  %p146_p2 = scmp.eq.s32.totalorder %s22234_s22, 1 }
   0x7   : > { %p151_p3 = scmp.ne.s32.totalorder %s22166_s19, %s22162_s18  ;;  %p152_p4 = scmp.eq.s32.totalorder %s17090_s23, 1 }
   0x8   : > { %s22249_s27 = scalar_select %p133_p1, %s22170_s20, %s135_s25  }
   0x9   : > { %p22251_p5 = por %p146_p2, %p145_p0  ;;  %p22255_p6 = por %p152_p4, %p151_p3 }
   0xa   : > { %p17093_p7 = scmp.ge.s32.totalorder %s22174_s21, 1  ;;  %p190_p8 = scmp.lt.s32.totalorder %s22174_s21, 3 }
   0xc   : > { %p191_p9 = pnand %p17093_p7, %p190_p8 }
   0xe   : > { %194 = sbr.rel (%p191_p9) target bundleno = 3538 (0xdd2), region = 40 }
  0x15   : > { %v21515_v0 = vld [vmem:[%s26610_s1 + $0x80] sm:$0xff]   ;;  %p217_p10 = scmp.lt.s32.totalorder %s22234_s22, 1  ;;  %v21516_v1 = vld [vmem:[%s26610_s1 + $0x88] sm:$0xff]   ;;  %v21517_v2 = vld [vmem:[%s26610_s1 + $0x90] sm:$0xff]   ;;  %vm1313_vm0 = vsmask.f32 3328 }
  0x16   : > { %19683 = vmatprep.subr.bf16.mxu0 %v21515_v0  ;;  %v21518_v3 = vld [vmem:[%s26610_s1 + $0x98] sm:$0xff]   ;;  %vm1314_vm1 = vsmask.f32 7440  ;;  %v21519_v9 = vld [vmem:[%s26610_s1 + $0xa0] sm:$0xff]   ;;  %v26624_v26 = vmov 0  ;;  %v21520_v32 = vld [vmem:[%s26610_s1 + $0xa8] sm:$0xff]  }
  0x17   : > { %s218_s9 = scalar_select %p217_p10, %s22234_s22, 1  ;;  %19684 = vmatpush3.bf16.msra.mxu0 %v21515_v0  ;;  %vm22291_vm2 = vmor %vm1313_vm0, %vm1314_vm1  ;;  %v21521_v56 = vld [vmem:[%s26610_s1 + $0xb0] sm:$0xff]   ;;  %vm224_vm3 = vcmask 1040384   ;;  %vm225_vm4 = vsmask.f32 256  ;;  %vm6487_vm6 = vcmask 1041409  }
  0x18   : > { %19685 = vmatprep.subr.bf16.mxu0 %v21516_v1  ;;  %v26625_v26 = vsel %vm22291_vm2, 4294967295, %v26624_v26  ;;  %vm23492_vm5 = vmand %vm224_vm3, %vm225_vm4  ;;  %vm6490_vm7 = vcmask 1042434   ;;  %vm6493_vm8 = vcmask 1043459   ;;  %vm6496_vm9 = vcmask 1044484   ;;  %s215_s17 = sand.u32 1, %s22166_s19   ;;  %s18919_s25 = sshll.u32 %s22234_s22, 4 }
  0x19   : > { %s21469_s12 = smul.u32 816, %s218_s9  ;;  %26626 = vst [vmem:[#allocation10_spill] sm:$0xff] %v26625_v26  ;;  %vm6499_vm10 = vcmask 1045509   ;;  %vm6502_vm11 = vcmask 1046534   ;;  %vm6505_vm12 = vcmask 1047559   ;;  %vm6711_vm13 = vcmask 1043456   ;;  %s26567_s8 = scalar_lea.hbm %s26614_s5, %s18919_s25 }
  0x1a   : > { %vm6712_vm14 = vsmask.f32 7938  ;;  %vm370_vm0 = vcmask 1042432   ;;  %vm371_vm1 = vsmask.f32 2304  ;;  %s216_s26 = scalar_lea.vmem [#allocation7], %s215_s17 }
  0x1b   : > { %s22275_s15 = scalar_lea.vmem %s26609_s0, %s21469_s12  ;;  %19686 = vmatpush3.bf16.msra.mxu0 %v21516_v1  ;;  %vm23702_vm15 = vmand %vm6711_vm13, %vm6712_vm14  ;;  %s17035_s30 = sshll.u32 %s216_s26, 4  ;;  %s26569_s30 = int_to_ptr.vmem [resolvable:$true] %s17035_s30 }
  0x1c   : > { %19687 = vmatprep.subr.bf16.mxu0 %v21517_v2  ;;  %v1265_v4 = vld [vmem:[%s22275_s15] sm:$0xf]  ;;  %v1266_v5 = vld [vmem:[%s22275_s15 + $0x4] sm:$0xf]  ;;  %v1267_v6 = vld [vmem:[%s22275_s15 + $0x8] sm:$0x1] }
  0x1d   : > { %v1317_v7 = vshrl.u32 %v1265_v4, 16  ;;  %v1320_v8 = vshll.u32 %v1265_v4, 16  ;;  %v1326_v10 = vshll.u32 %v1266_v5, 16  ;;  %v1330_v11 = vshrl.u32 %v1266_v5, 16  ;;  %v1268_v13 = vld [vmem:[%s22275_s15 + $0xc] sm:$0xf] }
  0x1e   : > { %v1336_v12 = vshll.u32 %v1267_v6, 16  ;;  %v1269_v16 = vld [vmem:[%s22275_s15 + $0x10] sm:$0xf]  ;;  %v1270_v17 = vld [vmem:[%s22275_s15 + $0x14] sm:$0x1]  ;;  %v1341_v21 = vshrl.u32 %v1268_v13, 16 }
  0x1f   : > { %19688 = vmatpush3.bf16.msra.mxu0 %v21517_v2  ;;  %v1319_v14 = vrot.slane %v1317_v7, 4  ;;  %v1322_v15 = vrot.slane %v1320_v8, 5  ;;  %v1328_v18 = vrot.slane %v1326_v10, 5  ;;  %v1332_v19 = vrot.slane %v1330_v11, 4  ;;  %v1271_v30 = vld [vmem:[%s22275_s15 + $0x18] sm:$0xf] }
  0x20   : > { %19689 = vmatprep.subr.bf16.mxu0 %v21518_v3  ;;  %v1338_v20 = vrot.slane %v1336_v12, 5  ;;  %v1344_v23 = vshll.u32 %v1268_v13, 16  ;;  %v1350_v24 = vshll.u32 %v1269_v16, 16  ;;  %v1354_v25 = vshrl.u32 %v1269_v16, 16  ;;  %v1272_v31 = vld [vmem:[%s22275_s15 + $0x1c] sm:$0xf] }
  0x21   : > { %v1323_v22 = vor.u32 %v1322_v15, %v1319_v14  ;;  %v1333_v27 = vor.u32 %v1332_v19, %v1328_v18  ;;  %v1343_v28 = vrot.slane %v1341_v21, 4  ;;  %v1360_v29 = vshll.u32 %v1270_v17, 16  ;;  %v1273_v39 = vld [vmem:[%s22275_s15 + $0x20] sm:$0x1]  ;;  %v1274_v46 = vld [vmem:[%s22275_s15 + $0x24] sm:$0xf] }
  0x22   : > { %v1346_v34 = vrot.slane %v1344_v23, 5  ;;  %v1352_v35 = vrot.slane %v1350_v24, 5  ;;  %v1356_v36 = vrot.slane %v1354_v25, 4  ;;  %v1365_v40 = vshrl.u32 %v1271_v30, 16  ;;  %v1275_v47 = vld [vmem:[%s22275_s15 + $0x28] sm:$0xf] }
  0x23   : > { %19690 = vmatpush3.bf16.msra.mxu0 %v21518_v3  ;;  %v1324_v33 = vrot.slane %v1323_v22, 4  ;;  %v1334_v37 = vrot.slane %v1333_v27, 4  ;;  %v1362_v38 = vrot.slane %v1360_v29, 5  ;;  %v1368_v41 = vshll.u32 %v1271_v30, 16  ;;  %v1276_v63 = vld [vmem:[%s22275_s15 + $0x2c] sm:$0x1] }
  0x24   : > { %19691 = vmatprep.subr.bf16.mxu0 %v21519_v9  ;;  %v1347_v43 = vor.u32 %v1346_v34, %v1343_v28  ;;  %v1357_v44 = vor.u32 %v1356_v36, %v1352_v35  ;;  %v1374_v45 = vshll.u32 %v1272_v31, 16  ;;  %v1367_v49 = vrot.slane %v1365_v40, 4  ;;  %v1277_v2 = vld [vmem:[%s22275_s15 + $0x30] sm:$0xf]  ;;  %v1278_v7 = vld [vmem:[%s22275_s15 + $0x34] sm:$0xf] }
  0x25   : > { %v1329_v42 = vsel %vm22291_vm2, %v1324_v33, %v1328_v18  ;;  %v1339_v48 = vsel %vm22291_vm2, %v1334_v37, %v1338_v20  ;;  %v1370_v50 = vrot.slane %v1368_v41, 5  ;;  %v1378_v51 = vshrl.u32 %v1272_v31, 16  ;;  %v1279_v12 = vld [vmem:[%s22275_s15 + $0x38] sm:$0x1]  ;;  %v1280_v13 = vld [vmem:[%s22275_s15 + $0x3c] sm:$0xf] }
  0x26   : > { %v17208_v52 = vcombine.low %v1329_v42, %v1339_v48  ;;  %v1348_v53 = vrot.slane %v1347_v43, 4  ;;  %v1358_v54 = vrot.slane %v1357_v44, 4  ;;  %v1376_v55 = vrot.slane %v1374_v45, 5  ;;  %v21522_v14 = vld [vmem:[%s26610_s1 + $0xb8] sm:$0xff]   ;;  %v21523_v28 = vld [vmem:[%s26610_s1 + $0xc0] sm:$0xff]   ;;  %s17023_s9 = scalar_lea.sflag [#allocation8], %s215_s17 }
  0x27   : > { %19692 = vmatpush3.bf16.msra.mxu0 %v21519_v9  ;;  %v1371_v57 = vor.u32 %v1370_v50, %v1367_v49  ;;  %v1380_v58 = vrot.slane %v1378_v51, 4  ;;  %v1384_v59 = vshll.u32 %v1273_v39, 16  ;;  %v1389_v60 = vshrl.u32 %v1274_v46, 16  ;;  %v1281_v33 = vld [vmem:[%s22275_s15 + $0x40] sm:$0xf]  ;;  %s22112_s22 = scalar_lea.vmem %s26569_s30, 16 }
  0x28   : > { %19693 = vmatprep.subr.bf16.mxu0 %v21520_v32  ;;  %19699 = vmatprep.mubr.bf16.mxu0 %v17208_v52  ;;  %v1353_v61 = vsel %vm22291_vm2, %v1348_v53, %v1352_v35  ;;  %v1363_v62 = vsel %vm22291_vm2, %v1358_v54, %v1362_v38  ;;  %v1392_v0 = vshll.u32 %v1274_v46, 16  ;;  %v1398_v1 = vshll.u32 %v1275_v47, 16  ;;  %v1282_v37 = vld [vmem:[%s22275_s15 + $0x44] sm:$0x1]  ;;  %v1283_v43 = vld [vmem:[%s22275_s15 + $0x48] sm:$0xf]  ;;  %p22113_p11 = scmp.ne.s32.totalorder %s26569_s30, %s22112_s22 }
  0x29   : > { %v22316_v3 = vcombine.low %v1353_v61, %v1363_v62  ;;  %v1372_v4 = vrot.slane %v1371_v57, 4  ;;  %v1381_v5 = vor.u32 %v1380_v58, %v1376_v55  ;;  %v1386_v6 = vrot.slane %v1384_v59, 5  ;;  %v1284_v44 = vld [vmem:[%s22275_s15 + $0x4c] sm:$0xf]  ;;  %s22182_s10 = smov [#allocation7]  }
  0x2a   : > { %v1391_v8 = vrot.slane %v1389_v60, 4  ;;  %v1394_v9 = vrot.slane %v1392_v0, 5  ;;  %v1400_v10 = vrot.slane %v1398_v1, 5  ;;  %v1402_v11 = vshrl.u32 %v1275_v47, 16  ;;  %v21524_v53 = vld [vmem:[%s26610_s1 + $0xc8] sm:$0xff]   ;;  %p22114_p12 = pnand %p22113_p11, %p22251_p5  ;;  %s22116_s11 = sshll.u32 %s22182_s10, 4  ;;  %s22117_s11 = int_to_ptr.vmem [resolvable:$false] %s22116_s11 }
  0x2b   : > { %19694 = vmatpush3.bf16.msra.mxu0 %v21520_v32  ;;  %v1377_v15 = vsel %vm22291_vm2, %v1372_v4, %v1376_v55  ;;  %v1382_v16 = vrot.slane %v1381_v5, 4  ;;  %v1408_v17 = vshll.u32 %v1276_v63, 16  ;;  %v1413_v18 = vshrl.u32 %v1277_v2, 16  ;;  %v1285_v60 = vld [vmem:[%s22275_s15 + $0x50] sm:$0x1]  ;;  %s22118_s12 = scalar_lea.vmem %s22117_s11, 32  ;;  %p22119_p0 = scmp.lt.s32.totalorder %s26569_s30, %s22117_s11 }
  0x2c   : > { %19695 = vmatprep.subr.bf16.mxu0 %v21521_v56  ;;  %v1395_v19 = vor.u32 %v1394_v9, %v1391_v8  ;;  %v1404_v20 = vrot.slane %v1402_v11, 4  ;;  %v1416_v21 = vshll.u32 %v1277_v2, 16  ;;  %v1422_v22 = vshll.u32 %v1278_v7, 16  ;;  %v1286_v2 = vld [vmem:[%s22275_s15 + $0x54] sm:$0xf]  ;;  %p22115_p13 = pneg %p22114_p12  ;;  %p22120_p1 = scmp.lt.s32.totalorder %s22118_s12, %s22112_s22 }
  0x2d   : > { %v1387_v23 = vsel %vm22291_vm2, %v1382_v16, %v1386_v6  ;;  %v1410_v24 = vrot.slane %v1408_v17, 5  ;;  %v1415_v25 = vrot.slane %v1413_v18, 4  ;;  %v1426_v27 = vshrl.u32 %v1278_v7, 16  ;;  %v1287_v8 = vld [vmem:[%s22275_s15 + $0x58] sm:$0xf] }
  0x2e   : > { %v17210_v29 = vcombine.low %v1377_v15, %v1387_v23  ;;  %v1396_v30 = vrot.slane %v1395_v19, 4  ;;  %v1405_v31 = vor.u32 %v1404_v20, %v1400_v10  ;;  %v1418_v32 = vrot.slane %v1416_v21, 5  ;;  %v1288_v20 = vld [vmem:[%s22275_s15 + $0x5c] sm:$0x1]  ;;  %p22121_p2 = por %p22120_p1, %p22119_p0 }
  0x2f   : > { %19696 = vmatpush3.bf16.msra.mxu0 %v21521_v56  ;;  %v1424_v34 = vrot.slane %v1422_v22, 5  ;;  %v1428_v35 = vrot.slane %v1426_v27, 4  ;;  %v1432_v36 = vshll.u32 %v1279_v12, 16  ;;  %v1437_v38 = vshrl.u32 %v1280_v13, 16  ;;  %v1289_v22 = vld [vmem:[%s22275_s15 + $0x60] sm:$0xf] }
  0x30   : > { %19697 = vmatprep.subr.bf16.mxu0 %v21522_v14  ;;  %v1401_v39 = vsel %vm22291_vm2, %v1396_v30, %v1400_v10  ;;  %v1406_v40 = vrot.slane %v1405_v31, 4  ;;  %v1419_v41 = vor.u32 %v1418_v32, %v1415_v25  ;;  %v1440_v42 = vshll.u32 %v1280_v13, 16  ;;  %p22122_p3 = pnand %p22121_p2, %p22115_p13 }
  0x31   : > { %v1429_v45 = vor.u32 %v1428_v35, %v1424_v34  ;;  %v1434_v46 = vrot.slane %v1432_v36, 5  ;;  %v1439_v47 = vrot.slane %v1437_v38, 4  ;;  %v1446_v48 = vshll.u32 %v1281_v33, 16 }
  0x32   : > { %v1411_v49 = vsel %vm22291_vm2, %v1406_v40, %v1410_v24  ;;  %v1420_v50 = vrot.slane %v1419_v41, 4  ;;  %v1442_v51 = vrot.slane %v1440_v42, 5  ;;  %v1450_v52 = vshrl.u32 %v1281_v33, 16  ;;  %v21526_v33 = vld [vmem:[%s26610_s1 + $0xd8] sm:$0xff]  }
  0x33   : > { %19698 = vmatpush3.bf16.msra.mxu0 %v21522_v14  ;;  %v1430_v54 = vrot.slane %v1429_v45, 4  ;;  %v22342_v55 = vrot.slane %v1446_v48, 5  ;;  %v1456_v56 = vshll.u32 %v1282_v37, 16  ;;  %v17211_v57 = vcombine.low %v1401_v39, %v1411_v49  ;;  %v1292_v39 = vld [vmem:[%s22275_s15 + $0x6c] sm:$0xf] }
  0x34   : > { %19731 = vmatprep.subr.bf16.mxu0 %v21523_v28  ;;  %v1443_v58 = vor.u32 %v1442_v51, %v1439_v47  ;;  %v1452_v59 = vrot.slane %v1450_v52, 4  ;;  %v1461_v61 = vshrl.u32 %v1283_v43, 16  ;;  %v1425_v62 = vsel %vm22291_vm2, %v1420_v50, %v1424_v34  ;;  %v1291_v34 = vld [vmem:[%s22275_s15 + $0x68] sm:$0x1] }
  0x35   : > { %v1435_v63 = vsel %vm22291_vm2, %v1430_v54, %v1434_v46  ;;  %v1464_v0 = vshll.u32 %v1283_v43, 16  ;;  %v1470_v1 = vshll.u32 %v1284_v44, 16  ;;  %v1458_v6 = vrot.slane %v1456_v56, 5 }
  0x36   : > { %19700 = vmatmul.mubr.bf16.vlgmr.msra.gmra.mrb[0].mxu0 %v22316_v3  ;;  %v1444_v4 = vrot.slane %v1443_v58, 4  ;;  %v1453_v5 = vor.u32 %v1452_v59, %v22342_v55  ;;  %v21525_v3 = vld [vmem:[%s26610_s1 + $0xd0] sm:$0xff]   ;;  %v1463_v7 = vrot.slane %v1461_v61, 4  ;;  %v1474_v11 = vshrl.u32 %v1284_v44, 16 }
  0x37   : > { %19732 = vmatpush3.bf16.msra.mxu0 %v21523_v28  ;;  %19703 = vmatprep.mubr.bf16.mxu0 %v17210_v29  ;;  %v1466_v9 = vrot.slane %v1464_v0, 5  ;;  %v1472_v10 = vrot.slane %v1470_v1, 5  ;;  %v1480_v12 = vshll.u32 %v1285_v60, 16  ;;  %v17212_v13 = vcombine.low %v1425_v62, %v1435_v63  ;;  %v1290_v28 = vld [vmem:[%s22275_s15 + $0x64] sm:$0xf] }
  0x38   : > { %19733 = vmatprep.subr.bf16.mxu0 %v21524_v53  ;;  %v1454_v14 = vrot.slane %v1453_v5, 4  ;;  %v1485_v15 = vshrl.u32 %v1286_v2, 16  ;;  %v1488_v16 = vshll.u32 %v1286_v2, 16  ;;  %v1449_v17 = vsel %vm22291_vm2, %v1444_v4, %v22342_v55  ;;  %v1293_v44 = vld [vmem:[%s22275_s15 + $0x70] sm:$0xf] }
  0x39   : > { %v1467_v18 = vor.u32 %v1466_v9, %v1463_v7  ;;  %v1476_v19 = vrot.slane %v1474_v11, 4  ;;  %v1494_v21 = vshll.u32 %v1287_v8, 16  ;;  %v1482_v23 = vrot.slane %v1480_v12, 5  ;;  %v1294_v60 = vld [vmem:[%s22275_s15 + $0x74] sm:$0x1]  ;;  %v21528_v9 = vld [vmem:[%s26610_s1 + $0xe8] sm:$0xff]  }
  0x3a   : > { %v1487_v24 = vrot.slane %v1485_v15, 4  ;;  %v1490_v25 = vrot.slane %v1488_v16, 5  ;;  %v1498_v27 = vshrl.u32 %v1287_v8, 16  ;;  %v1459_v29 = vsel %vm22291_vm2, %v1454_v14, %v1458_v6  ;;  %v1295_v4 = vld [vmem:[%s22275_s15 + $0x78] sm:$0xf] }
  0x3b   : > { %19734 = vmatpush3.bf16.msra.mxu0 %v21524_v53  ;;  %v1468_v30 = vrot.slane %v1467_v18, 4  ;;  %v1477_v31 = vor.u32 %v1476_v19, %v1472_v10  ;;  %v22364_v32 = vrot.slane %v1494_v21, 5  ;;  %v1504_v37 = vshll.u32 %v1288_v20, 16  ;;  %v21527_v53 = vld [vmem:[%s26610_s1 + $0xe0] sm:$0xff]   ;;  %v1296_v8 = vld [vmem:[%s22275_s15 + $0x7c] sm:$0xf] }
  0x3c   : > { %19735 = vmatprep.subr.bf16.mxu0 %v21525_v3  ;;  %v1491_v35 = vor.u32 %v1490_v25, %v1487_v24  ;;  %v1500_v36 = vrot.slane %v1498_v27, 4  ;;  %v1509_v38 = vshrl.u32 %v1289_v22, 16  ;;  %v1512_v42 = vshll.u32 %v1289_v22, 16  ;;  %v1297_v21 = vld [vmem:[%s22275_s15 + $0x80] sm:$0x1] }
  0x3d   : > { %v1473_v40 = vsel %vm22291_vm2, %v1468_v30, %v1472_v10  ;;  %v1478_v41 = vrot.slane %v1477_v31, 4  ;;  %v1518_v43 = vshll.u32 %v1290_v28, 16  ;;  %v1506_v47 = vrot.slane %v1504_v37, 5  ;;  %v21529_v30 = vld [vmem:[%s26610_s1 + $0xf0] sm:$0xff]  }
  0x3e   : > { %19704 = vmatmul.mubr.bf16.gmra.mrb[4].mxu0 %v17211_v57  ;;  %v1492_v45 = vrot.slane %v1491_v35, 4  ;;  %v1501_v46 = vor.u32 %v1500_v36, %v22364_v32  ;;  %v1511_v48 = vrot.slane %v1509_v38, 4  ;;  %v1514_v50 = vrot.slane %v1512_v42, 5  ;;  %v1300_v35 = vld [vmem:[%s22275_s15 + $0x8c] sm:$0x1] }
  0x3f   : > { %19707 = vmatprep.mubr.bf16.mxu0 %v17212_v13  ;;  %19736 = vmatpush3.bf16.msra.mxu0 %v21525_v3  ;;  %v1483_v49 = vsel %vm22291_vm2, %v1478_v41, %v1482_v23  ;;  %v1520_v51 = vrot.slane %v1518_v43, 5  ;;  %v1522_v52 = vshrl.u32 %v1290_v28, 16  ;;  %v17213_v54 = vcombine.low %v1449_v17, %v1459_v29  ;;  %v1298_v23 = vld [vmem:[%s22275_s15 + $0x84] sm:$0xf]  ;;  %v1299_v29 = vld [vmem:[%s22275_s15 + $0x88] sm:$0xf] }
  0x40   : > { %19737 = vmatprep.subr.bf16.mxu0 %v21526_v33  ;;  %v17214_v55 = vcombine.low %v1473_v40, %v1483_v49  ;;  %v1502_v56 = vrot.slane %v1501_v46, 4  ;;  %v1528_v57 = vshll.u32 %v1291_v34, 16  ;;  %v1515_v58 = vor.u32 %v1514_v50, %v1511_v48  ;;  %v1301_v40 = vld [vmem:[%s22275_s15 + $0x90] sm:$0xf]  ;;  %v21530_v41 = vld [vmem:[%s26610_s1 + $0xf8] sm:$0xff]  }
  0x41   : > { %v1524_v59 = vrot.slane %v1522_v52, 4  ;;  %v1533_v61 = vshrl.u32 %v1292_v39, 16  ;;  %v1536_v62 = vshll.u32 %v1292_v39, 16  ;;  %v1497_v63 = vsel %vm22291_vm2, %v1492_v45, %v22364_v32  ;;  %v1302_v46 = vld [vmem:[%s22275_s15 + $0x94] sm:$0xf] }
  0x42   : > { %v1507_v0 = vsel %vm22291_vm2, %v1502_v56, %v1506_v47  ;;  %v1542_v1 = vshll.u32 %v1293_v44, 16  ;;  %v1546_v2 = vshrl.u32 %v1293_v44, 16  ;;  %v1516_v5 = vrot.slane %v1515_v58, 4  ;;  %v1304_v56 = vld [vmem:[%s22275_s15 + $0x9c] sm:$0xf] }
  0x43   : > { %19738 = vmatpush3.bf16.msra.mxu0 %v21526_v33  ;;  %v1525_v6 = vor.u32 %v1524_v59, %v1520_v51  ;;  %v1530_v3 = vrot.slane %v1528_v57, 5  ;;  %v1535_v7 = vrot.slane %v1533_v61, 4  ;;  %v1538_v10 = vrot.slane %v1536_v62, 5 }
  0x44   : > { %19739 = vmatprep.subr.bf16.mxu0 %v21527_v53  ;;  %v22391_v11 = vrot.slane %v1542_v1, 5  ;;  %v1548_v12 = vrot.slane %v1546_v2, 4  ;;  %v1552_v13 = vshll.u32 %v1294_v60, 16  ;;  %v1521_v14 = vsel %vm22291_vm2, %v1516_v5, %v1520_v51  ;;  %v1305_v1 = vld [vmem:[%s22275_s15 + $0xa0] sm:$0xf] }
  0x45   : > { %v1526_v15 = vrot.slane %v1525_v6, 4  ;;  %v1557_v16 = vshrl.u32 %v1295_v4, 16  ;;  %v1560_v17 = vshll.u32 %v1295_v4, 16  ;;  %v1539_v18 = vor.u32 %v1538_v10, %v1535_v7 }
  0x46   : > { %19708 = vmatmul.mubr.bf16.gmra.mrb[8].mxu0 %v17213_v54  ;;  %v1549_v19 = vor.u32 %v1548_v12, %v22391_v11  ;;  %v1554_v20 = vrot.slane %v1552_v13, 5  ;;  %v1566_v22 = vshll.u32 %v1296_v8, 16  ;;  %v1570_v28 = vshrl.u32 %v1296_v8, 16 }
  0x47   : > { %19711 = vmatprep.mubr.bf16.mxu0 %v17214_v55  ;;  %19740 = vmatpush3.bf16.msra.mxu0 %v21527_v53  ;;  %v1531_v24 = vsel %vm22291_vm2, %v1526_v15, %v1530_v3  ;;  %v1559_v25 = vrot.slane %v1557_v16, 4  ;;  %v1562_v27 = vrot.slane %v1560_v17, 5  ;;  %v17215_v31 = vcombine.low %v1497_v63, %v1507_v0  ;;  %v1303_v55 = vld [vmem:[%s22275_s15 + $0x98] sm:$0x1]  ;;  %v22427_v3 = vld [vmem:[%s26610_s1 + $0x100] sm:$0xff]  }
  0x48   : > { %19741 = vmatprep.subr.bf16.mxu0 %v21528_v9  ;;  %v1540_v32 = vrot.slane %v1539_v18, 4  ;;  %v1550_v33 = vrot.slane %v1549_v19, 4  ;;  %v1568_v34 = vrot.slane %v1566_v22, 5  ;;  %v1572_v37 = vrot.slane %v1570_v28, 4  ;;  %v1307_v16 = vld [vmem:[%s22275_s15 + $0xa8] sm:$0xf] }
  0x49   : > { %v1563_v36 = vor.u32 %v1562_v27, %v1559_v25  ;;  %v1576_v38 = vshll.u32 %v1297_v21, 16  ;;  %v1581_v39 = vshrl.u32 %v1298_v23, 16  ;;  %v17216_v42 = vcombine.low %v1521_v14, %v1531_v24  ;;  %v1308_v21 = vld [vmem:[%s22275_s15 + $0xac] sm:$0xf] }
  0x4a   : > { %v1545_v43 = vsel %vm22291_vm2, %v1540_v32, %v22391_v11  ;;  %v1584_v44 = vshll.u32 %v1298_v23, 16  ;;  %v1590_v45 = vshll.u32 %v1299_v29, 16  ;;  %v1555_v47 = vsel %vm22291_vm2, %v1550_v33, %v1554_v20  ;;  %v1306_v11 = vld [vmem:[%s22275_s15 + $0xa4] sm:$0x1] }
  0x4b   : > { %19742 = vmatpush3.bf16.msra.mxu0 %v21528_v9  ;;  %v1564_v48 = vrot.slane %v1563_v36, 4  ;;  %v1573_v49 = vor.u32 %v1572_v37, %v1568_v34  ;;  %v1578_v50 = vrot.slane %v1576_v38, 5  ;;  %v1583_v51 = vrot.slane %v1581_v39, 4  ;;  %v1310_v36 = vld [vmem:[%s22275_s15 + $0xb4] sm:$0xf] }
  0x4c   : > { %19743 = vmatprep.subr.bf16.mxu0 %v21529_v30  ;;  %v1586_v52 = vrot.slane %v1584_v44, 5  ;;  %v22415_v53 = vrot.slane %v1590_v45, 5  ;;  %v1594_v54 = vshrl.u32 %v1299_v29, 16  ;;  %v1600_v59 = vshll.u32 %v1300_v35, 16 }
  0x4d   : > { %v1569_v57 = vsel %vm22291_vm2, %v1564_v48, %v1568_v34  ;;  %v1574_v58 = vrot.slane %v1573_v49, 4  ;;  %v1605_v60 = vshrl.u32 %v1301_v40, 16  ;;  %v1608_v63 = vshll.u32 %v1301_v40, 16 }
  0x4e   : > { %19712 = vmatmul.mubr.bf16.gmra.mrb[12].mxu0 %v17215_v31  ;;  %v1587_v61 = vor.u32 %v1586_v52, %v1583_v51  ;;  %v1596_v62 = vrot.slane %v1594_v54, 4  ;;  %v1614_v0 = vshll.u32 %v1302_v46, 16  ;;  %v1602_v4 = vrot.slane %v1600_v59, 5  ;;  %v1309_v31 = vld [vmem:[%s22275_s15 + $0xb0] sm:$0x1] }
  0x4f   : > { %19715 = vmatprep.mubr.bf16.mxu0 %v17216_v42  ;;  %19744 = vmatpush3.bf16.msra.mxu0 %v21529_v30  ;;  %v1579_v2 = vsel %vm22291_vm2, %v1574_v58, %v1578_v50  ;;  %v1607_v5 = vrot.slane %v1605_v60, 4  ;;  %v1618_v6 = vshrl.u32 %v1302_v46, 16  ;;  %v17217_v7 = vcombine.low %v1545_v43, %v1555_v47  ;;  %v1312_v60 = vld [vmem:[%s22275_s15 + $0xbc] sm:$0x1] }
  0x50   : > { %19745 = vmatprep.subr.bf16.mxu0 %v21530_v41  ;;  %v1588_v8 = vrot.slane %v1587_v61, 4  ;;  %v1597_v9 = vor.u32 %v1596_v62, %v22415_v53  ;;  %v1610_v10 = vrot.slane %v1608_v63, 5  ;;  %v1616_v12 = vrot.slane %v1614_v0, 5 }
  0x51   : > { %v1620_v13 = vrot.slane %v1618_v6, 4  ;;  %v1624_v14 = vshll.u32 %v1303_v55, 16  ;;  %v1629_v15 = vshrl.u32 %v1304_v56, 16  ;;  %v17218_v17 = vcombine.low %v1569_v57, %v1579_v2 }
  0x52   : > { %v1598_v18 = vrot.slane %v1597_v9, 4  ;;  %v1611_v19 = vor.u32 %v1610_v10, %v1607_v5  ;;  %v1632_v20 = vshll.u32 %v1304_v56, 16  ;;  %v1638_v25 = vshll.u32 %v1305_v1, 16 }
  0x53   : > { %19746 = vmatpush3.bf16.msra.mxu0 %v21530_v41  ;;  %v1621_v22 = vor.u32 %v1620_v13, %v1616_v12  ;;  %v1626_v23 = vrot.slane %v1624_v14, 5  ;;  %v1631_v24 = vrot.slane %v1629_v15, 4  ;;  %v1593_v27 = vsel %vm22291_vm2, %v1588_v8, %v22415_v53  ;;  %v1311_v41 = vld [vmem:[%s22275_s15 + $0xb8] sm:$0xf] }
  0x54   : > { %19779 = vmatprep.subr.bf16.mxu0 %v22427_v3  ;;  %v1612_v28 = vrot.slane %v1611_v19, 4  ;;  %v1634_v29 = vrot.slane %v1632_v20, 5  ;;  %v1642_v30 = vshrl.u32 %v1305_v1, 16  ;;  %v1603_v32 = vsel %vm22291_vm2, %v1598_v18, %v1602_v4 }
  0x55   : > { %v1622_v33 = vrot.slane %v1621_v22, 4  ;;  %v1640_v34 = vrot.slane %v1638_v25, 5  ;;  %v1648_v35 = vshll.u32 %v1306_v11, 16  ;;  %v1653_v40 = vshrl.u32 %v1307_v16, 16  ;;  %v21531_v22 = vld [vmem:[%s22275_s15 + $0x198] sm:$0xff]   ;;  %v21534_v25 = vld [vmem:[%s22275_s15 + $0x1b0] sm:$0xff]  }
  0x56   : > { %19716 = vmatmul.mubr.bf16.gmra.mrb[16].mxu0 %v17217_v7  ;;  %v1617_v37 = vsel %vm22291_vm2, %v1612_v28, %v1616_v12  ;;  %v1635_v38 = vor.u32 %v1634_v29, %v1631_v24  ;;  %v1644_v39 = vrot.slane %v1642_v30, 4  ;;  %v1656_v44 = vshll.u32 %v1307_v16, 16  ;;  %v21532_v24 = vld [vmem:[%s22275_s15 + $0x1a4] sm:$0xff]   ;;  %v21539_v28 = vld [vmem:[%s26610_s1 + $0x110] sm:$0xff]   ;;  %v21535_v29 = vld [vmem:[%s22275_s15 + $0x1bc] sm:$0xff]  }
  0x57   : > { %19719 = vmatprep.mubr.bf16.mxu0 %v17218_v17  ;;  %v1627_v42 = vsel %vm22291_vm2, %v1622_v33, %v1626_v23  ;;  %v1650_v43 = vrot.slane %v1648_v35, 5  ;;  %v1662_v45 = vshll.u32 %v1308_v21, 16  ;;  %v17219_v46 = vcombine.low %v1593_v27, %v1603_v32  ;;  %v21536_v27 = vld [vmem:[%s26610_s1 + $0x108] sm:$0xff]   ;;  %v21538_v32 = vld [vmem:[%s22275_s15 + $0x1d4] sm:$0xff]   ;;  %v21540_v33 = vld [vmem:[%s22275_s15 + $0x1e0] sm:$0xff]  }
  0x58   : > { %v1636_v47 = vrot.slane %v1635_v38, 4  ;;  %v1645_v48 = vor.u32 %v1644_v39, %v1640_v34  ;;  %v1655_v49 = vrot.slane %v1653_v40, 4  ;;  %v1658_v50 = vrot.slane %v1656_v44, 5  ;;  %v21537_v30 = vld [vmem:[%s22275_s15 + $0x1c8] sm:$0xff]   ;;  %v21551_v35 = vld [vmem:[%s26610_s1 + $0x130] sm:$0xff]   ;;  %v21554_v38 = vld [vmem:[%s26610_s1 + $0x138] sm:$0xff]  }
  0x59   : > { %v1664_v51 = vrot.slane %v1662_v45, 5  ;;  %v1666_v52 = vshrl.u32 %v1308_v21, 16  ;;  %v1672_v53 = vshll.u32 %v1309_v31, 16  ;;  %v17220_v54 = vcombine.low %v1617_v37, %v1627_v42  ;;  %v21542_v31 = vld [vmem:[%s26610_s1 + $0x118] sm:$0xff]   ;;  %v22493_v39 = vld [vmem:[%s26610_s1 + $0x140] sm:$0xff]   ;;  %v21586_v44 = vld [vmem:[%s26610_s1 + $0x10] sm:$0xff]  }
  0x5a   : > { %v1646_v55 = vrot.slane %v1645_v48, 4  ;;  %v1677_v56 = vshrl.u32 %v1310_v36, 16  ;;  %v1680_v57 = vshll.u32 %v1310_v36, 16  ;;  %v1659_v58 = vor.u32 %v1658_v50, %v1655_v49  ;;  %v21541_v36 = vld [vmem:[%s22275_s15 + $0x1ec] sm:$0xff]   ;;  %v21543_v37 = vld [vmem:[%s22275_s15 + $0x1f8] sm:$0xff]   ;;  %v21583_v40 = vld [vmem:[%s26610_s1] sm:$0xff]  }
  0x5b   : > { %v1668_v59 = vrot.slane %v1666_v52, 4  ;;  %v1686_v61 = vshll.u32 %v1311_v41, 16  ;;  %v1674_v62 = vrot.slane %v1672_v53, 5  ;;  %v1690_v1 = vshrl.u32 %v1311_v41, 16  ;;  %v21584_v41 = vld [vmem:[%s26610_s1 + $0x8] sm:$0xff]   ;;  %19587 = vmatprep.subr.bf16.mxu1 %v21583_v40  ;;  %v21587_v45 = vld [vmem:[%s26610_s1 + $0x18] sm:$0xff]  }
  0x5c   : > { %v1679_v63 = vrot.slane %v1677_v56, 4  ;;  %v1682_v0 = vrot.slane %v1680_v57, 5  ;;  %v1641_v2 = vsel %vm22291_vm2, %v1636_v47, %v1640_v34  ;;  %v1660_v4 = vrot.slane %v1659_v58, 4  ;;  %v21548_v34 = vld [vmem:[%s26610_s1 + $0x128] sm:$0xff]   ;;  %19588 = vmatpush3.bf16.msra.mxu1 %v21583_v40  ;;  %v17376_v47 = vld [vmem:[%s22275_s15 + $0x198] sm:$0xf] }
  0x5d   : > { %v1669_v5 = vor.u32 %v1668_v59, %v1664_v51  ;;  %v1688_v6 = vrot.slane %v1686_v61, 5  ;;  %v1651_v7 = vsel %vm22291_vm2, %v1646_v55, %v1650_v43  ;;  %v1692_v9 = vrot.slane %v1690_v1, 4  ;;  %v21544_v42 = vld [vmem:[%s22275_s15 + $0x204] sm:$0xff]   ;;  %v21546_v43 = vld [vmem:[%s22275_s15 + $0x210] sm:$0xff]   ;;  %19589 = vmatprep.subr.bf16.mxu1 %v21584_v41  ;;  %v17377_v49 = vld [vmem:[%s22275_s15 + $0x19c] sm:$0xf] }
  0x5e   : > { %19720 = vmatmul.mubr.bf16.gmra.mrb[20].mxu0 %v17219_v46  ;;  %v1683_v8 = vor.u32 %v1682_v0, %v1679_v63  ;;  %v1696_v10 = vshll.u32 %v1312_v60, 16  ;;  %v1665_v11 = vsel %vm22291_vm2, %v1660_v4, %v1664_v51  ;;  %v17221_v15 = vcombine.low %v1641_v2, %v1651_v7  ;;  %v21547_v46 = vld [vmem:[%s22275_s15 + $0x21c] sm:$0xff]   ;;  %v21549_v48 = vld [vmem:[%s22275_s15 + $0x228] sm:$0xff]   ;;  %v17379_v52 = vld [vmem:[%s22275_s15 + $0x1a4] sm:$0xf] }
  0x5f   : > { %19723 = vmatprep.mubr.bf16.mxu0 %v17220_v54  ;;  %v1670_v12 = vrot.slane %v1669_v5, 4  ;;  %v1693_v14 = vor.u32 %v1692_v9, %v1688_v6  ;;  %v2845_v50 = vshrl.u32 %v17376_v47, 16  ;;  %v2848_v51 = vshll.u32 %v17376_v47, 16  ;;  %v17380_v53 = vld [vmem:[%s22275_s15 + $0x1a8] sm:$0xf]  ;;  %v21550_v56 = vld [vmem:[%s22275_s15 + $0x234] sm:$0xff]  }
  0x60   : > { %v1684_v13 = vrot.slane %v1683_v8, 4  ;;  %v1698_v19 = vrot.slane %v1696_v10, 5  ;;  %19590 = vmatpush3.bf16.msra.mxu1 %v21584_v41  ;;  %v2854_v54 = vshll.u32 %v17377_v49, 16  ;;  %v2858_v55 = vshrl.u32 %v17377_v49, 16  ;;  %v17382_v59 = vld [vmem:[%s22275_s15 + $0x1b0] sm:$0xf] }
  0x61   : > { %v1675_v16 = vsel %vm22291_vm2, %v1670_v12, %v1674_v62  ;;  %v1694_v18 = vrot.slane %v1693_v14, 4  ;;  %19591 = vmatprep.subr.bf16.mxu1 %v21586_v44  ;;  %v2869_v57 = vshrl.u32 %v17379_v52, 16  ;;  %v2872_v58 = vshll.u32 %v17379_v52, 16  ;;  %v21552_v60 = vld [vmem:[%s22275_s15 + $0x240] sm:$0xff]   ;;  %v17383_v2 = vld [vmem:[%s22275_s15 + $0x1b4] sm:$0xf] }
  0x62   : > { %v17222_v17 = vcombine.low %v1665_v11, %v1675_v16  ;;  %v1689_v20 = vsel %vm22291_vm2, %v1684_v13, %v1688_v6  ;;  %v17378_v61 = vld [vmem:[%s22275_s15 + $0x1a0] sm:$0x1]  ;;  %v2847_v62 = vrot.slane %v2845_v50, 4  ;;  %v2850_v63 = vrot.slane %v2848_v51, 5  ;;  %v17381_v6 = vld [vmem:[%s22275_s15 + $0x1ac] sm:$0x1] }
  0x63   : > { %v1699_v21 = vsel %vm22291_vm2, %v1694_v18, %v1698_v19  ;;  %v2878_v0 = vshll.u32 %v17380_v53, 16  ;;  %v2882_v1 = vshrl.u32 %v17380_v53, 16  ;;  %v22521_v4 = vrot.slane %v2854_v54, 5  ;;  %v17384_v19 = vld [vmem:[%s22275_s15 + $0x1b8] sm:$0x1] }
  0x64   : > { %v17223_v23 = vcombine.low %v1689_v20, %v1699_v21  ;;  %19592 = vmatpush3.bf16.msra.mxu1 %v21586_v44  ;;  %v2860_v5 = vrot.slane %v2858_v55, 4  ;;  %v2893_v7 = vshrl.u32 %v17382_v59, 16  ;;  %v2896_v8 = vshll.u32 %v17382_v59, 16  ;;  %v17388_v41 = vld [vmem:[%s22275_s15 + $0x1c8] sm:$0xf]  ;;  %v21593_v53 = vld [vmem:[%s26610_s1 + $0x38] sm:$0xff]  }
  0x65   : > { %19593 = vmatprep.subr.bf16.mxu1 %v21587_v45  ;;  %v2871_v9 = vrot.slane %v2869_v57, 4  ;;  %v2874_v10 = vrot.slane %v2872_v58, 5  ;;  %v22524_v11 = vrot.slane %v2878_v0, 5  ;;  %v2884_v12 = vrot.slane %v2882_v1, 4  ;;  %v17391_v58 = vld [vmem:[%s22275_s15 + $0x1d4] sm:$0xf] }
  0x66   : > { %19724 = vmatmul.mubr.bf16.gmra.mrb[24].mxu0 %v17221_v15  ;;  %v2902_v13 = vshll.u32 %v17383_v2, 16  ;;  %v2906_v14 = vshrl.u32 %v17383_v2, 16  ;;  %v21589_v15 = vld [vmem:[%s26610_s1 + $0x20] sm:$0xff]   ;;  %v2851_v16 = vor.u32 %v2850_v63, %v2847_v62  ;;  %v2888_v18 = vshll.u32 %v17381_v6, 16  ;;  %v21556_v59 = vld [vmem:[%s22275_s15 + $0x270] sm:$0xff]   ;;  %v21560_v0 = vld [vmem:[%s26610_s1 + $0x148] sm:$0xff]  }
  0x67   : > { %19727 = vmatprep.mubr.bf16.mxu0 %v17222_v17  ;;  %v2864_v17 = vshll.u32 %v17378_v61, 16  ;;  %v2861_v20 = vor.u32 %v2860_v5, %v22521_v4  ;;  %v2895_v21 = vrot.slane %v2893_v7, 4  ;;  %v2941_v52 = vshrl.u32 %v17388_v41, 16  ;;  %v21558_v61 = vld [vmem:[%s22275_s15 + $0x27c] sm:$0xff]  }
  0x68   : > { %19594 = vmatpush3.bf16.msra.mxu1 %v21587_v45  ;;  %v17394_v7 = vld [vmem:[%s22275_s15 + $0x1e0] sm:$0xf] }
  0x69   : > { %19595 = vmatprep.subr.bf16.mxu1 %v21589_v15  ;;  %v22587_v5 = vrot.slane %v2941_v52, 4 }
  0x6c   : > { %19596 = vmatpush3.bf16.msra.mxu1 %v21589_v15  ;;  %v17397_v15 = vld [vmem:[%s22275_s15 + $0x1ec] sm:$0xf] }
  0x6e   : > { %19728 = vmatmul.mubr.bf16.gmra.mrb[28].mxu0 %v17223_v23  ;;  %v17385_v23 = vld [vmem:[%s22275_s15 + $0x1bc] sm:$0xf] }
  0x6f   : > { %19747 = vmatprep.mubr.bf16.mxu0 %v21531_v22  ;;  %v2898_v22 = vrot.slane %v2896_v8, 5  ;;  %v2920_v40 = vshll.u32 %v17385_v23, 16 }
  0x71   : > { %v22571_v55 = vrot.slane %v2920_v40, 5 }
  0x76   : > { %19748 = vmatmul.mubr.bf16.vlgmr.msra.gmra.mrb[0].mxu0 %v21532_v24  ;;  %v21553_v24 = vld [vmem:[%s22275_s15 + $0x24c] sm:$0xff]  }
  0x77   : > { %19780 = vmatpush3.bf16.msra.mxu0 %v22427_v3  ;;  %19751 = vmatprep.mubr.bf16.mxu0 %v21534_v25  ;;  %v21545_v3 = vld [vmem:[%s26610_s1 + $0x120] sm:$0xff]   ;;  %v21590_v25 = vld [vmem:[%s26610_s1 + $0x28] sm:$0xff]  }
  0x78   : > { %19781 = vmatprep.subr.bf16.mxu0 %v21536_v27  ;;  %19597 = vmatprep.subr.bf16.mxu1 %v21590_v25 }
  0x79   : > { %19598 = vmatpush3.bf16.msra.mxu1 %v21590_v25 }
  0x7b   : > { %19782 = vmatpush3.bf16.msra.mxu0 %v21536_v27  ;;  %v2875_v27 = vor.u32 %v2874_v10, %v2871_v9  ;;  %v2965_v10 = vshrl.u32 %v17391_v58, 16 }
  0x7c   : > { %19783 = vmatprep.subr.bf16.mxu0 %v21539_v28 }
  0x7e   : > { %19752 = vmatmul.mubr.bf16.gmra.mrb[4].mxu0 %v21535_v29  ;;  %v22537_v29 = vrot.slane %v2902_v13, 5  ;;  %v17395_v13 = vld [vmem:[%s22275_s15 + $0x1e4] sm:$0xf] }
  0x7f   : > { %19755 = vmatprep.mubr.bf16.mxu0 %v21537_v30  ;;  %19784 = vmatpush3.bf16.msra.mxu0 %v21539_v28  ;;  %v2885_v28 = vor.u32 %v2884_v12, %v22524_v11  ;;  %v2908_v30 = vrot.slane %v2906_v14, 4  ;;  %v2968_v12 = vshll.u32 %v17391_v58, 16  ;;  %v3002_v25 = vshrl.u32 %v17395_v13, 16 }
  0x80   : > { %19785 = vmatprep.subr.bf16.mxu0 %v21542_v31 }
  0x81   : > { %v22553_v44 = vrot.slane %v2885_v28, 4  ;;  %v2909_v45 = vor.u32 %v2908_v30, %v22537_v29  ;;  %v2967_v28 = vrot.slane %v2965_v10, 4  ;;  %v2970_v30 = vrot.slane %v2968_v12, 5 }
  0x82   : > { %v3004_v52 = vrot.slane %v3002_v25, 4 }
  0x83   : > { %19786 = vmatpush3.bf16.msra.mxu0 %v21542_v31  ;;  %v22539_v31 = vrot.slane %v2851_v16, 4  ;;  %v22577_v62 = vrot.slane %v2909_v45, 4  ;;  %v17398_v16 = vld [vmem:[%s22275_s15 + $0x1f0] sm:$0xf] }
  0x84   : > { %19787 = vmatprep.subr.bf16.mxu0 %v21545_v3  ;;  %v3022_v40 = vshll.u32 %v17398_v16, 16 }
  0x86   : > { %19756 = vmatmul.mubr.bf16.gmra.mrb[8].mxu0 %v21538_v32  ;;  %v2912_v32 = vshll.u32 %v17384_v19, 16  ;;  %v2989_v19 = vshrl.u32 %v17394_v7, 16 }
  0x87   : > { %19759 = vmatprep.mubr.bf16.mxu0 %v21540_v33  ;;  %19788 = vmatpush3.bf16.msra.mxu0 %v21545_v3  ;;  %v22541_v3 = vrot.slane %v2864_v17, 5  ;;  %v17386_v33 = vld [vmem:[%s22275_s15 + $0x1c0] sm:$0xf] }
  0x88   : > { %19789 = vmatprep.subr.bf16.mxu0 %v21548_v34  ;;  %v2926_v47 = vshll.u32 %v17386_v33, 16  ;;  %v22562_v49 = vrot.slane %v2912_v32, 5  ;;  %v2930_v51 = vshrl.u32 %v17386_v33, 16  ;;  %v21595_v17 = vld [vmem:[%s22275_s15] sm:$0xff]   ;;  %v3013_v32 = vshrl.u32 %v17397_v15, 16 }
  0x89   : > { %19603 = vmatprep.mubr.bf16.mxu1 %v21595_v17  ;;  %v3016_v33 = vshll.u32 %v17397_v15, 16 }
  0x8a   : > { %v22579_v63 = vrot.slane %v2926_v47, 5  ;;  %v22584_v1 = vrot.slane %v2930_v51, 4  ;;  %v3015_v58 = vrot.slane %v3013_v32, 4 }
  0x8b   : > { %19790 = vmatpush3.bf16.msra.mxu0 %v21548_v34  ;;  %v2917_v34 = vshrl.u32 %v17385_v23, 16  ;;  %v2992_v23 = vshll.u32 %v17394_v7, 16 }
  0x8c   : > { %19791 = vmatprep.subr.bf16.mxu0 %v21551_v35  ;;  %v2933_v47 = vor.u32 %v22584_v1, %v22579_v63 }
  0x8d   : > { %v22564_v50 = vrot.slane %v2917_v34, 4  ;;  %v21559_v34 = vld [vmem:[%s22275_s15 + $0x288] sm:$0xff]  }
  0x8e   : > { %19760 = vmatmul.mubr.bf16.gmra.mrb[12].mxu0 %v21541_v36  ;;  %v22545_v36 = vrot.slane %v2861_v20, 4  ;;  %v21563_v20 = vld [vmem:[%s26610_s1 + $0x150] sm:$0xff]   ;;  %v22630_v12 = vrot.slane %v2933_v47, 4 }
  0x8f   : > { %19763 = vmatprep.mubr.bf16.mxu0 %v21543_v37  ;;  %19792 = vmatpush3.bf16.msra.mxu0 %v21551_v35  ;;  %v21555_v35 = vld [vmem:[%s22275_s15 + $0x264] sm:$0xff]   ;;  %v22547_v37 = vrot.slane %v2888_v18, 5 }
  0x90   : > { %19793 = vmatprep.subr.bf16.mxu0 %v21554_v38 }
  0x93   : > { %19794 = vmatpush3.bf16.msra.mxu0 %v21554_v38  ;;  %v2899_v38 = vor.u32 %v2898_v22, %v2895_v21  ;;  %v17390_v21 = vld [vmem:[%s22275_s15 + $0x1d0] sm:$0x1] }
  0x94   : > { %19827 = vmatprep.subr.bf16.mxu0 %v22493_v39 }
  0x95   : > { %v22569_v54 = vrot.slane %v2899_v38, 4  ;;  %v17396_v38 = vld [vmem:[%s22275_s15 + $0x1e8] sm:$0x1] }
  0x96   : > { %19764 = vmatmul.mubr.bf16.gmra.mrb[16].mxu0 %v21544_v42  ;;  %v17389_v42 = vld [vmem:[%s22275_s15 + $0x1cc] sm:$0xf]  ;;  %v3008_v10 = vshll.u32 %v17396_v38, 16 }
  0x97   : > { %19767 = vmatprep.mubr.bf16.mxu0 %v21546_v43  ;;  %v22551_v43 = vrot.slane %v2875_v27, 4  ;;  %v2950_v57 = vshll.u32 %v17389_v42, 16  ;;  %v2954_v6 = vshrl.u32 %v17389_v42, 16  ;;  %v17393_v27 = vld [vmem:[%s22275_s15 + $0x1dc] sm:$0x1]  ;;  %v2960_v42 = vshll.u32 %v17390_v21, 16 }
  0x98   : > { %v2984_v1 = vshll.u32 %v17393_v27, 16  ;;  %v21562_v21 = vld [vmem:[%s22275_s15 + $0x2a0] sm:$0xff]   ;;  %v22651_v27 = vrot.slane %v3008_v10, 5 }
  0x99   : > { %v22592_v9 = vrot.slane %v2950_v57, 5  ;;  %v2956_v22 = vrot.slane %v2954_v6, 4  ;;  %v17399_v57 = vld [vmem:[%s22275_s15 + $0x1f4] sm:$0x1]  ;;  %v22623_v6 = vrot.slane %v3022_v40, 5 }
  0x9a   : > { %v17402_v40 = vld [vmem:[%s22275_s15 + $0x200] sm:$0x1] }
  0x9e   : > { %19768 = vmatmul.mubr.bf16.gmra.mrb[20].mxu0 %v21547_v46  ;;  %v22557_v46 = vld [vmem:[%s22275_s15 + $0x1c4] sm:$0x1] }
  0x9f   : > { %19771 = vmatprep.mubr.bf16.mxu0 %v21549_v48  ;;  %v21592_v48 = vld [vmem:[%s26610_s1 + $0x30] sm:$0xff]   ;;  %v2936_v2 = vshll.u32 %v22557_v46, 16  ;;  %v2991_v46 = vrot.slane %v2989_v19, 4  ;;  %v3032_v19 = vshll.u32 %v17399_v57, 16  ;;  %v17403_v57 = vld [vmem:[%s22275_s15 + $0x204] sm:$0xf] }
  0xa0   : > { %19599 = vmatprep.subr.bf16.mxu1 %v21592_v48 }
  0xa1   : > { %19600 = vmatpush3.bf16.msra.mxu1 %v21592_v48  ;;  %v2994_v48 = vrot.slane %v2992_v23, 5  ;;  %v22645_v23 = vrot.slane %v2984_v1, 5  ;;  %v22664_v38 = vrot.slane %v3032_v19, 5  ;;  %v17405_v1 = vld [vmem:[%s22275_s15 + $0x20c] sm:$0x1]  ;;  %v21606_v19 = vld [vmem:[%s22275_s15 + $0x3c] sm:$0xff]  }
  0xa2   : > { %19601 = vmatprep.subr.bf16.mxu1 %v21593_v53 }
  0xa5   : > { %19602 = vmatpush3.bf16.msra.mxu1 %v21593_v53  ;;  %v21596_v53 = vld [vmem:[%s22275_s15 + $0xc] sm:$0xff]  }
  0xa6   : > { %19772 = vmatmul.mubr.bf16.gmra.mrb[24].mxu0 %v21550_v56  ;;  %v2944_v56 = vshll.u32 %v17388_v41, 16  ;;  %v3026_v41 = vshrl.u32 %v17398_v16, 16 }
  0xa7   : > { %19775 = vmatprep.mubr.bf16.mxu0 %v21552_v60  ;;  %v17392_v60 = vld [vmem:[%s22275_s15 + $0x1d8] sm:$0xf] }
  0xa8   : > { %v22590_v8 = vrot.slane %v2944_v56, 5  ;;  %v2974_v14 = vshll.u32 %v17392_v60, 16  ;;  %v2978_v18 = vshrl.u32 %v17392_v60, 16  ;;  %v21561_v56 = vld [vmem:[%s22275_s15 + $0x294] sm:$0xff]   ;;  %v3028_v7 = vrot.slane %v3026_v41, 4  ;;  %19604 = vmatmul.mubr.bf16.vlgmr.msra.gmra.mrb[0].mxu1 %v21596_v53 }
  0xa9   : > { %v21566_v60 = vld [vmem:[%s26610_s1 + $0x158] sm:$0xff]  }
  0xaa   : > { %v22608_v45 = vrot.slane %v2974_v14, 5  ;;  %v2995_v14 = vor.u32 %v2994_v48, %v2991_v46  ;;  %v21600_v46 = vld [vmem:[%s22275_s15 + $0x18] sm:$0xff]  }
  0xab   : > { %19607 = vmatprep.mubr.bf16.mxu1 %v21600_v46  ;;  %v21565_v53 = vld [vmem:[%s22275_s15 + $0x2b8] sm:$0xff]  }
  0xac   : > { %v22657_v32 = vrot.slane %v2995_v14, 4 }
  0xae   : > { %19776 = vmatmul.mubr.bf16.gmra.mrb[28].mxu0 %v21553_v24  ;;  %v2998_v24 = vshll.u32 %v17395_v13, 16  ;;  %v22632_v13 = vrot.slane %v2960_v42, 5 }
  0xaf   : > { %19795 = vmatprep.mubr.bf16.mxu0 %v21555_v35  ;;  %v2923_v35 = vor.u32 %v22571_v55, %v22564_v50  ;;  %v2947_v50 = vor.u32 %v22590_v8, %v22587_v5  ;;  %v2957_v55 = vor.u32 %v2956_v22, %v22592_v9  ;;  %v22627_v5 = vrot.slane %v2936_v2, 5  ;;  %v21569_v2 = vld [vmem:[%s26610_s1 + $0x160] sm:$0xff]  }
  0xb0   : > { %v22612_v51 = vrot.slane %v2998_v24, 5  ;;  %v21564_v24 = vld [vmem:[%s22275_s15 + $0x2ac] sm:$0xff]  }
  0xb1   : > { %v22638_v16 = vrot.slane %v2947_v50, 4  ;;  %v22640_v17 = vrot.slane %v2957_v55, 4  ;;  %v21601_v50 = vld [vmem:[%s22275_s15 + $0x24] sm:$0xff]  }
  0xb2   : > { %v3005_v15 = vor.u32 %v3004_v52, %v22612_v51  ;;  %v21575_v52 = vld [vmem:[%s26610_s1 + $0x170] sm:$0xff]   ;;  %v21567_v55 = vld [vmem:[%s22275_s15 + $0x2c4] sm:$0xff]   ;;  %19608 = vmatmul.mubr.bf16.gmra.mrb[4].mxu1 %v21601_v50 }
  0xb6   : > { %19796 = vmatmul.mubr.bf16.vlgmr.msra.gmra.mrb[0].mxu0 %v21556_v59  ;;  %v3018_v59 = vrot.slane %v3016_v33, 5  ;;  %v22659_v33 = vrot.slane %v3005_v15, 4  ;;  %v22688_v15 = vld [vmem:[%s26610_s1 + $0x180] sm:$0xff]  }
  0xb7   : > { %19828 = vmatpush3.bf16.msra.mxu0 %v22493_v39  ;;  %19799 = vmatprep.mubr.bf16.mxu0 %v21558_v61  ;;  %v2980_v39 = vrot.slane %v2978_v18, 4  ;;  %v2971_v61 = vor.u32 %v2970_v30, %v2967_v28  ;;  %v17400_v28 = vld [vmem:[%s22275_s15 + $0x1f8] sm:$0xf]  ;;  %v21572_v30 = vld [vmem:[%s26610_s1 + $0x168] sm:$0xff]  }
  0xb8   : > { %19829 = vmatprep.subr.bf16.mxu0 %v21560_v0  ;;  %v3019_v18 = vor.u32 %v3018_v59, %v3015_v58  ;;  %v3037_v42 = vshrl.u32 %v17400_v28, 16  ;;  %v21578_v58 = vld [vmem:[%s26610_s1 + $0x178] sm:$0xff]  }
  0xb9   : > { %v2981_v8 = vor.u32 %v2980_v39, %v22608_v45  ;;  %v22643_v22 = vrot.slane %v2971_v61, 4  ;;  %v3040_v39 = vshll.u32 %v17400_v28, 16  ;;  %v17404_v61 = vld [vmem:[%s22275_s15 + $0x208] sm:$0xf] }
  0xba   : > { %v3039_v59 = vrot.slane %v3037_v42, 4  ;;  %v21610_v42 = vld [vmem:[%s22275_s15 + $0x48] sm:$0xff]  }
  0xbb   : > { %19830 = vmatpush3.bf16.msra.mxu0 %v21560_v0  ;;  %v22625_v0 = vrot.slane %v2923_v35, 4  ;;  %v22649_v25 = vrot.slane %v2981_v8, 4  ;;  %v22662_v35 = vrot.slane %v3019_v18, 4  ;;  %v21605_v8 = vld [vmem:[%s22275_s15 + $0x30] sm:$0xff]   ;;  %v3064_v18 = vshll.u32 %v17403_v57, 16 }
  0xbc   : > { %19831 = vmatprep.subr.bf16.mxu0 %v21563_v20  ;;  %19611 = vmatprep.mubr.bf16.mxu1 %v21605_v8  ;;  %v21573_v8 = vld [vmem:[%s22275_s15 + $0x2f4] sm:$0xff]  }
  0xbd   : > { %19612 = vmatmul.mubr.bf16.gmra.mrb[8].mxu1 %v21606_v19  ;;  %v21619_v19 = vld [vmem:[%s26610_s1 + $0x48] sm:$0xff]  }
  0xbe   : > { %19800 = vmatmul.mubr.bf16.gmra.mrb[4].mxu0 %v21559_v34  ;;  %v17401_v34 = vld [vmem:[%s22275_s15 + $0x1fc] sm:$0xf]  ;;  %19615 = vmatprep.mubr.bf16.mxu1 %v21610_v42 }
  0xbf   : > { %19803 = vmatprep.mubr.bf16.mxu0 %v21561_v56  ;;  %19832 = vmatpush3.bf16.msra.mxu0 %v21563_v20  ;;  %v3029_v20 = vor.u32 %v3028_v7, %v22623_v6  ;;  %v3046_v47 = vshll.u32 %v17401_v34, 16  ;;  %v3050_v48 = vshrl.u32 %v17401_v34, 16  ;;  %v3056_v56 = vshll.u32 %v17402_v40, 16  ;;  %v21570_v34 = vld [vmem:[%s22275_s15 + $0x2dc] sm:$0xff]  }
  0xc0   : > { %19833 = vmatprep.subr.bf16.mxu0 %v21566_v60  ;;  %v3061_v7 = vshrl.u32 %v17403_v57, 16  ;;  %v3080_v40 = vshll.u32 %v17405_v1, 16 }
  0xc1   : > { %v22667_v41 = vrot.slane %v3029_v20, 4  ;;  %v22683_v10 = vrot.slane %v3046_v47, 5  ;;  %v3052_v14 = vrot.slane %v3050_v48, 4  ;;  %v3074_v20 = vshrl.u32 %v17404_v61, 16 }
  0xc2   : > { %v22692_v28 = vrot.slane %v3056_v56, 5  ;;  %v3066_v47 = vrot.slane %v3064_v18, 5  ;;  %v17407_v56 = vld [vmem:[%s22275_s15 + $0x214] sm:$0xf]  ;;  %v22707_v57 = vrot.slane %v3080_v40, 5 }
  0xc3   : > { %19834 = vmatpush3.bf16.msra.mxu0 %v21566_v60  ;;  %v3042_v60 = vrot.slane %v3040_v39, 5  ;;  %v3053_v46 = vor.u32 %v3052_v14, %v22683_v10  ;;  %v3098_v18 = vshrl.u32 %v17407_v56, 16 }
  0xc4   : > { %19835 = vmatprep.subr.bf16.mxu0 %v21569_v2  ;;  %26627 = vst [vmem:[#allocation11_spill] sm:$0xff] %v22707_v57 }
  0xc5   : > { %v22704_v50 = vrot.slane %v3053_v46, 4  ;;  %v21622_v46 = vld [vmem:[%s22275_s15 + $0x78] sm:$0xff]  }
  0xc6   : > { %19804 = vmatmul.mubr.bf16.gmra.mrb[8].mxu0 %v21562_v21  ;;  %v3070_v21 = vshll.u32 %v17404_v61, 16  ;;  %v17408_v61 = vld [vmem:[%s22275_s15 + $0x218] sm:$0x1] }
  0xc7   : > { %19807 = vmatprep.mubr.bf16.mxu0 %v21564_v24  ;;  %19836 = vmatpush3.bf16.msra.mxu0 %v21569_v2  ;;  %v3043_v2 = vor.u32 %v3042_v60, %v3039_v59  ;;  %v21568_v24 = vld [vmem:[%s22275_s15 + $0x2d0] sm:$0xff]   ;;  %v21615_v59 = vld [vmem:[%s22275_s15 + $0x60] sm:$0xff]   ;;  %v21571_v60 = vld [vmem:[%s22275_s15 + $0x2e8] sm:$0xff]  }
  0xc8   : > { %19837 = vmatprep.subr.bf16.mxu0 %v21572_v30  ;;  %v22699_v48 = vrot.slane %v3070_v21, 5  ;;  %v17409_v21 = vld [vmem:[%s22275_s15 + $0x21c] sm:$0xf] }
  0xc9   : > { %v22696_v39 = vrot.slane %v3043_v2, 4  ;;  %v3094_v2 = vshll.u32 %v17407_v56, 16  ;;  %v3109_v42 = vshrl.u32 %v17409_v21, 16  ;;  %v21574_v56 = vld [vmem:[%s22275_s15 + $0x300] sm:$0xff]  }
  0xcb   : > { %19838 = vmatpush3.bf16.msra.mxu0 %v21572_v30  ;;  %v3063_v30 = vrot.slane %v3061_v7, 4  ;;  %v21617_v7 = vld [vmem:[%s26610_s1 + $0x40] sm:$0xff]  }
  0xcc   : > { %19839 = vmatprep.subr.bf16.mxu0 %v21575_v52  ;;  %19635 = vmatprep.subr.bf16.mxu1 %v21617_v7 }
  0xcd   : > { %19636 = vmatpush3.bf16.msra.mxu1 %v21617_v7 }
  0xce   : > { %19808 = vmatmul.mubr.bf16.gmra.mrb[12].mxu0 %v21565_v53  ;;  %v17406_v53 = vld [vmem:[%s22275_s15 + $0x210] sm:$0xf]  ;;  %19637 = vmatprep.subr.bf16.mxu1 %v21619_v19 }
  0xcf   : > { %19811 = vmatprep.mubr.bf16.mxu0 %v21567_v55  ;;  %19840 = vmatpush3.bf16.msra.mxu0 %v21575_v52  ;;  %v3076_v52 = vrot.slane %v3074_v20, 4  ;;  %v21611_v55 = vld [vmem:[%s22275_s15 + $0x54] sm:$0xff]   ;;  %v3085_v1 = vshrl.u32 %v17406_v53, 16  ;;  %v3088_v14 = vshll.u32 %v17406_v53, 16 }
  0xd0   : > { %19841 = vmatprep.subr.bf16.mxu0 %v21578_v58  ;;  %19616 = vmatmul.mubr.bf16.gmra.mrb[12].mxu1 %v21611_v55  ;;  %v21624_v53 = vld [vmem:[%s26610_s1 + $0x50] sm:$0xff]  }
  0xd1   : > { %19619 = vmatprep.mubr.bf16.mxu1 %v21615_v59  ;;  %v3077_v40 = vor.u32 %v3076_v52, %v22699_v48  ;;  %19638 = vmatpush3.bf16.msra.mxu1 %v21619_v19  ;;  %v3090_v55 = vrot.slane %v3088_v14, 5  ;;  %v22729_v59 = vrot.slane %v3094_v2, 5  ;;  %v21626_v52 = vld [vmem:[%s26610_s1 + $0x58] sm:$0xff]   ;;  %v17412_v2 = vld [vmem:[%s22275_s15 + $0x228] sm:$0xf] }
  0xd2   : > { %19639 = vmatprep.subr.bf16.mxu1 %v21624_v53 }
  0xd3   : > { %19842 = vmatpush3.bf16.msra.mxu0 %v21578_v58  ;;  %v3067_v58 = vor.u32 %v3066_v47, %v3063_v30  ;;  %v3104_v30 = vshll.u32 %v17408_v61, 16  ;;  %v3112_v47 = vshll.u32 %v17409_v21, 16  ;;  %v21576_v61 = vld [vmem:[%s22275_s15 + $0x30c] sm:$0xff]   ;;  %v17411_v21 = vld [vmem:[%s22275_s15 + $0x224] sm:$0x1] }
  0xd4   : > { %19875 = vmatprep.subr.bf16.mxu0 %v22688_v15 }
  0xd5   : > { %v22720_v20 = vrot.slane %v3067_v58, 4  ;;  %v17410_v58 = vld [vmem:[%s22275_s15 + $0x220] sm:$0xf]  ;;  %v22738_v7 = vrot.slane %v3104_v30, 5  ;;  %v3114_v19 = vrot.slane %v3112_v47, 5  ;;  %19640 = vmatpush3.bf16.msra.mxu1 %v21624_v53  ;;  %v2867_v47 = vsel %vm22291_vm2, %v22545_v36, %v22541_v3 }
  0xd6   : > { %19812 = vmatmul.mubr.bf16.gmra.mrb[16].mxu0 %v21568_v24  ;;  %v3087_v24 = vrot.slane %v3085_v1, 4  ;;  %v22736_v1 = vrot.slane %v3077_v40, 4  ;;  %19641 = vmatprep.subr.bf16.mxu1 %v21626_v52  ;;  %v3118_v57 = vshll.u32 %v17410_v58, 16  ;;  %v3122_v40 = vshrl.u32 %v17410_v58, 16  ;;  %v21631_v30 = vld [vmem:[%s26610_s1 + $0x60] sm:$0xff]  }
  0xd7   : > { %19815 = vmatprep.mubr.bf16.mxu0 %v21570_v34  ;;  %26628 = vst [vmem:[#allocation12_spill] sm:$0xff] %v22720_v20  ;;  %v21616_v34 = vld [vmem:[%s22275_s15 + $0x6c] sm:$0xff]   ;;  %26629 = vst [vmem:[#allocation13_spill] sm:$0xff] %v22738_v7  ;;  %v21623_v20 = vld [vmem:[%s22275_s15 + $0x84] sm:$0xff]  }
  0xd8   : > { %19620 = vmatmul.mubr.bf16.gmra.mrb[16].mxu1 %v21616_v34  ;;  %v3091_v14 = vor.u32 %v3090_v55, %v3087_v24  ;;  %v3133_v34 = vshrl.u32 %v17412_v2, 16  ;;  %v21577_v24 = vld [vmem:[%s22275_s15 + $0x318] sm:$0xff]   ;;  %v17413_v58 = vld [vmem:[%s22275_s15 + $0x22c] sm:$0xf]  ;;  %v17414_v3 = vld [vmem:[%s22275_s15 + $0x230] sm:$0x1] }
  0xd9   : > { %19623 = vmatprep.mubr.bf16.mxu1 %v21622_v46  ;;  %19642 = vmatpush3.bf16.msra.mxu1 %v21626_v52  ;;  %v2857_v46 = vsel %vm22291_vm2, %v22539_v31, %v22521_v4  ;;  %v3128_v4 = vshll.u32 %v17411_v21, 16  ;;  %v3124_v52 = vrot.slane %v3122_v40, 4  ;;  %v2891_v21 = vsel %vm22291_vm2, %v22553_v44, %v22547_v37  ;;  %v21640_v37 = vld [vmem:[%s26610_s1 + $0x78] sm:$0xff]  }
  0xda   : > { %v22757_v53 = vrot.slane %v3091_v14, 4  ;;  %19643 = vmatprep.subr.bf16.mxu1 %v21631_v30  ;;  %v17440_v31 = vcombine.low %v2857_v46, %v2867_v47  ;;  %v3135_v36 = vrot.slane %v3133_v34, 4  ;;  %v17415_v14 = vld [vmem:[%s22275_s15 + $0x234] sm:$0xf]  ;;  %v21636_v34 = vld [vmem:[%s22275_s15 + $0xa8] sm:$0xff]  }
  0xdb   : > { %v22794_v44 = vrot.slane %v3128_v4, 5  ;;  %v17416_v46 = vld [vmem:[%s22275_s15 + $0x238] sm:$0xf] }
  0xdd   : > { %19644 = vmatpush3.bf16.msra.mxu1 %v21631_v30  ;;  %v3146_v30 = vshrl.u32 %v17413_v58, 16 }
  0xde   : > { %19816 = vmatmul.mubr.bf16.gmra.mrb[20].mxu0 %v21571_v60  ;;  %v3100_v60 = vrot.slane %v3098_v18, 4 }
  0xdf   : > { %19819 = vmatprep.mubr.bf16.mxu0 %v21573_v8  ;;  %v3111_v8 = vrot.slane %v3109_v42, 4  ;;  %v21629_v42 = vld [vmem:[%s22275_s15 + $0x90] sm:$0xff]  }
  0xe0   : > { %v3101_v18 = vor.u32 %v3100_v60, %v22729_v59  ;;  %v22765_v60 = vrot.slane %v3118_v57, 5  ;;  %19624 = vmatmul.mubr.bf16.gmra.mrb[20].mxu1 %v21623_v20  ;;  %v2881_v20 = vsel %vm22291_vm2, %v22551_v43, %v22524_v11  ;;  %v2915_v11 = vsel %vm22291_vm2, %v22577_v62, %v22562_v49 }
  0xe1   : > { %19627 = vmatprep.mubr.bf16.mxu1 %v21629_v42  ;;  %v3115_v57 = vor.u32 %v3114_v19, %v3111_v8  ;;  %v2905_v8 = vsel %vm22291_vm2, %v22569_v54, %v22537_v29  ;;  %v3152_v43 = vshll.u32 %v17414_v3, 16  ;;  %v3157_v42 = vshrl.u32 %v17415_v14, 16  ;;  %v21580_v29 = vld [vmem:[%s26610_s1 + $0x188] sm:$0xff]   ;;  %v21637_v3 = vld [vmem:[%s22275_s15 + $0xb4] sm:$0xff]  }
  0xe2   : > { %v22762_v55 = vrot.slane %v3101_v18, 4  ;;  %v21638_v18 = vld [vmem:[%s26610_s1 + $0x70] sm:$0xff]   ;;  %v3125_v40 = vor.u32 %v3124_v52, %v22765_v60  ;;  %v3160_v49 = vshll.u32 %v17415_v14, 16  ;;  %v17442_v62 = vcombine.low %v2905_v8, %v2915_v11  ;;  %v21644_v11 = vld [vmem:[%s22275_s15 + $0xd8] sm:$0xff]  }
  0xe3   : > { %v22799_v54 = vrot.slane %v3115_v57, 4  ;;  %v2939_v14 = vsel %vm22291_vm2, %v22630_v12, %v22627_v5  ;;  %v21643_v57 = vld [vmem:[%s22275_s15 + $0xcc] sm:$0xff]   ;;  %v21582_v5 = vld [vmem:[%s26610_s1 + $0x198] sm:$0xff]  }
  0xe4   : > { %26630 = vst [vmem:[#allocation14_spill] sm:$0xff] %v22762_v55  ;;  %v21630_v55 = vld [vmem:[%s22275_s15 + $0x9c] sm:$0xff]   ;;  %v22802_v47 = vrot.slane %v3125_v40, 4  ;;  %v3162_v52 = vrot.slane %v3160_v49, 5  ;;  %v17419_v40 = vld [vmem:[%s22275_s15 + $0x244] sm:$0xf] }
  0xe6   : > { %19820 = vmatmul.mubr.bf16.gmra.mrb[24].mxu0 %v21574_v56  ;;  %v21633_v56 = vld [vmem:[%s26610_s1 + $0x68] sm:$0xff]  }
  0xe7   : > { %19823 = vmatprep.mubr.bf16.mxu0 %v21576_v61  ;;  %v3136_v61 = vshll.u32 %v17412_v2, 16  ;;  %19645 = vmatprep.subr.bf16.mxu1 %v21633_v56  ;;  %v3142_v2 = vshll.u32 %v17413_v58, 16  ;;  %v22807_v58 = vld [vmem:[%s22275_s15 + $0x23c] sm:$0x1] }
  0xe8   : > { %19646 = vmatpush3.bf16.msra.mxu1 %v21633_v56 }
  0xe9   : > { %v3138_v7 = vrot.slane %v3136_v61, 5  ;;  %19647 = vmatprep.subr.bf16.mxu1 %v21638_v18  ;;  %19628 = vmatmul.mubr.bf16.gmra.mrb[24].mxu1 %v21630_v55  ;;  %v22804_v56 = vrot.slane %v3142_v2, 5  ;;  %v22809_v61 = vrot.slane %v3152_v43, 5  ;;  %v21581_v55 = vld [vmem:[%s26610_s1 + $0x190] sm:$0xff]   ;;  %v2963_v2 = vsel %vm22291_vm2, %v22640_v17, %v22632_v13 }
  0xea   : > { %19631 = vmatprep.mubr.bf16.mxu1 %v21636_v34  ;;  %v2977_v13 = vsel %vm22291_vm2, %v22643_v22, %v22608_v45  ;;  %v2987_v43 = vsel %vm22291_vm2, %v22649_v25, %v22645_v23  ;;  %v3190_v22 = vshll.u32 %v17419_v40, 16  ;;  %v21588_v23 = vld [vmem:[%s26610_s1 + $0x1a8] sm:$0xff]  }
  0xeb   : > { %v3139_v19 = vor.u32 %v3138_v7, %v3135_v36  ;;  %v3148_v7 = vrot.slane %v3146_v30, 4  ;;  %v2929_v36 = vsel %vm22291_vm2, %v22625_v0, %v22579_v63  ;;  %v3176_v63 = vshll.u32 %v22807_v58, 16  ;;  %v17418_v0 = vld [vmem:[%s22275_s15 + $0x240] sm:$0xf] }
  0xec   : > { %19648 = vmatpush3.bf16.msra.mxu1 %v21638_v18  ;;  %v3166_v18 = vshll.u32 %v17416_v46, 16  ;;  %v3181_v8 = vshrl.u32 %v17418_v0, 16  ;;  %v3184_v45 = vshll.u32 %v17418_v0, 16  ;;  %v26632_v0 = vld [vmem:[#allocation11_spill] sm:$0xff] }
  0xed   : > { %19649 = vmatprep.subr.bf16.mxu1 %v21640_v37  ;;  %v22811_v4 = vrot.slane %v3139_v19, 4  ;;  %v3149_v12 = vor.u32 %v3148_v7, %v22804_v56  ;;  %v21648_v19 = vld [vmem:[%s22275_s15 + $0xe4] sm:$0xff]   ;;  %v21649_v7 = vld [vmem:[%s22275_s15 + $0xf0] sm:$0xff]  }
  0xee   : > { %19824 = vmatmul.mubr.bf16.gmra.mrb[28].mxu0 %v21577_v24  ;;  %v17441_v24 = vcombine.low %v2881_v20, %v2891_v21  ;;  %v3170_v20 = vshrl.u32 %v17416_v46, 16  ;;  %v17443_v21 = vcombine.low %v2929_v36, %v2939_v14  ;;  %v22851_v30 = vrot.slane %v3166_v18, 5  ;;  %v17420_v46 = vld [vmem:[%s22275_s15 + $0x248] sm:$0x1]  ;;  %v17421_v14 = vld [vmem:[%s22275_s15 + $0x24c] sm:$0xf] }
  0xef   : > { %19843 = vmatprep.mubr.bf16.mxu0 %v17440_v31  ;;  %v3159_v31 = vrot.slane %v3157_v42, 4  ;;  %v22849_v17 = vrot.slane %v3149_v12, 4  ;;  %v3001_v42 = vsel %vm22291_vm2, %v22657_v32, %v22612_v51  ;;  %v3025_v51 = vsel %vm22291_vm2, %v22662_v35, %v22623_v6  ;;  %v17422_v18 = vld [vmem:[%s22275_s15 + $0x250] sm:$0xf] }
  0xf0   : > { %19650 = vmatpush3.bf16.msra.mxu1 %v21640_v37  ;;  %v3172_v34 = vrot.slane %v3170_v20, 4  ;;  %v3194_v37 = vshrl.u32 %v17419_v40, 16  ;;  %v22877_v32 = vrot.slane %v3176_v63, 5  ;;  %v3186_v58 = vrot.slane %v3184_v45, 5  ;;  %v26631_v20 = vld [vmem:[#allocation12_spill] sm:$0xff] }
  0xf1   : > { %19632 = vmatmul.mubr.bf16.gmra.mrb[28].mxu1 %v21637_v3  ;;  %v3163_v25 = vor.u32 %v3162_v52, %v3159_v31  ;;  %v3035_v6 = vsel %vm22291_vm2, %v22667_v41, %v22664_v38  ;;  %v22887_v35 = vrot.slane %v3190_v22, 5  ;;  %v21653_v52 = vld [vmem:[%s22275_s15 + $0xfc] sm:$0xff]   ;;  %v3049_v3 = vsel %vm22291_vm2, %v22696_v39, %v22683_v10 }
  0xf2   : > { %19651 = vmatprep.mubr.bf16.mxu1 %v21643_v57  ;;  %v3196_v31 = vrot.slane %v3194_v37, 4  ;;  %v3059_v36 = vsel %vm22291_vm2, %v22704_v50, %v22692_v28  ;;  %v17447_v38 = vcombine.low %v3025_v51, %v3035_v6  ;;  %v3173_v41 = vor.u32 %v3172_v34, %v22851_v30  ;;  %v21594_v57 = vld [vmem:[%s26610_s1 + $0x1b8] sm:$0xff]   ;;  %v22916_v40 = vld [vmem:[%s26610_s1 + $0x1c0] sm:$0xff]  }
  0xf3   : > { %v3205_v39 = vshrl.u32 %v17421_v14, 16  ;;  %v3208_v50 = vshll.u32 %v17421_v14, 16  ;;  %v3073_v63 = vsel %vm22291_vm2, %v26631_v20, %v22699_v48  ;;  %v3218_v12 = vshrl.u32 %v17422_v18, 16  ;;  %v26633_v48 = vld [vmem:[#allocation13_spill] sm:$0xff]  ;;  %v21597_v14 = vld [vmem:[%s22275_s15 + $0xc] sm:$0xff]   ;;  %v21598_v20 = vld [vmem:[%s22275_s15 + $0x18] sm:$0xff]  }
  0xf4   : > { %v3174_v10 = vrot.slane %v3173_v41, 4 }
  0xf5   : > { %v3207_v37 = vrot.slane %v3205_v39, 4  ;;  %v21678_v39 = vld [vmem:[%s22275_s15 + $0x174] sm:$0xff]  }
  0xf6   : > { %19844 = vmatmul.mubr.bf16.vlgmr.msra.gmra.mrb[0].mxu0 %v17441_v24  ;;  %v3011_v24 = vsel %vm22291_vm2, %v22659_v33, %v22651_v27  ;;  %v22875_v27 = vrot.slane %v3163_v25, 4  ;;  %v21591_v33 = vld [vmem:[%s26610_s1 + $0x1b0] sm:$0xff]   ;;  %v3220_v25 = vrot.slane %v3218_v12, 4  ;;  %v21602_v12 = vld [vmem:[%s22275_s15 + $0x24] sm:$0xff]  }
  0xf7   : > { %19876 = vmatpush3.bf16.msra.mxu0 %v22688_v15  ;;  %19847 = vmatprep.mubr.bf16.mxu0 %v17442_v62  ;;  %v2953_v15 = vsel %vm22291_vm2, %v22638_v16, %v22592_v9  ;;  %v21585_v16 = vld [vmem:[%s26610_s1 + $0x1a0] sm:$0xff]   ;;  %v17446_v49 = vcombine.low %v3001_v42, %v3011_v24  ;;  %v3183_v62 = vrot.slane %v3181_v8, 4  ;;  %v3131_v24 = vsel %vm22291_vm2, %v22802_v47, %v22794_v44 }
  0xf8   : > { %19877 = vmatprep.subr.bf16.mxu0 %v21580_v29  ;;  %v17444_v9 = vcombine.low %v2953_v15, %v2963_v2  ;;  %v17448_v15 = vcombine.low %v3049_v3, %v3059_v36  ;;  %v21654_v2 = vld [vmem:[%s22275_s15 + $0x108] sm:$0xff]   ;;  %v21659_v42 = vld [vmem:[%s22275_s15 + $0x120] sm:$0xff]   ;;  %v3169_v47 = vsel %vm22291_vm2, %v22875_v27, %v22851_v30  ;;  %v17609_v36 = vld [vmem:[%s22275_s15 + $0x10] sm:$0xf] }
  0xf9   : > { %19652 = vmatmul.mubr.bf16.vlgmr.msra.gmra.mrb[0].mxu1 %v21644_v11  ;;  %v3187_v11 = vor.u32 %v3186_v58, %v3183_v62  ;;  %v21668_v58 = vld [vmem:[%s22275_s15 + $0x144] sm:$0xff]  }
  0xfa   : > { %19655 = vmatprep.mubr.bf16.mxu1 %v21648_v19 }
  0xfb   : > { %19878 = vmatpush3.bf16.msra.mxu0 %v21580_v29  ;;  %v17445_v29 = vcombine.low %v2977_v13, %v2987_v43  ;;  %v3097_v13 = vsel %vm22291_vm2, %v22757_v53, %v22729_v59  ;;  %v3197_v43 = vor.u32 %v3196_v31, %v22887_v35  ;;  %v3121_v59 = vsel %vm22291_vm2, %v22799_v54, %v22765_v60 }
  0xfc   : > { %19879 = vmatprep.subr.bf16.mxu0 %v21581_v55  ;;  %v3188_v53 = vrot.slane %v3187_v11, 4  ;;  %v3145_v60 = vsel %vm22291_vm2, %v22811_v4, %v22804_v56  ;;  %v3155_v54 = vsel %vm22291_vm2, %v22849_v17, %v22809_v61  ;;  %v21664_v56 = vld [vmem:[%s22275_s15 + $0x138] sm:$0xff]   ;;  %v3179_v4 = vsel %vm22291_vm2, %v3174_v10, %v22877_v32  ;;  %v21669_v32 = vld [vmem:[%s22275_s15 + $0x150] sm:$0xff]  }
  0xfd   : > { %v3198_v22 = vrot.slane %v3197_v43, 4  ;;  %v17452_v51 = vcombine.low %v3145_v60, %v3155_v54  ;;  %v17453_v27 = vcombine.low %v3169_v47, %v3179_v4  ;;  %v17612_v10 = vld [vmem:[%s22275_s15 + $0x1c] sm:$0xf]  ;;  %v17617_v11 = vld [vmem:[%s22275_s15 + $0x30] sm:$0xf]  ;;  %v21679_v60 = vld [vmem:[%s22275_s15 + $0x180] sm:$0xff]  }
  0xfe   : > { %19848 = vmatmul.mubr.bf16.gmra.mrb[4].mxu0 %v17443_v21  ;;  %v3083_v21 = vsel %vm22291_vm2, %v22736_v1, %v26632_v0  ;;  %v17423_v1 = vld [vmem:[%s22275_s15 + $0x254] sm:$0x1]  ;;  %v4448_v54 = vshll.u32 %v17617_v11, 16 }
  0xff   : > { %19851 = vmatprep.mubr.bf16.mxu0 %v17444_v9  ;;  %19880 = vmatpush3.bf16.msra.mxu0 %v21581_v55  ;;  %v3200_v55 = vshll.u32 %v17420_v46, 16  ;;  %v21658_v9 = vld [vmem:[%s22275_s15 + $0x114] sm:$0xff]   ;;  %v17449_v8 = vcombine.low %v3073_v63, %v3083_v21  ;;  %v3224_v19 = vshll.u32 %v17423_v1, 16  ;;  %v21663_v46 = vld [vmem:[%s22275_s15 + $0x12c] sm:$0xff]   ;;  %v4406_v21 = vshll.u32 %v17612_v10, 16 }
 0x100   : > { %19881 = vmatprep.subr.bf16.mxu0 %v21582_v5  ;;  %v17618_v43 = vld [vmem:[%s22275_s15 + $0x34] sm:$0xf] }
 0x101   : > { %19656 = vmatmul.mubr.bf16.gmra.mrb[4].mxu1 %v21649_v7  ;;  %v3202_v28 = vrot.slane %v3200_v55, 5  ;;  %v3226_v62 = vrot.slane %v3224_v19, 5  ;;  %v3193_v7 = vsel %vm22291_vm2, %v3188_v53, %v22887_v35  ;;  %v21673_v55 = vld [vmem:[%s22275_s15 + $0x15c] sm:$0xff]   ;;  %v21603_v4 = vld [vmem:[%s22275_s15 + $0x30] sm:$0xff]  }
 0x102   : > { %19659 = vmatprep.mubr.bf16.mxu1 %v21653_v52  ;;  %v17608_v52 = vld [vmem:[%s22275_s15 + $0xc] sm:$0xf] }
 0x103   : > { %19882 = vmatpush3.bf16.msra.mxu0 %v21582_v5  ;;  %v3214_v5 = vshll.u32 %v17422_v18, 16  ;;  %v3203_v30 = vsel %vm22291_vm2, %v3198_v22, %v3202_v28  ;;  %v4376_v41 = vshll.u32 %v17608_v52, 16  ;;  %v17611_v18 = vld [vmem:[%s22275_s15 + $0x18] sm:$0xf]  ;;  %v21674_v28 = vld [vmem:[%s22275_s15 + $0x168] sm:$0xff]  }
 0x104   : > { %19883 = vmatprep.subr.bf16.mxu0 %v21585_v16  ;;  %v17454_v6 = vcombine.low %v3193_v7, %v3203_v30 }
 0x105   : > { %v4378_v0 = vrot.slane %v4376_v41, 5 }
 0x106   : > { %19852 = vmatmul.mubr.bf16.gmra.mrb[8].mxu0 %v17445_v29  ;;  %v3210_v29 = vrot.slane %v3208_v50, 5  ;;  %v4397_v50 = vshrl.u32 %v17611_v18, 16 }
 0x107   : > { %19855 = vmatprep.mubr.bf16.mxu0 %v17446_v49  ;;  %19884 = vmatpush3.bf16.msra.mxu0 %v21585_v16  ;;  %v26634_v16 = vld [vmem:[#allocation14_spill] sm:$0xff]  ;;  %v17451_v49 = vcombine.low %v3121_v59, %v3131_v24 }
 0x108   : > { %19885 = vmatprep.subr.bf16.mxu0 %v21588_v23  ;;  %v3107_v34 = vsel %vm22291_vm2, %v26634_v16, %v26633_v48  ;;  %v17614_v48 = vld [vmem:[%s22275_s15 + $0x24] sm:$0xf]  ;;  %v17615_v16 = vld [vmem:[%s22275_s15 + $0x28] sm:$0xf]  ;;  %v4399_v59 = vrot.slane %v4397_v50, 4 }
 0x109   : > { %19660 = vmatmul.mubr.bf16.gmra.mrb[8].mxu1 %v21654_v2  ;;  %v17450_v45 = vcombine.low %v3097_v13, %v3107_v34  ;;  %v4400_v2 = vshll.u32 %v17611_v18, 16  ;;  %v21604_v34 = vld [vmem:[%s26610_s1 + $0x1c8] sm:$0xff]   ;;  %v4421_v1 = vshrl.u32 %v17614_v48, 16  ;;  %v4430_v53 = vshll.u32 %v17615_v16, 16 }
 0x10a   : > { %19663 = vmatprep.mubr.bf16.mxu1 %v21658_v9 }
 0x10b   : > { %19886 = vmatpush3.bf16.msra.mxu0 %v21588_v23  ;;  %v3216_v23 = vrot.slane %v3214_v5, 5  ;;  %v4410_v5 = vshrl.u32 %v17612_v10, 16  ;;  %v4402_v22 = vrot.slane %v4400_v2, 5 }
 0x10c   : > { %19887 = vmatprep.subr.bf16.mxu0 %v21591_v33 }
 0x10d   : > { %v3221_v44 = vor.u32 %v3220_v25, %v3216_v23  ;;  %v4412_v19 = vrot.slane %v4410_v5, 4 }
 0x10e   : > { %19856 = vmatmul.mubr.bf16.gmra.mrb[12].mxu0 %v17447_v38  ;;  %v4373_v38 = vshrl.u32 %v17608_v52, 16  ;;  %v17621_v52 = vld [vmem:[%s22275_s15 + $0x40] sm:$0xf] }
 0x10f   : > { %19859 = vmatprep.mubr.bf16.mxu0 %v17448_v15  ;;  %19888 = vmatpush3.bf16.msra.mxu0 %v21591_v33  ;;  %v3211_v33 = vor.u32 %v3210_v29, %v3207_v37  ;;  %v3222_v17 = vrot.slane %v3221_v44, 4  ;;  %v4386_v15 = vshrl.u32 %v17609_v36, 16  ;;  %v22987_v37 = vrot.slane %v4406_v21, 5  ;;  %v17613_v29 = vld [vmem:[%s22275_s15 + $0x20] sm:$0x1] }
 0x110   : > { %19889 = vmatprep.subr.bf16.mxu0 %v21594_v57  ;;  %v4375_v63 = vrot.slane %v4373_v38, 4  ;;  %v22996_v44 = vrot.slane %v4430_v53, 5  ;;  %v21608_v53 = vld [vmem:[%s22275_s15 + $0x48] sm:$0xff]  }
 0x111   : > { %19664 = vmatmul.mubr.bf16.gmra.mrb[12].mxu1 %v21659_v42  ;;  %v3212_v61 = vrot.slane %v3211_v33, 4  ;;  %v3227_v35 = vsel %vm22291_vm2, %v3222_v17, %v3226_v62  ;;  %v4388_v13 = vrot.slane %v4386_v15, 4  ;;  %v4434_v42 = vshrl.u32 %v17615_v16, 16  ;;  %v17623_v16 = vld [vmem:[%s22275_s15 + $0x48] sm:$0xf] }
 0x112   : > { %19667 = vmatprep.mubr.bf16.mxu1 %v21663_v46  ;;  %v4379_v24 = vor.u32 %v4378_v0, %v4375_v63  ;;  %v4445_v46 = vshrl.u32 %v17617_v11, 16  ;;  %v4403_v17 = vor.u32 %v4402_v22, %v4399_v59  ;;  %v4416_v62 = vshll.u32 %v17613_v29, 16  ;;  %v21621_v0 = vld [vmem:[%s26610_s1 + $0x1e0] sm:$0xff]   ;;  %v21612_v22 = vld [vmem:[%s22275_s15 + $0x54] sm:$0xff]  }
 0x113   : > { %19890 = vmatpush3.bf16.msra.mxu0 %v21594_v57  ;;  %v3217_v31 = vsel %vm22291_vm2, %v3212_v61, %v3216_v23  ;;  %v4382_v57 = vshll.u32 %v17609_v36, 16  ;;  %v4423_v23 = vrot.slane %v4421_v1, 4  ;;  %v4436_v47 = vrot.slane %v4434_v42, 4  ;;  %v21607_v36 = vld [vmem:[%s22275_s15 + $0x3c] sm:$0xff]  }
 0x114   : > { %19923 = vmatprep.subr.bf16.mxu0 %v22916_v40  ;;  %v17455_v3 = vcombine.low %v3217_v31, %v3227_v35  ;;  %v23001_v7 = vrot.slane %v4379_v24, 4  ;;  %v4450_v31 = vrot.slane %v4448_v54, 5  ;;  %v23017_v10 = vrot.slane %v4403_v17, 4  ;;  %v17626_v54 = vld [vmem:[%s22275_s15 + $0x54] sm:$0xf] }
 0x115   : > { %v22977_v9 = vrot.slane %v4382_v57, 5  ;;  %v4437_v41 = vor.u32 %v4436_v47, %v22996_v44  ;;  %v4482_v63 = vshrl.u32 %v17621_v52, 16  ;;  %v4493_v59 = vshrl.u32 %v17623_v16, 16 }
 0x116   : > { %19860 = vmatmul.mubr.bf16.gmra.mrb[16].mxu0 %v17449_v8  ;;  %v4424_v8 = vshll.u32 %v17614_v48, 16 }
 0x117   : > { %19863 = vmatprep.mubr.bf16.mxu0 %v17450_v45  ;;  %v17610_v45 = vld [vmem:[%s22275_s15 + $0x14] sm:$0x1]  ;;  %v4389_v33 = vor.u32 %v4388_v13, %v22977_v9  ;;  %v4495_v47 = vrot.slane %v4493_v59, 4  ;;  %v17635_v59 = vld [vmem:[%s22275_s15 + $0x78] sm:$0xf] }
 0x118   : > { %v4426_v25 = vrot.slane %v4424_v8, 5  ;;  %v4392_v61 = vshll.u32 %v17610_v45, 16  ;;  %v17624_v8 = vld [vmem:[%s22275_s15 + $0x4c] sm:$0xf] }
 0x119   : > { %19668 = vmatmul.mubr.bf16.gmra.mrb[16].mxu1 %v21664_v56  ;;  %v4458_v56 = vshrl.u32 %v17618_v43, 16  ;;  %v23012_v38 = vrot.slane %v4389_v33, 4 }
 0x11a   : > { %19671 = vmatprep.mubr.bf16.mxu1 %v21668_v58  ;;  %v17616_v58 = vld [vmem:[%s22275_s15 + $0x2c] sm:$0x1]  ;;  %v4427_v30 = vor.u32 %v4426_v25, %v4423_v23  ;;  %v23015_v15 = vrot.slane %v4392_v61, 5  ;;  %v17625_v25 = vld [vmem:[%s22275_s15 + $0x50] sm:$0x1] }
 0x11b   : > { %v4440_v18 = vshll.u32 %v17616_v58, 16  ;;  %v4512_v17 = vshll.u32 %v17625_v25, 16  ;;  %v17629_v58 = vld [vmem:[%s22275_s15 + $0x60] sm:$0xf] }
 0x11c   : > { %v23023_v50 = vrot.slane %v4427_v30, 4 }
 0x11d   : > { %v23033_v1 = vrot.slane %v4440_v18, 5  ;;  %v17632_v18 = vld [vmem:[%s22275_s15 + $0x6c] sm:$0xf] }
 0x11e   : > { %19864 = vmatmul.mubr.bf16.gmra.mrb[20].mxu0 %v17451_v49  ;;  %v4454_v49 = vshll.u32 %v17618_v43, 16  ;;  %v4484_v43 = vrot.slane %v4482_v63, 4 }
 0x11f   : > { %19867 = vmatprep.mubr.bf16.mxu0 %v17452_v51  ;;  %v21609_v51 = vld [vmem:[%s26610_s1 + $0x1d0] sm:$0xff]  }
 0x120   : > { %v23005_v35 = vrot.slane %v4454_v49, 5  ;;  %v17627_v49 = vld [vmem:[%s22275_s15 + $0x58] sm:$0xf] }
 0x121   : > { %19672 = vmatmul.mubr.bf16.gmra.mrb[20].mxu1 %v21669_v32  ;;  %v17620_v32 = vld [vmem:[%s22275_s15 + $0x3c] sm:$0xf]  ;;  %v4526_v30 = vshll.u32 %v17627_v49, 16 }
 0x122   : > { %19675 = vmatprep.mubr.bf16.mxu1 %v21673_v55  ;;  %v4460_v55 = vrot.slane %v4458_v56, 4  ;;  %v4472_v57 = vshll.u32 %v17620_v32, 16  ;;  %v4506_v56 = vshrl.u32 %v17624_v8, 16 }
 0x124   : > { %v4461_v5 = vor.u32 %v4460_v55, %v23005_v35  ;;  %v4474_v48 = vrot.slane %v4472_v57, 5 }
 0x126   : > { %19868 = vmatmul.mubr.bf16.gmra.mrb[24].mxu0 %v17453_v27  ;;  %v17619_v27 = vld [vmem:[%s22275_s15 + $0x38] sm:$0x1]  ;;  %v23045_v24 = vrot.slane %v4461_v5, 4 }
 0x127   : > { %19871 = vmatprep.mubr.bf16.mxu0 %v17454_v6  ;;  %v4447_v6 = vrot.slane %v4445_v46, 4  ;;  %v4464_v2 = vshll.u32 %v17619_v27, 16  ;;  %v4496_v46 = vshll.u32 %v17623_v16, 16  ;;  %v4530_v27 = vshrl.u32 %v17627_v49, 16  ;;  %v21642_v5 = vld [vmem:[%s26610_s1 + $0x1f8] sm:$0xff]  }
 0x129   : > { %19676 = vmatmul.mubr.bf16.gmra.mrb[24].mxu1 %v21674_v28  ;;  %v4451_v21 = vor.u32 %v4450_v31, %v4447_v6  ;;  %v23047_v29 = vrot.slane %v4464_v2, 5  ;;  %v17630_v6 = vld [vmem:[%s22275_s15 + $0x64] sm:$0xf]  ;;  %v4498_v31 = vrot.slane %v4496_v46, 5 }
 0x12a   : > { %19679 = vmatprep.mubr.bf16.mxu1 %v21678_v39  ;;  %v23021_v39 = vrot.slane %v4416_v62, 5  ;;  %v4520_v62 = vshll.u32 %v17626_v54, 16  ;;  %v4554_v63 = vshrl.u32 %v17630_v6, 16 }
 0x12b   : > { %v23043_v42 = vrot.slane %v4451_v21, 4  ;;  %v21618_v21 = vld [vmem:[%s22275_s15 + $0x6c] sm:$0xff]  }
 0x12c   : > { %v4522_v2 = vrot.slane %v4520_v62, 5  ;;  %v4556_v49 = vrot.slane %v4554_v63, 4 }
 0x12e   : > { %19872 = vmatmul.mubr.bf16.gmra.mrb[28].mxu0 %v17455_v3  ;;  %v4469_v3 = vshrl.u32 %v17620_v32, 16  ;;  %v21613_v32 = vld [vmem:[%s22275_s15 + $0x60] sm:$0xff]  }
 0x12f   : > { %19891 = vmatprep.mubr.bf16.mxu0 %v21597_v14  ;;  %v21614_v14 = vld [vmem:[%s26610_s1 + $0x1d8] sm:$0xff]  }
 0x130   : > { %v4471_v13 = vrot.slane %v4469_v3, 4 }
 0x131   : > { %19680 = vmatmul.mubr.bf16.gmra.mrb[28].mxu1 %v21679_v60  ;;  %v4502_v60 = vshll.u32 %v17624_v8, 16  ;;  %v4499_v8 = vor.u32 %v4498_v31, %v4495_v47  ;;  %v4589_v47 = vshrl.u32 %v17635_v59, 16 }
 0x132   : > { %v4475_v23 = vor.u32 %v4474_v48, %v4471_v13  ;;  %v23076_v13 = vrot.slane %v4526_v30, 5  ;;  %v4532_v48 = vrot.slane %v4530_v27, 4  ;;  %v17634_v27 = vld [vmem:[%s22275_s15 + $0x74] sm:$0x1] }
 0x133   : > { %v23063_v55 = vrot.slane %v4502_v60, 5  ;;  %v4591_v63 = vrot.slane %v4589_v47, 4  ;;  %v17641_v47 = vld [vmem:[%s22275_s15 + $0x90] sm:$0xf] }
 0x134   : > { %v23058_v61 = vrot.slane %v4475_v23, 4  ;;  %v4533_v62 = vor.u32 %v4532_v48, %v23076_v13 }
 0x136   : > { %19892 = vmatmul.mubr.bf16.vlgmr.msra.gmra.mrb[0].mxu0 %v21598_v20  ;;  %v4478_v20 = vshll.u32 %v17621_v52, 16  ;;  %v17628_v52 = vld [vmem:[%s22275_s15 + $0x5c] sm:$0x1]  ;;  %v23106_v48 = vrot.slane %v4533_v62, 4 }
 0x137   : > { %19924 = vmatpush3.bf16.msra.mxu0 %v22916_v40  ;;  %19895 = vmatprep.mubr.bf16.mxu0 %v21602_v12  ;;  %v4413_v40 = vor.u32 %v4412_v19, %v22987_v37  ;;  %v17622_v12 = vld [vmem:[%s22275_s15 + $0x44] sm:$0x1]  ;;  %v21628_v19 = vld [vmem:[%s26610_s1 + $0x1e8] sm:$0xff]   ;;  %v4536_v16 = vshll.u32 %v17628_v52, 16  ;;  %v21620_v52 = vld [vmem:[%s22275_s15 + $0x78] sm:$0xff]  }
 0x138   : > { %19925 = vmatprep.subr.bf16.mxu0 %v21604_v34  ;;  %v23036_v11 = vrot.slane %v4478_v20, 5  ;;  %v4488_v45 = vshll.u32 %v17622_v12, 16  ;;  %v4550_v20 = vshll.u32 %v17630_v6, 16  ;;  %v23074_v12 = vrot.slane %v4512_v17, 5  ;;  %v23087_v17 = vld [vmem:[%s26610_s1 + $0x200] sm:$0xff]  }
 0x139   : > { %v23019_v28 = vrot.slane %v4413_v40, 4  ;;  %v4517_v40 = vshrl.u32 %v17626_v54, 16  ;;  %v21632_v62 = vld [vmem:[%s22275_s15 + $0x9c] sm:$0xff]  }
 0x13a   : > { %v23053_v33 = vrot.slane %v4488_v45, 5  ;;  %v4568_v45 = vshll.u32 %v17632_v18, 16  ;;  %v23081_v54 = vrot.slane %v4550_v20, 5 }
 0x13b   : > { %19926 = vmatpush3.bf16.msra.mxu0 %v21604_v34  ;;  %v23031_v34 = vrot.slane %v4437_v41, 4  ;;  %v4544_v41 = vshll.u32 %v17629_v58, 16  ;;  %v4519_v57 = vrot.slane %v4517_v40, 4  ;;  %v23089_v40 = vrot.slane %v4499_v8, 4 }
 0x13c   : > { %19927 = vmatprep.subr.bf16.mxu0 %v21609_v51  ;;  %v4570_v30 = vrot.slane %v4568_v45, 5  ;;  %v4557_v20 = vor.u32 %v4556_v49, %v23081_v54  ;;  %v4584_v8 = vshll.u32 %v17634_v27, 16  ;;  %v17639_v49 = vld [vmem:[%s22275_s15 + $0x88] sm:$0xf] }
 0x13d   : > { %v4546_v23 = vrot.slane %v4544_v41, 5  ;;  %v4523_v60 = vor.u32 %v4522_v2, %v4519_v57  ;;  %v21625_v57 = vld [vmem:[%s22275_s15 + $0x84] sm:$0xff]   ;;  %v23101_v2 = vrot.slane %v4536_v16, 5 }
 0x13e   : > { %19896 = vmatmul.mubr.bf16.gmra.mrb[4].mxu0 %v21603_v4  ;;  %v21635_v4 = vld [vmem:[%s26610_s1 + $0x1f0] sm:$0xff]   ;;  %v23127_v27 = vrot.slane %v4584_v8, 5  ;;  %v4640_v8 = vshll.u32 %v17641_v47, 16 }
 0x13f   : > { %19899 = vmatprep.mubr.bf16.mxu0 %v21607_v36  ;;  %19928 = vmatpush3.bf16.msra.mxu0 %v21609_v51  ;;  %v4485_v51 = vor.u32 %v4484_v43, %v23036_v11  ;;  %v4508_v36 = vrot.slane %v4506_v56, 4  ;;  %v4565_v43 = vshrl.u32 %v17632_v18, 16  ;;  %v4592_v56 = vshll.u32 %v17635_v59, 16 }
 0x140   : > { %19929 = vmatprep.subr.bf16.mxu0 %v21614_v14  ;;  %26641 = vst [vmem:[#allocation17_spill] sm:$0xff] %v23127_v27 }
 0x141   : > { %v23066_v3 = vrot.slane %v4485_v51, 4  ;;  %v4509_v46 = vor.u32 %v4508_v36, %v23063_v55  ;;  %v17636_v51 = vld [vmem:[%s22275_s15 + $0x7c] sm:$0xf] }
 0x142   : > { %v4602_v31 = vshrl.u32 %v17636_v51, 16 }
 0x143   : > { %19930 = vmatpush3.bf16.msra.mxu0 %v21614_v14  ;;  %v4541_v14 = vshrl.u32 %v17629_v58, 16  ;;  %v4567_v58 = vrot.slane %v4565_v43, 4  ;;  %v23096_v36 = vrot.slane %v4509_v46, 4  ;;  %v17637_v43 = vld [vmem:[%s22275_s15 + $0x80] sm:$0x1] }
 0x144   : > { %19931 = vmatprep.subr.bf16.mxu0 %v21621_v0  ;;  %v4604_v59 = vrot.slane %v4602_v31, 4 }
 0x145   : > { %v4571_v45 = vor.u32 %v4570_v30, %v4567_v58 }
 0x146   : > { %19900 = vmatmul.mubr.bf16.gmra.mrb[8].mxu0 %v21608_v53  ;;  %v17631_v53 = vld [vmem:[%s22275_s15 + $0x68] sm:$0x1] }
 0x147   : > { %19903 = vmatprep.mubr.bf16.mxu0 %v21612_v22  ;;  %19932 = vmatpush3.bf16.msra.mxu0 %v21621_v0  ;;  %v17633_v0 = vld [vmem:[%s22275_s15 + $0x70] sm:$0xf]  ;;  %v4543_v22 = vrot.slane %v4541_v14, 4  ;;  %v23098_v14 = vrot.slane %v4523_v60, 4  ;;  %v4560_v18 = vshll.u32 %v17631_v53, 16  ;;  %v4608_v60 = vshll.u32 %v17637_v43, 16 }
 0x148   : > { %19933 = vmatprep.subr.bf16.mxu0 %v21628_v19  ;;  %v4578_v25 = vshrl.u32 %v17633_v0, 16  ;;  %v23123_v58 = vrot.slane %v4571_v45, 4  ;;  %v17645_v43 = vld [vmem:[%s22275_s15 + $0xa0] sm:$0xf] }
 0x149   : > { %v4547_v41 = vor.u32 %v4546_v23, %v4543_v22  ;;  %v23114_v22 = vrot.slane %v4560_v18, 5  ;;  %v17642_v18 = vld [vmem:[%s22275_s15 + $0x94] sm:$0xf] }
 0x14a   : > { %26639 = vst [vmem:[#allocation15_spill] sm:$0xff] %v23123_v58  ;;  %v21639_v58 = vld [vmem:[%s22275_s15 + $0xb4] sm:$0xff]  }
 0x14b   : > { %19934 = vmatpush3.bf16.msra.mxu0 %v21628_v19  ;;  %v4574_v19 = vshll.u32 %v17633_v0, 16  ;;  %v4594_v0 = vrot.slane %v4592_v56, 5  ;;  %v23112_v53 = vrot.slane %v4547_v41, 4  ;;  %26637 = vst [vmem:[#allocation13_spill] sm:$0xff] %v23114_v22  ;;  %v21627_v56 = vld [vmem:[%s22275_s15 + $0x90] sm:$0xff]   ;;  %v4626_v41 = vshrl.u32 %v17639_v49, 16 }
 0x14c   : > { %19935 = vmatprep.subr.bf16.mxu0 %v21635_v4  ;;  %v21645_v22 = vld [vmem:[%s22275_s15 + $0xd8] sm:$0xff]  }
 0x14d   : > { %v23093_v6 = vrot.slane %v4574_v19, 5  ;;  %v4595_v46 = vor.u32 %v4594_v0, %v4591_v63  ;;  %v4637_v0 = vshrl.u32 %v17641_v47, 16  ;;  %v4674_v47 = vshrl.u32 %v17645_v43, 16 }
 0x14e   : > { %19904 = vmatmul.mubr.bf16.gmra.mrb[12].mxu0 %v21613_v32  ;;  %v4598_v32 = vshll.u32 %v17636_v51, 16  ;;  %v17640_v51 = vld [vmem:[%s22275_s15 + $0x8c] sm:$0x1] }
 0x14f   : > { %19907 = vmatprep.mubr.bf16.mxu0 %v21618_v21  ;;  %19936 = vmatpush3.bf16.msra.mxu0 %v21635_v4  ;;  %26635 = vst [vmem:[#allocation12_spill] sm:$0xff] %v23093_v6  ;;  %v4580_v4 = vrot.slane %v4578_v25, 4  ;;  %v17638_v21 = vld [vmem:[%s22275_s15 + $0x84] sm:$0xf]  ;;  %v23116_v25 = vrot.slane %v4557_v20, 4  ;;  %v23133_v20 = vrot.slane %v4608_v60, 5 }
 0x150   : > { %19937 = vmatprep.subr.bf16.mxu0 %v21642_v5  ;;  %v23110_v16 = vrot.slane %v4598_v32, 5  ;;  %v4613_v23 = vshrl.u32 %v17638_v21, 16  ;;  %v4616_v19 = vshll.u32 %v17638_v21, 16  ;;  %v4632_v63 = vshll.u32 %v17640_v51, 16  ;;  %v17644_v21 = vld [vmem:[%s22275_s15 + $0x9c] sm:$0xf] }
 0x151   : > { %26638 = vst [vmem:[#allocation14_spill] sm:$0xff] %v23116_v25  ;;  %26643 = vst [vmem:[#allocation19_spill] sm:$0xff] %v23133_v20  ;;  %v4661_v60 = vshrl.u32 %v17644_v21, 16  ;;  %v17648_v20 = vld [vmem:[%s22275_s15 + $0xac] sm:$0xf] }
 0x152   : > { %26636 = vst [vmem:[#allocation11_spill] sm:$0xff] %v23110_v16  ;;  %v4615_v32 = vrot.slane %v4613_v23, 4  ;;  %v4618_v31 = vrot.slane %v4616_v19, 5  ;;  %v17647_v23 = vld [vmem:[%s22275_s15 + $0xa8] sm:$0xf]  ;;  %v23143_v51 = vrot.slane %v4632_v63, 5 }
 0x153   : > { %19938 = vmatpush3.bf16.msra.mxu0 %v21642_v5  ;;  %v4581_v5 = vor.u32 %v4580_v4, %v23093_v6  ;;  %v4605_v4 = vor.u32 %v4604_v59, %v23110_v16  ;;  %v4650_v59 = vshrl.u32 %v17642_v18, 16  ;;  %v4685_v16 = vshrl.u32 %v17647_v23, 16  ;;  %v17646_v63 = vld [vmem:[%s22275_s15 + $0xa4] sm:$0x1] }
 0x154   : > { %19971 = vmatprep.subr.bf16.mxu0 %v23087_v17  ;;  %v4619_v19 = vor.u32 %v4618_v31, %v4615_v32  ;;  %26646 = vst [vmem:[#allocation22_spill] sm:$0xff] %v23143_v51  ;;  %v4694_v51 = vshll.u32 %v17648_v20, 16 }
 0x155   : > { %v23125_v30 = vrot.slane %v4581_v5, 4  ;;  %v23137_v45 = vrot.slane %v4605_v4, 4  ;;  %v4646_v5 = vshll.u32 %v17642_v18, 16  ;;  %v4664_v4 = vshll.u32 %v17644_v21, 16 }
 0x156   : > { %19908 = vmatmul.mubr.bf16.gmra.mrb[16].mxu0 %v21620_v52  ;;  %v4622_v52 = vshll.u32 %v17639_v49, 16  ;;  %v4639_v18 = vrot.slane %v4637_v0, 4  ;;  %v4652_v31 = vrot.slane %v4650_v59, 4  ;;  %v23150_v27 = vrot.slane %v4619_v19, 4 }
 0x157   : > { %19911 = vmatprep.mubr.bf16.mxu0 %v21625_v57  ;;  %26640 = vst [vmem:[#allocation16_spill] sm:$0xff] %v23125_v30  ;;  %v23131_v57 = vrot.slane %v4595_v46, 4  ;;  %26644 = vst [vmem:[#allocation20_spill] sm:$0xff] %v23137_v45  ;;  %v4628_v46 = vrot.slane %v4626_v41, 4  ;;  %v4670_v45 = vshll.u32 %v17645_v43, 16  ;;  %v23146_v32 = vrot.slane %v4646_v5, 5 }
 0x158   : > { %v23140_v49 = vrot.slane %v4622_v52, 5  ;;  %v4688_v52 = vshll.u32 %v17647_v23, 16  ;;  %v17650_v41 = vld [vmem:[%s22275_s15 + $0xb4] sm:$0xf]  ;;  %v21634_v30 = vld [vmem:[%s22275_s15 + $0xa8] sm:$0xff]   ;;  %26648 = vst [vmem:[#allocation24_spill] sm:$0xff] %v23150_v27 }
 0x159   : > { %26642 = vst [vmem:[#allocation18_spill] sm:$0xff] %v23131_v57  ;;  %v17643_v57 = vld [vmem:[%s22275_s15 + $0x98] sm:$0x1]  ;;  %26647 = vst [vmem:[#allocation23_spill] sm:$0xff] %v23146_v32  ;;  %v4663_v21 = vrot.slane %v4661_v60, 4  ;;  %v4666_v43 = vrot.slane %v4664_v4, 5 }
 0x15a   : > { %26645 = vst [vmem:[#allocation21_spill] sm:$0xff] %v23140_v49  ;;  %v23155_v0 = vrot.slane %v4670_v45, 5  ;;  %v4698_v5 = vshrl.u32 %v17648_v20, 16  ;;  %v4687_v6 = vrot.slane %v4685_v16, 4  ;;  %v4690_v59 = vrot.slane %v4688_v52, 5 }
 0x15b   : > { %v4709_v23 = vshrl.u32 %v17650_v41, 16  ;;  %v4712_v25 = vshll.u32 %v17650_v41, 16  ;;  %v4656_v27 = vshll.u32 %v17643_v57, 16  ;;  %v17649_v60 = vld [vmem:[%s22275_s15 + $0xb0] sm:$0x1]  ;;  %v23159_v4 = vrot.slane %v4694_v51, 5 }
 0x15c   : > { %v4700_v45 = vrot.slane %v4698_v5, 4  ;;  %v4667_v52 = vor.u32 %v4666_v43, %v4663_v21  ;;  %v4691_v57 = vor.u32 %v4690_v59, %v4687_v6 }
 0x15d   : > { %v4711_v20 = vrot.slane %v4709_v23, 4  ;;  %v4714_v16 = vrot.slane %v4712_v25, 5  ;;  %v23173_v5 = vrot.slane %v4656_v27, 5  ;;  %v23179_v23 = vld [vmem:[%s22275_s15 + $0xc4] sm:$0xf] }
 0x15e   : > { %19912 = vmatmul.mubr.bf16.gmra.mrb[20].mxu0 %v21627_v56  ;;  %v4642_v56 = vrot.slane %v4640_v8, 5  ;;  %v4676_v8 = vrot.slane %v4674_v47, 4  ;;  %v17651_v47 = vld [vmem:[%s22275_s15 + $0xb8] sm:$0xf]  ;;  %v4701_v21 = vor.u32 %v4700_v45, %v23159_v4 }
 0x15f   : > { %19915 = vmatprep.mubr.bf16.mxu0 %v21632_v62  ;;  %v4629_v62 = vor.u32 %v4628_v46, %v23140_v49  ;;  %v4653_v46 = vor.u32 %v4652_v31, %v23146_v32  ;;  %v4680_v49 = vshll.u32 %v17646_v63, 16  ;;  %v4704_v63 = vshll.u32 %v17649_v60, 16  ;;  %v17652_v32 = vld [vmem:[%s22275_s15 + $0xbc] sm:$0x1] }
 0x160   : > { %v4643_v19 = vor.u32 %v4642_v56, %v4639_v18  ;;  %v4677_v41 = vor.u32 %v4676_v8, %v23155_v0  ;;  %v17653_v18 = vld [vmem:[%s22275_s15 + $0xc0] sm:$0xf]  ;;  %v4718_v25 = vshll.u32 %v17651_v47, 16  ;;  %v4715_v43 = vor.u32 %v4714_v16, %v4711_v20 }
 0x161   : > { %v21641_v56 = vld [vmem:[%s22275_s15 + $0xc0] sm:$0xff]   ;;  %v23165_v31 = vrot.slane %v4629_v62, 4  ;;  %v23171_v51 = vrot.slane %v4653_v46, 4  ;;  %v4722_v8 = vshrl.u32 %v17651_v47, 16  ;;  %v23181_v62 = vrot.slane %v4667_v52, 4 }
 0x162   : > { %v23183_v6 = vrot.slane %v4677_v41, 4  ;;  %v4728_v59 = vshll.u32 %v17652_v32, 16  ;;  %v23185_v46 = vrot.slane %v4691_v57, 4  ;;  %v23187_v27 = vrot.slane %v4704_v63, 5  ;;  %v21646_v41 = vld [vmem:[%s22275_s15 + $0xe4] sm:$0xff]   ;;  %v21650_v57 = vld [vmem:[%s22275_s15 + $0xf0] sm:$0xff]  }
 0x163   : > { %v4736_v60 = vshll.u32 %v17653_v18, 16  ;;  %v23191_v45 = vrot.slane %v4701_v21, 4  ;;  %v23193_v47 = vrot.slane %v4715_v43, 4  ;;  %v23195_v20 = vrot.slane %v4722_v8, 4  ;;  %v21655_v21 = vld [vmem:[%s22275_s15 + $0x108] sm:$0xff]   ;;  %v21662_v43 = vld [vmem:[%s26610_s1 + $0x218] sm:$0xff]  }
 0x164   : > { %v4742_v16 = vshll.u32 %v23179_v23, 16  ;;  %v23198_v32 = vrot.slane %v4728_v59, 5  ;;  %v21667_v8 = vld [vmem:[%s26610_s1 + $0x220] sm:$0xff]  }
 0x165   : > { %v23204_v63 = vrot.slane %v4736_v60, 5  ;;  %v21660_v59 = vld [vmem:[%s22275_s15 + $0x120] sm:$0xff]   ;;  %v21677_v60 = vld [vmem:[%s26610_s1 + $0x230] sm:$0xff]  }
 0x166   : > { %19916 = vmatmul.mubr.bf16.gmra.mrb[24].mxu0 %v21634_v30  ;;  %v23169_v30 = vrot.slane %v4643_v19, 4  ;;  %v4733_v19 = vshrl.u32 %v17653_v18, 16  ;;  %v4746_v18 = vshrl.u32 %v23179_v23, 16  ;;  %v4707_v23 = vsel %vm22291_vm2, %v23191_v45, %v23187_v27  ;;  %v23389_v27 = vld [vmem:[%s26611_s2] ss:$0 sm:$0xff] }
 0x167   : > { %19919 = vmatprep.mubr.bf16.mxu0 %v21639_v58  ;;  %v23175_v58 = vrot.slane %v4680_v49, 5  ;;  %v23189_v49 = vrot.slane %v4718_v25, 5  ;;  %v21651_v25 = vld [vmem:[%s22275_s15 + $0xfc] sm:$0xff]  }
 0x168   : > { %v23200_v52 = vrot.slane %v4733_v19, 4  ;;  %v21672_v19 = vld [vmem:[%s26610_s1 + $0x228] sm:$0xff]  }
 0x16e   : > { %19920 = vmatmul.mubr.bf16.gmra.mrb[28].mxu0 %v21641_v56  ;;  %v21652_v56 = vld [vmem:[%s26610_s1 + $0x208] sm:$0xff]  }
 0x16f   : > { %19939 = vmatprep.mubr.bf16.mxu0 %v21645_v22  ;;  %v21657_v22 = vld [vmem:[%s26610_s1 + $0x210] sm:$0xff]  }
 0x176   : > { %19940 = vmatmul.mubr.bf16.vlgmr.msra.gmra.mrb[0].mxu0 %v21646_v41  ;;  %v21661_v41 = vld [vmem:[%s22275_s15 + $0x12c] sm:$0xff]  }
 0x177   : > { %19972 = vmatpush3.bf16.msra.mxu0 %v23087_v17  ;;  %19943 = vmatprep.mubr.bf16.mxu0 %v21650_v57  ;;  %v21656_v17 = vld [vmem:[%s22275_s15 + $0x114] sm:$0xff]  }
 0x178   : > { %19973 = vmatprep.subr.bf16.mxu0 %v21652_v56  ;;  %v21665_v57 = vld [vmem:[%s22275_s15 + $0x138] sm:$0xff]  }
 0x17b   : > { %19974 = vmatpush3.bf16.msra.mxu0 %v21652_v56  ;;  %v21682_v56 = vld [vmem:[%s26610_s1 + $0x238] sm:$0xff]  }
 0x17c   : > { %19975 = vmatprep.subr.bf16.mxu0 %v21657_v22 }
 0x17e   : > { %19944 = vmatmul.mubr.bf16.gmra.mrb[4].mxu0 %v21651_v25  ;;  %v21670_v25 = vld [vmem:[%s22275_s15 + $0x150] sm:$0xff]  }
 0x17f   : > { %19947 = vmatprep.mubr.bf16.mxu0 %v21655_v21  ;;  %19976 = vmatpush3.bf16.msra.mxu0 %v21657_v22  ;;  %v21666_v22 = vld [vmem:[%s22275_s15 + $0x144] sm:$0xff]   ;;  %v21671_v21 = vld [vmem:[%s22275_s15 + $0x15c] sm:$0xff]  }
 0x180   : > { %19977 = vmatprep.subr.bf16.mxu0 %v21662_v43 }
 0x183   : > { %19978 = vmatpush3.bf16.msra.mxu0 %v21662_v43  ;;  %v21675_v43 = vld [vmem:[%s22275_s15 + $0x168] sm:$0xff]  }
 0x184   : > { %19979 = vmatprep.subr.bf16.mxu0 %v21667_v8 }
 0x186   : > { %19948 = vmatmul.mubr.bf16.gmra.mrb[8].mxu0 %v21656_v17  ;;  %v21680_v17 = vld [vmem:[%s22275_s15 + $0x180] sm:$0xff]  }
 0x187   : > { %19951 = vmatprep.mubr.bf16.mxu0 %v21660_v59  ;;  %19980 = vmatpush3.bf16.msra.mxu0 %v21667_v8  ;;  %v21676_v8 = vld [vmem:[%s22275_s15 + $0x174] sm:$0xff]   ;;  %v21681_v59 = vld [vmem:[%s22275_s15 + $0x18c] sm:$0xff]  }
 0x188   : > { %19981 = vmatprep.subr.bf16.mxu0 %v21672_v19 }
 0x18b   : > { %19982 = vmatpush3.bf16.msra.mxu0 %v21672_v19  ;;  %v4385_v19 = vsel %vm22291_vm2, %v23001_v7, %v22977_v9  ;;  %v4433_v9 = vsel %vm22291_vm2, %v23023_v50, %v22996_v44  ;;  %v4443_v7 = vsel %vm22291_vm2, %v23031_v34, %v23033_v1  ;;  %v4481_v44 = vsel %vm22291_vm2, %v23058_v61, %v23036_v11  ;;  %v26650_v61 = vld [vmem:[#allocation14_spill] sm:$0xff] }
 0x18c   : > { %19983 = vmatprep.subr.bf16.mxu0 %v21677_v60  ;;  %v4515_v34 = vsel %vm22291_vm2, %v23096_v36, %v23074_v12  ;;  %v4529_v1 = vsel %vm22291_vm2, %v23098_v14, %v23076_v13  ;;  %v4539_v11 = vsel %vm22291_vm2, %v23106_v48, %v23101_v2  ;;  %v26652_v12 = vld [vmem:[#allocation15_spill] sm:$0xff]  ;;  %v26654_v36 = vld [vmem:[#allocation16_spill] sm:$0xff] }
 0x18e   : > { %19952 = vmatmul.mubr.bf16.gmra.mrb[12].mxu0 %v21661_v41 }
 0x18f   : > { %19955 = vmatprep.mubr.bf16.mxu0 %v21665_v57  ;;  %19984 = vmatpush3.bf16.msra.mxu0 %v21677_v60  ;;  %v4395_v60 = vsel %vm22291_vm2, %v23012_v38, %v23015_v15  ;;  %v4409_v57 = vsel %vm22291_vm2, %v23017_v10, %v22987_v37  ;;  %v17674_v15 = vcombine.low %v4433_v9, %v4443_v7  ;;  %v4744_v7 = vrot.slane %v4742_v16, 5 }
 0x190   : > { %19985 = vmatprep.subr.bf16.mxu0 %v21682_v56  ;;  %v17672_v41 = vcombine.low %v4385_v19, %v4395_v60  ;;  %v4457_v37 = vsel %vm22291_vm2, %v23043_v42, %v23005_v35  ;;  %v4467_v10 = vsel %vm22291_vm2, %v23045_v24, %v23047_v29  ;;  %v4505_v35 = vsel %vm22291_vm2, %v23089_v40, %v23063_v55  ;;  %v26653_v40 = vld [vmem:[#allocation17_spill] sm:$0xff]  ;;  %v26661_v19 = vld [vmem:[#allocation22_spill] sm:$0xff] }
 0x191   : > { %v17677_v42 = vcombine.low %v4505_v35, %v4515_v34  ;;  %v17678_v24 = vcombine.low %v4529_v1, %v4539_v11  ;;  %v4553_v29 = vsel %vm22291_vm2, %v23112_v53, %v23081_v54  ;;  %v4587_v14 = vsel %vm22291_vm2, %v26654_v36, %v26653_v40  ;;  %v26655_v54 = vld [vmem:[#allocation11_spill] sm:$0xff]  ;;  %v26656_v53 = vld [vmem:[#allocation18_spill] sm:$0xff] }
 0x192   : > { %v4635_v60 = vsel %vm22291_vm2, %v23165_v31, %v26661_v19  ;;  %v4673_v16 = vsel %vm22291_vm2, %v23181_v62, %v23155_v0 }
 0x193   : > { %19986 = vmatpush3.bf16.msra.mxu0 %v21682_v56  ;;  %v4419_v56 = vsel %vm22291_vm2, %v23019_v28, %v23021_v39  ;;  %v4491_v28 = vsel %vm22291_vm2, %v23066_v3, %v23053_v33  ;;  %v17675_v39 = vcombine.low %v4457_v37, %v4467_v10  ;;  %v26649_v33 = vld [vmem:[#allocation13_spill] sm:$0xff]  ;;  %v26651_v3 = vld [vmem:[#allocation12_spill] sm:$0xff]  ;;  %v26662_v10 = vld [vmem:[#allocation23_spill] sm:$0xff] }
 0x194   : > { %v17673_v38 = vcombine.low %v4409_v57, %v4419_v56  ;;  %v17676_v50 = vcombine.low %v4481_v44, %v4491_v28  ;;  %v4563_v55 = vsel %vm22291_vm2, %v26650_v61, %v26649_v33  ;;  %v4577_v13 = vsel %vm22291_vm2, %v26652_v12, %v26651_v3  ;;  %v17655_v56 = vld [vmem:[%s22275_s15 + $0xc8] sm:$0x1] }
 0x195   : > { %v17679_v2 = vcombine.low %v4553_v29, %v4563_v55  ;;  %v17680_v48 = vcombine.low %v4577_v13, %v4587_v14  ;;  %v4725_v57 = vor.u32 %v23195_v20, %v23189_v49  ;;  %v4649_v31 = vsel %vm22291_vm2, %v23169_v30, %v26662_v10 }
 0x196   : > { %19956 = vmatmul.mubr.bf16.gmra.mrb[16].mxu0 %v21666_v22  ;;  %v4601_v22 = vsel %vm22291_vm2, %v26656_v53, %v26655_v54  ;;  %v4659_v20 = vsel %vm22291_vm2, %v23171_v51, %v23173_v5  ;;  %v4752_v44 = vshll.u32 %v17655_v56, 16  ;;  %v4748_v30 = vrot.slane %v4746_v18, 4 }
 0x197   : > { %19959 = vmatprep.mubr.bf16.mxu0 %v21670_v25  ;;  %v26657_v25 = vld [vmem:[#allocation19_spill] sm:$0xff]  ;;  %v17683_v35 = vcombine.low %v4649_v31, %v4659_v20  ;;  %v4739_v5 = vor.u32 %v23204_v63, %v23200_v52  ;;  %v4721_v63 = vsel %vm22291_vm2, %v23193_v47, %v23189_v49 }
 0x198   : > { %v4749_v34 = vor.u32 %v4748_v30, %v4744_v7  ;;  %v4754_v0 = vrot.slane %v4752_v44, 5 }
 0x19a   : > { %v4750_v11 = vrot.slane %v4749_v34, 4  ;;  %v23457_v34 = vld [vmem:[#allocation2 + $0x54] sm:$0x1] }
 0x19e   : > { %19960 = vmatmul.mubr.bf16.gmra.mrb[20].mxu0 %v21671_v21  ;;  %v26658_v21 = vld [vmem:[#allocation20_spill] sm:$0xff] }
 0x19f   : > { %19963 = vmatprep.mubr.bf16.mxu0 %v21675_v43  ;;  %v4611_v43 = vsel %vm22291_vm2, %v26658_v21, %v26657_v25 }
 0x1a6   : > { %19964 = vmatmul.mubr.bf16.gmra.mrb[24].mxu0 %v21676_v8  ;;  %v26659_v8 = vld [vmem:[#allocation21_spill] sm:$0xff] }
 0x1a7   : > { %19967 = vmatprep.mubr.bf16.mxu0 %v21680_v17  ;;  %v26660_v17 = vld [vmem:[#allocation24_spill] sm:$0xff] }
 0x1ae   : > { %19968 = vmatmul.mubr.bf16.gmra.mrb[28].mxu0 %v21681_v59  ;;  %v4625_v59 = vsel %vm22291_vm2, %v26660_v17, %v26659_v8 }
 0x1af   : > { %19987 = vmatprep.mubr.bf16.mxu0 %v17672_v41  ;;  %v17681_v41 = vcombine.low %v4601_v22, %v4611_v43  ;;  %v17682_v9 = vcombine.low %v4625_v59, %v4635_v60 }
 0x1b6   : > { %19988 = vmatmul.mubr.bf16.vlgmr.msra.gmra.mrb[0].mxu0 %v17673_v38 }
 0x1b7   : > { %19991 = vmatprep.mubr.bf16.mxu0 %v17674_v15  ;;  %v4726_v15 = vrot.slane %v4725_v57, 4 }
 0x1b9   : > { %v4731_v18 = vsel %vm22291_vm2, %v4726_v15, %v23198_v32  ;;  %v4755_v32 = vsel %vm22291_vm2, %v4750_v11, %v4754_v0  ;;  %v23459_v0 = vld [vmem:[#allocation2 + $0x5c] sm:$0x1]  ;;  %v23471_v11 = vld [vmem:[#allocation2 + $0x8c] sm:$0x1] }
 0x1be   : > { %19992 = vmatmul.mubr.bf16.gmra.mrb[4].mxu0 %v17675_v39  ;;  %v4683_v39 = vsel %vm22291_vm2, %v23183_v6, %v23175_v58  ;;  %v4697_v58 = vsel %vm22291_vm2, %v23185_v46, %v23159_v4  ;;  %v4740_v6 = vrot.slane %v4739_v5, 4  ;;  %v17686_v46 = vcombine.low %v4721_v63, %v4731_v18  ;;  %v23455_v5 = vld [vmem:[#allocation2 + $0x4c] sm:$0x1]  ;;  %v23467_v63 = vld [vmem:[#allocation2 + $0x7c] sm:$0x1] }
 0x1bf   : > { %19995 = vmatprep.mubr.bf16.mxu0 %v17676_v50  ;;  %v17684_v51 = vcombine.low %v4673_v16, %v4683_v39  ;;  %v17685_v4 = vcombine.low %v4697_v58, %v4707_v23  ;;  %v23461_v58 = vld [vmem:[#allocation2 + $0x64] sm:$0x1]  ;;  %v23463_v23 = vld [vmem:[#allocation2 + $0x6c] sm:$0x1] }
 0x1c0   : > { %v4745_v47 = vsel %vm22291_vm2, %v4740_v6, %v4744_v7  ;;  %v23465_v6 = vld [vmem:[#allocation2 + $0x74] sm:$0x1]  ;;  %v23469_v18 = vld [vmem:[#allocation2 + $0x84] sm:$0x1] }
 0x1c1   : > { %v17687_v12 = vcombine.low %v4745_v47, %v4755_v32  ;;  %v23479_v47 = vld [vmem:[#allocation2 + $0xec] sm:$0x1]  ;;  %v23481_v32 = vld [vmem:[#allocation2 + $0xf4] sm:$0x1] }
 0x1c6   : > { %19996 = vmatmul.mubr.bf16.gmra.mrb[8].mxu0 %v17677_v42 }
 0x1c7   : > { %19999 = vmatprep.mubr.bf16.mxu0 %v17678_v24 }
 0x1cc   : > { %v23335_v38 = vpop.f32.mrb[0].mxu1 }
 0x1cd   : > { %v23337_v37 = vpop.f32.mrb[1].mxu1 }
 0x1ce   : > { %20000 = vmatmul.mubr.bf16.gmra.mrb[12].mxu0 %v17679_v2  ;;  %v23347_v28 = vpop.f32.mrb[2].mxu1 }
 0x1cf   : > { %20003 = vmatprep.mubr.bf16.mxu0 %v17680_v48  ;;  %v23359_v50 = vpop.f32.mrb[3].mxu1 }
 0x1d4   : > { %v23363_v1 = vpop.f32.mrb[4].mxu1 }
 0x1d5   : > { %v23365_v62 = vpop.f32.mrb[5].mxu1 }
 0x1d6   : > { %20004 = vmatmul.mubr.bf16.gmra.mrb[16].mxu0 %v17681_v41  ;;  %v23375_v52 = vpop.f32.mrb[6].mxu1 }
 0x1d7   : > { %20007 = vmatprep.mubr.bf16.mxu0 %v17682_v9  ;;  %v23384_v42 = vpop.f32.mrb[7].mxu1 }
 0x1dc   : > { %v19661_v45 = vpop.f32.mrb[8].mxu1 }
 0x1dd   : > { %v23392_v24 = vadd.f32 %v19661_v45, %v23389_v27  ;;  %v1138_v49 = vpop.f32.mrb[9].mxu1  ;;  %v23477_v45 = vld [vmem:[#allocation2 + $0xe4] sm:$0x1] }
 0x1de   : > { %20008 = vmatmul.mubr.bf16.gmra.mrb[20].mxu0 %v17683_v35  ;;  %v23399_v29 = vadd.f32 %v23389_v27, %v1138_v49  ;;  %v19662_v33 = vpop.f32.mrb[10].mxu1 }
 0x1df   : > { %20011 = vmatprep.mubr.bf16.mxu0 %v17684_v51  ;;  %v23402_v61 = vadd.f32 %v19662_v33, %v23389_v27  ;;  %v1141_v55 = vpop.f32.mrb[11].mxu1  ;;  %v23483_v33 = vld [vmem:[#allocation2 + $0xfc] sm:$0x1] }
 0x1e0   : > { %v23405_v3 = vadd.f32 %v23389_v27, %v1141_v55  ;;  %v23485_v55 = vld [vmem:[#allocation2 + $0x104] sm:$0x1] }
 0x1e4   : > { %v19665_v13 = vpop.f32.mrb[12].mxu1 }
 0x1e5   : > { %v23408_v40 = vadd.f32 %v19665_v13, %v23389_v27  ;;  %v1154_v36 = vpop.f32.mrb[13].mxu1 }
 0x1e6   : > { %20012 = vmatmul.mubr.bf16.gmra.mrb[24].mxu0 %v17685_v4  ;;  %v23411_v14 = vadd.f32 %v23389_v27, %v1154_v36  ;;  %v19666_v2 = vpop.f32.mrb[14].mxu1  ;;  %v23473_v4 = vld [vmem:[#allocation2 + $0xd4] sm:$0x1] }
 0x1e7   : > { %20015 = vmatprep.mubr.bf16.mxu0 %v17686_v46  ;;  %v23414_v48 = vadd.f32 %v19666_v2, %v23389_v27  ;;  %v1157_v54 = vpop.f32.mrb[15].mxu1  ;;  %v23475_v46 = vld [vmem:[#allocation2 + $0xdc] sm:$0x1]  ;;  %v22176_v2 = vmov 0   ;;  %v22047_v36 = vld [vmem:[%s26610_s1 + $0xc50] sm:$0xff]  }
 0x1e8   : > { %v23417_v53 = vadd.f32 %v23389_v27, %v1157_v54  ;;  %230 = vst [vmem:[#allocation2 + $0x8] sm:$0xf] %v22176_v2  ;;  %v231_v54 = vld [vmem:[#allocation2 + $0xc] sm:$0x1]  ;;  %266 = vst [vmem:[#allocation2 + $0x50] sm:$0xf] %v22176_v2 }
 0x1e9   : > { %223 = vst [vmem:[#allocation2] sm:$0xf] %v22176_v2  ;;  %234 = vst [vmem:[#allocation2 + $0x10] sm:$0xf] %v22176_v2 }
 0x1ea   : > { %238 = vst [vmem:[#allocation2 + $0x18] sm:$0xf] %v22176_v2  ;;  %242 = vst [vmem:[#allocation2 + $0x20] sm:$0xf] %v22176_v2 }
 0x1eb   : > { %246 = vst [vmem:[#allocation2 + $0x28] sm:$0xf] %v22176_v2  ;;  %250 = vst [vmem:[#allocation2 + $0x30] sm:$0xf] %v22176_v2 }
 0x1ec   : > { %v19669_v22 = vpop.f32.mrb[16].mxu1  ;;  %254 = vst [vmem:[#allocation2 + $0x38] sm:$0xf] %v22176_v2  ;;  %258 = vst [vmem:[#allocation2 + $0x40] sm:$0xf] %v22176_v2 }
 0x1ed   : > { %v23420_v25 = vadd.f32 %v19669_v22, %v23389_v27  ;;  %v1170_v21 = vpop.f32.mrb[17].mxu1  ;;  %262 = vst [vmem:[#allocation2 + $0x48] sm:$0xf] %v22176_v2  ;;  %270 = vst [vmem:[#allocation2 + $0x58] sm:$0xf] %v22176_v2 }
 0x1ee   : > { %20016 = vmatmul.mubr.bf16.gmra.mrb[28].mxu0 %v17687_v12  ;;  %v23423_v43 = vadd.f32 %v23389_v27, %v1170_v21  ;;  %v19670_v8 = vpop.f32.mrb[18].mxu1  ;;  %274 = vst [vmem:[#allocation2 + $0x60] sm:$0xf] %v22176_v2  ;;  %278 = vst [vmem:[#allocation2 + $0x68] sm:$0xf] %v22176_v2 }
 0x1ef   : > { %v23426_v17 = vadd.f32 %v19670_v8, %v23389_v27  ;;  %v1173_v59 = vpop.f32.mrb[19].mxu1  ;;  %282 = vst [vmem:[#allocation2 + $0x70] sm:$0xf] %v22176_v2  ;;  %286 = vst [vmem:[#allocation2 + $0x78] sm:$0xf] %v22176_v2 }
 0x1f0   : > { %v23429_v19 = vadd.f32 %v23389_v27, %v1173_v59  ;;  %290 = vst [vmem:[#allocation2 + $0x80] sm:$0xf] %v22176_v2  ;;  %294 = vst [vmem:[#allocation2 + $0x88] sm:$0xf] %v22176_v2  ;;  %v359_v22 = vld [vmem:[#allocation2 + $0x10c] sm:$0x1] }
 0x1f1   : > { %298 = vst [vmem:[#allocation2 + $0x90] sm:$0xf] %v22176_v2  ;;  %302 = vst [vmem:[#allocation2 + $0x98] sm:$0xf] %v22176_v2  ;;  %v363_v21 = vld [vmem:[#allocation2 + $0x114] sm:$0x1] }
 0x1f2   : > { %306 = vst [vmem:[#allocation2 + $0xa0] sm:$0xf] %v22176_v2  ;;  %310 = vst [vmem:[#allocation2 + $0xa8] sm:$0xf] %v22176_v2  ;;  %v367_v8 = vld [vmem:[#allocation2 + $0x11c] sm:$0x1] }
 0x1f3   : > { %314 = vst [vmem:[#allocation2 + $0xb0] sm:$0xf] %v22176_v2  ;;  %318 = vst [vmem:[#allocation2 + $0xb8] sm:$0xf] %v22176_v2 }
 0x1f4   : > { %v19673_v60 = vpop.f32.mrb[20].mxu1  ;;  %322 = vst [vmem:[#allocation2 + $0xc0] sm:$0xf] %v22176_v2  ;;  %326 = vst [vmem:[#allocation2 + $0xc8] sm:$0xf] %v22176_v2 }
 0x1f5   : > { %v23432_v41 = vadd.f32 %v19673_v60, %v23389_v27  ;;  %v1186_v57 = vpop.f32.mrb[21].mxu1  ;;  %334 = vst [vmem:[#allocation2 + $0xd8] sm:$0xf] %v22176_v2  ;;  %338 = vst [vmem:[#allocation2 + $0xe0] sm:$0xf] %v22176_v2 }
 0x1f6   : > { %v23435_v56 = vadd.f32 %v23389_v27, %v1186_v57  ;;  %v19674_v9 = vpop.f32.mrb[22].mxu1  ;;  %342 = vst [vmem:[#allocation2 + $0xe8] sm:$0xf] %v22176_v2  ;;  %346 = vst [vmem:[#allocation2 + $0xf0] sm:$0xf] %v22176_v2  ;;  %v232_v57 = vsel %vm23492_vm5, 0, %v231_v54 }
 0x1f7   : > { %v23438_v7 = vadd.f32 %v19674_v9, %v23389_v27  ;;  %v1189_v15 = vpop.f32.mrb[23].mxu1  ;;  %350 = vst [vmem:[#allocation2 + $0xf8] sm:$0xf] %v22176_v2  ;;  %354 = vst [vmem:[#allocation2 + $0x100] sm:$0xf] %v22176_v2  ;;  %v264_v9 = vsel %vm23492_vm5, 0, %v23455_v5 }
 0x1f8   : > { %v23441_v10 = vadd.f32 %v23389_v27, %v1189_v15  ;;  %358 = vst [vmem:[#allocation2 + $0x108] sm:$0xf] %v22176_v2  ;;  %362 = vst [vmem:[#allocation2 + $0x110] sm:$0xf] %v22176_v2  ;;  %v268_v15 = vsel %vm23492_vm5, 0, %v23457_v34  ;;  %v280_v5 = vsel %vm23492_vm5, 0, %v23463_v23 }
 0x1f9   : > { %433 = vst [vmem:[#allocation4] sm:$0x7] %v22176_v2  ;;  %434 = vst [vmem:[#allocation4 + $0x4] sm:$0x7] %v22176_v2  ;;  %v332_v23 = vsel %vm23492_vm5, 0, %v23473_v4  ;;  %v352_v4 = vsel %vm23492_vm5, 0, %v23483_v33 }
 0x1fa   : > { %435 = vst [vmem:[#allocation4 + $0x8] sm:$0x7] %v22176_v2  ;;  %436 = vst [vmem:[#allocation4 + $0xc] sm:$0x7] %v22176_v2  ;;  %v299_v33 = vld [vmem:[#allocation2 + $0x94] sm:$0x1] }
 0x1fb   : > { %437 = vst [vmem:[#allocation4 + $0x10] sm:$0x7] %v22176_v2  ;;  %438 = vst [vmem:[#allocation4 + $0x14] sm:$0x7] %v22176_v2 }
 0x1fc   : > { %v19677_v31 = vpop.f32.mrb[24].mxu1  ;;  %478 = vst [vmem:[#allocation6] sm:$0x1] %v22176_v2  ;;  %479 = vst [vmem:[#allocation6 + $0x1] sm:$0x1] %v22176_v2 }
 0x1fd   : > { %v23444_v20 = vadd.f32 %v19677_v31, %v23389_v27  ;;  %v1202_v44 = vpop.f32.mrb[25].mxu1  ;;  %480 = vst [vmem:[#allocation6 + $0x2] sm:$0x1] %v22176_v2  ;;  %481 = vst [vmem:[#allocation6 + $0x3] sm:$0x1] %v22176_v2 }
 0x1fe   : > { %v23447_v16 = vadd.f32 %v23389_v27, %v1202_v44  ;;  %v19678_v39 = vpop.f32.mrb[26].mxu1  ;;  %482 = vst [vmem:[#allocation6 + $0x4] sm:$0x1] %v22176_v2  ;;  %484 = vst [vmem:[#allocation6 + $0x6] sm:$0x1] %v22176_v2 }
 0x1ff   : > { %v23450_v30 = vadd.f32 %v19678_v39, %v23389_v27  ;;  %v1205_v35 = vpop.f32.mrb[27].mxu1  ;;  %233 = vst [vmem:[#allocation2 + $0xc] sm:$0x1] %v232_v57  ;;  %265 = vst [vmem:[#allocation2 + $0x4c] sm:$0x1] %v264_v9  ;;  %v272_v39 = vsel %vm23492_vm5, 0, %v23459_v0 }
 0x200   : > { %v23453_v51 = vadd.f32 %v23389_v27, %v1205_v35  ;;  %269 = vst [vmem:[#allocation2 + $0x54] sm:$0x1] %v268_v15  ;;  %v276_v35 = vsel %vm23492_vm5, 0, %v23461_v58  ;;  %273 = vst [vmem:[#allocation2 + $0x5c] sm:$0x1] %v272_v39  ;;  %v288_v0 = vsel %vm23492_vm5, 0, %v23467_v63 }
 0x201   : > { %277 = vst [vmem:[#allocation2 + $0x64] sm:$0x1] %v276_v35  ;;  %281 = vst [vmem:[#allocation2 + $0x6c] sm:$0x1] %v280_v5  ;;  %v292_v58 = vsel %vm23492_vm5, 0, %v23469_v18  ;;  %v340_v63 = vsel %vm23492_vm5, 0, %v23477_v45 }
 0x202   : > { %26663 = vst [vmem:[#allocation13_spill] sm:$0xff] %v23453_v51  ;;  %289 = vst [vmem:[#allocation2 + $0x7c] sm:$0x1] %v288_v0  ;;  %v344_v18 = vsel %vm23492_vm5, 0, %v23479_v47  ;;  %v360_v45 = vsel %vm23492_vm5, 0, %v359_v22  ;;  %v364_v47 = vsel %vm23492_vm5, 0, %v363_v21 }
 0x203   : > { %293 = vst [vmem:[#allocation2 + $0x84] sm:$0x1] %v292_v58  ;;  %333 = vst [vmem:[#allocation2 + $0xd4] sm:$0x1] %v332_v23  ;;  %v235_v2 = vld [vmem:[#allocation2 + $0x14] sm:$0x1]  ;;  %v5138_v23 = vlaneseq }
 0x204   : > { %v19681_v49 = vpop.f32.mrb[28].mxu1  ;;  %341 = vst [vmem:[#allocation2 + $0xe4] sm:$0x1] %v340_v63  ;;  %345 = vst [vmem:[#allocation2 + $0xec] sm:$0x1] %v344_v18  ;;  %v236_v54 = vsel %vm23492_vm5, 0, %v235_v2 }
 0x205   : > { %v23488_v12 = vadd.f32 %v19681_v49, %v23389_v27  ;;  %v1218_v13 = vpop.f32.mrb[29].mxu1  ;;  %v284_v49 = vsel %vm23492_vm5, 0, %v23465_v6  ;;  %v336_v6 = vsel %vm23492_vm5, 0, %v23475_v46  ;;  %v356_v46 = vsel %vm23492_vm5, 0, %v23485_v55  ;;  %353 = vst [vmem:[#allocation2 + $0xfc] sm:$0x1] %v352_v4 }
 0x206   : > { %v23497_v59 = vadd.f32 %v23389_v27, %v1218_v13  ;;  %v19682_v60 = vpop.f32.mrb[30].mxu1  ;;  %285 = vst [vmem:[#allocation2 + $0x74] sm:$0x1] %v284_v49  ;;  %337 = vst [vmem:[#allocation2 + $0xdc] sm:$0x1] %v336_v6  ;;  %v300_v55 = vsel %vm23492_vm5, 0, %v299_v33 }
 0x207   : > { %26664 = vst [vmem:[#allocation14_spill] sm:$0xff] %v23488_v12  ;;  %v23508_v31 = vadd.f32 %v19682_v60, %v23389_v27  ;;  %v1221_v44 = vpop.f32.mrb[31].mxu1  ;;  %357 = vst [vmem:[#allocation2 + $0x104] sm:$0x1] %v356_v46  ;;  %v21683_v13 = vld [vmem:[%s26610_s1 + $0x240] sm:$0xff]   ;;  %v21684_v21 = vld [vmem:[%s26610_s1 + $0x248] sm:$0xff]  }
 0x208   : > { %26667 = vst [vmem:[#allocation12_spill] sm:$0xff] %v23497_v59  ;;  %v23520_v34 = vadd.f32 %v23389_v27, %v1221_v44  ;;  %v296_v27 = vsel %vm23492_vm5, 0, %v23471_v11  ;;  %v348_v11 = vsel %vm23492_vm5, 0, %v23481_v32  ;;  %v368_v32 = vsel %vm23492_vm5, 0, %v367_v8  ;;  %361 = vst [vmem:[#allocation2 + $0x10c] sm:$0x1] %v360_v45  ;;  %20019 = vmatprep.subr.bf16.mxu1 %v21683_v13 }
 0x209   : > { %26668 = vst [vmem:[#allocation15_spill] sm:$0xff] %v23508_v31  ;;  %297 = vst [vmem:[#allocation2 + $0x8c] sm:$0x1] %v296_v27  ;;  %20020 = vmatpush3.bf16.msra.mxu1 %v21683_v13  ;;  %v303_v22 = vld [vmem:[#allocation2 + $0x9c] sm:$0x1]  ;;  %v21685_v9 = vld [vmem:[%s26610_s1 + $0x250] sm:$0xff]  }
 0x20a   : > { %26669 = vst [vmem:[#allocation17_spill] sm:$0xff] %v23520_v34  ;;  %349 = vst [vmem:[#allocation2 + $0xf4] sm:$0x1] %v348_v11  ;;  %v304_v8 = vsel %vm23492_vm5, 0, %v303_v22  ;;  %20021 = vmatprep.subr.bf16.mxu1 %v21684_v21  ;;  %v239_v60 = vld [vmem:[#allocation2 + $0x1c] sm:$0x1] }
 0x20b   : > { %365 = vst [vmem:[#allocation2 + $0x114] sm:$0x1] %v364_v47  ;;  %369 = vst [vmem:[#allocation2 + $0x11c] sm:$0x1] %v368_v32  ;;  %v240_v57 = vsel %vm23492_vm5, 0, %v239_v60  ;;  %v21686_v5 = vld [vmem:[%s26610_s1 + $0x258] sm:$0xff]  }
 0x20c   : > { %301 = vst [vmem:[#allocation2 + $0x94] sm:$0x1] %v300_v55  ;;  %237 = vst [vmem:[#allocation2 + $0x14] sm:$0x1] %v236_v54  ;;  %v307_v15 = vld [vmem:[#allocation2 + $0xa4] sm:$0x1] }
 0x20d   : > { %305 = vst [vmem:[#allocation2 + $0x9c] sm:$0x1] %v304_v8  ;;  %20022 = vmatpush3.bf16.msra.mxu1 %v21684_v21  ;;  %241 = vst [vmem:[#allocation2 + $0x1c] sm:$0x1] %v240_v57  ;;  %v308_v44 = vsel %vm23492_vm5, 0, %v307_v15  ;;  %v23593_v32 = vshrl.u32 %v5138_v23, 7 }
 0x20e   : > { %20023 = vmatprep.subr.bf16.mxu1 %v21685_v9  ;;  %309 = vst [vmem:[#allocation2 + $0xa4] sm:$0x1] %v308_v44  ;;  %v243_v39 = vld [vmem:[#allocation2 + $0x24] sm:$0x1]  ;;  %v311_v49 = vld [vmem:[#allocation2 + $0xac] sm:$0x1] }
 0x20f   : > { %v244_v35 = vsel %vm23492_vm5, 0, %v243_v39  ;;  %v312_v0 = vsel %vm23492_vm5, 0, %v311_v49  ;;  %v22177_v58 = vmov 1966171168   ;;  %v22093_v6 = vld [vmem:[%s26611_s2] ss:$0 sm:$0xff] }
 0x210   : > { %245 = vst [vmem:[#allocation2 + $0x24] sm:$0x1] %v244_v35  ;;  %313 = vst [vmem:[#allocation2 + $0xac] sm:$0x1] %v312_v0  ;;  %v5136_v27 = vunpack.c.l.s4 %v22177_v58  ;;  %v20975_v63 = vadd.f32 %v22093_v6, %v23335_v38  ;;  %v20977_v18 = vadd.f32 %v22093_v6, %v23337_v37  ;;  %v20979_v4 = vadd.f32 %v22093_v6, %v23347_v28 }
 0x211   : > { %20024 = vmatpush3.bf16.msra.mxu1 %v21685_v9  ;;  %26670 = vst [vmem:[#allocation16_spill] sm:$0xff] %v23593_v32  ;;  %v20981_v33 = vadd.f32 %v22093_v6, %v23359_v50  ;;  %v22178_v2 = vmov 1935823168   ;;  %v20983_v15 = vadd.f32 %v22093_v6, %v23363_v1  ;;  %v20985_v50 = vadd.f32 %v22093_v6, %v23365_v62 }
 0x212   : > { %20025 = vmatprep.subr.bf16.mxu1 %v21686_v5  ;;  %v5137_v47 = vunpack.c.0.s8 %v5136_v27  ;;  %v5527_v54 = vunpack.c.l.s4 %v22178_v2  ;;  %v23602_v35 = vadd.f32 %v22093_v6, %v23375_v52  ;;  %v23605_v58 = vadd.f32 %v22093_v6, %v23384_v42 }
 0x214   : > { %v23597_v37 = vsub.s32 %v5137_v47, %v23593_v32  ;;  %v5528_v57 = vunpack.c.0.s8 %v5527_v54 }
 0x215   : > { %20026 = vmatpush3.bf16.msra.mxu1 %v21686_v5 }
 0x289   : > { %v19989_v11 = vpop.f32.mrb[0].mxu0 }
 0x28a   : > { %v20976_v46 = vadd.f32 %v20975_v63, %v19989_v11  ;;  %v4919_v45 = vpop.f32.mrb[1].mxu0 }
 0x28b   : > { %v20978_v55 = vadd.f32 %v20977_v18, %v4919_v45  ;;  %v19990_v13 = vpop.f32.mrb[2].mxu0  ;;  %v23612_v18 = vsub.s32 %v5528_v57, %v23593_v32 }
 0x28c   : > { %v20980_v22 = vadd.f32 %v20979_v4, %v19990_v13  ;;  %v4922_v21 = vpop.f32.mrb[3].mxu0  ;;  %v5080_v38 = vmax.f32 %v20976_v46, 0.0 }
 0x28d   : > { %v20982_v8 = vadd.f32 %v20981_v33, %v4922_v21  ;;  %v5078_v28 = vmax.f32 %v20978_v55, 0.0 }
 0x28e   : > { %v5081_v60 = vmax.f32 %v20980_v22, 0.0 }
 0x28f   : > { %v5079_v9 = vmax.f32 %v20982_v8, 0.0 }
 0x290   : > { %v5111_v44 = vpack.c.bf16 %v5081_v60, %v5080_v38  ;;  %v17704_v39 = vpack.c.bf16 %v5081_v60, %v5081_v60  ;;  %v21687_v38 = vld [vmem:[%s26610_s1 + $0x260] sm:$0xff]  }
 0x291   : > { %v5110_v5 = vpack.c.bf16 %v5079_v9, %v5078_v28  ;;  %v17696_v49 = vpack.c.bf16 %v5079_v9, %v5079_v9  ;;  %v19993_v0 = vpop.f32.mrb[4].mxu0  ;;  %20027 = vmatprep.subr.bf16.mxu1 %v21687_v38 }
 0x292   : > { %v6777_v27 = vrot.slane %v5111_v44, %v23597_v37  ;;  %v6784_v23 = vrot.slane %v17704_v39, %v23597_v37  ;;  %v23609_v63 = vadd.f32 %v20983_v15, %v19993_v0  ;;  %v4935_v1 = vpop.f32.mrb[5].mxu0  ;;  %20028 = vmatpush3.bf16.msra.mxu1 %v21687_v38 }
 0x293   : > { %v5141_v62 = vrot.slane %v5110_v5, %v23597_v37  ;;  %v5148_v52 = vrot.slane %v17696_v49, %v23597_v37  ;;  %v23616_v11 = vadd.f32 %v20985_v50, %v4935_v1  ;;  %v23618_v4 = vpop.f32.mrb[6].mxu0 }
 0x294   : > { %v6785_v42 = vcombine.high %v6777_v27, %v6777_v27  ;;  %v6786_v6 = vcombine.high %v6784_v23, %v6784_v23  ;;  %v6793_v46 = vrot.slane %v6777_v27, %v23597_v37  ;;  %v6800_v45 = vrot.slane %v6784_v23, %v23597_v37  ;;  %v23622_v47 = vpop.f32.mrb[7].mxu0 }
 0x295   : > { %v5149_v33 = vcombine.high %v5141_v62, %v5141_v62  ;;  %v5150_v55 = vcombine.high %v5148_v52, %v5148_v52  ;;  %v23625_v13 = vrot.slane %v5141_v62, %v23597_v37  ;;  %v23628_v2 = vrot.slane %v5148_v52, %v23597_v37 }
 0x296   : > { %v6807_v54 = vrot.slane %v6785_v42, %v23597_v37  ;;  %v6814_v22 = vrot.slane %v6786_v6, %v23597_v37  ;;  %v6815_v21 = vcombine.high %v6793_v46, %v6793_v46  ;;  %v6816_v8 = vcombine.high %v6800_v45, %v6800_v45 }
 0x297   : > { %v7168_v60 = vrot.slane %v6793_v46, %v23612_v18  ;;  %v7224_v28 = vrot.slane %v6800_v45, %v23612_v18  ;;  %v23638_v57 = vrot.slane %v5149_v33, %v23597_v37  ;;  %v23641_v9 = vrot.slane %v5150_v55, %v23597_v37 }
 0x298   : > { %v6817_v15 = vcombine.high %v6807_v54, %v6807_v54  ;;  %v6818_v44 = vcombine.high %v6814_v22, %v6814_v22  ;;  %v7182_v39 = vrot.slane %v6807_v54, %v23612_v18  ;;  %v7196_v50 = vrot.slane %v6815_v21, %v23612_v18 }
 0x299   : > { %v7175_v5 = vrot.slane %v7168_v60, %v23612_v18  ;;  %v7231_v49 = vrot.slane %v7224_v28, %v23612_v18  ;;  %v7238_v0 = vrot.slane %v6814_v22, %v23612_v18  ;;  %v7252_v27 = vrot.slane %v6816_v8, %v23612_v18  ;;  %v23649_v23 = vpop.f32.mrb[8].mxu0 }
 0x29a   : > { %v7189_v1 = vrot.slane %v7182_v39, %v23612_v18  ;;  %v7203_v62 = vrot.slane %v7196_v50, %v23612_v18  ;;  %v7210_v52 = vrot.slane %v6817_v15, %v23612_v18  ;;  %v7266_v42 = vrot.slane %v6818_v44, %v23612_v18  ;;  %v23655_v6 = vpop.f32.mrb[9].mxu0 }
 0x29b   : > { %v7245_v46 = vrot.slane %v7238_v0, %v23612_v18  ;;  %v7259_v45 = vrot.slane %v7252_v27, %v23612_v18  ;;  %v8058_v33 = vunpack.c.l.b16 %v7175_v5  ;;  %v8062_v55 = vunpack.c.l.b16 %v7231_v49  ;;  %v23659_v54 = vpop.f32.mrb[10].mxu0 }
 0x29c   : > { %v7217_v22 = vrot.slane %v7210_v52, %v23612_v18  ;;  %v7273_v21 = vrot.slane %v7266_v42, %v23612_v18  ;;  %v8059_v8 = vunpack.c.l.b16 %v7189_v1  ;;  %v8060_v38 = vunpack.c.l.b16 %v7203_v62  ;;  %v23663_v60 = vpop.f32.mrb[11].mxu0 }
 0x29d   : > { %v8063_v28 = vunpack.c.l.b16 %v7245_v46  ;;  %v8064_v15 = vunpack.c.l.b16 %v7259_v45  ;;  %v8128_v44 = vrot.slane %v8062_v55, 4  ;;  %v5179_v39 = vcombine.high %v23625_v13, %v23625_v13 }
 0x29e   : > { %v8061_v50 = vunpack.c.l.b16 %v7217_v22  ;;  %v8065_v0 = vunpack.c.l.b16 %v7273_v21  ;;  %v8122_v5 = vrot.slane %v8059_v8, 7  ;;  %v8124_v49 = vrot.slane %v8060_v38, 6  ;;  %v8343_v21 = vld [vmem:[#allocation2 + $0xc] sm:$0x1] }
 0x29f   : > { %v8130_v27 = vrot.slane %v8063_v28, 3  ;;  %v8132_v32 = vrot.slane %v8064_v15, 2  ;;  %v5180_v52 = vcombine.high %v23628_v2, %v23628_v2  ;;  %v5181_v1 = vcombine.high %v23638_v57, %v23638_v57 }
 0x2a0   : > { %v8123_v62 = vsel %vm6487_vm6, %v8122_v5, %v8058_v33  ;;  %v8126_v42 = vrot.slane %v8061_v50, 5  ;;  %v8134_v46 = vrot.slane %v8065_v0, 1  ;;  %v8259_v45 = vsel %vm6490_vm7, %v8122_v5, %v8058_v33 }
 0x2a1   : > { %v8125_v55 = vsel %vm6490_vm7, %v8124_v49, %v8123_v62  ;;  %v8260_v22 = vsel %vm6493_vm8, %v8124_v49, %v8259_v45  ;;  %v5182_v8 = vcombine.high %v23641_v9, %v23641_v9  ;;  %v5532_v38 = vrot.slane %v23625_v13, %v23612_v18  ;;  %v23679_v28 = vpop.f32.mrb[12].mxu0 }
 0x2a2   : > { %v8127_v15 = vsel %vm6493_vm8, %v8126_v42, %v8125_v55  ;;  %v8261_v50 = vsel %vm6496_vm9, %v8126_v42, %v8260_v22  ;;  %v8308_v0 = vpack.c.b16 %v8134_v46, %v8134_v46  ;;  %v5546_v33 = vrot.slane %v23638_v57, %v23612_v18  ;;  %v23685_v5 = vpop.f32.mrb[13].mxu0 }
 0x2a3   : > { %v8129_v49 = vsel %vm6496_vm9, %v8128_v44, %v8127_v15  ;;  %v8262_v62 = vsel %vm6499_vm10, %v8128_v44, %v8261_v50  ;;  %v5539_v45 = vrot.slane %v5532_v38, %v23612_v18  ;;  %v5560_v13 = vrot.slane %v5179_v39, %v23612_v18  ;;  %v23691_v26 = vpop.f32.mrb[14].mxu0  ;;  %v8340_v15 = vld [vmem:[#allocation2 + $0x8] sm:$0xf] }
 0x2a4   : > { %v8131_v55 = vsel %vm6499_vm10, %v8130_v27, %v8129_v49  ;;  %v8263_v42 = vsel %vm6502_vm11, %v8130_v27, %v8262_v62  ;;  %v8344_v22 = vsel %vm23492_vm5, %v8308_v0, %v8343_v21  ;;  %v5553_v57 = vrot.slane %v5546_v33, %v23612_v18  ;;  %v23698_v34 = vpop.f32.mrb[15].mxu0 }
 0x2a5   : > { %v8133_v39 = vsel %vm6502_vm11, %v8132_v32, %v8131_v55  ;;  %v8264_v38 = vsel %vm6505_vm12, %v8132_v32, %v8263_v42  ;;  %8345 = vst [vmem:[#allocation2 + $0xc] sm:$0x1] %v8344_v22  ;;  %v5567_v27 = vrot.slane %v5560_v13, %v23612_v18  ;;  %v5574_v21 = vrot.slane %v5181_v1, %v23612_v18 }
 0x2a6   : > { %v8135_v50 = vsel %vm6505_vm12, %v8134_v46, %v8133_v39  ;;  %v8307_v0 = vpack.c.b16 %v8264_v38, %v8264_v38  ;;  %v5588_v33 = vrot.slane %v23628_v2, %v23612_v18  ;;  %v5602_v49 = vrot.slane %v23641_v9, %v23612_v18 }
 0x2a7   : > { %v8234_v62 = vpack.c.b16 %v8135_v50, %v8135_v50  ;;  %v5581_v55 = vrot.slane %v5574_v21, %v23612_v18  ;;  %v5616_v32 = vrot.slane %v5180_v52, %v23612_v18  ;;  %v5630_v42 = vrot.slane %v5182_v8, %v23612_v18 }
 0x2a8   : > { %v8341_v13 = vsel %vm23702_vm15, %v8307_v0, %v8340_v15  ;;  %v5595_v1 = vrot.slane %v5588_v33, %v23612_v18  ;;  %v5609_v46 = vrot.slane %v5602_v49, %v23612_v18  ;;  %v6422_v22 = vunpack.c.l.b16 %v5539_v45 }
 0x2a9   : > { %8251 = vst [vmem:[#allocation2 + $0x50] sm:$0xf] %v8234_v62  ;;  %8342 = vst [vmem:[#allocation2 + $0x8] sm:$0xf] %v8341_v13  ;;  %v5623_v2 = vrot.slane %v5616_v32, %v23612_v18  ;;  %v5637_v9 = vrot.slane %v5630_v42, %v23612_v18  ;;  %v6423_v39 = vunpack.c.l.b16 %v5553_v57  ;;  %v6424_v38 = vunpack.c.l.b16 %v5567_v27  ;;  %v23724_v21 = vpop.f32.mrb[16].mxu0 }
 0x2aa   : > { %v6425_v52 = vunpack.c.l.b16 %v5581_v55  ;;  %v6426_v8 = vunpack.c.l.b16 %v5595_v1  ;;  %v6427_v50 = vunpack.c.l.b16 %v5609_v46  ;;  %v5084_v15 = vmax.f32 %v23609_v63, 0.0  ;;  %v23727_v0 = vpop.f32.mrb[17].mxu0 }
 0x2ab   : > { %v6428_v33 = vunpack.c.l.b16 %v5623_v2  ;;  %v6429_v49 = vunpack.c.l.b16 %v5637_v9  ;;  %v6486_v45 = vrot.slane %v6423_v39, 7  ;;  %v6489_v62 = vrot.slane %v6424_v38, 6  ;;  %v23729_v13 = vpop.f32.mrb[18].mxu0  ;;  %v6717_v39 = vld [vmem:[#allocation2 + $0x94] sm:$0x1] }
 0x2ac   : > { %v6492_v32 = vrot.slane %v6425_v52, 5  ;;  %v6495_v31 = vrot.slane %v6426_v8, 4  ;;  %v6498_v42 = vrot.slane %v6427_v50, 3  ;;  %v5082_v57 = vmax.f32 %v23616_v11, 0.0  ;;  %v23732_v27 = vpop.f32.mrb[19].mxu0 }
 0x2ad   : > { %v6488_v55 = vsel %vm6487_vm6, %v6486_v45, %v6422_v22  ;;  %v6501_v1 = vrot.slane %v6428_v33, 2  ;;  %v6504_v46 = vrot.slane %v6429_v49, 1  ;;  %v6630_v63 = vsel %vm6490_vm7, %v6486_v45, %v6422_v22 }
 0x2ae   : > { %v6491_v2 = vsel %vm6490_vm7, %v6489_v62, %v6488_v55  ;;  %v6631_v9 = vsel %vm6493_vm8, %v6489_v62, %v6630_v63  ;;  %v20988_v38 = vadd.f32 %v23602_v35, %v23618_v4  ;;  %v20990_v52 = vadd.f32 %v23605_v58, %v23622_v47  ;;  %v6714_v55 = vld [vmem:[#allocation2 + $0x90] sm:$0xf] }
 0x2af   : > { %v6494_v11 = vsel %vm6493_vm8, %v6492_v32, %v6491_v2  ;;  %v6632_v8 = vsel %vm6496_vm9, %v6492_v32, %v6631_v9  ;;  %v6679_v50 = vpack.c.b16 %v6504_v46, %v6504_v46  ;;  %v23746_v33 = vadd.f32 %v23392_v24, %v23649_v23 }
 0x2b0   : > { %v6497_v22 = vsel %vm6496_vm9, %v6495_v31, %v6494_v11  ;;  %v6633_v49 = vsel %vm6499_vm10, %v6495_v31, %v6632_v8  ;;  %v5085_v45 = vmax.f32 %v20988_v38, 0.0  ;;  %v5083_v62 = vmax.f32 %v20990_v52, 0.0 }
 0x2b1   : > { %v6500_v35 = vsel %vm6499_vm10, %v6498_v42, %v6497_v22  ;;  %v6634_v4 = vsel %vm6502_vm11, %v6498_v42, %v6633_v49  ;;  %v6718_v58 = vsel %vm23492_vm5, %v6679_v50, %v6717_v39  ;;  %v23755_v32 = vpop.f32.mrb[20].mxu0  ;;  %v21689_v39 = vld [vmem:[#allocation2] ss:$8 sps:$4 sm:$0xff]  }
 0x2b2   : > { %v6503_v24 = vsel %vm6502_vm11, %v6501_v1, %v6500_v35  ;;  %v6635_v23 = vsel %vm6505_vm12, %v6501_v1, %v6634_v4  ;;  %6719 = vst [vmem:[#allocation2 + $0x94] sm:$0x1] %v6718_v58  ;;  %v5113_v31 = vpack.c.bf16 %v5085_v45, %v5084_v15  ;;  %v17705_v63 = vpack.c.bf16 %v5085_v45, %v5085_v45  ;;  %v23759_v2 = vpop.f32.mrb[21].mxu0 }
 0x2b3   : > { %v6506_v9 = vsel %vm6505_vm12, %v6504_v46, %v6503_v24  ;;  %v6678_v42 = vpack.c.b16 %v6635_v23, %v6635_v23  ;;  %v5112_v38 = vpack.c.bf16 %v5083_v62, %v5082_v57  ;;  %v17697_v52 = vpack.c.bf16 %v5083_v62, %v5083_v62  ;;  %v23776_v49 = vpop.f32.mrb[22].mxu0  ;;  %20035 = vmatprep.mubr.bf16.mxu1 %v21689_v39 }
 0x2b4   : > { %v6605_v11 = vpack.c.b16 %v6506_v9, %v6506_v9  ;;  %v6826_v8 = vrot.slane %v5113_v31, %v23597_v37  ;;  %v6833_v50 = vrot.slane %v17705_v63, %v23597_v37  ;;  %v23766_v1 = vadd.f32 %v23399_v29, %v23655_v6 }
 0x2b5   : > { %v6715_v15 = vsel %vm23702_vm15, %v6678_v42, %v6714_v55  ;;  %v5190_v22 = vrot.slane %v5112_v38, %v23597_v37  ;;  %v5197_v46 = vrot.slane %v17697_v52, %v23597_v37  ;;  %v23774_v57 = vadd.f32 %v23402_v61, %v23659_v54  ;;  %v21688_v61 = vld [vmem:[%s26610_s1 + $0x268] sm:$0xff]   ;;  %v23789_v54 = vpop.f32.mrb[23].mxu0 }
 0x2b6   : > { %6622 = vst [vmem:[#allocation2 + $0xd8] sm:$0xf] %v6605_v11  ;;  %6716 = vst [vmem:[#allocation2 + $0x90] sm:$0xf] %v6715_v15  ;;  %v6834_v45 = vcombine.high %v6826_v8, %v6826_v8  ;;  %v6835_v62 = vcombine.high %v6833_v50, %v6833_v50  ;;  %v6842_v29 = vrot.slane %v6826_v8, %v23597_v37  ;;  %20029 = vmatprep.subr.bf16.mxu1 %v21688_v61 }
 0x2b7   : > { %v6849_v6 = vrot.slane %v6833_v50, %v23597_v37  ;;  %v5198_v35 = vcombine.high %v5190_v22, %v5190_v22  ;;  %v5199_v4 = vcombine.high %v5197_v46, %v5197_v46  ;;  %v23781_v58 = vrot.slane %v5190_v22, %v23597_v37  ;;  %20030 = vmatpush3.bf16.msra.mxu1 %v21688_v61 }
 0x2b8   : > { %v23784_v24 = vrot.slane %v5197_v46, %v23597_v37  ;;  %v6856_v23 = vrot.slane %v6834_v45, %v23597_v37  ;;  %v6863_v55 = vrot.slane %v6835_v62, %v23597_v37  ;;  %v6864_v31 = vcombine.high %v6842_v29, %v6842_v29 }
 0x2b9   : > { %v6865_v63 = vcombine.high %v6849_v6, %v6849_v6  ;;  %v7280_v9 = vrot.slane %v6842_v29, %v23612_v18  ;;  %v7336_v42 = vrot.slane %v6849_v6, %v23612_v18  ;;  %v23796_v38 = vrot.slane %v5198_v35, %v23597_v37 }
 0x2ba   : > { %v23799_v52 = vrot.slane %v5199_v4, %v23597_v37  ;;  %v6866_v39 = vcombine.high %v6856_v23, %v6856_v23  ;;  %v6867_v11 = vcombine.high %v6863_v55, %v6863_v55  ;;  %v7294_v8 = vrot.slane %v6856_v23, %v23612_v18 }
 0x2bb   : > { %v7308_v50 = vrot.slane %v6864_v31, %v23612_v18  ;;  %v7287_v15 = vrot.slane %v7280_v9, %v23612_v18  ;;  %v7343_v22 = vrot.slane %v7336_v42, %v23612_v18  ;;  %v7350_v46 = vrot.slane %v6863_v55, %v23612_v18 }
 0x2bc   : > { %v7364_v45 = vrot.slane %v6865_v63, %v23612_v18  ;;  %v7301_v62 = vrot.slane %v7294_v8, %v23612_v18  ;;  %v7322_v6 = vrot.slane %v6866_v39, %v23612_v18  ;;  %v7378_v35 = vrot.slane %v6867_v11, %v23612_v18 }
 0x2bd   : > { %v7315_v29 = vrot.slane %v7308_v50, %v23612_v18  ;;  %v7357_v4 = vrot.slane %v7350_v46, %v23612_v18  ;;  %v8066_v23 = vunpack.c.l.b16 %v7287_v15  ;;  %v8070_v31 = vunpack.c.l.b16 %v7343_v22 }
 0x2be   : > { %v7371_v61 = vrot.slane %v7364_v45, %v23612_v18  ;;  %v7329_v9 = vrot.slane %v7322_v6, %v23612_v18  ;;  %v7385_v55 = vrot.slane %v7378_v35, %v23612_v18  ;;  %v8067_v42 = vunpack.c.l.b16 %v7301_v62 }
 0x2bf   : > { %v8068_v63 = vunpack.c.l.b16 %v7315_v29  ;;  %v8071_v47 = vunpack.c.l.b16 %v7357_v4  ;;  %v8142_v59 = vrot.slane %v8070_v31, 4  ;;  %v5228_v39 = vcombine.high %v23781_v58, %v23781_v58  ;;  %v8349_v31 = vld [vmem:[#allocation2 + $0x14] sm:$0x1] }
 0x2c0   : > { %v8072_v8 = vunpack.c.l.b16 %v7371_v61  ;;  %v8069_v50 = vunpack.c.l.b16 %v7329_v9  ;;  %v8073_v11 = vunpack.c.l.b16 %v7385_v55  ;;  %v8136_v12 = vrot.slane %v8067_v42, 7 }
 0x2c1   : > { %v8138_v46 = vrot.slane %v8068_v63, 6  ;;  %v8144_v51 = vrot.slane %v8071_v47, 3  ;;  %v5229_v15 = vcombine.high %v23784_v24, %v23784_v24  ;;  %v5230_v22 = vcombine.high %v23796_v38, %v23796_v38 }
 0x2c2   : > { %v8146_v45 = vrot.slane %v8072_v8, 2  ;;  %v8137_v62 = vsel %vm6487_vm6, %v8136_v12, %v8066_v23  ;;  %v8140_v29 = vrot.slane %v8069_v50, 5  ;;  %v8148_v6 = vrot.slane %v8073_v11, 1 }
 0x2c3   : > { %v8265_v35 = vsel %vm6490_vm7, %v8136_v12, %v8066_v23  ;;  %v8139_v4 = vsel %vm6490_vm7, %v8138_v46, %v8137_v62  ;;  %v5231_v47 = vcombine.high %v23799_v52, %v23799_v52  ;;  %v5644_v9 = vrot.slane %v23781_v58, %v23612_v18 }
 0x2c4   : > { %v8266_v61 = vsel %vm6493_vm8, %v8138_v46, %v8265_v35  ;;  %v8141_v55 = vsel %vm6493_vm8, %v8140_v29, %v8139_v4  ;;  %v8310_v63 = vpack.c.b16 %v8148_v6, %v8148_v6  ;;  %v5658_v8 = vrot.slane %v23796_v38, %v23612_v18  ;;  %v8346_v4 = vld [vmem:[#allocation2 + $0x10] sm:$0xf] }
 0x2c5   : > { %v8267_v42 = vsel %vm6496_vm9, %v8140_v29, %v8266_v61  ;;  %v8143_v12 = vsel %vm6496_vm9, %v8142_v59, %v8141_v55  ;;  %v5651_v50 = vrot.slane %v5644_v9, %v23612_v18  ;;  %v5672_v11 = vrot.slane %v5228_v39, %v23612_v18 }
 0x2c6   : > { %v8268_v23 = vsel %vm6499_vm10, %v8142_v59, %v8267_v42  ;;  %v8145_v46 = vsel %vm6499_vm10, %v8144_v51, %v8143_v12  ;;  %v8350_v62 = vsel %vm23492_vm5, %v8310_v63, %v8349_v31  ;;  %v5665_v29 = vrot.slane %v5658_v8, %v23612_v18 }
 0x2c7   : > { %v8269_v58 = vsel %vm6502_vm11, %v8144_v51, %v8268_v23  ;;  %v8147_v35 = vsel %vm6502_vm11, %v8146_v45, %v8145_v46  ;;  %8351 = vst [vmem:[#allocation2 + $0x14] sm:$0x1] %v8350_v62  ;;  %v5679_v59 = vrot.slane %v5672_v11, %v23612_v18  ;;  %v5686_v61 = vrot.slane %v5230_v22, %v23612_v18  ;;  %v23860_v46 = vpop.f32.mrb[24].mxu0 }
 0x2c8   : > { %v8270_v38 = vsel %vm6505_vm12, %v8146_v45, %v8269_v58  ;;  %v8149_v39 = vsel %vm6505_vm12, %v8148_v6, %v8147_v35  ;;  %v5700_v51 = vrot.slane %v23784_v24, %v23612_v18  ;;  %v5714_v31 = vrot.slane %v23799_v52, %v23612_v18  ;;  %v23863_v35 = vpop.f32.mrb[25].mxu0 }
 0x2c9   : > { %v8309_v9 = vpack.c.b16 %v8270_v38, %v8270_v38  ;;  %v8235_v55 = vpack.c.b16 %v8149_v39, %v8149_v39  ;;  %v5693_v42 = vrot.slane %v5686_v61, %v23612_v18  ;;  %v5728_v45 = vrot.slane %v5229_v15, %v23612_v18  ;;  %v23865_v39 = vpop.f32.mrb[26].mxu0 }
 0x2ca   : > { %v5742_v63 = vrot.slane %v5231_v47, %v23612_v18  ;;  %v5707_v22 = vrot.slane %v5700_v51, %v23612_v18  ;;  %v5721_v6 = vrot.slane %v5714_v31, %v23612_v18  ;;  %v6430_v12 = vunpack.c.l.b16 %v5651_v50 }
 0x2cb   : > { %v8347_v8 = vsel %vm23702_vm15, %v8309_v9, %v8346_v4  ;;  %8252 = vst [vmem:[#allocation2 + $0x58] sm:$0xf] %v8235_v55  ;;  %v5735_v24 = vrot.slane %v5728_v45, %v23612_v18  ;;  %v6431_v23 = vunpack.c.l.b16 %v5665_v29  ;;  %v6432_v11 = vunpack.c.l.b16 %v5679_v59 }
 0x2cc   : > { %8348 = vst [vmem:[#allocation2 + $0x10] sm:$0xf] %v8347_v8  ;;  %v5749_v52 = vrot.slane %v5742_v63, %v23612_v18  ;;  %v6433_v15 = vunpack.c.l.b16 %v5693_v42  ;;  %v6434_v47 = vunpack.c.l.b16 %v5707_v22  ;;  %v6435_v58 = vunpack.c.l.b16 %v5721_v6  ;;  %v6723_v8 = vld [vmem:[#allocation2 + $0x9c] sm:$0x1] }
 0x2cd   : > { %v5086_v62 = vmax.f32 %v23766_v1, 0.0  ;;  %v6436_v38 = vunpack.c.l.b16 %v5735_v24  ;;  %v6507_v50 = vrot.slane %v6431_v23, 7  ;;  %v6509_v61 = vrot.slane %v6432_v11, 6 }
 0x2ce   : > { %v6437_v4 = vunpack.c.l.b16 %v5749_v52  ;;  %v6511_v9 = vrot.slane %v6433_v15, 5  ;;  %v6513_v51 = vrot.slane %v6434_v47, 4  ;;  %v6515_v31 = vrot.slane %v6435_v58, 3 }
 0x2cf   : > { %v5089_v29 = vmax.f32 %v23774_v57, 0.0  ;;  %v6508_v59 = vsel %vm6487_vm6, %v6507_v50, %v6430_v12  ;;  %v6517_v55 = vrot.slane %v6436_v38, 2  ;;  %v6636_v45 = vsel %vm6490_vm7, %v6507_v50, %v6430_v12 }
 0x2d0   : > { %v6519_v42 = vrot.slane %v6437_v4, 1  ;;  %v6510_v1 = vsel %vm6490_vm7, %v6509_v61, %v6508_v59  ;;  %v6637_v63 = vsel %vm6493_vm8, %v6509_v61, %v6636_v45  ;;  %v26673_v22 = vmax.f32 %v23746_v33, 0.0  ;;  %v21690_v33 = vld [vmem:[%s26610_s1 + $0x270] sm:$0xff]  }
 0x2d1   : > { %v17706_v24 = vpack.c.bf16 %v5089_v29, %v5089_v29  ;;  %v6512_v52 = vsel %vm6493_vm8, %v6511_v9, %v6510_v1  ;;  %v6638_v23 = vsel %vm6496_vm9, %v6511_v9, %v6637_v63  ;;  %v20998_v11 = vadd.f32 %v23405_v3, %v23663_v60  ;;  %v6720_v9 = vld [vmem:[#allocation2 + $0x98] sm:$0xf]  ;;  %20031 = vmatprep.subr.bf16.mxu1 %v21690_v33 }
 0x2d2   : > { %v5115_v6 = vpack.c.bf16 %v5089_v29, %v26673_v22  ;;  %v6681_v57 = vpack.c.b16 %v6519_v42, %v6519_v42  ;;  %v6514_v15 = vsel %vm6496_vm9, %v6513_v51, %v6512_v52  ;;  %v6639_v12 = vsel %vm6499_vm10, %v6513_v51, %v6638_v23  ;;  %20032 = vmatpush3.bf16.msra.mxu1 %v21690_v33 }
 0x2d3   : > { %v6882_v58 = vrot.slane %v17706_v24, %v23597_v37  ;;  %v6516_v38 = vsel %vm6499_vm10, %v6515_v31, %v6514_v15  ;;  %v6640_v4 = vsel %vm6502_vm11, %v6515_v31, %v6639_v12  ;;  %v23889_v3 = vmax.f32 %v20998_v11, 0.0 }
 0x2d4   : > { %v6875_v47 = vrot.slane %v5115_v6, %v23597_v37  ;;  %v6724_v50 = vsel %vm23492_vm5, %v6681_v57, %v6723_v8  ;;  %v6518_v60 = vsel %vm6502_vm11, %v6517_v55, %v6516_v38  ;;  %v6641_v61 = vsel %vm6505_vm12, %v6517_v55, %v6640_v4  ;;  %v23899_v6 = vpop.f32.mrb[27].mxu0 }
 0x2d5   : > { %6725 = vst [vmem:[#allocation2 + $0x9c] sm:$0x1] %v6724_v50  ;;  %v6884_v29 = vcombine.high %v6882_v58, %v6882_v58  ;;  %v6520_v59 = vsel %vm6505_vm12, %v6519_v42, %v6518_v60  ;;  %v6680_v45 = vpack.c.b16 %v6641_v61, %v6641_v61  ;;  %v6898_v31 = vrot.slane %v6882_v58, %v23597_v37 }
 0x2d6   : > { %v6883_v51 = vcombine.high %v6875_v47, %v6875_v47  ;;  %v6891_v1 = vrot.slane %v6875_v47, %v23597_v37  ;;  %v6606_v63 = vpack.c.b16 %v6520_v59, %v6520_v59  ;;  %v5114_v55 = vpack.c.bf16 %v23889_v3, %v5086_v62 }
 0x2d7   : > { %v6912_v22 = vrot.slane %v6884_v29, %v23597_v37  ;;  %v6721_v24 = vsel %vm23702_vm15, %v6680_v45, %v6720_v9  ;;  %v6914_v42 = vcombine.high %v6898_v31, %v6898_v31  ;;  %v7448_v12 = vrot.slane %v6898_v31, %v23612_v18 }
 0x2d8   : > { %v6905_v8 = vrot.slane %v6883_v51, %v23597_v37  ;;  %v6913_v52 = vcombine.high %v6891_v1, %v6891_v1  ;;  %v7392_v23 = vrot.slane %v6891_v1, %v23612_v18  ;;  %6623 = vst [vmem:[#allocation2 + $0xe0] sm:$0xf] %v6606_v63  ;;  %6722 = vst [vmem:[#allocation2 + $0x98] sm:$0xf] %v6721_v24 }
 0x2d9   : > { %v6916_v11 = vcombine.high %v6912_v22, %v6912_v22  ;;  %v7462_v58 = vrot.slane %v6912_v22, %v23612_v18  ;;  %v7476_v33 = vrot.slane %v6914_v42, %v23612_v18  ;;  %v7455_v50 = vrot.slane %v7448_v12, %v23612_v18 }
 0x2da   : > { %v6915_v57 = vcombine.high %v6905_v8, %v6905_v8  ;;  %v7406_v15 = vrot.slane %v6905_v8, %v23612_v18  ;;  %v7399_v47 = vrot.slane %v7392_v23, %v23612_v18  ;;  %v7420_v62 = vrot.slane %v6913_v52, %v23612_v18 }
 0x2db   : > { %v7490_v60 = vrot.slane %v6916_v11, %v23612_v18  ;;  %v7469_v9 = vrot.slane %v7462_v58, %v23612_v18  ;;  %v7483_v51 = vrot.slane %v7476_v33, %v23612_v18  ;;  %v8078_v31 = vunpack.c.l.b16 %v7455_v50 }
 0x2dc   : > { %v7413_v38 = vrot.slane %v7406_v15, %v23612_v18  ;;  %v7434_v4 = vrot.slane %v6915_v57, %v23612_v18  ;;  %v7427_v61 = vrot.slane %v7420_v62, %v23612_v18  ;;  %v8074_v29 = vunpack.c.l.b16 %v7399_v47 }
 0x2dd   : > { %v7497_v45 = vrot.slane %v7490_v60, %v23612_v18  ;;  %v8079_v8 = vunpack.c.l.b16 %v7469_v9  ;;  %v8080_v22 = vunpack.c.l.b16 %v7483_v51  ;;  %v17698_v24 = vpack.c.bf16 %v23889_v3, %v23889_v3  ;;  %v8355_v3 = vld [vmem:[#allocation2 + $0x1c] sm:$0x1] }
 0x2de   : > { %v7441_v59 = vrot.slane %v7434_v4, %v23612_v18  ;;  %v8075_v1 = vunpack.c.l.b16 %v7413_v38  ;;  %v8076_v63 = vunpack.c.l.b16 %v7427_v61  ;;  %v8156_v57 = vrot.slane %v8078_v31, 4 }
 0x2df   : > { %v8081_v42 = vunpack.c.l.b16 %v7497_v45  ;;  %v8158_v15 = vrot.slane %v8079_v8, 3  ;;  %v8160_v12 = vrot.slane %v8080_v22, 2  ;;  %v5239_v47 = vrot.slane %v5114_v55, %v23597_v37 }
 0x2e0   : > { %v8077_v52 = vunpack.c.l.b16 %v7441_v59  ;;  %v8150_v23 = vrot.slane %v8075_v1, 7  ;;  %v8152_v11 = vrot.slane %v8076_v63, 6  ;;  %v5246_v60 = vrot.slane %v17698_v24, %v23597_v37 }
 0x2e1   : > { %v8162_v33 = vrot.slane %v8081_v42, 1  ;;  %v5247_v61 = vcombine.high %v5239_v47, %v5239_v47  ;;  %v5255_v55 = vrot.slane %v5239_v47, %v23597_v37  ;;  %v21691_v47 = vld [vmem:[%s26610_s1 + $0x278] sm:$0xff]  }
 0x2e2   : > { %v8151_v62 = vsel %vm6487_vm6, %v8150_v23, %v8074_v29  ;;  %v8154_v58 = vrot.slane %v8077_v52, 5  ;;  %v8271_v38 = vsel %vm6490_vm7, %v8150_v23, %v8074_v29  ;;  %v5248_v29 = vcombine.high %v5246_v60, %v5246_v60  ;;  %v8352_v23 = vld [vmem:[#allocation2 + $0x18] sm:$0xf]  ;;  %20033 = vmatprep.subr.bf16.mxu1 %v21691_v47 }
 0x2e3   : > { %v8153_v4 = vsel %vm6490_vm7, %v8152_v11, %v8151_v62  ;;  %v8272_v50 = vsel %vm6493_vm8, %v8152_v11, %v8271_v38  ;;  %v8312_v59 = vpack.c.b16 %v8162_v33, %v8162_v33  ;;  %v5262_v31 = vrot.slane %v5246_v60, %v23597_v37  ;;  %20034 = vmatpush3.bf16.msra.mxu1 %v21691_v47 }
 0x2e4   : > { %v8155_v9 = vsel %vm6493_vm8, %v8154_v58, %v8153_v4  ;;  %v8273_v51 = vsel %vm6496_vm9, %v8154_v58, %v8272_v50  ;;  %v5269_v24 = vrot.slane %v5247_v61, %v23597_v37  ;;  %v5277_v11 = vcombine.high %v5255_v55, %v5255_v55 }
 0x2e5   : > { %v8157_v45 = vsel %vm6496_vm9, %v8156_v57, %v8155_v9  ;;  %v8274_v1 = vsel %vm6499_vm10, %v8156_v57, %v8273_v51  ;;  %v8356_v22 = vsel %vm23492_vm5, %v8312_v59, %v8355_v3  ;;  %v5276_v57 = vrot.slane %v5248_v29, %v23597_v37 }
 0x2e6   : > { %v8159_v63 = vsel %vm6499_vm10, %v8158_v15, %v8157_v45  ;;  %v8275_v8 = vsel %vm6502_vm11, %v8158_v15, %v8274_v1  ;;  %8357 = vst [vmem:[#allocation2 + $0x1c] sm:$0x1] %v8356_v22  ;;  %v5278_v58 = vcombine.high %v5262_v31, %v5262_v31  ;;  %v5279_v38 = vcombine.high %v5269_v24, %v5269_v24 }
 0x2e7   : > { %v8161_v52 = vsel %vm6502_vm11, %v8160_v12, %v8159_v63  ;;  %v8276_v42 = vsel %vm6505_vm12, %v8160_v12, %v8275_v8  ;;  %v5280_v50 = vcombine.high %v5276_v57, %v5276_v57  ;;  %v5756_v3 = vrot.slane %v5255_v55, %v23612_v18 }
 0x2e8   : > { %v8163_v15 = vsel %vm6505_vm12, %v8162_v33, %v8161_v52  ;;  %v8311_v62 = vpack.c.b16 %v8276_v42, %v8276_v42  ;;  %v5770_v12 = vrot.slane %v5269_v24, %v23612_v18  ;;  %v5784_v61 = vrot.slane %v5277_v11, %v23612_v18 }
 0x2e9   : > { %v8236_v4 = vpack.c.b16 %v8163_v15, %v8163_v15  ;;  %v5798_v9 = vrot.slane %v5279_v38, %v23612_v18  ;;  %v5812_v51 = vrot.slane %v5262_v31, %v23612_v18  ;;  %v5763_v33 = vrot.slane %v5756_v3, %v23612_v18  ;;  %v23960_v31 = vpop.f32.mrb[28].mxu0 }
 0x2ea   : > { %v8353_v60 = vsel %vm23702_vm15, %v8311_v62, %v8352_v23  ;;  %v5777_v59 = vrot.slane %v5770_v12, %v23612_v18  ;;  %v5826_v55 = vrot.slane %v5276_v57, %v23612_v18  ;;  %v5840_v45 = vrot.slane %v5278_v58, %v23612_v18  ;;  %v23964_v23 = vpop.f32.mrb[29].mxu0 }
 0x2eb   : > { %8253 = vst [vmem:[#allocation2 + $0x60] sm:$0xf] %v8236_v4  ;;  %8354 = vst [vmem:[#allocation2 + $0x18] sm:$0xf] %v8353_v60  ;;  %v5791_v1 = vrot.slane %v5784_v61, %v23612_v18  ;;  %v5805_v29 = vrot.slane %v5798_v9, %v23612_v18  ;;  %v5819_v63 = vrot.slane %v5812_v51, %v23612_v18  ;;  %v6438_v52 = vunpack.c.l.b16 %v5763_v33  ;;  %v23967_v62 = vpop.f32.mrb[30].mxu0 }
 0x2ec   : > { %v5854_v8 = vrot.slane %v5280_v50, %v23612_v18  ;;  %v5833_v22 = vrot.slane %v5826_v55, %v23612_v18  ;;  %v5847_v24 = vrot.slane %v5840_v45, %v23612_v18  ;;  %v6439_v42 = vunpack.c.l.b16 %v5777_v59 }
 0x2ed   : > { %v6440_v11 = vunpack.c.l.b16 %v5791_v1  ;;  %v6441_v47 = vunpack.c.l.b16 %v5805_v29  ;;  %v6442_v15 = vunpack.c.l.b16 %v5819_v63  ;;  %v21000_v50 = vadd.f32 %v23408_v40, %v23679_v28  ;;  %v6729_v29 = vld [vmem:[#allocation2 + $0xa4] sm:$0x1] }
 0x2ee   : > { %v5861_v57 = vrot.slane %v5854_v8, %v23612_v18  ;;  %v6443_v58 = vunpack.c.l.b16 %v5833_v22  ;;  %v6444_v38 = vunpack.c.l.b16 %v5847_v24  ;;  %v6521_v4 = vrot.slane %v6439_v42, 7 }
 0x2ef   : > { %v6523_v12 = vrot.slane %v6440_v11, 6  ;;  %v6525_v60 = vrot.slane %v6441_v47, 5  ;;  %v6527_v61 = vrot.slane %v6442_v15, 4  ;;  %v5092_v63 = vmax.f32 %v21000_v50, 0.0 }
 0x2f0   : > { %v6445_v3 = vunpack.c.l.b16 %v5861_v57  ;;  %v6522_v9 = vsel %vm6487_vm6, %v6521_v4, %v6438_v52  ;;  %v6529_v51 = vrot.slane %v6443_v58, 3  ;;  %v6531_v33 = vrot.slane %v6444_v38, 2 }
 0x2f1   : > { %v6642_v59 = vsel %vm6490_vm7, %v6521_v4, %v6438_v52  ;;  %v6524_v55 = vsel %vm6490_vm7, %v6523_v12, %v6522_v9  ;;  %v21002_v28 = vadd.f32 %v23411_v14, %v23685_v5  ;;  %v21004_v22 = vadd.f32 %v23414_v48, %v23691_v26  ;;  %v6726_v5 = vld [vmem:[#allocation2 + $0xa0] sm:$0xf] }
 0x2f2   : > { %v6533_v45 = vrot.slane %v6445_v3, 1  ;;  %v6643_v1 = vsel %vm6493_vm8, %v6523_v12, %v6642_v59  ;;  %v6526_v8 = vsel %vm6493_vm8, %v6525_v60, %v6524_v55  ;;  %v21006_v57 = vadd.f32 %v23417_v53, %v23698_v34  ;;  %v21692_v4 = vld [vmem:[#allocation2 + $0x10] ss:$8 sps:$4 sm:$0xff]   ;;  %v247_v12 = vld [vmem:[#allocation2 + $0x2c] sm:$0x1] }
 0x2f3   : > { %v6644_v40 = vsel %vm6496_vm9, %v6525_v60, %v6643_v1  ;;  %v6528_v24 = vsel %vm6496_vm9, %v6527_v61, %v6526_v8  ;;  %v5090_v15 = vmax.f32 %v21002_v28, 0.0  ;;  %v5093_v58 = vmax.f32 %v21004_v22, 0.0  ;;  %20036 = vmatmul.mubr.bf16.vlgmr.msra.gmra.mrb[32].mxu1 %v21692_v4 }
 0x2f4   : > { %v6645_v52 = vsel %vm6499_vm10, %v6527_v61, %v6644_v40  ;;  %v6683_v42 = vpack.c.b16 %v6533_v45, %v6533_v45  ;;  %v6530_v11 = vsel %vm6499_vm10, %v6529_v51, %v6528_v24  ;;  %v5091_v48 = vmax.f32 %v21006_v57, 0.0 }
 0x2f5   : > { %v6646_v47 = vsel %vm6502_vm11, %v6529_v51, %v6645_v52  ;;  %v6532_v38 = vsel %vm6502_vm11, %v6531_v33, %v6530_v11  ;;  %v5117_v53 = vpack.c.bf16 %v5093_v58, %v5092_v63  ;;  %v17707_v34 = vpack.c.bf16 %v5093_v58, %v5093_v58  ;;  %v24009_v63 = vpop.f32.mrb[31].mxu0 }
 0x2f6   : > { %v6647_v14 = vsel %vm6505_vm12, %v6531_v33, %v6646_v47  ;;  %v6730_v26 = vsel %vm23492_vm5, %v6683_v42, %v6729_v29  ;;  %v6534_v50 = vsel %vm6505_vm12, %v6533_v45, %v6532_v38  ;;  %v5116_v61 = vpack.c.bf16 %v5091_v48, %v5090_v15 }
 0x2f7   : > { %v6682_v3 = vpack.c.b16 %v6647_v14, %v6647_v14  ;;  %6731 = vst [vmem:[#allocation2 + $0xa4] sm:$0x1] %v6730_v26  ;;  %v6607_v60 = vpack.c.b16 %v6534_v50, %v6534_v50  ;;  %v17699_v9 = vpack.c.bf16 %v5091_v48, %v5091_v48  ;;  %v23994_v51 = vadd.f32 %v23420_v25, %v23724_v21 }
 0x2f8   : > { %v6924_v59 = vrot.slane %v5117_v53, %v23597_v37  ;;  %v6931_v55 = vrot.slane %v17707_v34, %v23597_v37  ;;  %v24002_v45 = vadd.f32 %v23423_v43, %v23727_v0  ;;  %v5288_v1 = vrot.slane %v5116_v61, %v23597_v37 }
 0x2f9   : > { %v6727_v33 = vsel %vm23702_vm15, %v6682_v3, %v6726_v5  ;;  %6624 = vst [vmem:[#allocation2 + $0xe8] sm:$0xf] %v6607_v60  ;;  %v5295_v29 = vrot.slane %v17699_v9, %v23597_v37  ;;  %v5096_v25 = vmax.f32 %v23994_v51, 0.0  ;;  %v248_v21 = vsel %vm23492_vm5, 0, %v247_v12  ;;  %v6732_v51 = vld [vmem:[#allocation2 + $0xa8] sm:$0xf] }
 0x2fa   : > { %6728 = vst [vmem:[#allocation2 + $0xa0] sm:$0xf] %v6727_v33  ;;  %v6932_v8 = vcombine.high %v6924_v59, %v6924_v59  ;;  %v6933_v40 = vcombine.high %v6931_v55, %v6931_v55  ;;  %v6940_v28 = vrot.slane %v6924_v59, %v23597_v37  ;;  %v6947_v43 = vrot.slane %v6931_v55, %v23597_v37 }
 0x2fb   : > { %249 = vst [vmem:[#allocation2 + $0x2c] sm:$0x1] %v248_v21  ;;  %v5296_v0 = vcombine.high %v5288_v1, %v5288_v1  ;;  %v5297_v22 = vcombine.high %v5295_v29, %v5295_v29  ;;  %v5304_v24 = vrot.slane %v5288_v1, %v23597_v37  ;;  %v24015_v52 = vrot.slane %v5295_v29, %v23597_v37 }
 0x2fc   : > { %v6954_v42 = vrot.slane %v6932_v8, %v23597_v37  ;;  %v6961_v57 = vrot.slane %v6933_v40, %v23597_v37  ;;  %v6962_v11 = vcombine.high %v6940_v28, %v6940_v28  ;;  %v6963_v47 = vcombine.high %v6947_v43, %v6947_v43 }
 0x2fd   : > { %v7504_v15 = vrot.slane %v6940_v28, %v23612_v18  ;;  %v7560_v58 = vrot.slane %v6947_v43, %v23612_v18  ;;  %v5318_v38 = vrot.slane %v5296_v0, %v23597_v37  ;;  %v24023_v14 = vrot.slane %v5297_v22, %v23597_v37 }
 0x2fe   : > { %v6964_v5 = vcombine.high %v6954_v42, %v6954_v42  ;;  %v6965_v26 = vcombine.high %v6961_v57, %v6961_v57  ;;  %v7518_v48 = vrot.slane %v6954_v42, %v23612_v18  ;;  %v7532_v4 = vrot.slane %v6962_v11, %v23612_v18 }
 0x2ff   : > { %v7511_v50 = vrot.slane %v7504_v15, %v23612_v18  ;;  %v7567_v3 = vrot.slane %v7560_v58, %v23612_v18  ;;  %v7574_v53 = vrot.slane %v6961_v57, %v23612_v18  ;;  %v7588_v34 = vrot.slane %v6963_v47, %v23612_v18 }
 0x300   : > { %v7525_v12 = vrot.slane %v7518_v48, %v23612_v18  ;;  %v7539_v60 = vrot.slane %v7532_v4, %v23612_v18  ;;  %v7546_v61 = vrot.slane %v6964_v5, %v23612_v18  ;;  %v7602_v9 = vrot.slane %v6965_v26, %v23612_v18 }
 0x301   : > { %v7581_v33 = vrot.slane %v7574_v53, %v23612_v18  ;;  %v7595_v59 = vrot.slane %v7588_v34, %v23612_v18  ;;  %v8082_v55 = vunpack.c.l.b16 %v7511_v50  ;;  %v8086_v1 = vunpack.c.l.b16 %v7567_v3 }
 0x302   : > { %v7553_v29 = vrot.slane %v7546_v61, %v23612_v18  ;;  %v7609_v21 = vrot.slane %v7602_v9, %v23612_v18  ;;  %v8083_v8 = vunpack.c.l.b16 %v7525_v12  ;;  %v8084_v40 = vunpack.c.l.b16 %v7539_v60  ;;  %v8361_v12 = vld [vmem:[#allocation2 + $0x24] sm:$0x1] }
 0x303   : > { %v8087_v28 = vunpack.c.l.b16 %v7581_v33  ;;  %v8088_v43 = vunpack.c.l.b16 %v7595_v59  ;;  %v8170_v0 = vrot.slane %v8086_v1, 4  ;;  %v5326_v22 = vcombine.high %v5304_v24, %v5304_v24 }
 0x304   : > { %v8085_v42 = vunpack.c.l.b16 %v7553_v29  ;;  %v8089_v57 = vunpack.c.l.b16 %v7609_v21  ;;  %v8164_v11 = vrot.slane %v8083_v8, 7  ;;  %v8166_v47 = vrot.slane %v8084_v40, 6 }
 0x305   : > { %v8172_v15 = vrot.slane %v8087_v28, 3  ;;  %v8174_v58 = vrot.slane %v8088_v43, 2  ;;  %v5327_v5 = vcombine.high %v24015_v52, %v24015_v52  ;;  %v5328_v26 = vcombine.high %v5318_v38, %v5318_v38 }
 0x306   : > { %v8165_v48 = vsel %vm6487_vm6, %v8164_v11, %v8082_v55  ;;  %v8168_v4 = vrot.slane %v8085_v42, 5  ;;  %v8176_v50 = vrot.slane %v8089_v57, 1  ;;  %v8277_v3 = vsel %vm6490_vm7, %v8164_v11, %v8082_v55  ;;  %v8358_v57 = vld [vmem:[#allocation2 + $0x20] sm:$0xf] }
 0x307   : > { %v8167_v53 = vsel %vm6490_vm7, %v8166_v47, %v8165_v48  ;;  %v8278_v34 = vsel %vm6493_vm8, %v8166_v47, %v8277_v3  ;;  %v5329_v60 = vcombine.high %v24023_v14, %v24023_v14  ;;  %v5868_v61 = vrot.slane %v5304_v24, %v23612_v18 }
 0x308   : > { %v8169_v9 = vsel %vm6493_vm8, %v8168_v4, %v8167_v53  ;;  %v8279_v33 = vsel %vm6496_vm9, %v8168_v4, %v8278_v34  ;;  %v8314_v59 = vpack.c.b16 %v8176_v50, %v8176_v50  ;;  %v5882_v1 = vrot.slane %v5318_v38, %v23612_v18 }
 0x309   : > { %v8171_v29 = vsel %vm6496_vm9, %v8170_v0, %v8169_v9  ;;  %v8280_v55 = vsel %vm6499_vm10, %v8170_v0, %v8279_v33  ;;  %v5875_v21 = vrot.slane %v5868_v61, %v23612_v18  ;;  %v5896_v8 = vrot.slane %v5326_v22, %v23612_v18  ;;  %v21693_v22 = vld [vmem:[%s26610_s1 + $0x280] sm:$0xff]  }
 0x30a   : > { %v8173_v40 = vsel %vm6499_vm10, %v8172_v15, %v8171_v29  ;;  %v8281_v28 = vsel %vm6502_vm11, %v8172_v15, %v8280_v55  ;;  %v8362_v24 = vsel %vm23492_vm5, %v8314_v59, %v8361_v12  ;;  %v5889_v43 = vrot.slane %v5882_v1, %v23612_v18  ;;  %20043 = vmatprep.subr.bf16.mxu1 %v21693_v22 }
 0x30b   : > { %v8175_v42 = vsel %vm6502_vm11, %v8174_v58, %v8173_v40  ;;  %v8282_v38 = vsel %vm6505_vm12, %v8174_v58, %v8281_v28  ;;  %8363 = vst [vmem:[#allocation2 + $0x24] sm:$0x1] %v8362_v24  ;;  %v5903_v0 = vrot.slane %v5896_v8, %v23612_v18  ;;  %v5910_v11 = vrot.slane %v5328_v26, %v23612_v18  ;;  %v315_v28 = vld [vmem:[#allocation2 + $0xb4] sm:$0x1] }
 0x30c   : > { %v8177_v47 = vsel %vm6505_vm12, %v8176_v50, %v8175_v42  ;;  %v8313_v15 = vpack.c.b16 %v8282_v38, %v8282_v38  ;;  %v5924_v48 = vrot.slane %v24015_v52, %v23612_v18  ;;  %v5938_v4 = vrot.slane %v24023_v14, %v23612_v18  ;;  %20044 = vmatpush3.bf16.msra.mxu1 %v21693_v22 }
 0x30d   : > { %v8237_v58 = vpack.c.b16 %v8177_v47, %v8177_v47  ;;  %v5917_v3 = vrot.slane %v5910_v11, %v23612_v18  ;;  %v5952_v53 = vrot.slane %v5327_v5, %v23612_v18  ;;  %v5966_v26 = vrot.slane %v5329_v60, %v23612_v18  ;;  %v21694_v60 = vld [vmem:[%s26610_s1 + $0x288] sm:$0xff]  }
 0x30e   : > { %v8359_v34 = vsel %vm23702_vm15, %v8313_v15, %v8358_v57  ;;  %v5931_v50 = vrot.slane %v5924_v48, %v23612_v18  ;;  %v5945_v12 = vrot.slane %v5938_v4, %v23612_v18  ;;  %v6446_v61 = vunpack.c.l.b16 %v5875_v21  ;;  %20045 = vmatprep.subr.bf16.mxu1 %v21694_v60  ;;  %v6735_v48 = vld [vmem:[#allocation2 + $0xac] sm:$0x1] }
 0x30f   : > { %8254 = vst [vmem:[#allocation2 + $0x68] sm:$0xf] %v8237_v58  ;;  %8360 = vst [vmem:[#allocation2 + $0x20] sm:$0xf] %v8359_v34  ;;  %v5959_v52 = vrot.slane %v5952_v53, %v23612_v18  ;;  %v5973_v14 = vrot.slane %v5966_v26, %v23612_v18  ;;  %v6447_v9 = vunpack.c.l.b16 %v5889_v43  ;;  %v6448_v5 = vunpack.c.l.b16 %v5903_v0 }
 0x310   : > { %v6449_v33 = vunpack.c.l.b16 %v5917_v3  ;;  %v6450_v59 = vunpack.c.l.b16 %v5931_v50  ;;  %v6451_v1 = vunpack.c.l.b16 %v5945_v12  ;;  %v5094_v29 = vmax.f32 %v24002_v45, 0.0  ;;  %20046 = vmatpush3.bf16.msra.mxu1 %v21694_v60  ;;  %v21695_v45 = vld [vmem:[%s26610_s1 + $0x290] sm:$0xff]  }
 0x311   : > { %v6452_v55 = vunpack.c.l.b16 %v5959_v52  ;;  %v6453_v21 = vunpack.c.l.b16 %v5973_v14  ;;  %v6535_v8 = vrot.slane %v6447_v9, 7  ;;  %v6537_v40 = vrot.slane %v6448_v5, 6  ;;  %20047 = vmatprep.subr.bf16.mxu1 %v21695_v45 }
 0x312   : > { %v6539_v24 = vrot.slane %v6449_v33, 5  ;;  %v6541_v42 = vrot.slane %v6450_v59, 4  ;;  %v6543_v38 = vrot.slane %v6451_v1, 3  ;;  %v21012_v43 = vadd.f32 %v23426_v17, %v23729_v13 }
 0x313   : > { %v6536_v57 = vsel %vm6487_vm6, %v6535_v8, %v6446_v61  ;;  %v6545_v0 = vrot.slane %v6452_v55, 2  ;;  %v6547_v11 = vrot.slane %v6453_v21, 1  ;;  %v6648_v22 = vsel %vm6490_vm7, %v6535_v8, %v6446_v61 }
 0x314   : > { %v6538_v47 = vsel %vm6490_vm7, %v6537_v40, %v6536_v57  ;;  %v6649_v15 = vsel %vm6493_vm8, %v6537_v40, %v6648_v22  ;;  %v5097_v4 = vmax.f32 %v21012_v43, 0.0  ;;  %v316_v17 = vsel %vm23492_vm5, 0, %v315_v28  ;;  %20048 = vmatpush3.bf16.msra.mxu1 %v21695_v45 }
 0x315   : > { %v6540_v13 = vsel %vm6493_vm8, %v6539_v24, %v6538_v47  ;;  %v6650_v58 = vsel %vm6496_vm9, %v6539_v24, %v6649_v15  ;;  %v6685_v3 = vpack.c.b16 %v6547_v11, %v6547_v11  ;;  %317 = vst [vmem:[#allocation2 + $0xb4] sm:$0x1] %v316_v17  ;;  %v21014_v53 = vadd.f32 %v23429_v19, %v23732_v27  ;;  %v21697_v19 = vld [vmem:[%s26610_s1 + $0x298] sm:$0xff]  }
 0x316   : > { %v6542_v26 = vsel %vm6496_vm9, %v6541_v42, %v6540_v13  ;;  %v6651_v34 = vsel %vm6499_vm10, %v6541_v42, %v6650_v58  ;;  %v5119_v50 = vpack.c.bf16 %v5097_v4, %v5096_v25  ;;  %v17708_v12 = vpack.c.bf16 %v5097_v4, %v5097_v4  ;;  %20049 = vmatprep.subr.bf16.mxu1 %v21697_v19 }
 0x317   : > { %v6544_v61 = vsel %vm6499_vm10, %v6543_v38, %v6542_v26  ;;  %v6652_v52 = vsel %vm6502_vm11, %v6543_v38, %v6651_v34  ;;  %v6736_v14 = vsel %vm23492_vm5, %v6685_v3, %v6735_v48  ;;  %v5095_v9 = vmax.f32 %v21014_v53, 0.0 }
 0x318   : > { %v6546_v27 = vsel %vm6502_vm11, %v6545_v0, %v6544_v61  ;;  %v6653_v5 = vsel %vm6505_vm12, %v6545_v0, %v6652_v52  ;;  %6737 = vst [vmem:[#allocation2 + $0xac] sm:$0x1] %v6736_v14  ;;  %v6973_v25 = vrot.slane %v5119_v50, %v23597_v37  ;;  %v6980_v60 = vrot.slane %v17708_v12, %v23597_v37  ;;  %v21699_v50 = vld [vmem:[%s26610_s1 + $0x2a8] sm:$0xff]  }
 0x319   : > { %v6548_v33 = vsel %vm6505_vm12, %v6547_v11, %v6546_v27  ;;  %v6684_v59 = vpack.c.b16 %v6653_v5, %v6653_v5  ;;  %v5118_v1 = vpack.c.bf16 %v5095_v9, %v5094_v29  ;;  %v17700_v55 = vpack.c.bf16 %v5095_v9, %v5095_v9  ;;  %20050 = vmatpush3.bf16.msra.mxu1 %v21697_v19  ;;  %v21698_v29 = vld [vmem:[%s26610_s1 + $0x2a0] sm:$0xff]  }
 0x31a   : > { %v6608_v21 = vpack.c.b16 %v6548_v33, %v6548_v33  ;;  %v6981_v8 = vcombine.high %v6973_v25, %v6973_v25  ;;  %v6982_v40 = vcombine.high %v6980_v60, %v6980_v60  ;;  %v6989_v28 = vrot.slane %v6973_v25, %v23597_v37  ;;  %20051 = vmatprep.subr.bf16.mxu1 %v21698_v29 }
 0x31b   : > { %v6733_v24 = vsel %vm23702_vm15, %v6684_v59, %v6732_v51  ;;  %v6996_v42 = vrot.slane %v6980_v60, %v23597_v37  ;;  %v5337_v38 = vrot.slane %v5118_v1, %v23597_v37  ;;  %v5344_v43 = vrot.slane %v17700_v55, %v23597_v37  ;;  %v21700_v59 = vld [vmem:[%s26610_s1 + $0x2b0] sm:$0xff]  }
 0x31c   : > { %6625 = vst [vmem:[#allocation2 + $0xf0] sm:$0xf] %v6608_v21  ;;  %6734 = vst [vmem:[#allocation2 + $0xa8] sm:$0xf] %v6733_v24  ;;  %v7003_v57 = vrot.slane %v6981_v8, %v23597_v37  ;;  %v7010_v0 = vrot.slane %v6982_v40, %v23597_v37  ;;  %v7011_v11 = vcombine.high %v6989_v28, %v6989_v28  ;;  %v21703_v40 = vld [vmem:[%s26610_s1 + $0x2b8] sm:$0xff]  }
 0x31d   : > { %v7616_v22 = vrot.slane %v6989_v28, %v23612_v18  ;;  %v7012_v45 = vcombine.high %v6996_v42, %v6996_v42  ;;  %v7672_v47 = vrot.slane %v6996_v42, %v23612_v18  ;;  %v5345_v15 = vcombine.high %v5337_v38, %v5337_v38  ;;  %20052 = vmatpush3.bf16.msra.mxu1 %v21698_v29 }
 0x31e   : > { %v5346_v48 = vcombine.high %v5344_v43, %v5344_v43  ;;  %v7013_v4 = vcombine.high %v7003_v57, %v7003_v57  ;;  %v7014_v17 = vcombine.high %v7010_v0, %v7010_v0  ;;  %v7630_v58 = vrot.slane %v7003_v57, %v23612_v18  ;;  %20053 = vmatprep.subr.bf16.mxu1 %v21699_v50 }
 0x31f   : > { %v7623_v13 = vrot.slane %v7616_v22, %v23612_v18  ;;  %v7644_v3 = vrot.slane %v7011_v11, %v23612_v18  ;;  %v7679_v53 = vrot.slane %v7672_v47, %v23612_v18  ;;  %v7686_v26 = vrot.slane %v7010_v0, %v23612_v18 }
 0x320   : > { %v7700_v34 = vrot.slane %v7012_v45, %v23612_v18  ;;  %v7637_v12 = vrot.slane %v7630_v58, %v23612_v18  ;;  %v7658_v61 = vrot.slane %v7013_v4, %v23612_v18  ;;  %v7714_v52 = vrot.slane %v7014_v17, %v23612_v18  ;;  %v8367_v58 = vld [vmem:[#allocation2 + $0x2c] sm:$0x1] }
 0x321   : > { %v8090_v14 = vunpack.c.l.b16 %v7623_v13  ;;  %v7651_v9 = vrot.slane %v7644_v3, %v23612_v18  ;;  %v7693_v19 = vrot.slane %v7686_v26, %v23612_v18  ;;  %v8094_v5 = vunpack.c.l.b16 %v7679_v53  ;;  %20054 = vmatpush3.bf16.msra.mxu1 %v21699_v50 }
 0x322   : > { %v7707_v27 = vrot.slane %v7700_v34, %v23612_v18  ;;  %v7665_v51 = vrot.slane %v7658_v61, %v23612_v18  ;;  %v7721_v25 = vrot.slane %v7714_v52, %v23612_v18  ;;  %v8091_v60 = vunpack.c.l.b16 %v7637_v12  ;;  %20055 = vmatprep.subr.bf16.mxu1 %v21700_v59 }
 0x323   : > { %v5353_v33 = vrot.slane %v5337_v38, %v23597_v37  ;;  %v8092_v1 = vunpack.c.l.b16 %v7651_v9  ;;  %v8095_v55 = vunpack.c.l.b16 %v7693_v19  ;;  %v8184_v8 = vrot.slane %v8094_v5, 4 }
 0x324   : > { %v8096_v21 = vunpack.c.l.b16 %v7707_v27  ;;  %v8093_v28 = vunpack.c.l.b16 %v7665_v51  ;;  %v8097_v24 = vunpack.c.l.b16 %v7721_v25  ;;  %v8178_v42 = vrot.slane %v8091_v60, 7  ;;  %v8364_v25 = vld [vmem:[#allocation2 + $0x28] sm:$0xf] }
 0x325   : > { %v5360_v29 = vrot.slane %v5344_v43, %v23597_v37  ;;  %v8180_v38 = vrot.slane %v8092_v1, 6  ;;  %v8186_v57 = vrot.slane %v8095_v55, 3  ;;  %v5367_v11 = vrot.slane %v5345_v15, %v23597_v37  ;;  %20056 = vmatpush3.bf16.msra.mxu1 %v21700_v59  ;;  %v24163_v15 = vld [vmem:[%s26610_s1 + $0x2c0] sm:$0xff]  }
 0x326   : > { %v8188_v0 = vrot.slane %v8096_v21, 2  ;;  %v8179_v22 = vsel %vm6487_vm6, %v8178_v42, %v8090_v14  ;;  %v8182_v45 = vrot.slane %v8093_v28, 5  ;;  %v8190_v47 = vrot.slane %v8097_v24, 1  ;;  %20057 = vmatprep.subr.bf16.mxu1 %v21703_v40 }
 0x327   : > { %v8283_v4 = vsel %vm6490_vm7, %v8178_v42, %v8090_v14  ;;  %v8181_v17 = vsel %vm6490_vm7, %v8180_v38, %v8179_v22  ;;  %v5374_v43 = vrot.slane %v5346_v48, %v23597_v37  ;;  %v5375_v3 = vcombine.high %v5353_v33, %v5353_v33 }
 0x328   : > { %v8284_v13 = vsel %vm6493_vm8, %v8180_v38, %v8283_v4  ;;  %v8183_v53 = vsel %vm6493_vm8, %v8182_v45, %v8181_v17  ;;  %v8316_v34 = vpack.c.b16 %v8190_v47, %v8190_v47  ;;  %v5376_v50 = vcombine.high %v5360_v29, %v5360_v29 }
 0x329   : > { %v8285_v26 = vsel %vm6496_vm9, %v8182_v45, %v8284_v13  ;;  %v8185_v12 = vsel %vm6496_vm9, %v8184_v8, %v8183_v53  ;;  %v5377_v52 = vcombine.high %v5367_v11, %v5367_v11  ;;  %v5378_v14 = vcombine.high %v5374_v43, %v5374_v43  ;;  %20058 = vmatpush3.bf16.msra.mxu1 %v21703_v40 }
 0x32a   : > { %v8286_v61 = vsel %vm6499_vm10, %v8184_v8, %v8285_v26  ;;  %v8187_v48 = vsel %vm6499_vm10, %v8186_v57, %v8185_v12  ;;  %v8368_v19 = vsel %vm23492_vm5, %v8316_v34, %v8367_v58  ;;  %v5980_v27 = vrot.slane %v5353_v33, %v23612_v18  ;;  %20067 = vmatprep.subr.bf16.mxu1 %v24163_v15 }
 0x32b   : > { %v8287_v9 = vsel %vm6502_vm11, %v8186_v57, %v8286_v61  ;;  %v8189_v5 = vsel %vm6502_vm11, %v8188_v0, %v8187_v48  ;;  %8369 = vst [vmem:[#allocation2 + $0x2c] sm:$0x1] %v8368_v19  ;;  %v5994_v60 = vrot.slane %v5367_v11, %v23612_v18  ;;  %v6008_v59 = vrot.slane %v5375_v3, %v23612_v18 }
 0x32c   : > { %v8288_v51 = vsel %vm6505_vm12, %v8188_v0, %v8287_v9  ;;  %v8191_v1 = vsel %vm6505_vm12, %v8190_v47, %v8189_v5  ;;  %v5987_v21 = vrot.slane %v5980_v27, %v23612_v18  ;;  %v6022_v33 = vrot.slane %v5377_v52, %v23612_v18  ;;  %v251_v9 = vld [vmem:[#allocation2 + $0x34] sm:$0x1] }
 0x32d   : > { %v8315_v55 = vpack.c.b16 %v8288_v51, %v8288_v51  ;;  %v8238_v8 = vpack.c.b16 %v8191_v1, %v8191_v1  ;;  %v6001_v40 = vrot.slane %v5994_v60, %v23612_v18  ;;  %v6015_v28 = vrot.slane %v6008_v59, %v23612_v18  ;;  %v6741_v60 = vld [vmem:[#allocation2 + $0xb4] sm:$0x1]  ;;  %v319_v1 = vld [vmem:[#allocation2 + $0xbc] sm:$0x1] }
 0x32e   : > { %v6036_v24 = vrot.slane %v5360_v29, %v23612_v18  ;;  %v6029_v38 = vrot.slane %v6022_v33, %v23612_v18  ;;  %v6050_v57 = vrot.slane %v5374_v43, %v23612_v18  ;;  %v6064_v0 = vrot.slane %v5376_v50, %v23612_v18 }
 0x32f   : > { %v8365_v42 = vsel %vm23702_vm15, %v8315_v55, %v8364_v25  ;;  %8255 = vst [vmem:[#allocation2 + $0x70] sm:$0xf] %v8238_v8  ;;  %v6078_v22 = vrot.slane %v5378_v14, %v23612_v18  ;;  %v6454_v45 = vunpack.c.l.b16 %v5987_v21  ;;  %v6455_v47 = vunpack.c.l.b16 %v6001_v40 }
 0x330   : > { %8366 = vst [vmem:[#allocation2 + $0x28] sm:$0xf] %v8365_v42  ;;  %v6043_v11 = vrot.slane %v6036_v24, %v23612_v18  ;;  %v6057_v4 = vrot.slane %v6050_v57, %v23612_v18  ;;  %v6071_v29 = vrot.slane %v6064_v0, %v23612_v18  ;;  %v6456_v17 = vunpack.c.l.b16 %v6015_v28  ;;  %v255_v0 = vld [vmem:[#allocation2 + $0x3c] sm:$0x1] }
 0x331   : > { %v6457_v13 = vunpack.c.l.b16 %v6029_v38  ;;  %v6085_v58 = vrot.slane %v6078_v22, %v23612_v18  ;;  %v6549_v43 = vrot.slane %v6455_v47, 7  ;;  %v21016_v53 = vadd.f32 %v23432_v41, %v23755_v32  ;;  %v6738_v38 = vld [vmem:[#allocation2 + $0xb0] sm:$0xf] }
 0x332   : > { %v6458_v3 = vunpack.c.l.b16 %v6043_v11  ;;  %v6459_v26 = vunpack.c.l.b16 %v6057_v4  ;;  %v6460_v34 = vunpack.c.l.b16 %v6071_v29  ;;  %v6551_v50 = vrot.slane %v6456_v17, 6 }
 0x333   : > { %v6553_v12 = vrot.slane %v6457_v13, 5  ;;  %v6461_v61 = vunpack.c.l.b16 %v6085_v58  ;;  %v6550_v52 = vsel %vm6487_vm6, %v6549_v43, %v6454_v45  ;;  %v6654_v48 = vsel %vm6490_vm7, %v6549_v43, %v6454_v45  ;;  %v323_v58 = vld [vmem:[#allocation2 + $0xc4] sm:$0x1] }
 0x334   : > { %v6555_v14 = vrot.slane %v6458_v3, 4  ;;  %v6552_v19 = vsel %vm6490_vm7, %v6551_v50, %v6550_v52  ;;  %v6557_v27 = vrot.slane %v6459_v26, 3  ;;  %v6559_v5 = vrot.slane %v6460_v34, 2 }
 0x335   : > { %v6655_v51 = vsel %vm6493_vm8, %v6551_v50, %v6654_v48  ;;  %v6554_v25 = vsel %vm6493_vm8, %v6553_v12, %v6552_v19  ;;  %v6561_v41 = vrot.slane %v6461_v61, 1  ;;  %v5100_v59 = vmax.f32 %v21016_v53, 0.0  ;;  %v26674_v50 = vld [vmem:[#allocation13_spill] sm:$0xff]  ;;  %v26675_v48 = vld [vmem:[#allocation14_spill] sm:$0xff] }
 0x336   : > { %v6656_v32 = vsel %vm6496_vm9, %v6553_v12, %v6655_v51  ;;  %v6556_v55 = vsel %vm6496_vm9, %v6555_v14, %v6554_v25  ;;  %v21018_v33 = vadd.f32 %v23435_v56, %v23759_v2  ;;  %v252_v8 = vsel %vm23492_vm5, 0, %v251_v9 }
 0x337   : > { %v6657_v21 = vsel %vm6499_vm10, %v6555_v14, %v6656_v32  ;;  %v21696_v40 = vld [vmem:[#allocation2 + $0x20] ss:$8 sps:$4 sm:$0xff]   ;;  %v6558_v28 = vsel %vm6499_vm10, %v6557_v27, %v6556_v55  ;;  %v6687_v42 = vpack.c.b16 %v6561_v41, %v6561_v41  ;;  %253 = vst [vmem:[#allocation2 + $0x34] sm:$0x1] %v252_v8  ;;  %v21020_v57 = vadd.f32 %v23438_v7, %v23776_v49 }
 0x338   : > { %v6658_v24 = vsel %vm6502_vm11, %v6557_v27, %v6657_v21  ;;  %v6560_v11 = vsel %vm6502_vm11, %v6559_v5, %v6558_v28  ;;  %v5098_v56 = vmax.f32 %v21018_v33, 0.0  ;;  %v320_v2 = vsel %vm23492_vm5, 0, %v319_v1  ;;  %20039 = vmatprep.mubr.bf16.mxu1 %v21696_v40 }
 0x339   : > { %v6659_v22 = vsel %vm6505_vm12, %v6559_v5, %v6658_v24  ;;  %v6562_v45 = vsel %vm6505_vm12, %v6561_v41, %v6560_v11  ;;  %v6742_v4 = vsel %vm23492_vm5, %v6687_v42, %v6741_v60  ;;  %v5101_v29 = vmax.f32 %v21020_v57, 0.0  ;;  %321 = vst [vmem:[#allocation2 + $0xbc] sm:$0x1] %v320_v2 }
 0x33a   : > { %v6686_v47 = vpack.c.b16 %v6659_v22, %v6659_v22  ;;  %v6609_v17 = vpack.c.b16 %v6562_v45, %v6562_v45  ;;  %6743 = vst [vmem:[#allocation2 + $0xb4] sm:$0x1] %v6742_v4  ;;  %v21022_v7 = vadd.f32 %v23441_v10, %v23789_v54  ;;  %v21024_v49 = vadd.f32 %v23444_v20, %v23860_v46 }
 0x33b   : > { %v24226_v13 = vadd.f32 %v23447_v16, %v23863_v35  ;;  %v5121_v43 = vpack.c.bf16 %v5101_v29, %v5100_v59  ;;  %v17709_v53 = vpack.c.bf16 %v5101_v29, %v5101_v29  ;;  %v256_v26 = vsel %vm23492_vm5, 0, %v255_v0 }
 0x33c   : > { %v6739_v3 = vsel %vm23702_vm15, %v6686_v47, %v6738_v38  ;;  %6626 = vst [vmem:[#allocation2 + $0xf8] sm:$0xf] %v6609_v17  ;;  %v5099_v34 = vmax.f32 %v21022_v7, 0.0  ;;  %v5104_v10 = vmax.f32 %v21024_v49, 0.0  ;;  %257 = vst [vmem:[#allocation2 + $0x3c] sm:$0x1] %v256_v26  ;;  %v21028_v20 = vadd.f32 %v23450_v30, %v23865_v39 }
 0x33d   : > { %6740 = vst [vmem:[#allocation2 + $0xb0] sm:$0xf] %v6739_v3  ;;  %v5102_v54 = vmax.f32 %v24226_v13, 0.0  ;;  %v7022_v16 = vrot.slane %v5121_v43, %v23597_v37  ;;  %v7029_v46 = vrot.slane %v17709_v53, %v23597_v37  ;;  %v324_v35 = vsel %vm23492_vm5, 0, %v323_v58 }
 0x33e   : > { %v24241_v12 = vadd.f32 %v26674_v50, %v23899_v6  ;;  %v5120_v61 = vpack.c.bf16 %v5099_v34, %v5098_v56  ;;  %v17701_v52 = vpack.c.bf16 %v5099_v34, %v5099_v34  ;;  %v24243_v14 = vmax.f32 %v21028_v20, 0.0  ;;  %325 = vst [vmem:[#allocation2 + $0xc4] sm:$0x1] %v324_v35 }
 0x33f   : > { %v24247_v9 = vadd.f32 %v26675_v48, %v23960_v31  ;;  %v7030_v30 = vcombine.high %v7022_v16, %v7022_v16  ;;  %v7031_v39 = vcombine.high %v7029_v46, %v7029_v46  ;;  %v7038_v19 = vrot.slane %v7022_v16, %v23597_v37 }
 0x340   : > { %v7045_v27 = vrot.slane %v7029_v46, %v23597_v37  ;;  %v5386_v5 = vrot.slane %v5120_v61, %v23597_v37  ;;  %v5393_v6 = vrot.slane %v17701_v52, %v23597_v37  ;;  %v24254_v51 = vpack.c.bf16 %v24243_v14, %v5104_v10 }
 0x341   : > { %v17710_v25 = vpack.c.bf16 %v24243_v14, %v24243_v14  ;;  %v7052_v41 = vrot.slane %v7030_v30, %v23597_v37  ;;  %v7059_v31 = vrot.slane %v7031_v39, %v23597_v37  ;;  %v7060_v32 = vcombine.high %v7038_v19, %v7038_v19  ;;  %v6744_v14 = vld [vmem:[#allocation2 + $0xb8] sm:$0xf] }
 0x342   : > { %v7061_v60 = vcombine.high %v7045_v27, %v7045_v27  ;;  %v7728_v59 = vrot.slane %v7038_v19, %v23612_v18  ;;  %v7784_v1 = vrot.slane %v7045_v27, %v23612_v18  ;;  %v5394_v55 = vcombine.high %v5386_v5, %v5386_v5  ;;  %v8373_v27 = vld [vmem:[#allocation2 + $0x34] sm:$0x1] }
 0x343   : > { %v5395_v21 = vcombine.high %v5393_v6, %v5393_v6  ;;  %v7062_v33 = vcombine.high %v7052_v41, %v7052_v41  ;;  %v7063_v8 = vcombine.high %v7059_v31, %v7059_v31  ;;  %v7742_v40 = vrot.slane %v7052_v41, %v23612_v18 }
 0x344   : > { %v7756_v28 = vrot.slane %v7060_v32, %v23612_v18  ;;  %v7735_v24 = vrot.slane %v7728_v59, %v23612_v18  ;;  %v7791_v42 = vrot.slane %v7784_v1, %v23612_v18  ;;  %v7798_v38 = vrot.slane %v7059_v31, %v23612_v18 }
 0x345   : > { %v7812_v57 = vrot.slane %v7061_v60, %v23612_v18  ;;  %v7749_v0 = vrot.slane %v7742_v40, %v23612_v18  ;;  %v7770_v22 = vrot.slane %v7062_v33, %v23612_v18  ;;  %v7826_v56 = vrot.slane %v7063_v8, %v23612_v18 }
 0x346   : > { %v7763_v11 = vrot.slane %v7756_v28, %v23612_v18  ;;  %v7805_v2 = vrot.slane %v7798_v38, %v23612_v18  ;;  %v8098_v47 = vunpack.c.l.b16 %v7735_v24  ;;  %v8102_v4 = vunpack.c.l.b16 %v7791_v42  ;;  %v8370_v38 = vld [vmem:[#allocation2 + $0x30] sm:$0xf] }
 0x347   : > { %v7819_v45 = vrot.slane %v7812_v57, %v23612_v18  ;;  %v7777_v29 = vrot.slane %v7770_v22, %v23612_v18  ;;  %v7833_v17 = vrot.slane %v7826_v56, %v23612_v18  ;;  %v8099_v7 = vunpack.c.l.b16 %v7749_v0 }
 0x348   : > { %v8100_v49 = vunpack.c.l.b16 %v7763_v11  ;;  %v8103_v58 = vunpack.c.l.b16 %v7805_v2  ;;  %v8198_v43 = vrot.slane %v8102_v4, 4  ;;  %v5402_v53 = vrot.slane %v5386_v5, %v23597_v37 }
 0x349   : > { %v8104_v3 = vunpack.c.l.b16 %v7819_v45  ;;  %v8101_v26 = vunpack.c.l.b16 %v7777_v29  ;;  %v8105_v34 = vunpack.c.l.b16 %v7833_v17  ;;  %v8192_v10 = vrot.slane %v8099_v7, 7 }
 0x34a   : > { %v8194_v20 = vrot.slane %v8100_v49, 6  ;;  %v8200_v16 = vrot.slane %v8103_v58, 3  ;;  %v5409_v35 = vrot.slane %v5393_v6, %v23597_v37  ;;  %v5416_v50 = vrot.slane %v5394_v55, %v23597_v37 }
 0x34b   : > { %v8202_v46 = vrot.slane %v8104_v3, 2  ;;  %v8193_v61 = vsel %vm6487_vm6, %v8192_v10, %v8098_v47  ;;  %v8196_v52 = vrot.slane %v8101_v26, 5  ;;  %v8204_v48 = vrot.slane %v8105_v34, 1 }
 0x34c   : > { %v8289_v30 = vsel %vm6490_vm7, %v8192_v10, %v8098_v47  ;;  %v8195_v39 = vsel %vm6490_vm7, %v8194_v20, %v8193_v61  ;;  %v5423_v5 = vrot.slane %v5395_v21, %v23597_v37  ;;  %v5424_v41 = vcombine.high %v5402_v53, %v5402_v53 }
 0x34d   : > { %v8290_v19 = vsel %vm6493_vm8, %v8194_v20, %v8289_v30  ;;  %v8197_v31 = vsel %vm6493_vm8, %v8196_v52, %v8195_v39  ;;  %v8318_v32 = vpack.c.b16 %v8204_v48, %v8204_v48  ;;  %v5425_v60 = vcombine.high %v5409_v35, %v5409_v35 }
 0x34e   : > { %v8291_v6 = vsel %vm6496_vm9, %v8196_v52, %v8290_v19  ;;  %v8199_v59 = vsel %vm6496_vm9, %v8198_v43, %v8197_v31  ;;  %v5426_v55 = vcombine.high %v5416_v50, %v5416_v50  ;;  %v5427_v33 = vcombine.high %v5423_v5, %v5423_v5 }
 0x34f   : > { %v8292_v1 = vsel %vm6499_vm10, %v8198_v43, %v8291_v6  ;;  %v8201_v8 = vsel %vm6499_vm10, %v8200_v16, %v8199_v59  ;;  %v8374_v21 = vsel %vm23492_vm5, %v8318_v32, %v8373_v27  ;;  %v6092_v28 = vrot.slane %v5402_v53, %v23612_v18 }
 0x350   : > { %v8293_v40 = vsel %vm6502_vm11, %v8200_v16, %v8292_v1  ;;  %v8203_v24 = vsel %vm6502_vm11, %v8202_v46, %v8201_v8  ;;  %8375 = vst [vmem:[#allocation2 + $0x34] sm:$0x1] %v8374_v21  ;;  %v6106_v57 = vrot.slane %v5416_v50, %v23612_v18  ;;  %v6120_v0 = vrot.slane %v5424_v41, %v23612_v18 }
 0x351   : > { %v8294_v42 = vsel %vm6505_vm12, %v8202_v46, %v8293_v40  ;;  %v8205_v11 = vsel %vm6505_vm12, %v8204_v48, %v8203_v24  ;;  %v6099_v56 = vrot.slane %v6092_v28, %v23612_v18  ;;  %v6134_v2 = vrot.slane %v5426_v55, %v23612_v18  ;;  %v6747_v40 = vld [vmem:[#allocation2 + $0xbc] sm:$0x1] }
 0x352   : > { %v8317_v22 = vpack.c.b16 %v8294_v42, %v8294_v42  ;;  %v8239_v45 = vpack.c.b16 %v8205_v11, %v8205_v11  ;;  %v6113_v47 = vrot.slane %v6106_v57, %v23612_v18  ;;  %v6127_v4 = vrot.slane %v6120_v0, %v23612_v18 }
 0x353   : > { %v6148_v29 = vrot.slane %v5409_v35, %v23612_v18  ;;  %v6141_v7 = vrot.slane %v6134_v2, %v23612_v18  ;;  %v6162_v49 = vrot.slane %v5423_v5, %v23612_v18  ;;  %v6176_v58 = vrot.slane %v5425_v60, %v23612_v18 }
 0x354   : > { %v8371_v17 = vsel %vm23702_vm15, %v8317_v22, %v8370_v38  ;;  %8256 = vst [vmem:[#allocation2 + $0x78] sm:$0xf] %v8239_v45  ;;  %v6190_v43 = vrot.slane %v5427_v33, %v23612_v18  ;;  %v6462_v53 = vunpack.c.l.b16 %v6099_v56  ;;  %v6463_v26 = vunpack.c.l.b16 %v6113_v47 }
 0x355   : > { %8372 = vst [vmem:[#allocation2 + $0x30] sm:$0xf] %v8371_v17  ;;  %v6155_v3 = vrot.slane %v6148_v29, %v23612_v18  ;;  %v6169_v34 = vrot.slane %v6162_v49, %v23612_v18  ;;  %v6183_v10 = vrot.slane %v6176_v58, %v23612_v18  ;;  %v6464_v20 = vunpack.c.l.b16 %v6127_v4 }
 0x356   : > { %v6465_v16 = vunpack.c.l.b16 %v6141_v7  ;;  %v6197_v46 = vrot.slane %v6190_v43, %v23612_v18  ;;  %v6563_v50 = vrot.slane %v6463_v26, 7  ;;  %v7071_v61 = vrot.slane %v24254_v51, %v23597_v37 }
 0x357   : > { %v6466_v35 = vunpack.c.l.b16 %v6155_v3  ;;  %v6467_v52 = vunpack.c.l.b16 %v6169_v34  ;;  %v6468_v48 = vunpack.c.l.b16 %v6183_v10  ;;  %v6565_v30 = vrot.slane %v6464_v20, 6 }
 0x358   : > { %v6567_v39 = vrot.slane %v6465_v16, 5  ;;  %v6469_v19 = vunpack.c.l.b16 %v6197_v46  ;;  %v6564_v27 = vsel %vm6487_vm6, %v6563_v50, %v6462_v53  ;;  %v6660_v41 = vsel %vm6490_vm7, %v6563_v50, %v6462_v53 }
 0x359   : > { %v6569_v5 = vrot.slane %v6466_v35, 4  ;;  %v6566_v31 = vsel %vm6490_vm7, %v6565_v30, %v6564_v27  ;;  %v6571_v6 = vrot.slane %v6467_v52, 3  ;;  %v6573_v32 = vrot.slane %v6468_v48, 2 }
 0x35a   : > { %v6661_v60 = vsel %vm6493_vm8, %v6565_v30, %v6660_v41  ;;  %v6568_v59 = vsel %vm6493_vm8, %v6567_v39, %v6566_v31  ;;  %v6575_v1 = vrot.slane %v6469_v19, 1  ;;  %v7078_v55 = vrot.slane %v17710_v25, %v23597_v37 }
 0x35b   : > { %v6662_v51 = vsel %vm6496_vm9, %v6567_v39, %v6661_v60  ;;  %v6570_v33 = vsel %vm6496_vm9, %v6569_v5, %v6568_v59  ;;  %v7079_v21 = vcombine.high %v7071_v61, %v7071_v61  ;;  %v7087_v28 = vrot.slane %v7071_v61, %v23597_v37 }
 0x35c   : > { %v6663_v8 = vsel %vm6499_vm10, %v6569_v5, %v6662_v51  ;;  %v6572_v24 = vsel %vm6499_vm10, %v6571_v6, %v6570_v33  ;;  %v6689_v38 = vpack.c.b16 %v6575_v1, %v6575_v1  ;;  %v7080_v57 = vcombine.high %v7078_v55, %v7078_v55 }
 0x35d   : > { %v6664_v42 = vsel %vm6502_vm11, %v6571_v6, %v6663_v8  ;;  %v6574_v0 = vsel %vm6502_vm11, %v6573_v32, %v6572_v24  ;;  %v7094_v25 = vrot.slane %v7078_v55, %v23597_v37  ;;  %v7101_v22 = vrot.slane %v7079_v21, %v23597_v37 }
 0x35e   : > { %v6665_v11 = vsel %vm6505_vm12, %v6573_v32, %v6664_v42  ;;  %v6576_v56 = vsel %vm6505_vm12, %v6575_v1, %v6574_v0  ;;  %v6748_v45 = vsel %vm23492_vm5, %v6689_v38, %v6747_v40  ;;  %v7108_v47 = vrot.slane %v7080_v57, %v23597_v37  ;;  %v8379_v57 = vld [vmem:[#allocation2 + $0x3c] sm:$0x1] }
 0x35f   : > { %v6688_v2 = vpack.c.b16 %v6665_v11, %v6665_v11  ;;  %v6610_v4 = vpack.c.b16 %v6576_v56, %v6576_v56  ;;  %6749 = vst [vmem:[#allocation2 + $0xbc] sm:$0x1] %v6748_v45  ;;  %v7109_v29 = vcombine.high %v7087_v28, %v7087_v28  ;;  %v7110_v17 = vcombine.high %v7094_v25, %v7094_v25 }
 0x360   : > { %v7111_v7 = vcombine.high %v7101_v22, %v7101_v22  ;;  %v7112_v58 = vcombine.high %v7108_v47, %v7108_v47  ;;  %v7840_v3 = vrot.slane %v7087_v28, %v23612_v18  ;;  %v7854_v43 = vrot.slane %v7101_v22, %v23612_v18 }
 0x361   : > { %v6745_v49 = vsel %vm23702_vm15, %v6688_v2, %v6744_v14  ;;  %6627 = vst [vmem:[#allocation2 + $0x100] sm:$0xf] %v6610_v4  ;;  %v7868_v53 = vrot.slane %v7109_v29, %v23612_v18  ;;  %v7896_v34 = vrot.slane %v7094_v25, %v23612_v18  ;;  %v7910_v10 = vrot.slane %v7108_v47, %v23612_v18  ;;  %v26676_v29 = vld [vmem:[#allocation12_spill] sm:$0xff] }
 0x362   : > { %6746 = vst [vmem:[#allocation2 + $0xb8] sm:$0xf] %v6745_v49  ;;  %v7882_v26 = vrot.slane %v7111_v7, %v23612_v18  ;;  %v7847_v20 = vrot.slane %v7840_v3, %v23612_v18  ;;  %v7861_v16 = vrot.slane %v7854_v43, %v23612_v18  ;;  %v7924_v46 = vrot.slane %v7110_v17, %v23612_v18 }
 0x363   : > { %v7938_v35 = vrot.slane %v7112_v58, %v23612_v18  ;;  %v7875_v50 = vrot.slane %v7868_v53, %v23612_v18  ;;  %v7903_v52 = vrot.slane %v7896_v34, %v23612_v18  ;;  %v7917_v48 = vrot.slane %v7910_v10, %v23612_v18  ;;  %v8376_v58 = vld [vmem:[#allocation2 + $0x38] sm:$0xf] }
 0x364   : > { %v7889_v61 = vrot.slane %v7882_v26, %v23612_v18  ;;  %v7931_v30 = vrot.slane %v7924_v46, %v23612_v18  ;;  %v8106_v19 = vunpack.c.l.b16 %v7847_v20  ;;  %v8107_v27 = vunpack.c.l.b16 %v7861_v16 }
 0x365   : > { %v7945_v39 = vrot.slane %v7938_v35, %v23612_v18  ;;  %v8108_v5 = vunpack.c.l.b16 %v7875_v50  ;;  %v8110_v31 = vunpack.c.l.b16 %v7903_v52  ;;  %v8111_v6 = vunpack.c.l.b16 %v7917_v48 }
 0x366   : > { %v8109_v41 = vunpack.c.l.b16 %v7889_v61  ;;  %v8112_v32 = vunpack.c.l.b16 %v7931_v30  ;;  %v8206_v59 = vrot.slane %v8107_v27, 7  ;;  %v5103_v1 = vmax.f32 %v24241_v12, 0.0 }
 0x367   : > { %v8113_v60 = vunpack.c.l.b16 %v7945_v39  ;;  %v8208_v51 = vrot.slane %v8108_v5, 6  ;;  %v8212_v33 = vrot.slane %v8110_v31, 4  ;;  %v8214_v8 = vrot.slane %v8111_v6, 3 }
 0x368   : > { %v8210_v55 = vrot.slane %v8109_v41, 5  ;;  %v8207_v40 = vsel %vm6487_vm6, %v8206_v59, %v8106_v19  ;;  %v8216_v21 = vrot.slane %v8112_v32, 2  ;;  %v8295_v24 = vsel %vm6490_vm7, %v8206_v59, %v8106_v19 }
 0x369   : > { %v8218_v28 = vrot.slane %v8113_v60, 1  ;;  %v8209_v42 = vsel %vm6490_vm7, %v8208_v51, %v8207_v40  ;;  %v8296_v38 = vsel %vm6493_vm8, %v8208_v51, %v8295_v24  ;;  %v5122_v0 = vpack.c.bf16 %v5103_v1, %v5102_v54 }
 0x36a   : > { %v17702_v11 = vpack.c.bf16 %v5103_v1, %v5103_v1  ;;  %v8211_v12 = vsel %vm6493_vm8, %v8210_v55, %v8209_v42  ;;  %v8297_v14 = vsel %vm6496_vm9, %v8210_v55, %v8296_v38  ;;  %v5108_v22 = vmax.f32 %v24247_v9, 0.0  ;;  %v259_v1 = vld [vmem:[#allocation2 + $0x44] sm:$0x1] }
 0x36b   : > { %v8320_v25 = vpack.c.b16 %v8218_v28, %v8218_v28  ;;  %v8213_v56 = vsel %vm6496_vm9, %v8212_v33, %v8211_v12  ;;  %v8298_v2 = vsel %vm6499_vm10, %v8212_v33, %v8297_v14  ;;  %v5435_v45 = vrot.slane %v5122_v0, %v23597_v37 }
 0x36c   : > { %v5442_v47 = vrot.slane %v17702_v11, %v23597_v37  ;;  %v8215_v4 = vsel %vm6499_vm10, %v8214_v8, %v8213_v56  ;;  %v8299_v13 = vsel %vm6502_vm11, %v8214_v8, %v8298_v2  ;;  %v24376_v17 = vadd.f32 %v26676_v29, %v23964_v23  ;;  %v327_v56 = vld [vmem:[#allocation2 + $0xcc] sm:$0x1] }
 0x36d   : > { %v8380_v54 = vsel %vm23492_vm5, %v8320_v25, %v8379_v57  ;;  %v8217_v7 = vsel %vm6502_vm11, %v8216_v21, %v8215_v4  ;;  %v8300_v49 = vsel %vm6505_vm12, %v8216_v21, %v8299_v13  ;;  %v5443_v3 = vcombine.high %v5435_v45, %v5435_v45  ;;  %v26677_v4 = vld [vmem:[#allocation15_spill] sm:$0xff] }
 0x36e   : > { %8381 = vst [vmem:[#allocation2 + $0x3c] sm:$0x1] %v8380_v54  ;;  %v5444_v43 = vcombine.high %v5442_v47, %v5442_v47  ;;  %v8219_v53 = vsel %vm6505_vm12, %v8218_v28, %v8217_v7  ;;  %v8319_v26 = vpack.c.b16 %v8300_v49, %v8300_v49  ;;  %v5451_v34 = vrot.slane %v5435_v45, %v23597_v37 }
 0x36f   : > { %v5458_v10 = vrot.slane %v5442_v47, %v23597_v37  ;;  %v8240_v20 = vpack.c.b16 %v8219_v53, %v8219_v53  ;;  %v5465_v16 = vrot.slane %v5443_v3, %v23597_v37  ;;  %v5106_v46 = vmax.f32 %v24376_v17, 0.0  ;;  %v6753_v53 = vld [vmem:[#allocation2 + $0xc4] sm:$0x1] }
 0x370   : > { %v5472_v23 = vrot.slane %v5444_v43, %v23597_v37  ;;  %v8377_v35 = vsel %vm23702_vm15, %v8319_v26, %v8376_v58  ;;  %v5473_v50 = vcombine.high %v5451_v34, %v5451_v34  ;;  %v6204_v52 = vrot.slane %v5451_v34, %v23612_v18 }
 0x371   : > { %v5474_v61 = vcombine.high %v5458_v10, %v5458_v10  ;;  %8257 = vst [vmem:[#allocation2 + $0x80] sm:$0xf] %v8240_v20  ;;  %8378 = vst [vmem:[#allocation2 + $0x38] sm:$0xf] %v8377_v35  ;;  %v5475_v48 = vcombine.high %v5465_v16, %v5465_v16  ;;  %v6218_v39 = vrot.slane %v5465_v16, %v23612_v18  ;;  %v260_v0 = vsel %vm23492_vm5, 0, %v259_v1 }
 0x372   : > { %v5476_v30 = vcombine.high %v5472_v23, %v5472_v23  ;;  %v6260_v19 = vrot.slane %v5458_v10, %v23612_v18  ;;  %v6211_v27 = vrot.slane %v6204_v52, %v23612_v18  ;;  %v6232_v5 = vrot.slane %v5473_v50, %v23612_v18  ;;  %261 = vst [vmem:[#allocation2 + $0x44] sm:$0x1] %v260_v0  ;;  %v21702_v10 = vld [vmem:[#allocation2 + $0x48] ss:$8 sps:$4 sm:$0xff]  }
 0x373   : > { %v6274_v41 = vrot.slane %v5472_v23, %v23612_v18  ;;  %v6288_v31 = vrot.slane %v5474_v61, %v23612_v18  ;;  %v6225_v6 = vrot.slane %v6218_v39, %v23612_v18  ;;  %v6246_v32 = vrot.slane %v5475_v48, %v23612_v18  ;;  %v26678_v23 = vld [vmem:[#allocation17_spill] sm:$0xff] }
 0x374   : > { %v6267_v60 = vrot.slane %v6260_v19, %v23612_v18  ;;  %v6302_v59 = vrot.slane %v5476_v30, %v23612_v18  ;;  %v6239_v51 = vrot.slane %v6232_v5, %v23612_v18  ;;  %v6470_v8 = vunpack.c.l.b16 %v6211_v27 }
 0x375   : > { %v6281_v55 = vrot.slane %v6274_v41, %v23612_v18  ;;  %v6295_v33 = vrot.slane %v6288_v31, %v23612_v18  ;;  %v6253_v40 = vrot.slane %v6246_v32, %v23612_v18  ;;  %v6471_v28 = vunpack.c.l.b16 %v6225_v6  ;;  %v6750_v41 = vld [vmem:[#allocation2 + $0xc0] sm:$0xf] }
 0x376   : > { %v6309_v21 = vrot.slane %v6302_v59, %v23612_v18  ;;  %v6474_v24 = vunpack.c.l.b16 %v6267_v60  ;;  %v6472_v42 = vunpack.c.l.b16 %v6239_v51  ;;  %v21036_v13 = vadd.f32 %v26677_v4, %v23967_v62 }
 0x377   : > { %v6475_v38 = vunpack.c.l.b16 %v6281_v55  ;;  %v6476_v57 = vunpack.c.l.b16 %v6295_v33  ;;  %v6473_v11 = vunpack.c.l.b16 %v6253_v40  ;;  %v6577_v14 = vrot.slane %v6471_v28, 7  ;;  %v21705_v28 = vld [vmem:[#allocation2 + $0x58] ss:$8 sps:$4 sm:$0xff]  }
 0x378   : > { %v6477_v12 = vunpack.c.l.b16 %v6309_v21  ;;  %v6583_v25 = vrot.slane %v6474_v24, 4  ;;  %v6579_v2 = vrot.slane %v6472_v42, 6  ;;  %v21701_v58 = vld [vmem:[#allocation2 + $0x30] ss:$8 sps:$4 sm:$0xff]   ;;  %v5109_v26 = vmax.f32 %v21036_v13, 0.0 }
 0x379   : > { %v6585_v45 = vrot.slane %v6475_v38, 3  ;;  %v6587_v47 = vrot.slane %v6476_v57, 2  ;;  %v6578_v54 = vsel %vm6487_vm6, %v6577_v14, %v6470_v8  ;;  %v6581_v29 = vrot.slane %v6473_v11, 5  ;;  %20040 = vmatmul.mubr.bf16.gmra.mrb[36].mxu1 %v21701_v58  ;;  %v21707_v38 = vld [vmem:[%s26610_s1 + $0x2c8] sm:$0xff]  }
 0x37a   : > { %v6589_v7 = vrot.slane %v6477_v12, 1  ;;  %v6666_v49 = vsel %vm6490_vm7, %v6577_v14, %v6470_v8  ;;  %v6580_v3 = vsel %vm6490_vm7, %v6579_v2, %v6578_v54  ;;  %v328_v34 = vsel %vm23492_vm5, 0, %v327_v56  ;;  %20059 = vmatprep.mubr.bf16.mxu1 %v21702_v10  ;;  %v21706_v14 = vld [vmem:[#allocation2 + $0x68] ss:$8 sps:$4 sm:$0xff]  }
 0x37b   : > { %v6667_v43 = vsel %vm6493_vm8, %v6579_v2, %v6666_v49  ;;  %v6582_v20 = vsel %vm6493_vm8, %v6581_v29, %v6580_v3  ;;  %329 = vst [vmem:[#allocation2 + $0xcc] sm:$0x1] %v328_v34  ;;  %v21038_v35 = vadd.f32 %v26678_v23, %v24009_v63  ;;  %v5125_v52 = vpack.c.bf16 %v5109_v26, %v5108_v22 }
 0x37c   : > { %v6668_v62 = vsel %vm6496_vm9, %v6581_v29, %v6667_v43  ;;  %v6691_v16 = vpack.c.b16 %v6589_v7, %v6589_v7  ;;  %v6584_v50 = vsel %vm6496_vm9, %v6583_v25, %v6582_v20  ;;  %v17711_v48 = vpack.c.bf16 %v5109_v26, %v5109_v26  ;;  %v21708_v29 = vld [vmem:[%s26610_s1 + $0x2d0] sm:$0xff]  }
 0x37d   : > { %v6669_v61 = vsel %vm6499_vm10, %v6583_v25, %v6668_v62  ;;  %v6586_v30 = vsel %vm6499_vm10, %v6585_v45, %v6584_v50  ;;  %v5107_v27 = vmax.f32 %v21038_v35, 0.0  ;;  %v7120_v31 = vrot.slane %v5125_v52, %v23597_v37  ;;  %v21710_v52 = vld [vmem:[%s26610_s1 + $0x2d8] sm:$0xff]  }
 0x37e   : > { %v6670_v39 = vsel %vm6502_vm11, %v6585_v45, %v6669_v61  ;;  %v6754_v19 = vsel %vm23492_vm5, %v6691_v16, %v6753_v53  ;;  %v6588_v63 = vsel %vm6502_vm11, %v6587_v47, %v6586_v30  ;;  %v7127_v9 = vrot.slane %v17711_v48, %v23597_v37  ;;  %v21709_v16 = vld [vmem:[#allocation2 + $0x78] ss:$8 sps:$4 sm:$0xff]  }
 0x37f   : > { %v6671_v5 = vsel %vm6505_vm12, %v6587_v47, %v6670_v39  ;;  %6755 = vst [vmem:[#allocation2 + $0xc4] sm:$0x1] %v6754_v19  ;;  %v6590_v22 = vsel %vm6505_vm12, %v6589_v7, %v6588_v63  ;;  %v5124_v32 = vpack.c.bf16 %v5107_v27, %v5106_v46  ;;  %v17703_v60 = vpack.c.bf16 %v5107_v27, %v5107_v27 }
 0x380   : > { %v6690_v6 = vpack.c.b16 %v6671_v5, %v6671_v5  ;;  %v6611_v59 = vpack.c.b16 %v6590_v22, %v6590_v22  ;;  %v7128_v1 = vcombine.high %v7120_v31, %v7120_v31  ;;  %v7129_v51 = vcombine.high %v7127_v9, %v7127_v9 }
 0x381   : > { %v7136_v55 = vrot.slane %v7120_v31, %v23597_v37  ;;  %v7143_v8 = vrot.slane %v7127_v9, %v23597_v37  ;;  %v5484_v40 = vrot.slane %v5124_v32, %v23597_v37  ;;  %v24439_v21 = vrot.slane %v17703_v60, %v23597_v37  ;;  %20060 = vmatmul.mubr.bf16.vlgmr.msra.gmra.mrb[32].mxu1 %v21705_v28 }
 0x382   : > { %v6751_v33 = vsel %vm23702_vm15, %v6690_v6, %v6750_v41  ;;  %6628 = vst [vmem:[#allocation2 + $0x108] sm:$0xf] %v6611_v59  ;;  %v7150_v17 = vrot.slane %v7128_v1, %v23597_v37  ;;  %v7157_v46 = vrot.slane %v7129_v51, %v23597_v37  ;;  %20068 = vmatpush3.bf16.msra.mxu1 %v24163_v15  ;;  %v8385_v59 = vld [vmem:[#allocation2 + $0x44] sm:$0x1] }
 0x383   : > { %6752 = vst [vmem:[#allocation2 + $0xc0] sm:$0xf] %v6751_v33  ;;  %v7158_v24 = vcombine.high %v7136_v55, %v7136_v55  ;;  %v7952_v42 = vrot.slane %v7136_v55, %v23612_v18  ;;  %v7159_v57 = vcombine.high %v7143_v8, %v7143_v8  ;;  %v8008_v0 = vrot.slane %v7143_v8, %v23612_v18  ;;  %v21711_v55 = vld [vmem:[%s26610_s1 + $0x2e0] sm:$0xff]  }
 0x384   : > { %v5492_v11 = vcombine.high %v5484_v40, %v5484_v40  ;;  %v5493_v12 = vcombine.high %v24439_v21, %v24439_v21  ;;  %v7160_v25 = vcombine.high %v7150_v17, %v7150_v17  ;;  %v7161_v56 = vcombine.high %v7157_v46, %v7157_v46  ;;  %20063 = vmatprep.mubr.bf16.mxu1 %v21706_v14  ;;  %v8382_v14 = vld [vmem:[#allocation2 + $0x40] sm:$0xf] }
 0x385   : > { %v7959_v2 = vrot.slane %v7952_v42, %v23612_v18  ;;  %v7966_v45 = vrot.slane %v7150_v17, %v23612_v18  ;;  %v7980_v47 = vrot.slane %v7158_v24, %v23612_v18  ;;  %v8015_v4 = vrot.slane %v8008_v0, %v23612_v18  ;;  %20069 = vmatprep.subr.bf16.mxu1 %v21707_v38 }
 0x386   : > { %v8022_v13 = vrot.slane %v7157_v46, %v23612_v18  ;;  %v8036_v54 = vrot.slane %v7159_v57, %v23612_v18  ;;  %v7994_v49 = vrot.slane %v7160_v25, %v23612_v18  ;;  %v8050_v58 = vrot.slane %v7161_v56, %v23612_v18  ;;  %20070 = vmatpush3.bf16.msra.mxu1 %v21707_v38 }
 0x387   : > { %v7973_v7 = vrot.slane %v7966_v45, %v23612_v18  ;;  %v8114_v15 = vunpack.c.l.b16 %v7959_v2  ;;  %v7987_v3 = vrot.slane %v7980_v47, %v23612_v18  ;;  %v8118_v26 = vunpack.c.l.b16 %v8015_v4  ;;  %20071 = vmatprep.subr.bf16.mxu1 %v21708_v29  ;;  %v21712_v2 = vld [vmem:[%s26610_s1 + $0x2e8] sm:$0xff]  }
 0x388   : > { %v8029_v43 = vrot.slane %v8022_v13, %v23612_v18  ;;  %v8043_v53 = vrot.slane %v8036_v54, %v23612_v18  ;;  %v8001_v34 = vrot.slane %v7994_v49, %v23612_v18  ;;  %v8057_v10 = vrot.slane %v8050_v58, %v23612_v18 }
 0x389   : > { %v8115_v20 = vunpack.c.l.b16 %v7973_v7  ;;  %v5500_v62 = vrot.slane %v5484_v40, %v23597_v37  ;;  %v8116_v23 = vunpack.c.l.b16 %v7987_v3  ;;  %v8226_v61 = vrot.slane %v8118_v26, 4  ;;  %20064 = vmatmul.mubr.bf16.gmra.mrb[36].mxu1 %v21709_v16 }
 0x38a   : > { %v8119_v35 = vunpack.c.l.b16 %v8029_v43  ;;  %v8120_v50 = vunpack.c.l.b16 %v8043_v53  ;;  %v8117_v48 = vunpack.c.l.b16 %v8001_v34  ;;  %v8121_v30 = vunpack.c.l.b16 %v8057_v10  ;;  %20072 = vmatpush3.bf16.msra.mxu1 %v21708_v29  ;;  %v227_v53 = vld [vmem:[#allocation2 + $0x4] sm:$0x1] }
 0x38b   : > { %v8220_v39 = vrot.slane %v8115_v20, 7  ;;  %v5507_v19 = vrot.slane %v24439_v21, %v23597_v37  ;;  %v8222_v27 = vrot.slane %v8116_v23, 6  ;;  %v5514_v41 = vrot.slane %v5492_v11, %v23597_v37  ;;  %20073 = vmatprep.subr.bf16.mxu1 %v21710_v52 }
 0x38c   : > { %v8228_v63 = vrot.slane %v8119_v35, 3  ;;  %v8230_v5 = vrot.slane %v8120_v50, 2  ;;  %v8224_v9 = vrot.slane %v8117_v48, 5  ;;  %v8232_v22 = vrot.slane %v8121_v30, 1 }
 0x38d   : > { %v8221_v31 = vsel %vm6487_vm6, %v8220_v39, %v8114_v15  ;;  %v8301_v6 = vsel %vm6490_vm7, %v8220_v39, %v8114_v15  ;;  %v5521_v1 = vrot.slane %v5493_v12, %v23597_v37  ;;  %v5522_v51 = vcombine.high %v5500_v62, %v5500_v62 }
 0x38e   : > { %v8223_v32 = vsel %vm6490_vm7, %v8222_v27, %v8221_v31  ;;  %v8302_v60 = vsel %vm6493_vm8, %v8222_v27, %v8301_v6  ;;  %v8322_v40 = vpack.c.b16 %v8232_v22, %v8232_v22  ;;  %v5523_v21 = vcombine.high %v5507_v19, %v5507_v19  ;;  %20074 = vmatpush3.bf16.msra.mxu1 %v21710_v52  ;;  %v8739_v6 = vld [vmem:[#allocation2 + $0x8] sm:$0xf] }
 0x38f   : > { %v8225_v33 = vsel %vm6493_vm8, %v8224_v9, %v8223_v32  ;;  %v8303_v8 = vsel %vm6496_vm9, %v8224_v9, %v8302_v60  ;;  %v5524_v46 = vcombine.high %v5514_v41, %v5514_v41  ;;  %v5525_v24 = vcombine.high %v5521_v1, %v5521_v1  ;;  %20075 = vmatprep.subr.bf16.mxu1 %v21711_v55  ;;  %v21714_v32 = vld [vmem:[%s26610_s1 + $0x2f8] sm:$0xff]  }
 0x390   : > { %v8227_v28 = vsel %vm6496_vm9, %v8226_v61, %v8225_v33  ;;  %v8304_v17 = vsel %vm6499_vm10, %v8226_v61, %v8303_v8  ;;  %v8386_v57 = vsel %vm23492_vm5, %v8322_v40, %v8385_v59  ;;  %v6316_v0 = vrot.slane %v5500_v62, %v23612_v18  ;;  %v21713_v62 = vld [vmem:[%s26610_s1 + $0x2f0] sm:$0xff]  }
 0x391   : > { %v8229_v42 = vsel %vm6499_vm10, %v8228_v63, %v8227_v28  ;;  %v8305_v38 = vsel %vm6502_vm11, %v8228_v63, %v8304_v17  ;;  %8387 = vst [vmem:[#allocation2 + $0x44] sm:$0x1] %v8386_v57  ;;  %v6330_v25 = vrot.slane %v5514_v41, %v23612_v18  ;;  %v6344_v56 = vrot.slane %v5522_v51, %v23612_v18  ;;  %v6759_v17 = vld [vmem:[#allocation2 + $0xcc] sm:$0x1] }
 0x392   : > { %v8231_v11 = vsel %vm6502_vm11, %v8230_v5, %v8229_v42  ;;  %v8306_v12 = vsel %vm6505_vm12, %v8230_v5, %v8305_v38  ;;  %v6323_v4 = vrot.slane %v6316_v0, %v23612_v18  ;;  %v6358_v13 = vrot.slane %v5524_v46, %v23612_v18  ;;  %20076 = vmatpush3.bf16.msra.mxu1 %v21711_v55  ;;  %v8737_v5 = vld [vmem:[#allocation2] sm:$0xf]  ;;  %v8740_v0 = vld [vmem:[#allocation2 + $0xc] sm:$0x1] }
 0x393   : > { %v8233_v45 = vsel %vm6505_vm12, %v8232_v22, %v8231_v11  ;;  %v8321_v47 = vpack.c.b16 %v8306_v12, %v8306_v12  ;;  %v6337_v29 = vrot.slane %v6330_v25, %v23612_v18  ;;  %v6351_v7 = vrot.slane %v6344_v56, %v23612_v18  ;;  %20077 = vmatprep.subr.bf16.mxu1 %v21712_v2  ;;  %v24536_v12 = vld [vmem:[%s26610_s1 + $0x300] sm:$0xff]   ;;  %v6756_v56 = vld [vmem:[#allocation2 + $0xc8] sm:$0xf] }
 0x394   : > { %v8241_v54 = vpack.c.b16 %v8233_v45, %v8233_v45  ;;  %v6372_v49 = vrot.slane %v5507_v19, %v23612_v18  ;;  %v6365_v15 = vrot.slane %v6358_v13, %v23612_v18  ;;  %v6386_v3 = vrot.slane %v5521_v1, %v23612_v18 }
 0x395   : > { %v8383_v58 = vsel %vm23702_vm15, %v8321_v47, %v8382_v14  ;;  %v6400_v43 = vrot.slane %v5523_v21, %v23612_v18  ;;  %v6414_v34 = vrot.slane %v5525_v24, %v23612_v18  ;;  %v6478_v10 = vunpack.c.l.b16 %v6323_v4  ;;  %v8741_v47 = vld [vmem:[#allocation2 + $0x10] sm:$0xf] }
 0x396   : > { %8258 = vst [vmem:[#allocation2 + $0x88] sm:$0xf] %v8241_v54  ;;  %8384 = vst [vmem:[#allocation2 + $0x40] sm:$0xf] %v8383_v58  ;;  %v6379_v26 = vrot.slane %v6372_v49, %v23612_v18  ;;  %v6479_v20 = vunpack.c.l.b16 %v6337_v29  ;;  %v6393_v16 = vrot.slane %v6386_v3, %v23612_v18  ;;  %v6480_v35 = vunpack.c.l.b16 %v6351_v7  ;;  %20078 = vmatpush3.bf16.msra.mxu1 %v21712_v2 }
 0x397   : > { %v6407_v23 = vrot.slane %v6400_v43, %v23612_v18  ;;  %v6481_v50 = vunpack.c.l.b16 %v6365_v15  ;;  %v6421_v61 = vrot.slane %v6414_v34, %v23612_v18  ;;  %v228_v30 = vsel %vm23492_vm5, 0, %v227_v53  ;;  %20079 = vmatprep.subr.bf16.mxu1 %v21713_v62  ;;  %v8742_v43 = vld [vmem:[#allocation2 + $0x14] sm:$0x1]  ;;  %v8743_v53 = vld [vmem:[#allocation2 + $0x18] sm:$0xf] }
 0x398   : > { %v6482_v52 = vunpack.c.l.b16 %v6379_v26  ;;  %v6591_v48 = vrot.slane %v6479_v20, 7  ;;  %v6483_v39 = vunpack.c.l.b16 %v6393_v16  ;;  %v6593_v27 = vrot.slane %v6480_v35, 6  ;;  %229 = vst [vmem:[#allocation2 + $0x4] sm:$0x1] %v228_v30 }
 0x399   : > { %v6484_v19 = vunpack.c.l.b16 %v6407_v23  ;;  %v6595_v63 = vrot.slane %v6481_v50, 5  ;;  %v6485_v41 = vunpack.c.l.b16 %v6421_v61  ;;  %v8754_v40 = vshrl.u32 %v8737_v5, 16  ;;  %v8745_v50 = vld [vmem:[#allocation2 + $0x20] sm:$0xf] }
 0x39a   : > { %v6592_v31 = vsel %vm6487_vm6, %v6591_v48, %v6478_v10  ;;  %v6597_v9 = vrot.slane %v6482_v52, 4  ;;  %v6672_v22 = vsel %vm6490_vm7, %v6591_v48, %v6478_v10  ;;  %v6599_v59 = vrot.slane %v6483_v39, 3  ;;  %20080 = vmatpush3.bf16.msra.mxu1 %v21713_v62  ;;  %v8744_v10 = vld [vmem:[#allocation2 + $0x1c] sm:$0x1] }
 0x39b   : > { %v6594_v60 = vsel %vm6490_vm7, %v6593_v27, %v6592_v31  ;;  %v6601_v1 = vrot.slane %v6484_v19, 2  ;;  %v6673_v51 = vsel %vm6493_vm8, %v6593_v27, %v6672_v22  ;;  %v6603_v33 = vrot.slane %v6485_v41, 1  ;;  %20081 = vmatprep.subr.bf16.mxu1 %v21714_v32 }
 0x39c   : > { %v6596_v55 = vsel %vm6493_vm8, %v6595_v63, %v6594_v60  ;;  %v6674_v8 = vsel %vm6496_vm9, %v6595_v63, %v6673_v51  ;;  %v8757_v46 = vshll.u32 %v8737_v5, 16  ;;  %v8768_v24 = vshrl.u32 %v8739_v6, 16  ;;  %v8747_v5 = vld [vmem:[#allocation2 + $0x28] sm:$0xf] }
 0x39d   : > { %v6598_v21 = vsel %vm6496_vm9, %v6597_v9, %v6596_v55  ;;  %v6675_v28 = vsel %vm6499_vm10, %v6597_v9, %v6674_v8  ;;  %v6693_v57 = vpack.c.b16 %v6603_v33, %v6603_v33  ;;  %v8756_v11 = vrot.slane %v8754_v40, 4  ;;  %v8749_v55 = vld [vmem:[#allocation2 + $0x30] sm:$0xf] }
 0x39e   : > { %v6600_v42 = vsel %vm6499_vm10, %v6599_v59, %v6598_v21  ;;  %v6676_v38 = vsel %vm6502_vm11, %v6599_v59, %v6675_v28  ;;  %v8759_v2 = vrot.slane %v8757_v46, 5  ;;  %v8770_v45 = vrot.slane %v8768_v24, 4  ;;  %20082 = vmatpush3.bf16.msra.mxu1 %v21714_v32  ;;  %v8746_v59 = vld [vmem:[#allocation2 + $0x24] sm:$0x1]  ;;  %v8748_v21 = vld [vmem:[#allocation2 + $0x2c] sm:$0x1]  ;;  %vm24625_vm10 = vmand %vm370_vm0, %vm371_vm1 }
 0x39f   : > { %v6602_v14 = vsel %vm6502_vm11, %v6601_v1, %v6600_v42  ;;  %v6677_v25 = vsel %vm6505_vm12, %v6601_v1, %v6676_v38  ;;  %v6760_v54 = vsel %vm23492_vm5, %v6693_v57, %v6759_v17  ;;  %v8738_v29 = vld [vmem:[#allocation2 + $0x4] sm:$0x1]  ;;  %v8771_v7 = vshll.u32 %v8739_v6, 16  ;;  %20091 = vmatprep.subr.bf16.mxu1 %v24536_v12  ;;  %v8751_v17 = vld [vmem:[#allocation2 + $0x38] sm:$0xf] }
 0x3a0   : > { %v6604_v4 = vsel %vm6505_vm12, %v6603_v33, %v6602_v14  ;;  %v6692_v13 = vpack.c.b16 %v6677_v25, %v6677_v25  ;;  %6761 = vst [vmem:[#allocation2 + $0xcc] sm:$0x1] %v6760_v54  ;;  %v8760_v58 = vor.u32 %v8759_v2, %v8756_v11  ;;  %v8763_v15 = vshll.u32 %v8738_v29, 16 }
 0x3a1   : > { %v6612_v49 = vpack.c.b16 %v6604_v4, %v6604_v4  ;;  %v8777_v3 = vshll.u32 %v8740_v0, 16  ;;  %v8773_v34 = vrot.slane %v8771_v7, 5  ;;  %v8782_v20 = vshrl.u32 %v8741_v47, 16 }
 0x3a2   : > { %v6757_v26 = vsel %vm23702_vm15, %v6692_v13, %v6756_v56  ;;  %v8785_v62 = vshll.u32 %v8741_v47, 16  ;;  %v8761_v16 = vrot.slane %v8760_v58, 4  ;;  %v8765_v23 = vrot.slane %v8763_v15, 5  ;;  %v21716_v58 = vld [vmem:[%s26610_s1 + $0x308] sm:$0xff]   ;;  %v8750_v15 = vld [vmem:[#allocation2 + $0x34] sm:$0x1] }
 0x3a3   : > { %6629 = vst [vmem:[#allocation2 + $0x110] sm:$0xf] %v6612_v49  ;;  %6758 = vst [vmem:[#allocation2 + $0xc8] sm:$0xf] %v6757_v26  ;;  %v8779_v35 = vrot.slane %v8777_v3, 5  ;;  %v8774_v61 = vor.u32 %v8773_v34, %v8770_v45  ;;  %v8784_v52 = vrot.slane %v8782_v20, 4 }
 0x3a4   : > { %v8787_v48 = vrot.slane %v8785_v62, 5  ;;  %v8796_v30 = vshrl.u32 %v8743_v53, 16  ;;  %v8766_v44 = vsel %vm22291_vm2, %v8761_v16, %v8765_v23  ;;  %v8791_v19 = vshll.u32 %v8742_v43, 16  ;;  %v8752_v3 = vld [vmem:[#allocation2 + $0x3c] sm:$0x1] }
 0x3a5   : > { %v8799_v27 = vshll.u32 %v8743_v53, 16  ;;  %v8805_v63 = vshll.u32 %v8744_v10, 16  ;;  %v8775_v41 = vrot.slane %v8774_v61, 4  ;;  %v8810_v22 = vshrl.u32 %v8745_v50, 16  ;;  %v21717_v61 = vld [vmem:[%s26610_s1 + $0x310] sm:$0xff]  }
 0x3a6   : > { %v8788_v31 = vor.u32 %v8787_v48, %v8784_v52  ;;  %v8798_v9 = vrot.slane %v8796_v30, 4  ;;  %v8813_v32 = vshll.u32 %v8745_v50, 16  ;;  %v8824_v51 = vshrl.u32 %v8747_v5, 16 }
 0x3a7   : > { %v8801_v6 = vrot.slane %v8799_v27, 5  ;;  %v8780_v60 = vsel %vm22291_vm2, %v8775_v41, %v8779_v35  ;;  %v8812_v1 = vrot.slane %v8810_v22, 4  ;;  %v8793_v46 = vrot.slane %v8791_v19, 5  ;;  %v21719_v27 = vld [vmem:[%s26610_s1 + $0x318] sm:$0xff]   ;;  %v21721_v22 = vld [vmem:[%s26610_s1 + $0x328] sm:$0xff]  }
 0x3a8   : > { %v17786_v33 = vcombine.low %v8766_v44, %v8780_v60  ;;  %v8789_v8 = vrot.slane %v8788_v31, 4  ;;  %v8815_v28 = vrot.slane %v8813_v32, 5  ;;  %v8807_v24 = vrot.slane %v8805_v63, 5  ;;  %v21718_v31 = vld [vmem:[#allocation2 + $0x90] ss:$8 sps:$4 sm:$0xff]   ;;  %v21725_v60 = vld [vmem:[%s26610_s1 + $0x340] sm:$0xff]  }
 0x3a9   : > { %v8802_v40 = vor.u32 %v8801_v6, %v8798_v9  ;;  %v8826_v42 = vrot.slane %v8824_v51, 4  ;;  %v8827_v38 = vshll.u32 %v8747_v5, 16  ;;  %v8838_v11 = vshrl.u32 %v8749_v55, 16  ;;  %v21720_v9 = vld [vmem:[%s26610_s1 + $0x320] sm:$0xff]   ;;  %v21722_v6 = vld [vmem:[%s26610_s1 + $0x330] sm:$0xff]   ;;  %v21723_v32 = vld [vmem:[%s26610_s1 + $0x338] sm:$0xff]  }
 0x3aa   : > { %20083 = vmatprep.mubr.bf16.mxu1 %v17786_v33  ;;  %v8816_v0 = vor.u32 %v8815_v28, %v8812_v1  ;;  %v8841_v14 = vshll.u32 %v8749_v55, 16  ;;  %v8819_v25 = vshll.u32 %v8746_v59, 16  ;;  %v8833_v2 = vshll.u32 %v8748_v21, 16  ;;  %v21724_v59 = vld [vmem:[#allocation2 + $0xa0] ss:$8 sps:$4 sm:$0xff]   ;;  %v21729_v55 = vld [vmem:[%s26610_s1 + $0x350] sm:$0xff]  }
 0x3ab   : > { %v8803_v57 = vrot.slane %v8802_v40, 4  ;;  %v8829_v56 = vrot.slane %v8827_v38, 5  ;;  %v8852_v45 = vshrl.u32 %v8751_v17, 16  ;;  %v8794_v47 = vsel %vm22291_vm2, %v8789_v8, %v8793_v46  ;;  %v21727_v1 = vld [vmem:[%s26610_s1 + $0x348] sm:$0xff]   ;;  %v21726_v51 = vld [vmem:[#allocation2 + $0xb0] ss:$8 sps:$4 sm:$0xff]  }
 0x3ac   : > { %v8840_v13 = vrot.slane %v8838_v11, 4  ;;  %v8843_v54 = vrot.slane %v8841_v14, 5  ;;  %v8817_v7 = vrot.slane %v8816_v0, 4  ;;  %v8855_v26 = vshll.u32 %v8751_v17, 16  ;;  %v21728_v33 = vld [vmem:[#allocation2 + $0xc0] ss:$8 sps:$4 sm:$0xff]  }
 0x3ad   : > { %v8808_v4 = vsel %vm22291_vm2, %v8803_v57, %v8807_v24  ;;  %v8830_v49 = vor.u32 %v8829_v56, %v8826_v42  ;;  %v8854_v53 = vrot.slane %v8852_v45, 4  ;;  %v8821_v34 = vrot.slane %v8819_v25, 5  ;;  %v21731_v8 = vld [vmem:[%s26610_s1 + $0x358] sm:$0xff]   ;;  %v21732_v21 = vld [vmem:[%s26610_s1 + $0x360] sm:$0xff]   ;;  %v21733_v28 = vld [vmem:[%s26610_s1 + $0x368] sm:$0xff]  }
 0x3ae   : > { %v17787_v29 = vcombine.low %v8794_v47, %v8808_v4  ;;  %v8844_v43 = vor.u32 %v8843_v54, %v8840_v13  ;;  %v8835_v20 = vrot.slane %v8833_v2, 5  ;;  %v8847_v62 = vshll.u32 %v8750_v15, 16  ;;  %v21730_v40 = vld [vmem:[#allocation2 + $0xd8] ss:$8 sps:$4 sm:$0xff]   ;;  %v21734_v46 = vld [vmem:[%s26610_s1 + $0x370] sm:$0xff]  }
 0x3af   : > { %v8831_v10 = vrot.slane %v8830_v49, 4  ;;  %v8857_v16 = vrot.slane %v8855_v26, 5  ;;  %v8861_v23 = vshll.u32 %v8752_v3, 16  ;;  %v8822_v35 = vsel %vm22291_vm2, %v8817_v7, %v8821_v34  ;;  %v9361_v17 = vld [vmem:[#allocation2 + $0x98] sm:$0xf]  ;;  %v21737_v56 = vld [vmem:[%s26610_s1 + $0x380] sm:$0xff]  }
 0x3b0   : > { %20084 = vmatmul.mubr.bf16.vlgmr.msra.gmra.mrb[32].mxu1 %v17787_v29  ;;  %v8845_v48 = vrot.slane %v8844_v43, 4  ;;  %v9359_v24 = vld [vmem:[#allocation2 + $0x90] sm:$0xf]  ;;  %v9390_v42 = vshrl.u32 %v9361_v17, 16  ;;  %v9393_v38 = vshll.u32 %v9361_v17, 16  ;;  %v21735_v57 = vld [vmem:[%s26610_s1 + $0x378] sm:$0xff]  }
 0x3b1   : > { %20092 = vmatpush3.bf16.msra.mxu1 %v24536_v12  ;;  %v8836_v50 = vsel %vm22291_vm2, %v8831_v10, %v8835_v20  ;;  %v8858_v30 = vor.u32 %v8857_v16, %v8854_v53  ;;  %v8849_v12 = vrot.slane %v8847_v62, 5  ;;  %v8863_v19 = vrot.slane %v8861_v23, 5  ;;  %v9362_v47 = vld [vmem:[#allocation2 + $0x9c] sm:$0x1]  ;;  %v9360_v13 = vld [vmem:[#allocation2 + $0x94] sm:$0x1] }
 0x3b2   : > { %20093 = vmatprep.subr.bf16.mxu1 %v21716_v58  ;;  %v17788_v52 = vcombine.low %v8822_v35, %v8836_v50  ;;  %v9376_v0 = vshrl.u32 %v9359_v24, 16  ;;  %v9379_v11 = vshll.u32 %v9359_v24, 16  ;;  %v9392_v14 = vrot.slane %v9390_v42, 4  ;;  %v21736_v54 = vld [vmem:[#allocation2 + $0xe8] ss:$8 sps:$4 sm:$0xff]   ;;  %v21742_v16 = vld [vmem:[%s26610_s1 + $0x398] sm:$0xff]  }
 0x3b3   : > { %v8859_v44 = vrot.slane %v8858_v30, 4  ;;  %v8850_v63 = vsel %vm22291_vm2, %v8845_v48, %v8849_v12  ;;  %v9395_v25 = vrot.slane %v9393_v38, 5  ;;  %v21739_v29 = vld [vmem:[%s26610_s1 + $0x388] sm:$0xff]   ;;  %v9399_v49 = vshll.u32 %v9362_v47, 16  ;;  %v21741_v43 = vld [vmem:[%s26610_s1 + $0x390] sm:$0xff]  }
 0x3b4   : > { %20087 = vmatprep.mubr.bf16.mxu1 %v17788_v52  ;;  %v9378_v2 = vrot.slane %v9376_v0, 4  ;;  %v9381_v45 = vrot.slane %v9379_v11, 5  ;;  %v9385_v15 = vshll.u32 %v9360_v13, 16  ;;  %v21740_v20 = vld [vmem:[#allocation2 + $0x108] ss:$8 sps:$4 sm:$0xff]  }
 0x3b5   : > { %20094 = vmatpush3.bf16.msra.mxu1 %v21716_v58  ;;  %v8864_v5 = vsel %vm22291_vm2, %v8859_v44, %v8863_v19  ;;  %v9396_v4 = vor.u32 %v9395_v25, %v9392_v14  ;;  %v21738_v58 = vld [vmem:[#allocation2 + $0xf8] ss:$8 sps:$4 sm:$0xff]   ;;  %v9401_v26 = vrot.slane %v9399_v49, 5  ;;  %v430_v35 = vld [vmem:[#allocation3 + $0x4c] sm:$0x7]  ;;  %v21745_v42 = vld [vmem:[%s26610_s1 + $0x3b0] sm:$0xff]  }
 0x3b6   : > { %20095 = vmatprep.subr.bf16.mxu1 %v21717_v61  ;;  %v17789_v41 = vcombine.low %v8850_v63, %v8864_v5  ;;  %v9382_v7 = vor.u32 %v9381_v45, %v9378_v2  ;;  %v9387_v34 = vrot.slane %v9385_v15, 5  ;;  %v415_v23 = vld [vmem:[#allocation3 + $0x38] sm:$0x7]  ;;  %v9363_v52 = vld [vmem:[#allocation2 + $0xa0] sm:$0xf] }
 0x3b7   : > { %v9397_v3 = vrot.slane %v9396_v4, 4  ;;  %v406_v48 = vld [vmem:[#allocation3 + $0x2c] sm:$0x7]  ;;  %v9369_v30 = vld [vmem:[#allocation2 + $0xb8] sm:$0xf]  ;;  %v21743_v19 = vld [vmem:[%s26610_s1 + $0x3a0] sm:$0xff]  }
 0x3b8   : > { %20088 = vmatmul.mubr.bf16.gmra.mrb[36].mxu1 %v17789_v41  ;;  %v9383_v53 = vrot.slane %v9382_v7, 4  ;;  %v421_v44 = vld [vmem:[#allocation3 + $0x40] sm:$0x7]  ;;  %v416_v63 = vsel %vm24625_vm10, 0, %v415_v23  ;;  %v431_v41 = vsel %vm24625_vm10, 0, %v430_v35  ;;  %v21746_v7 = vld [vmem:[%s26610_s1 + $0x3b8] sm:$0xff]  }
 0x3b9   : > { %20096 = vmatpush3.bf16.msra.mxu1 %v21717_v61  ;;  %20107 = vmatprep.mubr.bf16.mxu1 %v21718_v31  ;;  %v9402_v10 = vsel %vm22291_vm2, %v9397_v3, %v9401_v26  ;;  %v9365_v61 = vld [vmem:[#allocation2 + $0xa8] sm:$0xf]  ;;  %v422_v5 = vsel %vm24625_vm10, 0, %v421_v44  ;;  %417 = vst [vmem:[#allocation3 + $0x38] sm:$0x7] %v416_v63  ;;  %v21747_v23 = vld [vmem:[%s26610_s1 + $0x3c0] sm:$0xff]  }
 0x3ba   : > { %20097 = vmatprep.subr.bf16.mxu1 %v21719_v27  ;;  %v9388_v62 = vsel %vm22291_vm2, %v9383_v53, %v9387_v34  ;;  %v9418_v31 = vshrl.u32 %v9365_v61, 16  ;;  %423 = vst [vmem:[#allocation3 + $0x40] sm:$0x7] %v422_v5  ;;  %432 = vst [vmem:[#allocation3 + $0x4c] sm:$0x7] %v431_v41 }
 0x3bb   : > { %v17870_v50 = vcombine.low %v9388_v62, %v9402_v10  ;;  %v9366_v17 = vld [vmem:[#allocation2 + $0xac] sm:$0x1]  ;;  %v9371_v0 = vld [vmem:[#allocation2 + $0xc0] sm:$0xf]  ;;  %v9370_v14 = vld [vmem:[#allocation2 + $0xbc] sm:$0x1] }
 0x3bc   : > { %v9364_v2 = vld [vmem:[#allocation2 + $0xa4] sm:$0x1]  ;;  %v9427_v4 = vshll.u32 %v9366_v17, 16  ;;  %v9368_v13 = vld [vmem:[#allocation2 + $0xb4] sm:$0x1] }
 0x3bd   : > { %20098 = vmatpush3.bf16.msra.mxu1 %v21719_v27  ;;  %v407_v27 = vsel %vm24625_vm10, 0, %v406_v48  ;;  %v9413_v15 = vshll.u32 %v9364_v2, 16  ;;  %v9441_v26 = vshll.u32 %v9368_v13, 16  ;;  %v21752_v17 = vld [vmem:[%s26610_s1 + $0x3e0] sm:$0xff]   ;;  %v21762_v2 = vld [vmem:[#allocation2 + $0x50] ss:$8 sps:$4 sm:$0xff]  }
 0x3be   : > { %20099 = vmatprep.subr.bf16.mxu1 %v21720_v9  ;;  %408 = vst [vmem:[#allocation3 + $0x2c] sm:$0x7] %v407_v27  ;;  %v9372_v27 = vld [vmem:[#allocation2 + $0xc4] sm:$0x1]  ;;  %v21766_v13 = vld [vmem:[%s26610_s1 + $0x430] sm:$0xff]  }
 0x3bf   : > { %v9443_v44 = vrot.slane %v9441_v26, 5  ;;  %vm10689_vm12 = vsmask.f32 2306  ;;  %vm440_vm15 = vsmask.f32 1280 }
 0x3c0   : > { %vm24877_vm13 = vmand %vm370_vm0, %vm10689_vm12  ;;  %vm11426_vm0 = vsmask.f32 3336  ;;  %vm11430_vm12 = vsmask.f32 7448 }
 0x3c1   : > { %20100 = vmatpush3.bf16.msra.mxu1 %v21720_v9  ;;  %v9421_v9 = vshll.u32 %v9365_v61, 16  ;;  %v9374_v61 = vld [vmem:[#allocation2 + $0xcc] sm:$0x1]  ;;  %vm11427_vm1 = vmor %vm440_vm15, %vm11426_vm0 }
 0x3c2   : > { %20101 = vmatprep.subr.bf16.mxu1 %v21721_v22  ;;  %v9483_v41 = vshll.u32 %v9374_v61, 16  ;;  %v21770_v61 = vld [vmem:[#allocation2 + $0x70] ss:$8 sps:$4 sm:$0xff]  }
 0x3c5   : > { %20102 = vmatpush3.bf16.msra.mxu1 %v21721_v22  ;;  %v9367_v22 = vld [vmem:[#allocation2 + $0xb0] sm:$0xf] }
 0x3c6   : > { %20103 = vmatprep.subr.bf16.mxu1 %v21722_v6 }
 0x3c9   : > { %20104 = vmatpush3.bf16.msra.mxu1 %v21722_v6  ;;  %v9446_v6 = vshrl.u32 %v9369_v30, 16 }
 0x3ca   : > { %20105 = vmatprep.subr.bf16.mxu1 %v21723_v32 }
 0x3cd   : > { %20106 = vmatpush3.bf16.msra.mxu1 %v21723_v32  ;;  %v9449_v32 = vshll.u32 %v9369_v30, 16 }
 0x3ce   : > { %20115 = vmatprep.subr.bf16.mxu1 %v21725_v60 }
 0x3d0   : > { %20108 = vmatmul.mubr.bf16.vlgmr.msra.gmra.mrb[32].mxu1 %v21724_v59  ;;  %v9407_v59 = vshll.u32 %v9363_v52, 16 }
 0x3d1   : > { %20111 = vmatprep.mubr.bf16.mxu1 %v21726_v51  ;;  %20116 = vmatpush3.bf16.msra.mxu1 %v21725_v60  ;;  %v9404_v60 = vshrl.u32 %v9363_v52, 16  ;;  %v9432_v51 = vshrl.u32 %v9367_v22, 16  ;;  %v9415_v52 = vrot.slane %v9413_v15, 5 }
 0x3d2   : > { %20117 = vmatprep.subr.bf16.mxu1 %v21727_v1  ;;  %v9409_v24 = vrot.slane %v9407_v59, 5 }
 0x3d3   : > { %v9434_v38 = vrot.slane %v9432_v51, 4  ;;  %v21749_v51 = vld [vmem:[%s26610_s1 + $0x3d0] sm:$0xff]  }
 0x3d5   : > { %20118 = vmatpush3.bf16.msra.mxu1 %v21727_v1  ;;  %v21744_v1 = vld [vmem:[%s26610_s1 + $0x3a8] sm:$0xff]  }
 0x3d6   : > { %20119 = vmatprep.subr.bf16.mxu1 %v21729_v55 }
 0x3d8   : > { %20112 = vmatmul.mubr.bf16.gmra.mrb[36].mxu1 %v21728_v33  ;;  %v9420_v33 = vrot.slane %v9418_v31, 4 }
 0x3d9   : > { %20120 = vmatpush3.bf16.msra.mxu1 %v21729_v55  ;;  %20131 = vmatprep.mubr.bf16.mxu1 %v21730_v40  ;;  %v9435_v55 = vshll.u32 %v9367_v22, 16  ;;  %v9448_v40 = vrot.slane %v9446_v6, 4  ;;  %v21748_v22 = vld [vmem:[%s26610_s1 + $0x3c8] sm:$0xff]  }
 0x3da   : > { %20121 = vmatprep.subr.bf16.mxu1 %v21731_v8 }
 0x3dd   : > { %20122 = vmatpush3.bf16.msra.mxu1 %v21731_v8  ;;  %v9423_v8 = vrot.slane %v9421_v9, 5 }
 0x3de   : > { %20123 = vmatprep.subr.bf16.mxu1 %v21732_v21 }
 0x3df   : > { %v9424_v11 = vor.u32 %v9423_v8, %v9420_v33 }
 0x3e1   : > { %20124 = vmatpush3.bf16.msra.mxu1 %v21732_v21  ;;  %v9451_v21 = vrot.slane %v9449_v32, 5  ;;  %v9425_v3 = vrot.slane %v9424_v11, 4  ;;  %v9469_v32 = vshll.u32 %v9372_v27, 16  ;;  %v21758_v11 = vld [vmem:[#allocation2 + $0x28] ss:$8 sps:$4 sm:$0xff]  }
 0x3e2   : > { %20125 = vmatprep.subr.bf16.mxu1 %v21733_v28 }
 0x3e3   : > { %v9452_v45 = vor.u32 %v9451_v21, %v9448_v40  ;;  %v21751_v21 = vld [vmem:[%s26610_s1 + $0x3d8] sm:$0xff]  }
 0x3e5   : > { %20126 = vmatpush3.bf16.msra.mxu1 %v21733_v28  ;;  %v9373_v28 = vld [vmem:[#allocation2 + $0xc8] sm:$0xf]  ;;  %v9453_v34 = vrot.slane %v9452_v45, 4  ;;  %v21764_v45 = vld [vmem:[%s26610_s1 + $0x420] sm:$0xff]  }
 0x3e6   : > { %20127 = vmatprep.subr.bf16.mxu1 %v21734_v46  ;;  %v9474_v25 = vshrl.u32 %v9373_v28, 16 }
 0x3e9   : > { %20128 = vmatpush3.bf16.msra.mxu1 %v21734_v46  ;;  %v9406_v46 = vrot.slane %v9404_v60, 4 }
 0x3ea   : > { %20129 = vmatprep.subr.bf16.mxu1 %v21735_v57 }
 0x3eb   : > { %v9410_v47 = vor.u32 %v9409_v24, %v9406_v46  ;;  %v21753_v46 = vld [vmem:[%s26610_s1 + $0x3e8] sm:$0xff]   ;;  %v21754_v24 = vld [vmem:[%s26610_s1 + $0x3f0] sm:$0xff]  }
 0x3ed   : > { %20130 = vmatpush3.bf16.msra.mxu1 %v21735_v57  ;;  %v9437_v57 = vrot.slane %v9435_v55, 5  ;;  %v9411_v10 = vrot.slane %v9410_v47, 4  ;;  %v9471_v55 = vrot.slane %v9469_v32, 5  ;;  %v21765_v47 = vld [vmem:[%s26610_s1 + $0x428] sm:$0xff]   ;;  %v21775_v32 = vld [vmem:[%s26610_s1 + $0x460] sm:$0xff]  }
 0x3ee   : > { %20139 = vmatprep.subr.bf16.mxu1 %v21737_v56 }
 0x3ef   : > { %v9438_v49 = vor.u32 %v9437_v57, %v9434_v38  ;;  %v9416_v63 = vsel %vm22291_vm2, %v9411_v10, %v9415_v52  ;;  %v21757_v38 = vld [vmem:[%s26610_s1 + $0x400] sm:$0xff]   ;;  %v9984_v10 = vld [vmem:[#allocation2 + $0x14] sm:$0x1] }
 0x3f0   : > { %20132 = vmatmul.mubr.bf16.vlgmr.msra.gmra.mrb[32].mxu1 %v21736_v54  ;;  %v9460_v54 = vshrl.u32 %v9371_v0, 16  ;;  %v21756_v57 = vld [vmem:[#allocation2 + $0x18] ss:$8 sps:$4 sm:$0xff]  }
 0x3f1   : > { %20135 = vmatprep.mubr.bf16.mxu1 %v21738_v58  ;;  %20140 = vmatpush3.bf16.msra.mxu1 %v21737_v56  ;;  %v9477_v56 = vshll.u32 %v9373_v28, 16  ;;  %v9455_v58 = vshll.u32 %v9370_v14, 16  ;;  %v9439_v35 = vrot.slane %v9438_v49, 4  ;;  %v21750_v28 = vld [vmem:[#allocation2 + $0x8] ss:$8 sps:$4 sm:$0xff]   ;;  %v21767_v49 = vld [vmem:[%s26610_s1 + $0x438] sm:$0xff]  }
 0x3f2   : > { %20141 = vmatprep.subr.bf16.mxu1 %v21739_v29  ;;  %v9462_v62 = vrot.slane %v9460_v54, 4  ;;  %v21761_v14 = vld [vmem:[%s26610_s1 + $0x410] sm:$0xff]   ;;  %v9981_v54 = vld [vmem:[#allocation2 + $0x8] sm:$0xf] }
 0x3f3   : > { %v9479_v53 = vrot.slane %v9477_v56, 5  ;;  %v9444_v9 = vsel %vm22291_vm2, %v9439_v35, %v9443_v44  ;;  %v21763_v56 = vld [vmem:[%s26610_s1 + $0x418] sm:$0xff]   ;;  %v10001_v15 = vshll.u32 %v9981_v54, 16 }
 0x3f5   : > { %20142 = vmatpush3.bf16.msra.mxu1 %v21739_v29  ;;  %v9463_v29 = vshll.u32 %v9371_v0, 16  ;;  %v21759_v0 = vld [vmem:[%s26610_s1 + $0x408] sm:$0xff]  }
 0x3f6   : > { %20143 = vmatprep.subr.bf16.mxu1 %v21741_v43 }
 0x3f8   : > { %20136 = vmatmul.mubr.bf16.gmra.mrb[36].mxu1 %v21740_v20  ;;  %v9429_v20 = vrot.slane %v9427_v4, 5  ;;  %v9983_v4 = vld [vmem:[#allocation2 + $0x10] sm:$0xf] }
 0x3f9   : > { %20144 = vmatpush3.bf16.msra.mxu1 %v21741_v43  ;;  %20155 = vmatprep.mubr.bf16.mxu1 %v17870_v50  ;;  %v9476_v43 = vrot.slane %v9474_v25, 4  ;;  %v9457_v50 = vrot.slane %v9455_v58, 5  ;;  %v21760_v25 = vld [vmem:[#allocation2 + $0x38] ss:$8 sps:$4 sm:$0xff]   ;;  %v9998_v58 = vshrl.u32 %v9981_v54, 16 }
 0x3fa   : > { %20145 = vmatprep.subr.bf16.mxu1 %v21742_v16  ;;  %v9430_v48 = vsel %vm22291_vm2, %v9425_v3, %v9429_v20 }
 0x3fb   : > { %v9480_v30 = vor.u32 %v9479_v53, %v9476_v43  ;;  %v17871_v31 = vcombine.low %v9416_v63, %v9430_v48  ;;  %v21769_v53 = vld [vmem:[%s26610_s1 + $0x440] sm:$0xff]   ;;  %v10000_v26 = vrot.slane %v9998_v58, 4 }
 0x3fd   : > { %20146 = vmatpush3.bf16.msra.mxu1 %v21742_v16  ;;  %v9465_v16 = vrot.slane %v9463_v29, 5  ;;  %v9481_v60 = vrot.slane %v9480_v30, 4  ;;  %v10012_v29 = vshrl.u32 %v9983_v4, 16  ;;  %v21773_v30 = vld [vmem:[%s26610_s1 + $0x450] sm:$0xff]  }
 0x3fe   : > { %20147 = vmatprep.subr.bf16.mxu1 %v21743_v19 }
 0x3ff   : > { %v9466_v5 = vor.u32 %v9465_v16, %v9462_v62  ;;  %v10014_v3 = vrot.slane %v10012_v29, 4  ;;  %v9982_v62 = vld [vmem:[#allocation2 + $0xc] sm:$0x1]  ;;  %v21768_v16 = vld [vmem:[#allocation2 + $0x60] ss:$8 sps:$4 sm:$0xff]  }
 0x400   : > { %v10007_v52 = vshll.u32 %v9982_v62, 16  ;;  %v9986_v29 = vld [vmem:[#allocation2 + $0x1c] sm:$0x1] }
 0x401   : > { %20148 = vmatpush3.bf16.msra.mxu1 %v21743_v19  ;;  %v9458_v19 = vsel %vm22291_vm2, %v9453_v34, %v9457_v50  ;;  %v9467_v59 = vrot.slane %v9466_v5, 4  ;;  %v10003_v34 = vrot.slane %v10001_v15, 5  ;;  %v10021_v50 = vshll.u32 %v9984_v10, 16  ;;  %v21772_v5 = vld [vmem:[#allocation2 + $0x80] ss:$8 sps:$4 sm:$0xff]  }
 0x402   : > { %20149 = vmatprep.subr.bf16.mxu1 %v21744_v1  ;;  %v17872_v6 = vcombine.low %v9444_v9, %v9458_v19  ;;  %v10009_v27 = vrot.slane %v10007_v52, 5  ;;  %v9990_v15 = vld [vmem:[#allocation2 + $0x2c] sm:$0x1]  ;;  %v10035_v10 = vshll.u32 %v9986_v29, 16  ;;  %v424_v29 = vld [vmem:[#allocation3 + $0x44] sm:$0x7] }
 0x403   : > { %v9472_v8 = vsel %vm22291_vm2, %v9467_v59, %v9471_v55  ;;  %v10004_v35 = vor.u32 %v10003_v34, %v10000_v26  ;;  %v10023_v19 = vrot.slane %v10021_v50, 5 }
 0x405   : > { %20150 = vmatpush3.bf16.msra.mxu1 %v21744_v1  ;;  %v9485_v1 = vrot.slane %v9483_v41, 5  ;;  %v10005_v44 = vrot.slane %v10004_v35, 4 }
 0x406   : > { %20151 = vmatprep.subr.bf16.mxu1 %v21745_v42 }
 0x407   : > { %v9486_v33 = vsel %vm22291_vm2, %v9481_v60, %v9485_v1  ;;  %v10010_v41 = vsel %vm22291_vm2, %v10005_v44, %v10009_v27  ;;  %v9985_v60 = vld [vmem:[#allocation2 + $0x18] sm:$0xf]  ;;  %v10037_v27 = vrot.slane %v10035_v10, 5 }
 0x408   : > { %v17873_v40 = vcombine.low %v9472_v8, %v9486_v33  ;;  %v10026_v8 = vshrl.u32 %v9985_v60, 16 }
 0x409   : > { %20152 = vmatpush3.bf16.msra.mxu1 %v21745_v42  ;;  %v21755_v42 = vld [vmem:[%s26610_s1 + $0x3f8] sm:$0xff]  }
 0x40a   : > { %20153 = vmatprep.subr.bf16.mxu1 %v21746_v7 }
 0x40d   : > { %20154 = vmatpush3.bf16.msra.mxu1 %v21746_v7  ;;  %v10015_v7 = vshll.u32 %v9983_v4, 16  ;;  %v9992_v4 = vld [vmem:[#allocation2 + $0x34] sm:$0x1] }
 0x40e   : > { %20163 = vmatprep.subr.bf16.mxu1 %v21747_v23  ;;  %v10077_v34 = vshll.u32 %v9992_v4, 16 }
 0x40f   : > { %v10017_v43 = vrot.slane %v10015_v7, 5 }
 0x410   : > { %20156 = vmatmul.mubr.bf16.vlgmr.msra.gmra.mrb[32].mxu1 %v17871_v31  ;;  %v21774_v31 = vld [vmem:[%s26610_s1 + $0x458] sm:$0xff]   ;;  %v10079_v44 = vrot.slane %v10077_v34, 5 }
 0x411   : > { %20159 = vmatprep.mubr.bf16.mxu1 %v17872_v6  ;;  %20164 = vmatpush3.bf16.msra.mxu1 %v21747_v23  ;;  %v10018_v20 = vor.u32 %v10017_v43, %v10014_v3  ;;  %v21771_v23 = vld [vmem:[%s26610_s1 + $0x448] sm:$0xff]   ;;  %v9991_v6 = vld [vmem:[#allocation2 + $0x30] sm:$0xf] }
 0x412   : > { %20165 = vmatprep.subr.bf16.mxu1 %v21748_v22  ;;  %v10068_v55 = vshrl.u32 %v9991_v6, 16  ;;  %v10071_v33 = vshll.u32 %v9991_v6, 16 }
 0x413   : > { %v10019_v48 = vrot.slane %v10018_v20, 4 }
 0x415   : > { %20166 = vmatpush3.bf16.msra.mxu1 %v21748_v22  ;;  %v10024_v63 = vsel %vm22291_vm2, %v10019_v48, %v10023_v19  ;;  %v9987_v22 = vld [vmem:[#allocation2 + $0x20] sm:$0xf]  ;;  %v9996_v19 = vld [vmem:[#allocation2 + $0x44] sm:$0x1] }
 0x416   : > { %20167 = vmatprep.subr.bf16.mxu1 %v21749_v51  ;;  %v17954_v9 = vcombine.low %v10010_v41, %v10024_v63  ;;  %v10040_v59 = vshrl.u32 %v9987_v22, 16  ;;  %v10043_v1 = vshll.u32 %v9987_v22, 16 }
 0x418   : > { %20160 = vmatmul.mubr.bf16.gmra.mrb[36].mxu1 %v17873_v40  ;;  %v10029_v40 = vshll.u32 %v9985_v60, 16 }
 0x419   : > { %20168 = vmatpush3.bf16.msra.mxu1 %v21749_v51  ;;  %20179 = vmatprep.mubr.bf16.mxu1 %v21750_v28  ;;  %v9989_v51 = vld [vmem:[#allocation2 + $0x28] sm:$0xf] }
 0x41a   : > { %20169 = vmatprep.subr.bf16.mxu1 %v21751_v21  ;;  %v10054_v28 = vshrl.u32 %v9989_v51, 16 }
 0x41d   : > { %20170 = vmatpush3.bf16.msra.mxu1 %v21751_v21  ;;  %v21776_v21 = vld [vmem:[%s26610_s1 + $0x468] sm:$0xff]  }
 0x41e   : > { %20171 = vmatprep.subr.bf16.mxu1 %v21752_v17 }
 0x421   : > { %20172 = vmatpush3.bf16.msra.mxu1 %v21752_v17  ;;  %v10057_v17 = vshll.u32 %v9989_v51, 16 }
 0x422   : > { %20173 = vmatprep.subr.bf16.mxu1 %v21753_v46 }
 0x425   : > { %20174 = vmatpush3.bf16.msra.mxu1 %v21753_v46  ;;  %v10042_v46 = vrot.slane %v10040_v59, 4 }
 0x426   : > { %20175 = vmatprep.subr.bf16.mxu1 %v21754_v24 }
 0x429   : > { %20176 = vmatpush3.bf16.msra.mxu1 %v21754_v24  ;;  %v10045_v24 = vrot.slane %v10043_v1, 5 }
 0x42a   : > { %20177 = vmatprep.subr.bf16.mxu1 %v21755_v42 }
 0x42d   : > { %20178 = vmatpush3.bf16.msra.mxu1 %v21755_v42  ;;  %v10070_v42 = vrot.slane %v10068_v55, 4 }
 0x42e   : > { %20187 = vmatprep.subr.bf16.mxu1 %v21757_v38 }
 0x430   : > { %20180 = vmatmul.mubr.bf16.vlgmr.msra.gmra.mrb[32].mxu1 %v21756_v57  ;;  %v9995_v57 = vld [vmem:[#allocation2 + $0x40] sm:$0xf] }
 0x431   : > { %20183 = vmatprep.mubr.bf16.mxu1 %v21758_v11  ;;  %20188 = vmatpush3.bf16.msra.mxu1 %v21757_v38  ;;  %v10073_v38 = vrot.slane %v10071_v33, 5  ;;  %v10028_v11 = vrot.slane %v10026_v8, 4  ;;  %v10099_v54 = vshll.u32 %v9995_v57, 16 }
 0x432   : > { %20189 = vmatprep.subr.bf16.mxu1 %v21759_v0 }
 0x433   : > { %v10074_v7 = vor.u32 %v10073_v38, %v10070_v42 }
 0x435   : > { %20190 = vmatpush3.bf16.msra.mxu1 %v21759_v0  ;;  %v9988_v0 = vld [vmem:[#allocation2 + $0x24] sm:$0x1]  ;;  %v10075_v35 = vrot.slane %v10074_v7, 4 }
 0x436   : > { %20191 = vmatprep.subr.bf16.mxu1 %v21761_v14  ;;  %v10049_v58 = vshll.u32 %v9988_v0, 16  ;;  %v394_v0 = vld [vmem:[#allocation3 + $0x1c] sm:$0x7] }
 0x437   : > { %v395_v39 = vsel %vm24625_vm10, 0, %v394_v0 }
 0x438   : > { %20184 = vmatmul.mubr.bf16.gmra.mrb[36].mxu1 %v21760_v25  ;;  %v21777_v25 = vld [vmem:[%s26610_s1 + $0x470] sm:$0xff]   ;;  %396 = vst [vmem:[#allocation3 + $0x1c] sm:$0x7] %v395_v39 }
 0x439   : > { %20192 = vmatpush3.bf16.msra.mxu1 %v21761_v14  ;;  %20203 = vmatprep.mubr.bf16.mxu1 %v21762_v2  ;;  %v10031_v14 = vrot.slane %v10029_v40, 5  ;;  %v10059_v2 = vrot.slane %v10057_v17, 5 }
 0x43a   : > { %20193 = vmatprep.subr.bf16.mxu1 %v21763_v56 }
 0x43d   : > { %20194 = vmatpush3.bf16.msra.mxu1 %v21763_v56  ;;  %v10056_v56 = vrot.slane %v10054_v28, 4 }
 0x43e   : > { %20195 = vmatprep.subr.bf16.mxu1 %v21764_v45 }
 0x43f   : > { %v10060_v26 = vor.u32 %v10059_v2, %v10056_v56 }
 0x441   : > { %20196 = vmatpush3.bf16.msra.mxu1 %v21764_v45  ;;  %v9993_v45 = vld [vmem:[#allocation2 + $0x38] sm:$0xf] }
 0x442   : > { %20197 = vmatprep.subr.bf16.mxu1 %v21765_v47  ;;  %v10082_v3 = vshrl.u32 %v9993_v45, 16  ;;  %v10085_v43 = vshll.u32 %v9993_v45, 16  ;;  %v412_v45 = vld [vmem:[#allocation3 + $0x34] sm:$0x7] }
 0x443   : > { %v413_v4 = vsel %vm24625_vm10, 0, %v412_v45 }
 0x444   : > { %v10084_v52 = vrot.slane %v10082_v3, 4  ;;  %v10087_v48 = vrot.slane %v10085_v43, 5  ;;  %414 = vst [vmem:[#allocation3 + $0x34] sm:$0x7] %v413_v4 }
 0x445   : > { %20198 = vmatpush3.bf16.msra.mxu1 %v21765_v47  ;;  %v10046_v47 = vor.u32 %v10045_v24, %v10042_v46  ;;  %v403_v46 = vld [vmem:[#allocation3 + $0x28] sm:$0x7]  ;;  %v418_v24 = vld [vmem:[#allocation3 + $0x3c] sm:$0x7] }
 0x446   : > { %20199 = vmatprep.subr.bf16.mxu1 %v21766_v13  ;;  %v10088_v6 = vor.u32 %v10087_v48, %v10084_v52  ;;  %v404_v42 = vsel %vm24625_vm10, 0, %v403_v46  ;;  %v419_v38 = vsel %vm24625_vm10, 0, %v418_v24  ;;  %v21783_v52 = vld [vmem:[%s26610_s1 + $0x4a0] sm:$0xff]   ;;  %v21784_v48 = vld [vmem:[%s26610_s1 + $0x4a8] sm:$0xff]  }
 0x447   : > { %v10047_v20 = vrot.slane %v10046_v47, 4  ;;  %405 = vst [vmem:[#allocation3 + $0x28] sm:$0x7] %v404_v42  ;;  %420 = vst [vmem:[#allocation3 + $0x3c] sm:$0x7] %v419_v38 }
 0x448   : > { %v10089_v33 = vrot.slane %v10088_v6, 4  ;;  %v427_v47 = vld [vmem:[#allocation3 + $0x48] sm:$0x7] }
 0x449   : > { %20200 = vmatpush3.bf16.msra.mxu1 %v21766_v13  ;;  %v10096_v13 = vshrl.u32 %v9995_v57, 16  ;;  %v379_v57 = vld [vmem:[#allocation3 + $0x8] sm:$0x7] }
 0x44a   : > { %20201 = vmatprep.subr.bf16.mxu1 %v21767_v49 }
 0x44b   : > { %v10098_v62 = vrot.slane %v10096_v13, 4  ;;  %v428_v13 = vsel %vm24625_vm10, 0, %v427_v47 }
 0x44c   : > { %429 = vst [vmem:[#allocation3 + $0x48] sm:$0x7] %v428_v13 }
 0x44d   : > { %20202 = vmatpush3.bf16.msra.mxu1 %v21767_v49  ;;  %v10032_v49 = vor.u32 %v10031_v14, %v10028_v11  ;;  %v380_v11 = vsel %vm24625_vm10, 0, %v379_v57  ;;  %v376_v14 = vld [vmem:[#allocation3 + $0x4] sm:$0x7] }
 0x44e   : > { %20211 = vmatprep.subr.bf16.mxu1 %v21769_v53  ;;  %381 = vst [vmem:[#allocation3 + $0x8] sm:$0x7] %v380_v11  ;;  %v377_v56 = vsel %vm24625_vm10, 0, %v376_v14 }
 0x44f   : > { %v10033_v50 = vrot.slane %v10032_v49, 4  ;;  %378 = vst [vmem:[#allocation3 + $0x4] sm:$0x7] %v377_v56  ;;  %v425_v49 = vsel %vm24625_vm10, 0, %v424_v29 }
 0x450   : > { %20204 = vmatmul.mubr.bf16.vlgmr.msra.gmra.mrb[32].mxu1 %v21768_v16  ;;  %v10101_v16 = vrot.slane %v10099_v54, 5  ;;  %v409_v54 = vld [vmem:[#allocation3 + $0x30] sm:$0x7]  ;;  %426 = vst [vmem:[#allocation3 + $0x44] sm:$0x7] %v425_v49 }
 0x451   : > { %20207 = vmatprep.mubr.bf16.mxu1 %v21770_v61  ;;  %20212 = vmatpush3.bf16.msra.mxu1 %v21769_v53  ;;  %v21778_v53 = vld [vmem:[%s26610_s1 + $0x478] sm:$0xff]   ;;  %v10051_v61 = vrot.slane %v10049_v58, 5  ;;  %v10038_v22 = vsel %vm22291_vm2, %v10033_v50, %v10037_v27  ;;  %v410_v7 = vsel %vm24625_vm10, 0, %v409_v54  ;;  %v385_v58 = vld [vmem:[#allocation3 + $0x10] sm:$0x7] }
 0x452   : > { %20213 = vmatprep.subr.bf16.mxu1 %v21771_v23  ;;  %411 = vst [vmem:[#allocation3 + $0x30] sm:$0x7] %v410_v7  ;;  %v386_v3 = vsel %vm24625_vm10, 0, %v385_v58  ;;  %v21781_v50 = vld [vmem:[%s26610_s1 + $0x490] sm:$0xff]  }
 0x453   : > { %v10052_v63 = vsel %vm22291_vm2, %v10047_v20, %v10051_v61  ;;  %387 = vst [vmem:[#allocation3 + $0x10] sm:$0x7] %v386_v3  ;;  %v21779_v20 = vld [vmem:[%s26610_s1 + $0x480] sm:$0xff]   ;;  %v21782_v61 = vld [vmem:[%s26610_s1 + $0x498] sm:$0xff]  }
 0x454   : > { %v17955_v60 = vcombine.low %v10038_v22, %v10052_v63  ;;  %v24822_v63 = vld [vmem:[%s26611_s2 + $0x1] ss:$0 sm:$0xff] }
 0x455   : > { %20214 = vmatpush3.bf16.msra.mxu1 %v21771_v23  ;;  %v10063_v23 = vshll.u32 %v9990_v15, 16  ;;  %v400_v15 = vld [vmem:[#allocation3 + $0x24] sm:$0x7] }
 0x456   : > { %20215 = vmatprep.subr.bf16.mxu1 %v21773_v30  ;;  %v401_v43 = vsel %vm24625_vm10, 0, %v400_v15 }
 0x457   : > { %v10065_v41 = vrot.slane %v10063_v23, 5  ;;  %402 = vst [vmem:[#allocation3 + $0x24] sm:$0x7] %v401_v43  ;;  %v373_v23 = vld [vmem:[#allocation3] sm:$0x7] }
 0x458   : > { %20208 = vmatmul.mubr.bf16.gmra.mrb[36].mxu1 %v21772_v5  ;;  %v10102_v5 = vor.u32 %v10101_v16, %v10098_v62  ;;  %v22179_v62 = vmov 0.0   ;;  %v21780_v16 = vld [vmem:[%s26610_s1 + $0x488] sm:$0xff]  }
 0x459   : > { %20216 = vmatpush3.bf16.msra.mxu1 %v21773_v30  ;;  %20227 = vmatprep.mubr.bf16.mxu1 %v17954_v9  ;;  %v10061_v30 = vrot.slane %v10060_v26, 4  ;;  %v9994_v9 = vld [vmem:[#allocation2 + $0x3c] sm:$0x1]  ;;  %v397_v26 = vld [vmem:[#allocation3 + $0x20] sm:$0x7] }
 0x45a   : > { %20217 = vmatprep.subr.bf16.mxu1 %v21774_v31  ;;  %v10091_v51 = vshll.u32 %v9994_v9, 16  ;;  %v10103_v55 = vrot.slane %v10102_v5, 4  ;;  %v398_v10 = vsel %vm24625_vm10, 0, %v397_v26  ;;  %20415 = vmatprep.subr.bf16.mxu0 %v22179_v62 }
 0x45b   : > { %v10066_v59 = vsel %vm22291_vm2, %v10061_v30, %v10065_v41  ;;  %399 = vst [vmem:[#allocation3 + $0x20] sm:$0x7] %v398_v10  ;;  %v21785_v30 = vld [vmem:[%s26610_s1 + $0x4b0] sm:$0xff]  }
 0x45c   : > { %v10093_v40 = vrot.slane %v10091_v51, 5 }
 0x45d   : > { %20218 = vmatpush3.bf16.msra.mxu1 %v21774_v31  ;;  %v10080_v31 = vsel %vm22291_vm2, %v10075_v35, %v10079_v44  ;;  %v374_v35 = vsel %vm24625_vm10, 0, %v373_v23  ;;  %v21786_v44 = vld [vmem:[%s26610_s1 + $0x4b8] sm:$0xff]  }
 0x45e   : > { %20219 = vmatprep.subr.bf16.mxu1 %v21775_v32  ;;  %v17956_v1 = vcombine.low %v10066_v59, %v10080_v31  ;;  %v10094_v28 = vsel %vm22291_vm2, %v10089_v33, %v10093_v40  ;;  %375 = vst [vmem:[#allocation3] sm:$0x7] %v374_v35 }
 0x461   : > { %20220 = vmatpush3.bf16.msra.mxu1 %v21775_v32  ;;  %v10105_v32 = vshll.u32 %v9996_v19, 16  ;;  %v388_v19 = vld [vmem:[#allocation3 + $0x14] sm:$0x7] }
 0x462   : > { %20221 = vmatprep.subr.bf16.mxu1 %v21776_v21  ;;  %v389_v27 = vsel %vm24625_vm10, 0, %v388_v19 }
 0x463   : > { %v10107_v8 = vrot.slane %v10105_v32, 5  ;;  %390 = vst [vmem:[#allocation3 + $0x14] sm:$0x7] %v389_v27 }
 0x465   : > { %20222 = vmatpush3.bf16.msra.mxu1 %v21776_v21  ;;  %v10108_v21 = vsel %vm22291_vm2, %v10103_v55, %v10107_v8  ;;  %vm22180_vm2 = vmmov 0  }
 0x466   : > { %20223 = vmatprep.subr.bf16.mxu1 %v21777_v25  ;;  %v17957_v17 = vcombine.low %v10094_v28, %v10108_v21  ;;  %20431 = vmatprep.mubr.msk.bf16.mxu0 %vm22180_vm2, %v22179_v62 }
 0x469   : > { %20224 = vmatpush3.bf16.msra.mxu1 %v21777_v25  ;;  %v391_v25 = vld [vmem:[#allocation3 + $0x18] sm:$0x7] }
 0x46a   : > { %20225 = vmatprep.subr.bf16.mxu1 %v21778_v53  ;;  %v392_v2 = vsel %vm24625_vm10, 0, %v391_v25 }
 0x46b   : > { %393 = vst [vmem:[#allocation3 + $0x18] sm:$0x7] %v392_v2 }
 0x46d   : > { %20226 = vmatpush3.bf16.msra.mxu1 %v21778_v53  ;;  %v382_v53 = vld [vmem:[#allocation3 + $0xc] sm:$0x7] }
 0x46e   : > { %v383_v34 = vsel %vm24625_vm10, 0, %v382_v53  ;;  %20235 = vmatprep.subr.bf16.mxu1 %v22179_v62  ;;  %vm11428_vm10 = vsmask.f32 5392 }
 0x46f   : > { %384 = vst [vmem:[#allocation3 + $0xc] sm:$0x7] %v383_v34 }
 0x470   : > { %20228 = vmatmul.mubr.bf16.vlgmr.msra.gmra.mrb[32].mxu1 %v17955_v60 }
 0x471   : > { %20231 = vmatprep.mubr.bf16.mxu1 %v17956_v1  ;;  %20236 = vmatpush3.bf16.msra.mxu1 %v21779_v20 }
 0x472   : > { %20237 = vmatprep.subr.bf16.mxu1 %v22179_v62 }
 0x475   : > { %20238 = vmatpush3.bf16.msra.mxu1 %v21780_v16 }
 0x476   : > { %20239 = vmatprep.subr.bf16.mxu1 %v22179_v62 }
 0x478   : > { %20232 = vmatmul.mubr.bf16.gmra.mrb[36].mxu1 %v17957_v17 }
 0x479   : > { %20251 = vmatprep.mubr.msk.bf16.mxu1 %vm22180_vm2, %v22179_v62  ;;  %20240 = vmatpush3.bf16.msra.mxu1 %v21781_v50 }
 0x47a   : > { %20241 = vmatprep.subr.bf16.mxu1 %v22179_v62 }
 0x47d   : > { %20242 = vmatpush3.bf16.msra.mxu1 %v21782_v61 }
 0x47e   : > { %20243 = vmatprep.subr.bf16.mxu1 %v22179_v62 }
 0x481   : > { %20244 = vmatpush3.bf16.msra.mxu1 %v21783_v52 }
 0x482   : > { %20245 = vmatprep.subr.bf16.mxu1 %v22179_v62 }
 0x485   : > { %20246 = vmatpush3.bf16.msra.mxu1 %v21784_v48 }
 0x486   : > { %20247 = vmatprep.subr.bf16.mxu1 %v22179_v62 }
 0x489   : > { %20248 = vmatpush3.bf16.msra.mxu1 %v21785_v30 }
 0x48a   : > { %20249 = vmatprep.subr.bf16.mxu1 %v22179_v62 }
 0x48d   : > { %20250 = vmatpush3.bf16.msra.mxu1 %v21786_v44 }
 0x48e   : > { %20255 = vmatprep.subr.bf16.mxu1 %v22179_v62 }
 0x543   : > { %v20229_v5 = vpop.f32.mrb[32].mxu1 }
 0x544   : > { %v21039_v41 = vadd.f32 %v20229_v5, %v24822_v63  ;;  %v10224_v31 = vpop.f32.mrb[33].mxu1 }
 0x545   : > { %v21040_v9 = vadd.f32 %v24822_v63, %v10224_v31  ;;  %v20230_v22 = vpop.f32.mrb[34].mxu1 }
 0x546   : > { %v10265_v6 = vmax.f32 %v21039_v41, 0.0  ;;  %v21041_v32 = vadd.f32 %v20230_v22, %v24822_v63  ;;  %v10227_v60 = vpop.f32.mrb[35].mxu1 }
 0x547   : > { %v10263_v59 = vmax.f32 %v21040_v9, 0.0  ;;  %v21042_v12 = vadd.f32 %v24822_v63, %v10227_v60 }
 0x548   : > { %v18924_v1 = vpack.c.bf16 %v10265_v6, %v10265_v6  ;;  %v10266_v51 = vmax.f32 %v21041_v32, 0.0 }
 0x549   : > { %v18922_v55 = vpack.c.bf16 %v10263_v59, %v10263_v59  ;;  %v10264_v33 = vmax.f32 %v21042_v12, 0.0 }
 0x54a   : > { %v10325_v8 = vrot.slane %v18924_v1, %v23597_v37  ;;  %v18925_v40 = vpack.c.bf16 %v10266_v51, %v10266_v51 }
 0x54b   : > { %v10301_v21 = vrot.slane %v18922_v55, %v23597_v37  ;;  %v18923_v28 = vpack.c.bf16 %v10264_v33, %v10264_v33  ;;  %v20233_v17 = vpop.f32.mrb[36].mxu1 }
 0x54c   : > { %v10326_v46 = vcombine.high %v10325_v8, %v10325_v8  ;;  %v10333_v24 = vrot.slane %v10325_v8, %v23597_v37  ;;  %v10733_v42 = vrot.slane %v18925_v40, %v23597_v37  ;;  %v24833_v38 = vadd.f32 %v20233_v17, %v24822_v63  ;;  %v10240_v57 = vpop.f32.mrb[37].mxu1 }
 0x54d   : > { %v10302_v0 = vcombine.high %v10301_v21, %v10301_v21  ;;  %v10309_v11 = vrot.slane %v10301_v21, %v23597_v37  ;;  %v24837_v39 = vrot.slane %v18923_v28, %v23597_v37  ;;  %v24840_v14 = vadd.f32 %v24822_v63, %v10240_v57  ;;  %v24842_v25 = vpop.f32.mrb[38].mxu1  ;;  %v10694_v57 = vld [vmem:[#allocation3 + $0x2c] sm:$0x7] }
 0x54e   : > { %v10340_v56 = vrot.slane %v10326_v46, %v23597_v37  ;;  %v10341_v2 = vcombine.high %v10333_v24, %v10333_v24  ;;  %v10453_v45 = vrot.slane %v10333_v24, %v23612_v18  ;;  %v10734_v47 = vcombine.high %v10733_v42, %v10733_v42  ;;  %v24846_v4 = vpop.f32.mrb[39].mxu1 }
 0x54f   : > { %v10316_v13 = vrot.slane %v10302_v0, %v23597_v37  ;;  %v10317_v54 = vcombine.high %v10309_v11, %v10309_v11  ;;  %v10397_v29 = vrot.slane %v10309_v11, %v23612_v18  ;;  %v10741_v7 = vrot.slane %v10733_v42, %v23597_v37 }
 0x550   : > { %v10342_v49 = vcombine.high %v10340_v56, %v10340_v56  ;;  %v10460_v58 = vrot.slane %v10453_v45, %v23612_v18  ;;  %v10467_v15 = vrot.slane %v10340_v56, %v23612_v18  ;;  %v10481_v3 = vrot.slane %v10341_v2, %v23612_v18 }
 0x551   : > { %v10318_v43 = vcombine.high %v10316_v13, %v10316_v13  ;;  %v10404_v53 = vrot.slane %v10397_v29, %v23612_v18  ;;  %v10411_v26 = vrot.slane %v10316_v13, %v23612_v18  ;;  %v10425_v34 = vrot.slane %v10317_v54, %v23612_v18  ;;  %v10691_v29 = vld [vmem:[#allocation3 + $0x28] sm:$0x7] }
 0x552   : > { %v10474_v10 = vrot.slane %v10467_v15, %v23612_v18  ;;  %v10488_v20 = vrot.slane %v10481_v3, %v23612_v18  ;;  %v10495_v16 = vrot.slane %v10342_v49, %v23612_v18  ;;  %v10619_v23 = vunpack.c.l.b16 %v10460_v58 }
 0x553   : > { %v10418_v35 = vrot.slane %v10411_v26, %v23612_v18  ;;  %v10432_v50 = vrot.slane %v10425_v34, %v23612_v18  ;;  %v10439_v61 = vrot.slane %v10318_v43, %v23612_v18  ;;  %v10615_v52 = vunpack.c.l.b16 %v10404_v53 }
 0x554   : > { %v10502_v48 = vrot.slane %v10495_v16, %v23612_v18  ;;  %v10620_v30 = vunpack.c.l.b16 %v10474_v10  ;;  %v10621_v44 = vunpack.c.l.b16 %v10488_v20  ;;  %v10748_v19 = vrot.slane %v10734_v47, %v23597_v37 }
 0x555   : > { %v10446_v27 = vrot.slane %v10439_v61, %v23612_v18  ;;  %v10616_v5 = vunpack.c.l.b16 %v10418_v35  ;;  %v10617_v41 = vunpack.c.l.b16 %v10432_v50  ;;  %v10749_v31 = vcombine.high %v10741_v7, %v10741_v7 }
 0x556   : > { %v10622_v9 = vunpack.c.l.b16 %v10502_v48  ;;  %v10637_v22 = vrot.slane %v10620_v30, 7  ;;  %v10639_v6 = vrot.slane %v10621_v44, 6  ;;  %v10750_v32 = vcombine.high %v10748_v19, %v10748_v19 }
 0x557   : > { %v10618_v60 = vunpack.c.l.b16 %v10446_v27  ;;  %v10631_v59 = vrot.slane %v10616_v5, 7  ;;  %v10633_v12 = vrot.slane %v10617_v41, 6  ;;  %v10861_v1 = vrot.slane %v10741_v7, %v23612_v18 }
 0x558   : > { %v10638_v51 = vsel %vm6487_vm6, %v10637_v22, %v10619_v23  ;;  %v10641_v55 = vrot.slane %v10622_v9, 5  ;;  %v10671_v33 = vsel %vm6490_vm7, %v10637_v22, %v10619_v23  ;;  %v10875_v8 = vrot.slane %v10748_v19, %v23612_v18 }
 0x559   : > { %v10640_v40 = vsel %vm6490_vm7, %v10639_v6, %v10638_v51  ;;  %v10672_v21 = vsel %vm6493_vm8, %v10639_v6, %v10671_v33  ;;  %v10632_v28 = vsel %vm6487_vm6, %v10631_v59, %v10615_v52  ;;  %v10635_v17 = vrot.slane %v10618_v60, 5 }
 0x55a   : > { %v10642_v46 = vsel %vm6493_vm8, %v10641_v55, %v10640_v40  ;;  %v10673_v24 = vsel %vm6496_vm9, %v10641_v55, %v10672_v21  ;;  %v10634_v0 = vsel %vm6490_vm7, %v10633_v12, %v10632_v28  ;;  %v10668_v11 = vsel %vm6490_vm7, %v10631_v59, %v10615_v52  ;;  %v11100_v40 = vld [vmem:[#allocation3 + $0x8] sm:$0x7] }
 0x55b   : > { %v10656_v56 = vpack.c.b16 %v10642_v46, %v10642_v46  ;;  %v10681_v2 = vpack.c.b16 %v10673_v24, %v10673_v24  ;;  %v10636_v45 = vsel %vm6493_vm8, %v10635_v17, %v10634_v0  ;;  %v10669_v47 = vsel %vm6493_vm8, %v10633_v12, %v10668_v11 }
 0x55c   : > { %v10655_v13 = vpack.c.b16 %v10636_v45, %v10636_v45  ;;  %v10670_v54 = vsel %vm6496_vm9, %v10635_v17, %v10669_v47  ;;  %v10868_v7 = vrot.slane %v10861_v1, %v23612_v18  ;;  %v10882_v49 = vrot.slane %v10875_v8, %v23612_v18 }
 0x55d   : > { %10665 = vst [vmem:[#allocation3 + $0x40] sm:$0x3] %v10656_v56  ;;  %v10695_v58 = vsel %vm24877_vm13, %v10681_v2, %v10694_v57  ;;  %v10680_v15 = vpack.c.b16 %v10670_v54, %v10670_v54  ;;  %v10889_v3 = vrot.slane %v10749_v31, %v23612_v18  ;;  %v10903_v43 = vrot.slane %v10750_v32, %v23612_v18 }
 0x55e   : > { %10696 = vst [vmem:[#allocation3 + $0x2c] sm:$0x7] %v10695_v58  ;;  %10664 = vst [vmem:[#allocation3 + $0x3c] sm:$0x3] %v10655_v13  ;;  %v11027_v53 = vunpack.c.l.b16 %v10868_v7  ;;  %v11028_v26 = vunpack.c.l.b16 %v10882_v49  ;;  %v10710_v34 = vcombine.high %v24837_v39, %v24837_v39  ;;  %v10717_v10 = vrot.slane %v24837_v39, %v23597_v37 }
 0x55f   : > { %v10692_v20 = vsel %vm24877_vm13, %v10680_v15, %v10691_v29  ;;  %v10896_v16 = vrot.slane %v10889_v3, %v23612_v18  ;;  %v10910_v23 = vrot.slane %v10903_v43, %v23612_v18  ;;  %v10269_v35 = vmax.f32 %v24833_v38, 0.0 }
 0x560   : > { %10693 = vst [vmem:[#allocation3 + $0x28] sm:$0x7] %v10692_v20  ;;  %v11045_v50 = vrot.slane %v11028_v26, 7  ;;  %v10724_v61 = vrot.slane %v10710_v34, %v23597_v37  ;;  %v10725_v52 = vcombine.high %v10717_v10, %v10717_v10  ;;  %v10805_v48 = vrot.slane %v10717_v10, %v23612_v18 }
 0x561   : > { %v11029_v30 = vunpack.c.l.b16 %v10896_v16  ;;  %v11030_v44 = vunpack.c.l.b16 %v10910_v23  ;;  %v18928_v19 = vpack.c.bf16 %v10269_v35, %v10269_v35  ;;  %v10267_v39 = vmax.f32 %v24840_v14, 0.0  ;;  %v11097_v23 = vld [vmem:[#allocation3 + $0x4] sm:$0x7] }
 0x562   : > { %v11046_v27 = vsel %vm6487_vm6, %v11045_v50, %v11027_v53  ;;  %v11079_v5 = vsel %vm6490_vm7, %v11045_v50, %v11027_v53  ;;  %v10726_v41 = vcombine.high %v10724_v61, %v10724_v61  ;;  %v10812_v31 = vrot.slane %v10805_v48, %v23612_v18 }
 0x563   : > { %v11047_v38 = vrot.slane %v11029_v30, 6  ;;  %v11049_v9 = vrot.slane %v11030_v44, 5  ;;  %v10819_v22 = vrot.slane %v10724_v61, %v23612_v18  ;;  %v10833_v6 = vrot.slane %v10725_v52, %v23612_v18 }
 0x564   : > { %v10847_v32 = vrot.slane %v10726_v41, %v23612_v18  ;;  %v11023_v60 = vunpack.c.l.b16 %v10812_v31  ;;  %v10373_v59 = vrot.slane %v18928_v19, %v23597_v37  ;;  %v18926_v12 = vpack.c.bf16 %v10267_v39, %v10267_v39 }
 0x565   : > { %v11048_v14 = vsel %vm6490_vm7, %v11047_v38, %v11046_v27  ;;  %v11080_v1 = vsel %vm6493_vm8, %v11047_v38, %v11079_v5  ;;  %v10826_v51 = vrot.slane %v10819_v22, %v23612_v18  ;;  %v10840_v55 = vrot.slane %v10833_v6, %v23612_v18 }
 0x566   : > { %v11050_v33 = vsel %vm6493_vm8, %v11049_v9, %v11048_v14  ;;  %v11081_v8 = vsel %vm6496_vm9, %v11049_v9, %v11080_v1  ;;  %v10854_v21 = vrot.slane %v10847_v32, %v23612_v18  ;;  %v10374_v28 = vcombine.high %v10373_v59, %v10373_v59 }
 0x567   : > { %v11064_v17 = vpack.c.b16 %v11050_v33, %v11050_v33  ;;  %v11089_v46 = vpack.c.b16 %v11081_v8, %v11081_v8  ;;  %v11024_v24 = vunpack.c.l.b16 %v10826_v51  ;;  %v11025_v57 = vunpack.c.l.b16 %v10840_v55 }
 0x568   : > { %v11026_v0 = vunpack.c.l.b16 %v10854_v21  ;;  %v10381_v11 = vrot.slane %v10373_v59, %v23597_v37  ;;  %v10388_v56 = vrot.slane %v10374_v28, %v23597_v37  ;;  %v10349_v2 = vrot.slane %v18926_v12, %v23597_v37 }
 0x569   : > { %11073 = vst [vmem:[#allocation3 + $0x1c] sm:$0x3] %v11064_v17  ;;  %v11101_v45 = vsel %vm24877_vm13, %v11089_v46, %v11100_v40  ;;  %v11039_v47 = vrot.slane %v11024_v24, 7  ;;  %v11041_v13 = vrot.slane %v11025_v57, 6  ;;  %v21045_v54 = vadd.f32 %v24842_v25, %v24822_v63  ;;  %v10700_v17 = vld [vmem:[#allocation3 + $0x34] sm:$0x7] }
 0x56a   : > { %11102 = vst [vmem:[#allocation3 + $0x8] sm:$0x7] %v11101_v45  ;;  %v11043_v29 = vrot.slane %v11026_v0, 5  ;;  %v10389_v7 = vcombine.high %v10381_v11, %v10381_v11  ;;  %v10390_v49 = vcombine.high %v10388_v56, %v10388_v56  ;;  %v10565_v58 = vrot.slane %v10381_v11, %v23612_v18 }
 0x56b   : > { %v11040_v15 = vsel %vm6487_vm6, %v11039_v47, %v11023_v60  ;;  %v11076_v3 = vsel %vm6490_vm7, %v11039_v47, %v11023_v60  ;;  %v10579_v43 = vrot.slane %v10388_v56, %v23612_v18  ;;  %v10350_v53 = vcombine.high %v10349_v2, %v10349_v2 }
 0x56c   : > { %v11042_v26 = vsel %vm6490_vm7, %v11041_v13, %v11040_v15  ;;  %v11077_v34 = vsel %vm6493_vm8, %v11041_v13, %v11076_v3  ;;  %v10572_v10 = vrot.slane %v10565_v58, %v23612_v18  ;;  %v10593_v25 = vrot.slane %v10389_v7, %v23612_v18 }
 0x56d   : > { %v11044_v20 = vsel %vm6493_vm8, %v11043_v29, %v11042_v26  ;;  %v11078_v16 = vsel %vm6496_vm9, %v11043_v29, %v11077_v34  ;;  %v10586_v35 = vrot.slane %v10579_v43, %v23612_v18  ;;  %v10607_v50 = vrot.slane %v10390_v49, %v23612_v18 }
 0x56e   : > { %v11063_v61 = vpack.c.b16 %v11044_v20, %v11044_v20  ;;  %v11088_v52 = vpack.c.b16 %v11078_v16, %v11078_v16  ;;  %v10600_v48 = vrot.slane %v10593_v25, %v23612_v18  ;;  %v10627_v30 = vunpack.c.l.b16 %v10572_v10 }
 0x56f   : > { %v10614_v44 = vrot.slane %v10607_v50, %v23612_v18  ;;  %v10628_v19 = vunpack.c.l.b16 %v10586_v35  ;;  %v10357_v39 = vrot.slane %v10349_v2, %v23597_v37  ;;  %v10364_v27 = vrot.slane %v10350_v53, %v23597_v37 }
 0x570   : > { %11072 = vst [vmem:[#allocation3 + $0x18] sm:$0x3] %v11063_v61  ;;  %v11098_v5 = vsel %vm24877_vm13, %v11088_v52, %v11097_v23  ;;  %v10629_v41 = vunpack.c.l.b16 %v10600_v48  ;;  %v10270_v31 = vmax.f32 %v21045_v54, 0.0  ;;  %v21046_v38 = vadd.f32 %v24822_v63, %v24846_v4  ;;  %v10697_v61 = vld [vmem:[#allocation3 + $0x30] sm:$0x7] }
 0x571   : > { %11099 = vst [vmem:[#allocation3 + $0x4] sm:$0x7] %v11098_v5  ;;  %v10630_v9 = vunpack.c.l.b16 %v10614_v44  ;;  %v10649_v22 = vrot.slane %v10628_v19, 7  ;;  %v10365_v6 = vcombine.high %v10357_v39, %v10357_v39  ;;  %v10366_v32 = vcombine.high %v10364_v27, %v10364_v27 }
 0x572   : > { %v10651_v60 = vrot.slane %v10629_v41, 6  ;;  %v10509_v59 = vrot.slane %v10357_v39, %v23612_v18  ;;  %v10523_v12 = vrot.slane %v10364_v27, %v23612_v18  ;;  %v18929_v14 = vpack.c.bf16 %v10270_v31, %v10270_v31 }
 0x573   : > { %v10650_v1 = vsel %vm6487_vm6, %v10649_v22, %v10627_v30  ;;  %v10653_v51 = vrot.slane %v10630_v9, 5  ;;  %v10677_v55 = vsel %vm6490_vm7, %v10649_v22, %v10627_v30  ;;  %v10537_v33 = vrot.slane %v10365_v6, %v23612_v18 }
 0x574   : > { %v10652_v63 = vsel %vm6490_vm7, %v10651_v60, %v10650_v1  ;;  %v10678_v4 = vsel %vm6493_vm8, %v10651_v60, %v10677_v55  ;;  %v10516_v8 = vrot.slane %v10509_v59, %v23612_v18  ;;  %v10530_v40 = vrot.slane %v10523_v12, %v23612_v18 }
 0x575   : > { %v10654_v21 = vsel %vm6493_vm8, %v10653_v51, %v10652_v63  ;;  %v10679_v28 = vsel %vm6496_vm9, %v10653_v51, %v10678_v4  ;;  %v10544_v46 = vrot.slane %v10537_v33, %v23612_v18  ;;  %v10551_v24 = vrot.slane %v10366_v32, %v23612_v18 }
 0x576   : > { %v10658_v57 = vpack.c.b16 %v10654_v21, %v10654_v21  ;;  %v10683_v0 = vpack.c.b16 %v10679_v28, %v10679_v28  ;;  %v10624_v11 = vunpack.c.l.b16 %v10530_v40  ;;  %v10781_v45 = vrot.slane %v18929_v14, %v23597_v37 }
 0x577   : > { %v10558_v56 = vrot.slane %v10551_v24, %v23612_v18  ;;  %v10625_v2 = vunpack.c.l.b16 %v10544_v46  ;;  %v10268_v47 = vmax.f32 %v21046_v38, 0.0  ;;  %v10623_v54 = vunpack.c.l.b16 %v10516_v8 }
 0x578   : > { %10667 = vst [vmem:[#allocation3 + $0x48] sm:$0x3] %v10658_v57  ;;  %v10701_v13 = vsel %vm24877_vm13, %v10683_v0, %v10700_v17  ;;  %v10643_v29 = vrot.slane %v10624_v11, 7  ;;  %v10782_v58 = vcombine.high %v10781_v45, %v10781_v45  ;;  %v10789_v15 = vrot.slane %v10781_v45, %v23597_v37 }
 0x579   : > { %10702 = vst [vmem:[#allocation3 + $0x34] sm:$0x7] %v10701_v13  ;;  %v10626_v7 = vunpack.c.l.b16 %v10558_v56  ;;  %v10645_v49 = vrot.slane %v10625_v2, 6  ;;  %v18927_v53 = vpack.c.bf16 %v10268_v47, %v10268_v47  ;;  %v11106_v2 = vld [vmem:[#allocation3 + $0x10] sm:$0x7] }
 0x57a   : > { %v10644_v3 = vsel %vm6487_vm6, %v10643_v29, %v10623_v54  ;;  %v10674_v43 = vsel %vm6490_vm7, %v10643_v29, %v10623_v54  ;;  %v10796_v25 = vrot.slane %v10782_v58, %v23597_v37  ;;  %v10797_v20 = vcombine.high %v10789_v15, %v10789_v15 }
 0x57b   : > { %v10646_v26 = vsel %vm6490_vm7, %v10645_v49, %v10644_v3  ;;  %v10647_v34 = vrot.slane %v10626_v7, 5  ;;  %v10675_v10 = vsel %vm6493_vm8, %v10645_v49, %v10674_v43  ;;  %v10973_v16 = vrot.slane %v10789_v15, %v23612_v18  ;;  %v18026_v7 = vld.sshfl [vmem:[#allocation3 + $0x8] sm:$0x13 pattern:$0x76325410] }
 0x57c   : > { %v10757_v23 = vrot.slane %v18927_v53, %v23597_v37  ;;  %v10798_v52 = vcombine.high %v10796_v25, %v10796_v25  ;;  %v10987_v48 = vrot.slane %v10796_v25, %v23612_v18  ;;  %v11001_v39 = vrot.slane %v10797_v20, %v23612_v18  ;;  %v18025_v53 = vld.sshfl [vmem:[#allocation3 + $0x4] sm:$0x13 pattern:$0x76325410] }
 0x57d   : > { %v10648_v35 = vsel %vm6493_vm8, %v10647_v34, %v10646_v26  ;;  %v10676_v50 = vsel %vm6496_vm9, %v10647_v34, %v10675_v10  ;;  %v10980_v19 = vrot.slane %v10973_v16, %v23612_v18  ;;  %v11417_v10 = vcombine.high %v18026_v7, %v18026_v7 }
 0x57e   : > { %v10657_v30 = vpack.c.b16 %v10648_v35, %v10648_v35  ;;  %v10682_v44 = vpack.c.b16 %v10676_v50, %v10676_v50  ;;  %v10994_v27 = vrot.slane %v10987_v48, %v23612_v18  ;;  %v11015_v5 = vrot.slane %v10798_v52, %v23612_v18  ;;  %v11103_v48 = vld [vmem:[#allocation3 + $0xc] sm:$0x7] }
 0x57f   : > { %v10758_v41 = vcombine.high %v10757_v23, %v10757_v23  ;;  %v10765_v31 = vrot.slane %v10757_v23, %v23597_v37  ;;  %v11008_v9 = vrot.slane %v11001_v39, %v23612_v18  ;;  %v11035_v59 = vunpack.c.l.b16 %v10980_v19 }
 0x580   : > { %10666 = vst [vmem:[#allocation3 + $0x44] sm:$0x3] %v10657_v30  ;;  %v10698_v38 = vsel %vm24877_vm13, %v10682_v44, %v10697_v61  ;;  %v11022_v22 = vrot.slane %v11015_v5, %v23612_v18  ;;  %v11036_v6 = vunpack.c.l.b16 %v10994_v27  ;;  %v11409_v23 = vcombine.high %v18025_v53, %v18025_v53 }
 0x581   : > { %10699 = vst [vmem:[#allocation3 + $0x30] sm:$0x7] %v10698_v38  ;;  %v10772_v32 = vrot.slane %v10758_v41, %v23597_v37  ;;  %v10773_v60 = vcombine.high %v10765_v31, %v10765_v31  ;;  %v11037_v12 = vunpack.c.l.b16 %v11008_v9  ;;  %v10917_v14 = vrot.slane %v10765_v31, %v23612_v18 }
 0x582   : > { %v11038_v1 = vunpack.c.l.b16 %v11022_v22  ;;  %v11057_v51 = vrot.slane %v11036_v6, 7  ;;  %v11447_v35 = vshrl.u32 %v18025_v53, 16  ;;  %v11450_v50 = vshll.u32 %v18025_v53, 16 }
 0x583   : > { %v10774_v55 = vcombine.high %v10772_v32, %v10772_v32  ;;  %v10931_v33 = vrot.slane %v10772_v32, %v23612_v18  ;;  %v11059_v63 = vrot.slane %v11037_v12, 6  ;;  %v10924_v4 = vrot.slane %v10917_v14, %v23612_v18 }
 0x584   : > { %v10945_v8 = vrot.slane %v10773_v60, %v23612_v18  ;;  %v11058_v40 = vsel %vm6487_vm6, %v11057_v51, %v11035_v59  ;;  %v11061_v21 = vrot.slane %v11038_v1, 5  ;;  %v11085_v28 = vsel %vm6490_vm7, %v11057_v51, %v11035_v59 }
 0x585   : > { %v10938_v17 = vrot.slane %v10931_v33, %v23612_v18  ;;  %v11060_v46 = vsel %vm6490_vm7, %v11059_v63, %v11058_v40  ;;  %v11086_v24 = vsel %vm6493_vm8, %v11059_v63, %v11085_v28  ;;  %v10959_v0 = vrot.slane %v10774_v55, %v23612_v18  ;;  %v22094_v63 = vld.sshfl [vmem:[#allocation3] sm:$0xf pattern:$0x76325410] }
 0x586   : > { %v10952_v57 = vrot.slane %v10945_v8, %v23612_v18  ;;  %v11062_v11 = vsel %vm6493_vm8, %v11061_v21, %v11060_v46  ;;  %v11087_v56 = vsel %vm6496_vm9, %v11061_v21, %v11086_v24  ;;  %v11031_v49 = vunpack.c.l.b16 %v10924_v4  ;;  %v26686_v21 = vld [vmem:[#allocation16_spill] sm:$0xff] }
 0x587   : > { %v11032_v45 = vunpack.c.l.b16 %v10938_v17  ;;  %v11066_v47 = vpack.c.b16 %v11062_v11, %v11062_v11  ;;  %v11091_v13 = vpack.c.b16 %v11087_v56, %v11087_v56  ;;  %v10966_v54 = vrot.slane %v10959_v0, %v23612_v18  ;;  %v21789_v0 = vld [vmem:[%s26610_s1 + $0x4c0] sm:$0xff]  }
 0x588   : > { %v11033_v29 = vunpack.c.l.b16 %v10952_v57  ;;  %v11461_v30 = vshrl.u32 %v18026_v7, 16  ;;  %v11464_v44 = vshll.u32 %v18026_v7, 16  ;;  %v11449_v27 = vrot.slane %v11447_v35, 6  ;;  %v21793_v35 = vld [vmem:[%s26610_s1 + $0x4e0] sm:$0xff]  }
 0x589   : > { %v11051_v58 = vrot.slane %v11032_v45, 7  ;;  %11075 = vst [vmem:[#allocation3 + $0x24] sm:$0x3] %v11066_v47  ;;  %v11107_v15 = vsel %vm24877_vm13, %v11091_v13, %v11106_v2  ;;  %v11034_v3 = vunpack.c.l.b16 %v10966_v54  ;;  %v11452_v5 = vrot.slane %v11450_v50, 7  ;;  %v21790_v45 = vld [vmem:[%s26610_s1 + $0x4c8] sm:$0xff]   ;;  %v21881_v33 = vld [vmem:[%s26610_s1 + $0x740] sm:$0xff]  }
 0x58a   : > { %v11053_v43 = vrot.slane %v11033_v29, 6  ;;  %11108 = vst [vmem:[#allocation3 + $0x10] sm:$0x7] %v11107_v15  ;;  %v11463_v41 = vrot.slane %v11461_v30, 6  ;;  %v11466_v31 = vrot.slane %v11464_v44, 7  ;;  %v11456_v6 = vshll.u32 %v11409_v23, 16 }
 0x58b   : > { %v11052_v26 = vsel %vm6487_vm6, %v11051_v58, %v11031_v49  ;;  %v11082_v34 = vsel %vm6490_vm7, %v11051_v58, %v11031_v49  ;;  %v11055_v20 = vrot.slane %v11034_v3, 5  ;;  %v22181_v9 = vmov 1983009808   ;;  %v21791_v49 = vld [vmem:[%s26610_s1 + $0x4d0] sm:$0xff]  }
 0x58c   : > { %v11054_v25 = vsel %vm6490_vm7, %v11053_v43, %v11052_v26  ;;  %v11083_v16 = vsel %vm6493_vm8, %v11053_v43, %v11082_v34  ;;  %v11145_v22 = vunpack.c.l.s4 %v22181_v9  ;;  %v11470_v32 = vshll.u32 %v11417_v10, 16  ;;  %v21792_v34 = vld [vmem:[%s26610_s1 + $0x4d8] sm:$0xff]   ;;  %v18024_v9 = vld.sshfl [vmem:[#allocation3] sm:$0x13 pattern:$0x76325410] }
 0x58d   : > { %v11056_v61 = vsel %vm6493_vm8, %v11055_v20, %v11054_v25  ;;  %v11084_v52 = vsel %vm6496_vm9, %v11055_v20, %v11083_v16  ;;  %v11453_v60 = vor.u32 %v11452_v5, %v11449_v27  ;;  %v11467_v59 = vor.u32 %v11466_v31, %v11463_v41  ;;  %vm11429_vm8 = vmor %vm11427_vm1, %vm11428_vm10  ;;  %v22097_v27 = vld.sshfl [vmem:[#allocation3 + $0x14] sm:$0xf pattern:$0x76325410]  ;;  %v21799_v41 = vld [vmem:[%s26610_s1 + $0x500] sm:$0xff]  }
 0x58e   : > { %v11065_v19 = vpack.c.b16 %v11056_v61, %v11056_v61  ;;  %v11090_v39 = vpack.c.b16 %v11084_v52, %v11084_v52  ;;  %v11146_v1 = vunpack.c.0.s8 %v11145_v22  ;;  %v11458_v51 = vrot.slane %v11456_v6, 7  ;;  %vm25008_vm0 = vmor %vm11429_vm8, %vm11430_vm12  ;;  %v21794_v52 = vld [vmem:[%s26610_s1 + $0x4e8] sm:$0xff]   ;;  %v21796_v5 = vld [vmem:[%s26610_s1 + $0x4f8] sm:$0xff]  }
 0x58f   : > { %v11454_v12 = vrot.slane %v11453_v60, 2  ;;  %v11468_v14 = vrot.slane %v11467_v59, 2  ;;  %v11472_v55 = vrot.slane %v11470_v32, 7  ;;  %v21801_v22 = vld [vmem:[%s26610_s1 + $0x510] sm:$0xff]   ;;  %v11433_v6 = vshrl.u32 %v18024_v9, 16  ;;  %v21802_v60 = vld [vmem:[%s26610_s1 + $0x518] sm:$0xff]  }
 0x590   : > { %11074 = vst [vmem:[#allocation3 + $0x20] sm:$0x3] %v11065_v19  ;;  %v11104_v38 = vsel %vm24877_vm13, %v11090_v39, %v11103_v48  ;;  %v25021_v28 = vsub.s32 %v11146_v1, %v26686_v21  ;;  %v21795_v19 = vld [vmem:[%s26610_s1 + $0x4f0] sm:$0xff]   ;;  %v11436_v32 = vshll.u32 %v18024_v9, 16  ;;  %v11401_v59 = vcombine.high %v18024_v9, %v18024_v9  ;;  %v21803_v1 = vld [vmem:[%s26610_s1 + $0x520] sm:$0xff]  }
 0x591   : > { %11105 = vst [vmem:[#allocation3 + $0xc] sm:$0x7] %v11104_v38  ;;  %v25014_v4 = vsel %vm25008_vm0, %v11454_v12, %v11458_v51  ;;  %v25018_v8 = vsel %vm25008_vm0, %v11468_v14, %v11472_v55  ;;  %v18179_v47 = vld.sshfl [vmem:[#allocation3 + $0x10] sm:$0x13 pattern:$0x76325410] }
 0x592   : > { %v12485_v46 = vcombine.low %v25014_v4, %v25018_v8  ;;  %v12411_v29 = vcombine.high %v18179_v47, %v18179_v47  ;;  %v12455_v7 = vshrl.u32 %v18179_v47, 16  ;;  %v12458_v3 = vshll.u32 %v18179_v47, 16  ;;  %v21800_v38 = vld [vmem:[%s26610_s1 + $0x508] sm:$0xff]   ;;  %v21810_v47 = vld [vmem:[%s26610_s1 + $0x558] sm:$0xff]  }
 0x593   : > { %v11435_v12 = vrot.slane %v11433_v6, 6  ;;  %v11438_v14 = vrot.slane %v11436_v32, 7  ;;  %v11442_v55 = vshll.u32 %v11401_v59, 16  ;;  %v21829_v6 = vld [vmem:[%s26610_s1 + $0x5d0] sm:$0xff]   ;;  %vm14879_vm12 = vsmask.f32 2312 }
 0x594   : > { %v12457_v15 = vrot.slane %v12455_v7, 6  ;;  %v12460_v53 = vrot.slane %v12458_v3, 7  ;;  %v12464_v26 = vshll.u32 %v12411_v29, 16  ;;  %v25057_v48 = vrot.slane %v12485_v46, %v25021_v28  ;;  %v21813_v29 = vld [vmem:[%s26610_s1 + $0x570] sm:$0xff]  }
 0x595   : > { %v11439_v51 = vor.u32 %v11438_v14, %v11435_v12  ;;  %v11444_v21 = vrot.slane %v11442_v55, 7  ;;  %v22098_v7 = vld.sshfl [vmem:[#allocation3 + $0x30] sm:$0xf pattern:$0x76325410] }
 0x596   : > { %v12461_v25 = vor.u32 %v12460_v53, %v12457_v15  ;;  %v12466_v23 = vrot.slane %v12464_v26, 7  ;;  %v21817_v15 = vld [vmem:[%s26610_s1 + $0x580] sm:$0xff]   ;;  %v21819_v53 = vld [vmem:[%s26610_s1 + $0x590] sm:$0xff]   ;;  %v21820_v26 = vld [vmem:[%s26610_s1 + $0x598] sm:$0xff]  }
 0x597   : > { %v22096_v39 = vld.sshfl [vmem:[#allocation3 + $0x1c] sm:$0xf pattern:$0x76325410]  ;;  %v21865_v14 = vld [vmem:[%s26610_s1 + $0x6d0] sm:$0xff]  }
 0x598   : > { %v22095_v40 = vld.sshfl [vmem:[#allocation3 + $0x8] sm:$0xf pattern:$0x76325410]  ;;  %v12462_v16 = vrot.slane %v12461_v25, 2  ;;  %v11293_v31 = vcombine.low %v22097_v27, %v22096_v39  ;;  %v21823_v25 = vld [vmem:[%s26610_s1 + $0x5b0] sm:$0xff]  }
 0x599   : > { %v18027_v17 = vld.sshfl [vmem:[#allocation3 + $0xc] sm:$0x13 pattern:$0x76325410]  ;;  %v11158_v11 = vcombine.low %v22094_v63, %v22095_v40  ;;  %v11440_v40 = vrot.slane %v11439_v51, 2 }
 0x59a   : > { %v11475_v24 = vshrl.u32 %v18027_v17, 16  ;;  %v11478_v57 = vshll.u32 %v18027_v17, 16  ;;  %v11425_v13 = vcombine.high %v18027_v17, %v18027_v17  ;;  %v12467_v50 = vsel %vm25008_vm0, %v12462_v16, %v12466_v23  ;;  %v21804_v63 = vld [vmem:[%s26610_s1 + $0x528] sm:$0xff]   ;;  %v21805_v17 = vld [vmem:[%s26610_s1 + $0x530] sm:$0xff]   ;;  %v21824_v23 = vld [vmem:[%s26610_s1 + $0x5b8] sm:$0xff]  }
 0x59b   : > { %20252 = vmatmul.mubr.bf16.vlgmr.msra.gmra.mrb[40].mxu1 %v11158_v11  ;;  %v11445_v46 = vsel %vm25008_vm0, %v11440_v40, %v11444_v21  ;;  %v22101_v16 = vld.sshfl [vmem:[#allocation3 + $0x3c] sm:$0xf pattern:$0x76325410]  ;;  %v21828_v39 = vld [vmem:[%s26610_s1 + $0x5c8] sm:$0xff]  }
 0x59c   : > { %v11477_v56 = vrot.slane %v11475_v24, 6  ;;  %v11480_v2 = vrot.slane %v11478_v57, 7  ;;  %20256 = vmatpush3.bf16.msra.mxu1 %v21789_v0  ;;  %20271 = vmatprep.mubr.msk.bf16.mxu1 %vm22180_vm2, %v22179_v62  ;;  %v11484_v58 = vshll.u32 %v11425_v13, 16  ;;  %v11505_v57 = vcombine.low %v11445_v46, %v25014_v4  ;;  %v21806_v0 = vld [vmem:[%s26610_s1 + $0x538] sm:$0xff]   ;;  %v21808_v4 = vld [vmem:[%s26610_s1 + $0x548] sm:$0xff]   ;;  %v21811_v13 = vld [vmem:[%s26610_s1 + $0x560] sm:$0xff]  }
 0x59d   : > { %20257 = vmatprep.subr.bf16.mxu1 %v22179_v62  ;;  %v18101_v27 = vld.sshfl [vmem:[#allocation3 + $0x2c] sm:$0x13 pattern:$0x76325410] }
 0x59e   : > { %v11481_v54 = vor.u32 %v11480_v2, %v11477_v56  ;;  %v11486_v10 = vrot.slane %v11484_v58, 7  ;;  %v11513_v56 = vrot.slane %v11505_v57, %v25021_v28  ;;  %v21807_v2 = vld [vmem:[%s26610_s1 + $0x540] sm:$0xff]   ;;  %v21814_v58 = vld [vmem:[%s26610_s1 + $0x578] sm:$0xff]   ;;  %v11937_v59 = vshrl.u32 %v18101_v27, 16 }
 0x59f   : > { %v11940_v12 = vshll.u32 %v18101_v27, 16 }
 0x5a0   : > { %20258 = vmatpush3.bf16.msra.mxu1 %v21790_v45  ;;  %v11482_v43 = vrot.slane %v11481_v54, 2  ;;  %v21812_v54 = vld [vmem:[%s26610_s1 + $0x568] sm:$0xff]   ;;  %v11939_v57 = vrot.slane %v11937_v59, 6 }
 0x5a1   : > { %20259 = vmatprep.subr.bf16.mxu1 %v22179_v62  ;;  %v22103_v59 = vld.sshfl [vmem:[#allocation3 + $0x4] sm:$0xf pattern:$0x76325410] }
 0x5a2   : > { %v25044_v20 = vsel %vm25008_vm0, %v11482_v43, %v11486_v10  ;;  %v21818_v43 = vld [vmem:[%s26610_s1 + $0x588] sm:$0xff]  }
 0x5a3   : > { %v12486_v61 = vcombine.low %v25044_v20, %v12467_v50  ;;  %v11506_v24 = vcombine.low %v25018_v8, %v25044_v20  ;;  %v21809_v8 = vld [vmem:[%s26610_s1 + $0x550] sm:$0xff]   ;;  %v21822_v10 = vld [vmem:[%s26610_s1 + $0x5a8] sm:$0xff]  }
 0x5a4   : > { %20260 = vmatpush3.bf16.msra.mxu1 %v21791_v49  ;;  %v22099_v49 = vld.sshfl [vmem:[#allocation3 + $0x28] sm:$0xf pattern:$0x76325410] }
 0x5a5   : > { %20261 = vmatprep.subr.bf16.mxu1 %v22179_v62  ;;  %v25060_v30 = vrot.slane %v12486_v61, %v25021_v28  ;;  %v11520_v11 = vrot.slane %v11506_v24, %v25021_v28  ;;  %v11655_v3 = vcombine.low %v22099_v49, %v22098_v7  ;;  %v22100_v20 = vld.sshfl [vmem:[#allocation3 + $0x44] sm:$0xf pattern:$0x76325410] }
 0x5a6   : > { %v11789_v50 = vcombine.low %v22101_v16, %v22100_v20  ;;  %v18103_v61 = vld.sshfl [vmem:[#allocation3 + $0x34] sm:$0x13 pattern:$0x76325410] }
 0x5a7   : > { %v12501_v44 = vcombine.low %v25057_v48, %v25060_v30  ;;  %v11521_v45 = vcombine.low %v11513_v56, %v11520_v11  ;;  %v11965_v9 = vshrl.u32 %v18103_v61, 16  ;;  %v11921_v21 = vcombine.high %v18103_v61, %v18103_v61  ;;  %v21866_v11 = vld [vmem:[%s26610_s1 + $0x6d8] sm:$0xff]   ;;  %v21869_v48 = vld [vmem:[%s26610_s1 + $0x6f0] sm:$0xff]  }
 0x5a8   : > { %20262 = vmatpush3.bf16.msra.mxu1 %v21792_v34  ;;  %v21821_v34 = vld [vmem:[%s26610_s1 + $0x5a0] sm:$0xff]   ;;  %v21870_v30 = vld [vmem:[%s26610_s1 + $0x6f8] sm:$0xff]  }
 0x5a9   : > { %20263 = vmatprep.subr.bf16.mxu1 %v22179_v62  ;;  %v11967_v55 = vrot.slane %v11965_v9, 6  ;;  %v21838_v9 = vld [vmem:[%s26610_s1 + $0x618] sm:$0xff]  }
 0x5ac   : > { %20264 = vmatpush3.bf16.msra.mxu1 %v21793_v35  ;;  %v21827_v35 = vld [vmem:[%s26610_s1 + $0x5c0] sm:$0xff]  }
 0x5ad   : > { %20265 = vmatprep.subr.bf16.mxu1 %v22179_v62 }
 0x5b0   : > { %20266 = vmatpush3.bf16.msra.mxu1 %v21794_v52  ;;  %v18102_v52 = vld.sshfl [vmem:[#allocation3 + $0x30] sm:$0x13 pattern:$0x76325410] }
 0x5b1   : > { %20267 = vmatprep.subr.bf16.mxu1 %v22179_v62  ;;  %v11913_v40 = vcombine.high %v18102_v52, %v18102_v52 }
 0x5b4   : > { %20268 = vmatpush3.bf16.msra.mxu1 %v21795_v19  ;;  %v21863_v19 = vld [vmem:[%s26610_s1 + $0x6c0] sm:$0xff]  }
 0x5b5   : > { %20269 = vmatprep.subr.bf16.mxu1 %v22179_v62  ;;  %20416 = vmatpush3.bf16.msra.mxu0 %v21863_v19  ;;  %v21834_v19 = vld [vmem:[%s26610_s1 + $0x5f8] sm:$0xff]  }
 0x5b6   : > { %20417 = vmatprep.subr.bf16.mxu0 %v22179_v62 }
 0x5b8   : > { %20270 = vmatpush3.bf16.msra.mxu1 %v21796_v5  ;;  %v18100_v5 = vld.sshfl [vmem:[#allocation3 + $0x28] sm:$0x13 pattern:$0x76325410] }
 0x5b9   : > { %20275 = vmatprep.subr.bf16.mxu1 %v22179_v62  ;;  %v11923_v32 = vshrl.u32 %v18100_v5, 16  ;;  %v11897_v56 = vcombine.high %v18100_v5, %v18100_v5 }
 0x5bb   : > { %20272 = vmatmul.mubr.bf16.vlgmr.msra.gmra.mrb[40].mxu1 %v11293_v31  ;;  %v11951_v31 = vshrl.u32 %v18102_v52, 16  ;;  %v11925_v46 = vrot.slane %v11923_v32, 6  ;;  %v11932_v7 = vshll.u32 %v11897_v56, 16  ;;  %v21841_v32 = vld [vmem:[%s26610_s1 + $0x630] sm:$0xff]   ;;  %v21856_v56 = vld [vmem:[%s26610_s1 + $0x688] sm:$0xff]  }
 0x5bc   : > { %20276 = vmatpush3.bf16.msra.mxu1 %v21799_v41  ;;  %20291 = vmatprep.mubr.msk.bf16.mxu1 %vm22180_vm2, %v22179_v62  ;;  %v21864_v41 = vld [vmem:[%s26610_s1 + $0x6c8] sm:$0xff]  }
 0x5bd   : > { %20277 = vmatprep.subr.bf16.mxu1 %v22179_v62  ;;  %20418 = vmatpush3.bf16.msra.mxu0 %v21864_v41 }
 0x5be   : > { %20419 = vmatprep.subr.bf16.mxu0 %v22179_v62 }
 0x5c0   : > { %20278 = vmatpush3.bf16.msra.mxu1 %v21800_v38  ;;  %v11954_v38 = vshll.u32 %v18102_v52, 16 }
 0x5c1   : > { %20279 = vmatprep.subr.bf16.mxu1 %v22179_v62  ;;  %20420 = vmatpush3.bf16.msra.mxu0 %v21865_v14  ;;  %v21845_v14 = vld [vmem:[%s26610_s1 + $0x640] sm:$0xff]  }
 0x5c2   : > { %v11956_v51 = vrot.slane %v11954_v38, 7  ;;  %20421 = vmatprep.subr.bf16.mxu0 %v22179_v62  ;;  %v21837_v38 = vld [vmem:[%s26610_s1 + $0x610] sm:$0xff]  }
 0x5c4   : > { %20280 = vmatpush3.bf16.msra.mxu1 %v21801_v22  ;;  %v11968_v22 = vshll.u32 %v18103_v61, 16 }
 0x5c5   : > { %20281 = vmatprep.subr.bf16.mxu1 %v22179_v62  ;;  %20422 = vmatpush3.bf16.msra.mxu0 %v21866_v11 }
 0x5c6   : > { %20423 = vmatprep.subr.bf16.mxu0 %v22179_v62 }
 0x5c8   : > { %20282 = vmatpush3.bf16.msra.mxu1 %v21802_v60  ;;  %v11926_v60 = vshll.u32 %v18100_v5, 16  ;;  %v21835_v5 = vld [vmem:[%s26610_s1 + $0x600] sm:$0xff]  }
 0x5c9   : > { %20283 = vmatprep.subr.bf16.mxu1 %v22179_v62 }
 0x5ca   : > { %v11928_v24 = vrot.slane %v11926_v60, 7  ;;  %v22102_v60 = vld.sshfl [vmem:[#allocation3 + $0xc] sm:$0xf pattern:$0x76325410] }
 0x5cc   : > { %20284 = vmatpush3.bf16.msra.mxu1 %v21803_v1  ;;  %v11953_v1 = vrot.slane %v11951_v31, 6  ;;  %v21836_v31 = vld [vmem:[%s26610_s1 + $0x608] sm:$0xff]  }
 0x5cd   : > { %20285 = vmatprep.subr.bf16.mxu1 %v22179_v62 }
 0x5d0   : > { %20286 = vmatpush3.bf16.msra.mxu1 %v21804_v63  ;;  %v11970_v63 = vrot.slane %v11968_v22, 7  ;;  %v21839_v22 = vld [vmem:[%s26610_s1 + $0x620] sm:$0xff]  }
 0x5d1   : > { %20287 = vmatprep.subr.bf16.mxu1 %v22179_v62 }
 0x5d4   : > { %20288 = vmatpush3.bf16.msra.mxu1 %v21805_v17  ;;  %v21830_v17 = vld [vmem:[%s26610_s1 + $0x5d8] sm:$0xff]  }
 0x5d5   : > { %20289 = vmatprep.subr.bf16.mxu1 %v22179_v62 }
 0x5d8   : > { %20290 = vmatpush3.bf16.msra.mxu1 %v21806_v0  ;;  %v11942_v0 = vrot.slane %v11940_v12, 7  ;;  %v21842_v12 = vld [vmem:[%s26610_s1 + $0x638] sm:$0xff]  }
 0x5d9   : > { %20295 = vmatprep.subr.bf16.mxu1 %v22179_v62 }
 0x5db   : > { %20292 = vmatmul.mubr.bf16.vlgmr.msra.gmra.mrb[40].mxu1 %v11521_v45  ;;  %v11957_v45 = vor.u32 %v11956_v51, %v11953_v1  ;;  %v12145_v1 = vcombine.low %v22103_v59, %v22102_v60  ;;  %v21846_v51 = vld [vmem:[%s26610_s1 + $0x648] sm:$0xff]  }
 0x5dc   : > { %20296 = vmatpush3.bf16.msra.mxu1 %v21807_v2  ;;  %20311 = vmatprep.mubr.msk.bf16.mxu1 %vm22180_vm2, %v22179_v62  ;;  %v11905_v2 = vcombine.high %v18101_v27, %v18101_v27 }
 0x5dd   : > { %20297 = vmatprep.subr.bf16.mxu1 %v22179_v62 }
 0x5de   : > { %v11946_v49 = vshll.u32 %v11905_v2, 16  ;;  %v21857_v2 = vld [vmem:[%s26610_s1 + $0x690] sm:$0xff]  }
 0x5e0   : > { %20298 = vmatpush3.bf16.msra.mxu1 %v21808_v4  ;;  %v11971_v4 = vor.u32 %v11970_v63, %v11967_v55  ;;  %v21847_v55 = vld [vmem:[%s26610_s1 + $0x650] sm:$0xff]   ;;  %v21848_v63 = vld [vmem:[%s26610_s1 + $0x658] sm:$0xff]  }
 0x5e1   : > { %20299 = vmatprep.subr.bf16.mxu1 %v22179_v62 }
 0x5e4   : > { %20300 = vmatpush3.bf16.msra.mxu1 %v21809_v8  ;;  %v21831_v8 = vld [vmem:[%s26610_s1 + $0x5e0] sm:$0xff]  }
 0x5e5   : > { %20301 = vmatprep.subr.bf16.mxu1 %v22179_v62 }
 0x5e8   : > { %20302 = vmatpush3.bf16.msra.mxu1 %v21810_v47  ;;  %v11929_v47 = vor.u32 %v11928_v24, %v11925_v46  ;;  %v22104_v46 = vld.sshfl [vmem:[#allocation3 + $0x20] sm:$0xf pattern:$0x76325410] }
 0x5e9   : > { %20303 = vmatprep.subr.bf16.mxu1 %v22179_v62  ;;  %v22105_v24 = vld.sshfl [vmem:[#allocation3 + $0x18] sm:$0xf pattern:$0x76325410] }
 0x5ea   : > { %v12279_v11 = vcombine.low %v22105_v24, %v22104_v46  ;;  %v18402_v46 = vld.sshfl [vmem:[#allocation4 + $0x14] sm:$0x13 pattern:$0x76325410] }
 0x5ec   : > { %20304 = vmatpush3.bf16.msra.mxu1 %v21811_v13  ;;  %v11943_v13 = vor.u32 %v11942_v0, %v11939_v57  ;;  %v21852_v57 = vld [vmem:[%s26610_s1 + $0x678] sm:$0xff]   ;;  %v21855_v0 = vld [vmem:[%s26610_s1 + $0x680] sm:$0xff]  }
 0x5ed   : > { %20305 = vmatprep.subr.bf16.mxu1 %v22179_v62 }
 0x5f0   : > { %20306 = vmatpush3.bf16.msra.mxu1 %v21812_v54  ;;  %v11960_v54 = vshll.u32 %v11913_v40, 16  ;;  %v21849_v40 = vld [vmem:[%s26610_s1 + $0x660] sm:$0xff]  }
 0x5f1   : > { %20307 = vmatprep.subr.bf16.mxu1 %v22179_v62 }
 0x5f4   : > { %20308 = vmatpush3.bf16.msra.mxu1 %v21813_v29  ;;  %v11974_v29 = vshll.u32 %v11921_v21, 16  ;;  %v21850_v21 = vld [vmem:[%s26610_s1 + $0x668] sm:$0xff]  }
 0x5f5   : > { %20309 = vmatprep.subr.bf16.mxu1 %v22179_v62 }
 0x5f8   : > { %20310 = vmatpush3.bf16.msra.mxu1 %v21814_v58  ;;  %v11958_v58 = vrot.slane %v11957_v45, 2  ;;  %v21858_v45 = vld [vmem:[%s26610_s1 + $0x698] sm:$0xff]  }
 0x5f9   : > { %20315 = vmatprep.subr.bf16.mxu1 %v22179_v62 }
 0x5fb   : > { %20312 = vmatmul.mubr.bf16.vlgmr.msra.gmra.mrb[40].mxu1 %v11655_v3  ;;  %v21832_v3 = vld [vmem:[%s26610_s1 + $0x5e8] sm:$0xff]  }
 0x5fc   : > { %20316 = vmatpush3.bf16.msra.mxu1 %v21817_v15  ;;  %20331 = vmatprep.mubr.msk.bf16.mxu1 %vm22180_vm2, %v22179_v62  ;;  %v11972_v15 = vrot.slane %v11971_v4, 2  ;;  %v21859_v4 = vld [vmem:[%s26610_s1 + $0x6a0] sm:$0xff]  }
 0x5fd   : > { %20317 = vmatprep.subr.bf16.mxu1 %v22179_v62 }
 0x600   : > { %20318 = vmatpush3.bf16.msra.mxu1 %v21818_v43  ;;  %v11930_v43 = vrot.slane %v11929_v47, 2  ;;  %v21861_v47 = vld [vmem:[%s26610_s1 + $0x6b0] sm:$0xff]  }
 0x601   : > { %20319 = vmatprep.subr.bf16.mxu1 %v22179_v62 }
 0x604   : > { %20320 = vmatpush3.bf16.msra.mxu1 %v21819_v53  ;;  %v11944_v53 = vrot.slane %v11943_v13, 2  ;;  %v21862_v13 = vld [vmem:[%s26610_s1 + $0x6b8] sm:$0xff]  }
 0x605   : > { %20321 = vmatprep.subr.bf16.mxu1 %v22179_v62 }
 0x608   : > { %20322 = vmatpush3.bf16.msra.mxu1 %v21820_v26  ;;  %v11962_v26 = vrot.slane %v11960_v54, 7  ;;  %v21867_v54 = vld [vmem:[%s26610_s1 + $0x6e0] sm:$0xff]  }
 0x609   : > { %20323 = vmatprep.subr.bf16.mxu1 %v22179_v62  ;;  %20424 = vmatpush3.bf16.msra.mxu0 %v21867_v54 }
 0x60a   : > { %v11963_v20 = vsel %vm25008_vm0, %v11958_v58, %v11962_v26  ;;  %20425 = vmatprep.subr.bf16.mxu0 %v22179_v62 }
 0x60c   : > { %20324 = vmatpush3.bf16.msra.mxu1 %v21821_v34  ;;  %v11976_v34 = vrot.slane %v11974_v29, 7  ;;  %v21868_v29 = vld [vmem:[%s26610_s1 + $0x6e8] sm:$0xff]  }
 0x60d   : > { %20325 = vmatprep.subr.bf16.mxu1 %v22179_v62  ;;  %20426 = vmatpush3.bf16.msra.mxu0 %v21868_v29 }
 0x60e   : > { %v11977_v16 = vsel %vm25008_vm0, %v11972_v15, %v11976_v34  ;;  %20427 = vmatprep.subr.bf16.mxu0 %v22179_v62 }
 0x60f   : > { %v11996_v61 = vcombine.low %v11963_v20, %v11977_v16 }
 0x610   : > { %20326 = vmatpush3.bf16.msra.mxu1 %v21822_v10  ;;  %v11934_v10 = vrot.slane %v11932_v7, 7 }
 0x611   : > { %20327 = vmatprep.subr.bf16.mxu1 %v22179_v62  ;;  %20428 = vmatpush3.bf16.msra.mxu0 %v21869_v48 }
 0x612   : > { %20429 = vmatprep.subr.bf16.mxu0 %v22179_v62 }
 0x614   : > { %20328 = vmatpush3.bf16.msra.mxu1 %v21823_v25  ;;  %v11948_v25 = vrot.slane %v11946_v49, 7 }
 0x615   : > { %20329 = vmatprep.subr.bf16.mxu1 %v22179_v62  ;;  %20430 = vmatpush3.bf16.msra.mxu0 %v21870_v30  ;;  %v25389_v30 = vld.sshfl [vmem:[#allocation4 + $0x14] sm:$0x12 pattern:$0x76325410] }
 0x616   : > { %20435 = vmatprep.subr.bf16.mxu0 %v22179_v62 }
 0x618   : > { %20330 = vmatpush3.bf16.msra.mxu1 %v21824_v23  ;;  %v21833_v23 = vld [vmem:[%s26610_s1 + $0x5f0] sm:$0xff]  }
 0x619   : > { %20335 = vmatprep.subr.bf16.mxu1 %v22179_v62 }
 0x61b   : > { %20332 = vmatmul.mubr.bf16.vlgmr.msra.gmra.mrb[40].mxu1 %v11789_v50  ;;  %v11949_v50 = vsel %vm25008_vm0, %v11944_v53, %v11948_v25 }
 0x61c   : > { %20336 = vmatpush3.bf16.msra.mxu1 %v21827_v35  ;;  %20351 = vmatprep.mubr.msk.bf16.mxu1 %vm22180_vm2, %v22179_v62  ;;  %v11935_v35 = vsel %vm25008_vm0, %v11930_v43, %v11934_v10 }
 0x61d   : > { %20337 = vmatprep.subr.bf16.mxu1 %v22179_v62  ;;  %v11995_v52 = vcombine.low %v11935_v35, %v11949_v50 }
 0x61f   : > { %v12003_v27 = vrot.slane %v11995_v52, %v25021_v28 }
 0x620   : > { %20338 = vmatpush3.bf16.msra.mxu1 %v21828_v39  ;;  %v12010_v39 = vrot.slane %v11996_v61, %v25021_v28 }
 0x621   : > { %20339 = vmatprep.subr.bf16.mxu1 %v22179_v62 }
 0x622   : > { %v12011_v41 = vcombine.low %v12003_v27, %v12010_v39 }
 0x624   : > { %20340 = vmatpush3.bf16.msra.mxu1 %v21829_v6  ;;  %v21840_v6 = vld [vmem:[%s26610_s1 + $0x628] sm:$0xff]  }
 0x625   : > { %20341 = vmatprep.subr.bf16.mxu1 %v22179_v62 }
 0x628   : > { %20342 = vmatpush3.bf16.msra.mxu1 %v21830_v17  ;;  %v21851_v17 = vld [vmem:[%s26610_s1 + $0x670] sm:$0xff]  }
 0x629   : > { %20343 = vmatprep.subr.bf16.mxu1 %v22179_v62 }
 0x62c   : > { %20344 = vmatpush3.bf16.msra.mxu1 %v21831_v8  ;;  %v21860_v8 = vld [vmem:[%s26610_s1 + $0x6a8] sm:$0xff]  }
 0x62d   : > { %20345 = vmatprep.subr.bf16.mxu1 %v22179_v62 }
 0x630   : > { %20346 = vmatpush3.bf16.msra.mxu1 %v21832_v3 }
 0x631   : > { %20347 = vmatprep.subr.bf16.mxu1 %v22179_v62 }
 0x634   : > { %20348 = vmatpush3.bf16.msra.mxu1 %v21833_v23 }
 0x635   : > { %20349 = vmatprep.subr.bf16.mxu1 %v22179_v62 }
 0x638   : > { %20350 = vmatpush3.bf16.msra.mxu1 %v21834_v19 }
 0x639   : > { %20355 = vmatprep.subr.bf16.mxu1 %v22179_v62 }
 0x63b   : > { %20352 = vmatmul.mubr.bf16.vlgmr.msra.gmra.mrb[40].mxu1 %v12011_v41 }
 0x63c   : > { %20356 = vmatpush3.bf16.msra.mxu1 %v21835_v5  ;;  %20371 = vmatprep.mubr.msk.bf16.mxu1 %vm22180_vm2, %v22179_v62 }
 0x63d   : > { %20357 = vmatprep.subr.bf16.mxu1 %v22179_v62 }
 0x640   : > { %20358 = vmatpush3.bf16.msra.mxu1 %v21836_v31 }
 0x641   : > { %20359 = vmatprep.subr.bf16.mxu1 %v22179_v62 }
 0x644   : > { %20360 = vmatpush3.bf16.msra.mxu1 %v21837_v38  ;;  %v12676_v38 = vld [vmem:[#allocation4 + $0x4] sm:$0x7] }
 0x645   : > { %20361 = vmatprep.subr.bf16.mxu1 %v22179_v62 }
 0x648   : > { %20362 = vmatpush3.bf16.msra.mxu1 %v21838_v9 }
 0x649   : > { %20363 = vmatprep.subr.bf16.mxu1 %v22179_v62 }
 0x64c   : > { %20364 = vmatpush3.bf16.msra.mxu1 %v21839_v22 }
 0x64d   : > { %20365 = vmatprep.subr.bf16.mxu1 %v22179_v62 }
 0x650   : > { %20366 = vmatpush3.bf16.msra.mxu1 %v21840_v6 }
 0x651   : > { %20367 = vmatprep.subr.bf16.mxu1 %v22179_v62 }
 0x654   : > { %20368 = vmatpush3.bf16.msra.mxu1 %v21841_v32  ;;  %v12679_v32 = vld [vmem:[#allocation4 + $0x8] sm:$0x7] }
 0x655   : > { %20369 = vmatprep.subr.bf16.mxu1 %v22179_v62 }
 0x658   : > { %20370 = vmatpush3.bf16.msra.mxu1 %v21842_v12 }
 0x659   : > { %20375 = vmatprep.subr.bf16.mxu1 %v22179_v62 }
 0x65b   : > { %20372 = vmatmul.mubr.bf16.vlgmr.msra.gmra.mrb[40].mxu1 %v12145_v1  ;;  %v12682_v1 = vld [vmem:[#allocation4 + $0xc] sm:$0x7] }
 0x65c   : > { %20376 = vmatpush3.bf16.msra.mxu1 %v21845_v14  ;;  %20391 = vmatprep.mubr.msk.bf16.mxu1 %vm22180_vm2, %v22179_v62 }
 0x65d   : > { %20377 = vmatprep.subr.bf16.mxu1 %v22179_v62 }
 0x660   : > { %20378 = vmatpush3.bf16.msra.mxu1 %v21846_v51 }
 0x661   : > { %20379 = vmatprep.subr.bf16.mxu1 %v22179_v62 }
 0x664   : > { %20380 = vmatpush3.bf16.msra.mxu1 %v21847_v55  ;;  %v12685_v55 = vld [vmem:[#allocation4 + $0x10] sm:$0x7] }
 0x665   : > { %20381 = vmatprep.subr.bf16.mxu1 %v22179_v62 }
 0x668   : > { %20382 = vmatpush3.bf16.msra.mxu1 %v21848_v63  ;;  %v18231_v63 = vld.sshfl [vmem:[#allocation4] sm:$0x13 pattern:$0x76325410] }
 0x669   : > { %20383 = vmatprep.subr.bf16.mxu1 %v22179_v62 }
 0x66c   : > { %20384 = vmatpush3.bf16.msra.mxu1 %v21849_v40 }
 0x66d   : > { %20385 = vmatprep.subr.bf16.mxu1 %v22179_v62 }
 0x670   : > { %20386 = vmatpush3.bf16.msra.mxu1 %v21850_v21 }
 0x671   : > { %20387 = vmatprep.subr.bf16.mxu1 %v22179_v62 }
 0x674   : > { %20388 = vmatpush3.bf16.msra.mxu1 %v21851_v17 }
 0x675   : > { %20389 = vmatprep.subr.bf16.mxu1 %v22179_v62 }
 0x678   : > { %20390 = vmatpush3.bf16.msra.mxu1 %v21852_v57 }
 0x679   : > { %20395 = vmatprep.subr.bf16.mxu1 %v22179_v62 }
 0x67b   : > { %20392 = vmatmul.mubr.bf16.vlgmr.msra.gmra.mrb[40].mxu1 %v12279_v11  ;;  %v12871_v11 = vshrl.u32 %v18231_v63, 16 }
 0x67c   : > { %20396 = vmatpush3.bf16.msra.mxu1 %v21855_v0  ;;  %20411 = vmatprep.mubr.msk.bf16.mxu1 %vm22180_vm2, %v22179_v62 }
 0x67d   : > { %20397 = vmatprep.subr.bf16.mxu1 %v22179_v62 }
 0x680   : > { %20398 = vmatpush3.bf16.msra.mxu1 %v21856_v56  ;;  %v12845_v56 = vcombine.high %v18231_v63, %v18231_v63 }
 0x681   : > { %20399 = vmatprep.subr.bf16.mxu1 %v22179_v62 }
 0x684   : > { %20400 = vmatpush3.bf16.msra.mxu1 %v21857_v2  ;;  %v12874_v2 = vshll.u32 %v18231_v63, 16 }
 0x685   : > { %20401 = vmatprep.subr.bf16.mxu1 %v22179_v62 }
 0x688   : > { %20402 = vmatpush3.bf16.msra.mxu1 %v21858_v45  ;;  %v13996_v45 = vshrl.u32 %v18402_v46, 16 }
 0x689   : > { %20403 = vmatprep.subr.bf16.mxu1 %v22179_v62 }
 0x68a   : > { %v13998_v54 = vrot.slane %v13996_v45, 6 }
 0x68c   : > { %20404 = vmatpush3.bf16.msra.mxu1 %v21859_v4  ;;  %v13999_v4 = vshll.u32 %v18402_v46, 16 }
 0x68d   : > { %20405 = vmatprep.subr.bf16.mxu1 %v22179_v62 }
 0x68e   : > { %v14001_v29 = vrot.slane %v13999_v4, 7 }
 0x690   : > { %20406 = vmatpush3.bf16.msra.mxu1 %v21860_v8  ;;  %v25383_v8 = vrot.slane %v12871_v11, 6 }
 0x691   : > { %20407 = vmatprep.subr.bf16.mxu1 %v22179_v62 }
 0x694   : > { %20408 = vmatpush3.bf16.msra.mxu1 %v21861_v47  ;;  %v25385_v47 = vrot.slane %v12874_v2, 7 }
 0x695   : > { %20409 = vmatprep.subr.bf16.mxu1 %v22179_v62 }
 0x698   : > { %20410 = vmatpush3.bf16.msra.mxu1 %v21862_v13  ;;  %v25387_v13 = vshll.u32 %v12845_v56, 16 }
 0x699   : > { %20595 = vmatprep.subr.bf16.mxu1 %v22179_v62 }
 0x69b   : > { %20412 = vmatmul.mubr.bf16.vlgmr.msra.gmra.mrb[40].mxu1 %v12501_v44  ;;  %v17975_v44 = vld [vmem:[%s26611_s2 + $0x2] ss:$0 sm:$0xff] }
 0x69c   : > { %20611 = vmatprep.mubr.msk.bf16.mxu1 %vm22180_vm2, %v22179_v62 }
 0x76e   : > { %v12585_v7 = vpop.f32.mrb[40].mxu1 }
 0x76f   : > { %v21047_v49 = vadd.f32 %v17975_v44, %v12585_v7  ;;  %v20413_v58 = vpop.f32.mrb[41].mxu1 }
 0x770   : > { %v12588_v15 = vpop.f32.mrb[42].mxu1  ;;  %v13952_v58 = vcombine.high %v18402_v46, %v18402_v46 }
 0x771   : > { %v21048_v3 = vadd.f32 %v17975_v44, %v12588_v15  ;;  %v20414_v43 = vpop.f32.mrb[43].mxu1  ;;  %v12594_v53 = vmax.f32 %v21047_v49, 0.0 }
 0x773   : > { %v12595_v26 = vmax.f32 %v21048_v3, 0.0 }
 0x775   : > { %v12596_v34 = vpack.c.bf16 %v12595_v26, %v12594_v53  ;;  %v18204_v10 = vpack.c.bf16 %v12595_v26, %v12595_v26 }
 0x777   : > { %v12605_v25 = vrot.slane %v12596_v34, %v25021_v28  ;;  %v12612_v20 = vrot.slane %v18204_v10, %v25021_v28  ;;  %v21873_v10 = vld [vmem:[%s26610_s1 + $0x700] sm:$0xff]  }
 0x779   : > { %v12613_v16 = vcombine.high %v12605_v25, %v12605_v25  ;;  %v12614_v23 = vcombine.high %v12612_v20, %v12612_v20  ;;  %v12621_v35 = vrot.slane %v12605_v25, %v25021_v28  ;;  %v12635_v50 = vrot.slane %v12612_v20, %v25021_v28 }
 0x77b   : > { %v12628_v61 = vrot.slane %v12613_v16, %v25021_v28  ;;  %v12642_v52 = vrot.slane %v12614_v23, %v25021_v28  ;;  %v12644_v19 = vshrl.u32 %v12621_v35, 16  ;;  %v12658_v39 = vshrl.u32 %v12635_v50, 16 }
 0x77c   : > { %v12647_v5 = vshll.u32 %v12621_v35, 16  ;;  %v12661_v6 = vshll.u32 %v12635_v50, 16  ;;  %v14174_v16 = vcombine.high %v25389_v30, %v25389_v30  ;;  %v18434_v23 = vrot.slane %v25389_v30, 9 }
 0x77d   : > { %v12646_v27 = vrot.slane %v12644_v19, 7  ;;  %v12651_v41 = vshrl.u32 %v12628_v61, 16  ;;  %v12665_v31 = vshrl.u32 %v12642_v52, 16  ;;  %v12654_v9 = vshll.u32 %v12628_v61, 16 }
 0x77e   : > { %v12660_v22 = vrot.slane %v12658_v39, 7  ;;  %v12668_v14 = vshll.u32 %v12642_v52, 16  ;;  %v14002_v52 = vor.u32 %v14001_v29, %v13998_v54  ;;  %v25397_v19 = vshll.u32 %v13952_v58, 16 }
 0x77f   : > { %v12649_v60 = vor.u32 %v12647_v5, %v12646_v27  ;;  %v12653_v59 = vrot.slane %v12651_v41, 7  ;;  %v12667_v12 = vrot.slane %v12665_v31, 7  ;;  %v21874_v31 = vld [vmem:[%s26610_s1 + $0x708] sm:$0xff]   ;;  %v12877_v58 = vor.u32 %v25385_v47, %v25383_v8 }
 0x780   : > { %v12663_v51 = vor.u32 %v12661_v6, %v12660_v22  ;;  %v14003_v63 = vrot.slane %v14002_v52, 2 }
 0x781   : > { %v12656_v40 = vor.u32 %v12654_v9, %v12653_v59  ;;  %v12670_v21 = vor.u32 %v12668_v14, %v12667_v12  ;;  %v12677_v17 = vsel %vm24877_vm13, %v12649_v60, %v12676_v38 }
 0x782   : > { %12678 = vst [vmem:[#allocation4 + $0x4] sm:$0x7] %v12677_v17  ;;  %v12683_v24 = vsel %vm24877_vm13, %v12663_v51, %v12682_v1  ;;  %v14189_v1 = vrot.slane %v14174_v16, 7 }
 0x783   : > { %v12680_v57 = vsel %vm24877_vm13, %v12656_v40, %v12679_v32  ;;  %12684 = vst [vmem:[#allocation4 + $0xc] sm:$0x7] %v12683_v24  ;;  %v12686_v0 = vsel %vm24877_vm13, %v12670_v21, %v12685_v55  ;;  %vm25404_vm13 = vmor %vm224_vm3, %vm6490_vm7  ;;  %v14007_v40 = vrot.slane %v25397_v19, 7  ;;  %v21875_v21 = vld [vmem:[%s26610_s1 + $0x710] sm:$0xff]  }
 0x784   : > { %12681 = vst [vmem:[#allocation4 + $0x8] sm:$0x7] %v12680_v57  ;;  %12687 = vst [vmem:[#allocation4 + $0x10] sm:$0x7] %v12686_v0 }
 0x785   : > { %vm13095_vm1 = vmor %vm25404_vm13, %vm6496_vm9  ;;  %vm439_vm9 = vcmask 1041408   ;;  %vm14881_vm13 = vsmask.f32 3340 }
 0x786   : > { %vm25422_vm10 = vmor %vm13095_vm1, %vm6502_vm11  ;;  %vm14883_vm1 = vsmask.f32 4368 }
 0x787   : > { %vm25768_vm11 = vmand %vm439_vm9, %vm440_vm15  ;;  %vm14460_vm15 = vsmask.f32 1282 }
 0x788   : > { %vm25858_vm8 = vmand %vm439_vm9, %vm14460_vm15  ;;  %vm14885_vm9 = vsmask.f32 5396  ;;  %vm14887_vm15 = vsmask.f32 6424 }
 0x789   : > { %v22106_v48 = vld.sshfl [vmem:[#allocation4] sm:$0xf pattern:$0x76325410] }
 0x78a   : > { %v18232_v42 = vld.sshfl [vmem:[#allocation4 + $0x4] sm:$0x13 pattern:$0x76325410] }
 0x78b   : > { %v22107_v44 = vld.sshfl [vmem:[#allocation4 + $0x8] sm:$0xf pattern:$0x76325410]  ;;  %v12885_v7 = vshrl.u32 %v18232_v42, 16  ;;  %v12888_v49 = vshll.u32 %v18232_v42, 16  ;;  %v12853_v3 = vcombine.high %v18232_v42, %v18232_v42 }
 0x78c   : > { %v18233_v15 = vld.sshfl [vmem:[#allocation4 + $0x8] sm:$0x13 pattern:$0x76325410]  ;;  %v12737_v35 = vcombine.low %v22106_v48, %v22107_v44 }
 0x78d   : > { %v18234_v43 = vld.sshfl [vmem:[#allocation4 + $0xc] sm:$0x13 pattern:$0x76325410]  ;;  %v12861_v53 = vcombine.high %v18233_v15, %v18233_v15  ;;  %v12887_v26 = vrot.slane %v12885_v7, 6  ;;  %v12890_v34 = vrot.slane %v12888_v49, 7 }
 0x78e   : > { %v12899_v25 = vshrl.u32 %v18233_v15, 16  ;;  %v12902_v20 = vshll.u32 %v18233_v15, 16  ;;  %v12913_v50 = vshrl.u32 %v18234_v43, 16  ;;  %v12894_v39 = vshll.u32 %v12853_v3, 16  ;;  %20432 = vmatmul.mubr.bf16.vlgmr.msra.gmra.mrb[32].mxu0 %v12737_v35 }
 0x78f   : > { %v18260_v61 = vld.sshfl [vmem:[#allocation4 + $0x4] sm:$0x12 pattern:$0x76325410]  ;;  %v12916_v41 = vshll.u32 %v18234_v43, 16  ;;  %v12869_v38 = vcombine.high %v18234_v43, %v18234_v43  ;;  %v12891_v9 = vor.u32 %v12890_v34, %v12887_v26  ;;  %v12908_v22 = vshll.u32 %v12861_v53, 16  ;;  %20436 = vmatpush3.bf16.msra.mxu0 %v21873_v10  ;;  %20451 = vmatprep.mubr.msk.bf16.mxu0 %vm22180_vm2, %v22179_v62 }
 0x790   : > { %v12901_v27 = vrot.slane %v12899_v25, 6  ;;  %v12904_v5 = vrot.slane %v12902_v20, 7  ;;  %v12915_v6 = vrot.slane %v12913_v50, 6  ;;  %v13075_v14 = vcombine.high %v18260_v61, %v18260_v61  ;;  %20437 = vmatprep.subr.bf16.mxu0 %v22179_v62  ;;  %v21876_v10 = vld [vmem:[%s26610_s1 + $0x718] sm:$0xff]  }
 0x791   : > { %v12918_v59 = vrot.slane %v12916_v41, 7  ;;  %v18261_v12 = vld.sshfl [vmem:[#allocation4 + $0x8] sm:$0x12 pattern:$0x76325410]  ;;  %v12896_v17 = vrot.slane %v12894_v39, 7 }
 0x792   : > { %v12905_v60 = vor.u32 %v12904_v5, %v12901_v27  ;;  %v18262_v51 = vld.sshfl [vmem:[#allocation4 + $0xc] sm:$0x12 pattern:$0x76325410]  ;;  %v13083_v55 = vcombine.high %v18261_v12, %v18261_v12  ;;  %v12892_v0 = vrot.slane %v12891_v9, 2  ;;  %v12910_v11 = vrot.slane %v12908_v22, 7 }
 0x793   : > { %v12919_v24 = vor.u32 %v12918_v59, %v12915_v6  ;;  %v13091_v57 = vcombine.high %v18262_v51, %v18262_v51  ;;  %v12922_v56 = vshll.u32 %v12869_v38, 16  ;;  %20438 = vmatpush3.bf16.msra.mxu0 %v21874_v31  ;;  %v18264_v45 = vrot.slane %v18260_v61, 9  ;;  %v18318_v54 = vld.sshfl [vmem:[#allocation4 + $0x10] sm:$0x13 pattern:$0x76325410] }
 0x794   : > { %v12906_v46 = vrot.slane %v12905_v60, 2  ;;  %v13108_v2 = vrot.slane %v13083_v55, 7  ;;  %v13104_v4 = vrot.slane %v13075_v14, 7  ;;  %20439 = vmatprep.subr.bf16.mxu0 %v22179_v62  ;;  %v18265_v42 = vrot.slane %v18261_v12, 9  ;;  %v21877_v9 = vld [vmem:[%s26610_s1 + $0x720] sm:$0xff]  }
 0x795   : > { %v13112_v44 = vrot.slane %v13091_v57, 7  ;;  %v13413_v7 = vcombine.high %v18318_v54, %v18318_v54  ;;  %v18346_v49 = vld.sshfl [vmem:[#allocation4 + $0x10] sm:$0x12 pattern:$0x76325410]  ;;  %v12920_v15 = vrot.slane %v12919_v24, 2  ;;  %v12897_v43 = vsel %vm25008_vm0, %v12892_v0, %v12896_v17 }
 0x796   : > { %v12911_v29 = vsel %vm25008_vm0, %v12906_v46, %v12910_v11  ;;  %v13457_v3 = vshrl.u32 %v18318_v54, 16  ;;  %v13109_v53 = vsel %vm25422_vm10, %v18265_v42, %v13108_v2  ;;  %v18266_v26 = vrot.slane %v18262_v51, 9 }
 0x797   : > { %v13460_v34 = vshll.u32 %v18318_v54, 16  ;;  %20440 = vmatpush3.bf16.msra.mxu0 %v21875_v21  ;;  %v12924_v25 = vrot.slane %v12922_v56, 7  ;;  %v25437_v20 = vsel %vm25422_vm10, %v18264_v45, %v13104_v4  ;;  %v13487_v47 = vcombine.low %v12897_v43, %v12911_v29  ;;  %v21879_v56 = vld [vmem:[%s26610_s1 + $0x730] sm:$0xff]  }
 0x798   : > { %v13459_v8 = vrot.slane %v13457_v3, 6  ;;  %20441 = vmatprep.subr.bf16.mxu0 %v22179_v62  ;;  %v13113_v16 = vsel %vm25422_vm10, %v18266_v26, %v13112_v44  ;;  %v13466_v50 = vshll.u32 %v13413_v7, 16  ;;  %v13635_v61 = vcombine.high %v18346_v49, %v18346_v49  ;;  %v21882_v7 = vld [vmem:[%s26610_s1 + $0x748] sm:$0xff]   ;;  %v21885_v3 = vld [vmem:[%s26610_s1 + $0x760] sm:$0xff]  }
 0x799   : > { %v13462_v35 = vrot.slane %v13460_v34, 7  ;;  %v12925_v52 = vsel %vm25008_vm0, %v12920_v15, %v12924_v25  ;;  %v13132_v19 = vcombine.low %v13109_v53, %v13113_v16  ;;  %v13669_v39 = vcombine.low %v25437_v20, %v13109_v53  ;;  %v18259_v15 = vld.sshfl [vmem:[#allocation4] sm:$0x12 pattern:$0x76325410]  ;;  %v21886_v53 = vld [vmem:[%s26610_s1 + $0x768] sm:$0xff]  }
 0x79a   : > { %v14190_v27 = vsel %vm25422_vm10, %v18434_v23, %v14189_v1  ;;  %v12944_v5 = vcombine.low %v12911_v29, %v12925_v52  ;;  %v18350_v31 = vrot.slane %v18346_v49, 9  ;;  %v13650_v38 = vrot.slane %v13635_v61, 7  ;;  %v21880_v29 = vld [vmem:[%s26610_s1 + $0x738] sm:$0xff]   ;;  %v21883_v49 = vld [vmem:[%s26610_s1 + $0x750] sm:$0xff]  }
 0x79b   : > { %v13463_v41 = vor.u32 %v13462_v35, %v13459_v8  ;;  %20442 = vmatpush3.bf16.msra.mxu0 %v21876_v10  ;;  %v12882_v22 = vrot.slane %v25387_v13, 7  ;;  %v13468_v32 = vrot.slane %v13466_v50, 7  ;;  %v14008_v23 = vsel %vm25008_vm0, %v14003_v63, %v14007_v40  ;;  %v21878_v63 = vld [vmem:[%s26610_s1 + $0x728] sm:$0xff]   ;;  %v21887_v10 = vld [vmem:[%s26610_s1 + $0x770] sm:$0xff]   ;;  %v21889_v35 = vld [vmem:[%s26610_s1 + $0x780] sm:$0xff]  }
 0x79c   : > { %20443 = vmatprep.subr.bf16.mxu0 %v22179_v62  ;;  %v13651_v30 = vsel %vm25422_vm10, %v18350_v31, %v13650_v38  ;;  %v25459_v60 = vrot.slane %v13132_v19, %v25021_v28  ;;  %v25462_v12 = vrot.slane %v13669_v39, %v25021_v28  ;;  %v12878_v1 = vrot.slane %v12877_v58, 2  ;;  %v21884_v58 = vld [vmem:[%s26610_s1 + $0x758] sm:$0xff]   ;;  %v21891_v50 = vld [vmem:[%s26610_s1 + $0x790] sm:$0xff]   ;;  %v21894_v19 = vld [vmem:[%s26610_s1 + $0x7a8] sm:$0xff]  }
 0x79d   : > { %v13464_v6 = vrot.slane %v13463_v41, 2  ;;  %v13670_v59 = vcombine.low %v13113_v16, %v13651_v30  ;;  %v14209_v14 = vcombine.low %v13651_v30, %v14190_v27  ;;  %v25465_v13 = vrot.slane %v12944_v5, %v25021_v28  ;;  %v21892_v61 = vld [vmem:[%s26610_s1 + $0x798] sm:$0xff]   ;;  %v21895_v39 = vld [vmem:[%s26610_s1 + $0x7b0] sm:$0xff]   ;;  %v21899_v31 = vld [vmem:[%s26610_s1 + $0x7c0] sm:$0xff]  }
 0x79e   : > { %v25470_v55 = vrot.slane %v13487_v47, %v25021_v28  ;;  %v12883_v2 = vsel %vm25008_vm0, %v12878_v1, %v12882_v22  ;;  %v18263_v26 = vrot.slane %v18259_v15, 9  ;;  %v21888_v47 = vld [vmem:[%s26610_s1 + $0x778] sm:$0xff]   ;;  %v21901_v22 = vld [vmem:[%s26610_s1 + $0x7d0] sm:$0xff]   ;;  %v21904_v30 = vld [vmem:[%s26610_s1 + $0x7e8] sm:$0xff]  }
 0x79f   : > { %v13469_v51 = vsel %vm25008_vm0, %v13464_v6, %v13468_v32  ;;  %20444 = vmatpush3.bf16.msra.mxu0 %v21877_v9  ;;  %v25476_v21 = vrot.slane %v13670_v59, %v25021_v28  ;;  %v25479_v46 = vrot.slane %v14209_v14, %v25021_v28  ;;  %v12943_v54 = vcombine.low %v12883_v2, %v12897_v43  ;;  %v22108_v27 = vld.sshfl [vmem:[#allocation4 + $0x4] sm:$0xf pattern:$0x76325410]  ;;  %v21900_v9 = vld [vmem:[%s26610_s1 + $0x7c8] sm:$0xff]   ;;  %v21903_v32 = vld [vmem:[%s26610_s1 + $0x7e0] sm:$0xff]  }
 0x7a0   : > { %v13488_v40 = vcombine.low %v12925_v52, %v13469_v51  ;;  %v14027_v17 = vcombine.low %v13469_v51, %v14008_v23  ;;  %20445 = vmatprep.subr.bf16.mxu0 %v22179_v62  ;;  %v13067_v43 = vcombine.high %v18259_v15, %v18259_v15  ;;  %v21893_v52 = vld [vmem:[%s26610_s1 + $0x7a0] sm:$0xff]   ;;  %v21896_v41 = vld [vmem:[%s26610_s1 + $0x7b8] sm:$0xff]   ;;  %v21905_v23 = vld [vmem:[%s26610_s1 + $0x7f0] sm:$0xff]  }
 0x7a1   : > { %v13685_v57 = vcombine.low %v25462_v12, %v25476_v21  ;;  %v14224_v11 = vcombine.low %v25459_v60, %v25479_v46  ;;  %v12951_v42 = vrot.slane %v12943_v54, %v25021_v28  ;;  %v22109_v5 = vld.sshfl [vmem:[#allocation4 + $0xc] sm:$0xf pattern:$0x76325410]  ;;  %v21908_v1 = vld [vmem:[%s26610_s1 + $0x808] sm:$0xff]   ;;  %v21909_v51 = vld [vmem:[%s26610_s1 + $0x810] sm:$0xff]  }
 0x7a2   : > { %v25483_v24 = vrot.slane %v13488_v40, %v25021_v28  ;;  %v25488_v0 = vrot.slane %v14027_v17, %v25021_v28  ;;  %v13100_v34 = vrot.slane %v13067_v43, 7  ;;  %v13281_v38 = vcombine.low %v22108_v27, %v22109_v5  ;;  %v21902_v6 = vld [vmem:[%s26610_s1 + $0x7d8] sm:$0xff]   ;;  %v21907_v14 = vld [vmem:[%s26610_s1 + $0x800] sm:$0xff]   ;;  %v21912_v40 = vld [vmem:[%s26610_s1 + $0x828] sm:$0xff]  }
 0x7a3   : > { %20446 = vmatpush3.bf16.msra.mxu0 %v21878_v63  ;;  %v12959_v44 = vcombine.low %v12951_v42, %v25465_v13  ;;  %v21906_v59 = vld [vmem:[%s26610_s1 + $0x7f8] sm:$0xff]   ;;  %v21911_v63 = vld [vmem:[%s26610_s1 + $0x820] sm:$0xff]   ;;  %v21913_v17 = vld [vmem:[%s26610_s1 + $0x830] sm:$0xff]  }
 0x7a4   : > { %v13503_v45 = vcombine.low %v25470_v55, %v25483_v24  ;;  %v14042_v4 = vcombine.low %v25465_v13, %v25488_v0  ;;  %20447 = vmatprep.subr.bf16.mxu0 %v22179_v62  ;;  %v13101_v25 = vsel %vm25422_vm10, %v18263_v26, %v13100_v34  ;;  %v21910_v55 = vld [vmem:[%s26610_s1 + $0x818] sm:$0xff]   ;;  %v21916_v2 = vld [vmem:[%s26610_s1 + $0x848] sm:$0xff]   ;;  %v21919_v21 = vld [vmem:[%s26610_s1 + $0x860] sm:$0xff]  }
 0x7a5   : > { %v13131_v8 = vcombine.low %v13101_v25, %v25437_v20  ;;  %v21890_v20 = vld [vmem:[%s26610_s1 + $0x788] sm:$0xff]   ;;  %v21914_v24 = vld [vmem:[%s26610_s1 + $0x838] sm:$0xff]   ;;  %v21921_v54 = vld [vmem:[%s26610_s1 + $0x870] sm:$0xff]  }
 0x7a6   : > { %v21918_v12 = vld [vmem:[%s26610_s1 + $0x858] sm:$0xff]   ;;  %v22111_v42 = vld.sshfl [vmem:[#allocation4 + $0x10] sm:$0xf pattern:$0x76325410]  ;;  %v21930_v43 = vld [vmem:[%s26610_s1 + $0x8a8] sm:$0xff]  }
 0x7a7   : > { %20448 = vmatpush3.bf16.msra.mxu0 %v21879_v56  ;;  %v13139_v16 = vrot.slane %v13131_v8, %v25021_v28  ;;  %v21915_v56 = vld [vmem:[%s26610_s1 + $0x840] sm:$0xff]   ;;  %v21928_v15 = vld [vmem:[%s26610_s1 + $0x898] sm:$0xff]   ;;  %v21935_v25 = vld [vmem:[%s26610_s1 + $0x8d0] sm:$0xff]  }
 0x7a8   : > { %20449 = vmatprep.subr.bf16.mxu0 %v22179_v62  ;;  %v21932_v26 = vld [vmem:[%s26610_s1 + $0x8b8] sm:$0xff]   ;;  %v21933_v34 = vld [vmem:[%s26610_s1 + $0x8c0] sm:$0xff]   ;;  %v21939_v8 = vld [vmem:[%s26610_s1 + $0x8f0] sm:$0xff]  }
 0x7a9   : > { %v13147_v48 = vcombine.low %v13139_v16, %v25459_v60  ;;  %v21936_v13 = vld [vmem:[%s26610_s1 + $0x8d8] sm:$0xff]   ;;  %v21937_v0 = vld [vmem:[%s26610_s1 + $0x8e0] sm:$0xff]   ;;  %v445_v16 = vld [vmem:[#allocation5 + $0x2] sm:$0x3] }
 0x7aa   : > { %v466_v27 = vld [vmem:[#allocation5 + $0x10] sm:$0x3] }
 0x7ab   : > { %20450 = vmatpush3.bf16.msra.mxu0 %v21880_v29  ;;  %v22110_v29 = vld.sshfl [vmem:[#allocation4 + $0x8] sm:$0xf pattern:$0x76325410] }
 0x7ac   : > { %20455 = vmatprep.subr.bf16.mxu0 %v22179_v62 }
 0x7ae   : > { %20452 = vmatmul.mubr.bf16.vlgmr.msra.gmra.mrb[32].mxu0 %v12959_v44  ;;  %v21925_v44 = vld [vmem:[%s26610_s1 + $0x880] sm:$0xff]  }
 0x7af   : > { %20456 = vmatpush3.bf16.msra.mxu0 %v21881_v33  ;;  %20471 = vmatprep.mubr.msk.bf16.mxu0 %vm22180_vm2, %v22179_v62  ;;  %v21922_v33 = vld [vmem:[%s26610_s1 + $0x878] sm:$0xff]  }
 0x7b0   : > { %20457 = vmatprep.subr.bf16.mxu0 %v22179_v62 }
 0x7b3   : > { %20458 = vmatpush3.bf16.msra.mxu0 %v21882_v7  ;;  %v13820_v7 = vcombine.low %v22110_v29, %v22111_v42 }
 0x7b4   : > { %20459 = vmatprep.subr.bf16.mxu0 %v22179_v62 }
 0x7b7   : > { %20460 = vmatpush3.bf16.msra.mxu0 %v21883_v49  ;;  %v21926_v49 = vld [vmem:[%s26610_s1 + $0x888] sm:$0xff]  }
 0x7b8   : > { %20461 = vmatprep.subr.bf16.mxu0 %v22179_v62 }
 0x7bb   : > { %20462 = vmatpush3.bf16.msra.mxu0 %v21884_v58  ;;  %v21927_v58 = vld [vmem:[%s26610_s1 + $0x890] sm:$0xff]  }
 0x7bc   : > { %20463 = vmatprep.subr.bf16.mxu0 %v22179_v62 }
 0x7bf   : > { %20464 = vmatpush3.bf16.msra.mxu0 %v21885_v3  ;;  %v21929_v3 = vld [vmem:[%s26610_s1 + $0x8a0] sm:$0xff]  }
 0x7c0   : > { %20465 = vmatprep.subr.bf16.mxu0 %v22179_v62 }
 0x7c3   : > { %20466 = vmatpush3.bf16.msra.mxu0 %v21886_v53  ;;  %v21931_v53 = vld [vmem:[%s26610_s1 + $0x8b0] sm:$0xff]  }
 0x7c4   : > { %20467 = vmatprep.subr.bf16.mxu0 %v22179_v62 }
 0x7c7   : > { %20468 = vmatpush3.bf16.msra.mxu0 %v21887_v10  ;;  %v21934_v10 = vld [vmem:[%s26610_s1 + $0x8c8] sm:$0xff]  }
 0x7c8   : > { %20469 = vmatprep.subr.bf16.mxu0 %v22179_v62 }
 0x7cb   : > { %20470 = vmatpush3.bf16.msra.mxu0 %v21888_v47  ;;  %v21940_v47 = vld [vmem:[%s26610_s1 + $0x8f8] sm:$0xff]  }
 0x7cc   : > { %20475 = vmatprep.subr.bf16.mxu0 %v22179_v62 }
 0x7ce   : > { %20472 = vmatmul.mubr.bf16.vlgmr.msra.gmra.mrb[32].mxu0 %v13147_v48 }
 0x7cf   : > { %20476 = vmatpush3.bf16.msra.mxu0 %v21889_v35  ;;  %20491 = vmatprep.mubr.msk.bf16.mxu0 %vm22180_vm2, %v22179_v62  ;;  %v448_v35 = vld [vmem:[#allocation5 + $0x4] sm:$0x3] }
 0x7d0   : > { %20477 = vmatprep.subr.bf16.mxu0 %v22179_v62  ;;  %v449_v60 = vsel %vm25768_vm11, 0, %v448_v35 }
 0x7d1   : > { %450 = vst [vmem:[#allocation5 + $0x4] sm:$0x3] %v449_v60 }
 0x7d3   : > { %20478 = vmatpush3.bf16.msra.mxu0 %v21890_v20  ;;  %v454_v20 = vld [vmem:[#allocation5 + $0x8] sm:$0x3] }
 0x7d4   : > { %20479 = vmatprep.subr.bf16.mxu0 %v22179_v62  ;;  %v455_v46 = vsel %vm25768_vm11, 0, %v454_v20 }
 0x7d5   : > { %456 = vst [vmem:[#allocation5 + $0x8] sm:$0x3] %v455_v46 }
 0x7d7   : > { %20480 = vmatpush3.bf16.msra.mxu0 %v21891_v50  ;;  %v457_v50 = vld [vmem:[#allocation5 + $0xa] sm:$0x3] }
 0x7d8   : > { %20481 = vmatprep.subr.bf16.mxu0 %v22179_v62 }
 0x7db   : > { %20482 = vmatpush3.bf16.msra.mxu0 %v21892_v61  ;;  %v446_v61 = vsel %vm25768_vm11, 0, %v445_v16 }
 0x7dc   : > { %20483 = vmatprep.subr.bf16.mxu0 %v22179_v62  ;;  %447 = vst [vmem:[#allocation5 + $0x2] sm:$0x3] %v446_v61 }
 0x7df   : > { %20484 = vmatpush3.bf16.msra.mxu0 %v21893_v52  ;;  %v460_v52 = vld [vmem:[#allocation5 + $0xc] sm:$0x3] }
 0x7e0   : > { %20485 = vmatprep.subr.bf16.mxu0 %v22179_v62 }
 0x7e3   : > { %20486 = vmatpush3.bf16.msra.mxu0 %v21894_v19  ;;  %v461_v19 = vsel %vm25768_vm11, 0, %v460_v52 }
 0x7e4   : > { %20487 = vmatprep.subr.bf16.mxu0 %v22179_v62  ;;  %462 = vst [vmem:[#allocation5 + $0xc] sm:$0x3] %v461_v19 }
 0x7e7   : > { %20488 = vmatpush3.bf16.msra.mxu0 %v21895_v39  ;;  %v463_v39 = vld [vmem:[#allocation5 + $0xe] sm:$0x3] }
 0x7e8   : > { %20489 = vmatprep.subr.bf16.mxu0 %v22179_v62  ;;  %v464_v5 = vsel %vm25768_vm11, 0, %v463_v39 }
 0x7e9   : > { %465 = vst [vmem:[#allocation5 + $0xe] sm:$0x3] %v464_v5 }
 0x7eb   : > { %20490 = vmatpush3.bf16.msra.mxu0 %v21896_v41  ;;  %v467_v41 = vsel %vm25768_vm11, 0, %v466_v27 }
 0x7ec   : > { %20495 = vmatprep.subr.bf16.mxu0 %v22179_v62  ;;  %468 = vst [vmem:[#allocation5 + $0x10] sm:$0x3] %v467_v41 }
 0x7ee   : > { %20492 = vmatmul.mubr.bf16.vlgmr.msra.gmra.mrb[32].mxu0 %v13281_v38  ;;  %v472_v38 = vld [vmem:[#allocation5 + $0x14] sm:$0x3] }
 0x7ef   : > { %20496 = vmatpush3.bf16.msra.mxu0 %v21899_v31  ;;  %20511 = vmatprep.mubr.msk.bf16.mxu0 %vm22180_vm2, %v22179_v62  ;;  %v469_v31 = vld [vmem:[#allocation5 + $0x12] sm:$0x3] }
 0x7f0   : > { %20497 = vmatprep.subr.bf16.mxu0 %v22179_v62 }
 0x7f3   : > { %20498 = vmatpush3.bf16.msra.mxu0 %v21900_v9  ;;  %v470_v9 = vsel %vm25768_vm11, 0, %v469_v31 }
 0x7f4   : > { %20499 = vmatprep.subr.bf16.mxu0 %v22179_v62  ;;  %471 = vst [vmem:[#allocation5 + $0x12] sm:$0x3] %v470_v9 }
 0x7f7   : > { %20500 = vmatpush3.bf16.msra.mxu0 %v21901_v22  ;;  %v473_v22 = vsel %vm25768_vm11, 0, %v472_v38 }
 0x7f8   : > { %20501 = vmatprep.subr.bf16.mxu0 %v22179_v62  ;;  %474 = vst [vmem:[#allocation5 + $0x14] sm:$0x3] %v473_v22 }
 0x7fb   : > { %20502 = vmatpush3.bf16.msra.mxu0 %v21902_v6  ;;  %v475_v6 = vld [vmem:[#allocation5 + $0x16] sm:$0x3] }
 0x7fc   : > { %20503 = vmatprep.subr.bf16.mxu0 %v22179_v62 }
 0x7ff   : > { %20504 = vmatpush3.bf16.msra.mxu0 %v21903_v32  ;;  %v476_v32 = vsel %vm25768_vm11, 0, %v475_v6 }
 0x800   : > { %20505 = vmatprep.subr.bf16.mxu0 %v22179_v62  ;;  %477 = vst [vmem:[#allocation5 + $0x16] sm:$0x3] %v476_v32 }
 0x803   : > { %20506 = vmatpush3.bf16.msra.mxu0 %v21904_v30  ;;  %v21941_v30 = vld [vmem:[%s26610_s1 + $0x900] sm:$0xff]  }
 0x804   : > { %20507 = vmatprep.subr.bf16.mxu0 %v22179_v62  ;;  %20596 = vmatpush3.bf16.msra.mxu1 %v21941_v30 }
 0x805   : > { %20597 = vmatprep.subr.bf16.mxu1 %v22179_v62 }
 0x807   : > { %20508 = vmatpush3.bf16.msra.mxu0 %v21905_v23  ;;  %v21942_v23 = vld [vmem:[%s26610_s1 + $0x908] sm:$0xff]  }
 0x808   : > { %20509 = vmatprep.subr.bf16.mxu0 %v22179_v62  ;;  %20598 = vmatpush3.bf16.msra.mxu1 %v21942_v23 }
 0x809   : > { %20599 = vmatprep.subr.bf16.mxu1 %v22179_v62 }
 0x80b   : > { %20510 = vmatpush3.bf16.msra.mxu0 %v21906_v59  ;;  %v442_v59 = vld [vmem:[#allocation5] sm:$0x3] }
 0x80c   : > { %20515 = vmatprep.subr.bf16.mxu0 %v22179_v62 }
 0x80e   : > { %20512 = vmatmul.mubr.bf16.vlgmr.msra.gmra.mrb[32].mxu0 %v13503_v45  ;;  %v21917_v45 = vld [vmem:[%s26610_s1 + $0x850] sm:$0xff]  }
 0x80f   : > { %20516 = vmatpush3.bf16.msra.mxu0 %v21907_v14  ;;  %20531 = vmatprep.mubr.msk.bf16.mxu0 %vm22180_vm2, %v22179_v62  ;;  %v443_v14 = vsel %vm25768_vm11, 0, %v442_v59 }
 0x810   : > { %20517 = vmatprep.subr.bf16.mxu0 %v22179_v62  ;;  %444 = vst [vmem:[#allocation5] sm:$0x3] %v443_v14 }
 0x813   : > { %20518 = vmatpush3.bf16.msra.mxu0 %v21908_v1  ;;  %v21943_v1 = vld [vmem:[%s26610_s1 + $0x910] sm:$0xff]  }
 0x814   : > { %20519 = vmatprep.subr.bf16.mxu0 %v22179_v62  ;;  %20600 = vmatpush3.bf16.msra.mxu1 %v21943_v1 }
 0x815   : > { %20601 = vmatprep.subr.bf16.mxu1 %v22179_v62 }
 0x817   : > { %20520 = vmatpush3.bf16.msra.mxu0 %v21909_v51  ;;  %v21944_v51 = vld [vmem:[%s26610_s1 + $0x918] sm:$0xff]  }
 0x818   : > { %20521 = vmatprep.subr.bf16.mxu0 %v22179_v62  ;;  %20602 = vmatpush3.bf16.msra.mxu1 %v21944_v51 }
 0x819   : > { %20603 = vmatprep.subr.bf16.mxu1 %v22179_v62 }
 0x81b   : > { %20522 = vmatpush3.bf16.msra.mxu0 %v21910_v55  ;;  %v21945_v55 = vld [vmem:[%s26610_s1 + $0x920] sm:$0xff]  }
 0x81c   : > { %20523 = vmatprep.subr.bf16.mxu0 %v22179_v62  ;;  %20604 = vmatpush3.bf16.msra.mxu1 %v21945_v55 }
 0x81d   : > { %20605 = vmatprep.subr.bf16.mxu1 %v22179_v62 }
 0x81f   : > { %20524 = vmatpush3.bf16.msra.mxu0 %v21911_v63  ;;  %v21946_v63 = vld [vmem:[%s26610_s1 + $0x928] sm:$0xff]  }
 0x820   : > { %20525 = vmatprep.subr.bf16.mxu0 %v22179_v62  ;;  %20606 = vmatpush3.bf16.msra.mxu1 %v21946_v63 }
 0x821   : > { %20607 = vmatprep.subr.bf16.mxu1 %v22179_v62 }
 0x823   : > { %20526 = vmatpush3.bf16.msra.mxu0 %v21912_v40  ;;  %v21947_v40 = vld [vmem:[%s26610_s1 + $0x930] sm:$0xff]  }
 0x824   : > { %20527 = vmatprep.subr.bf16.mxu0 %v22179_v62  ;;  %20608 = vmatpush3.bf16.msra.mxu1 %v21947_v40  ;;  %v14462_v40 = vld [vmem:[#allocation5 + $0xc] sm:$0x3] }
 0x825   : > { %20609 = vmatprep.subr.bf16.mxu1 %v22179_v62 }
 0x827   : > { %20528 = vmatpush3.bf16.msra.mxu0 %v21913_v17  ;;  %v21948_v17 = vld [vmem:[%s26610_s1 + $0x938] sm:$0xff]  }
 0x828   : > { %20529 = vmatprep.subr.bf16.mxu0 %v22179_v62  ;;  %20610 = vmatpush3.bf16.msra.mxu1 %v21948_v17  ;;  %v14465_v17 = vld [vmem:[#allocation5 + $0xe] sm:$0x3] }
 0x829   : > { %20615 = vmatprep.subr.bf16.mxu1 %v22179_v62 }
 0x82b   : > { %20530 = vmatpush3.bf16.msra.mxu0 %v21914_v24  ;;  %v451_v24 = vld [vmem:[#allocation5 + $0x6] sm:$0x3] }
 0x82c   : > { %20535 = vmatprep.subr.bf16.mxu0 %v22179_v62 }
 0x82e   : > { %20532 = vmatmul.mubr.bf16.vlgmr.msra.gmra.mrb[32].mxu0 %v13685_v57  ;;  %v21920_v57 = vld [vmem:[%s26610_s1 + $0x868] sm:$0xff]  }
 0x82f   : > { %20536 = vmatpush3.bf16.msra.mxu0 %v21915_v56  ;;  %20551 = vmatprep.mubr.msk.bf16.mxu0 %vm22180_vm2, %v22179_v62  ;;  %v452_v56 = vsel %vm25768_vm11, 0, %v451_v24 }
 0x830   : > { %20537 = vmatprep.subr.bf16.mxu0 %v22179_v62  ;;  %453 = vst [vmem:[#allocation5 + $0x6] sm:$0x3] %v452_v56 }
 0x833   : > { %20538 = vmatpush3.bf16.msra.mxu0 %v21916_v2  ;;  %v18206_v2 = vld [vmem:[%s26611_s2 + $0x3] ss:$0 sm:$0xff] }
 0x834   : > { %20539 = vmatprep.subr.bf16.mxu0 %v22179_v62 }
 0x837   : > { %20540 = vmatpush3.bf16.msra.mxu0 %v21917_v45 }
 0x838   : > { %20541 = vmatprep.subr.bf16.mxu0 %v22179_v62 }
 0x83b   : > { %20542 = vmatpush3.bf16.msra.mxu0 %v21918_v12 }
 0x83c   : > { %20543 = vmatprep.subr.bf16.mxu0 %v22179_v62 }
 0x83f   : > { %20544 = vmatpush3.bf16.msra.mxu0 %v21919_v21 }
 0x840   : > { %20545 = vmatprep.subr.bf16.mxu0 %v22179_v62 }
 0x843   : > { %20546 = vmatpush3.bf16.msra.mxu0 %v21920_v57 }
 0x844   : > { %20547 = vmatprep.subr.bf16.mxu0 %v22179_v62 }
 0x847   : > { %20548 = vmatpush3.bf16.msra.mxu0 %v21921_v54 }
 0x848   : > { %20549 = vmatprep.subr.bf16.mxu0 %v22179_v62 }
 0x84b   : > { %20550 = vmatpush3.bf16.msra.mxu0 %v21922_v33 }
 0x84c   : > { %20555 = vmatprep.subr.bf16.mxu0 %v22179_v62 }
 0x84e   : > { %20552 = vmatmul.mubr.bf16.vlgmr.msra.gmra.mrb[32].mxu0 %v13820_v7 }
 0x84f   : > { %20556 = vmatpush3.bf16.msra.mxu0 %v21925_v44  ;;  %20571 = vmatprep.mubr.msk.bf16.mxu0 %vm22180_vm2, %v22179_v62 }
 0x850   : > { %20557 = vmatprep.subr.bf16.mxu0 %v22179_v62 }
 0x853   : > { %20558 = vmatpush3.bf16.msra.mxu0 %v21926_v49 }
 0x854   : > { %20559 = vmatprep.subr.bf16.mxu0 %v22179_v62 }
 0x857   : > { %20560 = vmatpush3.bf16.msra.mxu0 %v21927_v58 }
 0x858   : > { %20561 = vmatprep.subr.bf16.mxu0 %v22179_v62 }
 0x85b   : > { %20562 = vmatpush3.bf16.msra.mxu0 %v21928_v15 }
 0x85c   : > { %20563 = vmatprep.subr.bf16.mxu0 %v22179_v62 }
 0x85f   : > { %20564 = vmatpush3.bf16.msra.mxu0 %v21929_v3 }
 0x860   : > { %20565 = vmatprep.subr.bf16.mxu0 %v22179_v62 }
 0x863   : > { %20566 = vmatpush3.bf16.msra.mxu0 %v21930_v43 }
 0x864   : > { %20567 = vmatprep.subr.bf16.mxu0 %v22179_v62 }
 0x867   : > { %20568 = vmatpush3.bf16.msra.mxu0 %v21931_v53 }
 0x868   : > { %20569 = vmatprep.subr.bf16.mxu0 %v22179_v62 }
 0x86b   : > { %20570 = vmatpush3.bf16.msra.mxu0 %v21932_v26 }
 0x86c   : > { %20575 = vmatprep.subr.bf16.mxu0 %v22179_v62 }
 0x86e   : > { %20572 = vmatmul.mubr.bf16.vlgmr.msra.gmra.mrb[32].mxu0 %v14042_v4  ;;  %v21938_v4 = vld [vmem:[%s26610_s1 + $0x8e8] sm:$0xff]  }
 0x86f   : > { %20576 = vmatpush3.bf16.msra.mxu0 %v21933_v34  ;;  %20591 = vmatprep.mubr.msk.bf16.mxu0 %vm22180_vm2, %v22179_v62 }
 0x870   : > { %20577 = vmatprep.subr.bf16.mxu0 %v22179_v62 }
 0x873   : > { %20578 = vmatpush3.bf16.msra.mxu0 %v21934_v10 }
 0x874   : > { %20579 = vmatprep.subr.bf16.mxu0 %v22179_v62 }
 0x877   : > { %20580 = vmatpush3.bf16.msra.mxu0 %v21935_v25 }
 0x878   : > { %20581 = vmatprep.subr.bf16.mxu0 %v22179_v62 }
 0x87b   : > { %20582 = vmatpush3.bf16.msra.mxu0 %v21936_v13 }
 0x87c   : > { %20583 = vmatprep.subr.bf16.mxu0 %v22179_v62 }
 0x87f   : > { %20584 = vmatpush3.bf16.msra.mxu0 %v21937_v0 }
 0x880   : > { %20585 = vmatprep.subr.bf16.mxu0 %v22179_v62 }
 0x883   : > { %20586 = vmatpush3.bf16.msra.mxu0 %v21938_v4 }
 0x884   : > { %20587 = vmatprep.subr.bf16.mxu0 %v22179_v62 }
 0x887   : > { %20588 = vmatpush3.bf16.msra.mxu0 %v21939_v8 }
 0x888   : > { %20589 = vmatprep.subr.bf16.mxu0 %v22179_v62 }
 0x88b   : > { %20590 = vmatpush3.bf16.msra.mxu0 %v21940_v47 }
 0x88c   : > { %20775 = vmatprep.subr.bf16.mxu0 %v22179_v62 }
 0x88e   : > { %20592 = vmatmul.mubr.bf16.vlgmr.msra.gmra.mrb[32].mxu0 %v14224_v11  ;;  %v458_v11 = vsel %vm25768_vm11, 0, %v457_v50 }
 0x88f   : > { %20791 = vmatprep.mubr.msk.bf16.mxu0 %vm22180_vm2, %v22179_v62  ;;  %459 = vst [vmem:[#allocation5 + $0xa] sm:$0x3] %v458_v11 }
 0x961   : > { %v14308_v45 = vpop.f32.mrb[32].mxu0 }
 0x962   : > { %v21049_v12 = vadd.f32 %v18206_v2, %v14308_v45  ;;  %v20593_v21 = vpop.f32.mrb[33].mxu0 }
 0x963   : > { %v14311_v57 = vpop.f32.mrb[34].mxu0 }
 0x964   : > { %v21050_v54 = vadd.f32 %v18206_v2, %v14311_v57  ;;  %v20594_v29 = vpop.f32.mrb[35].mxu0  ;;  %v14317_v42 = vmax.f32 %v21049_v12, 0.0 }
 0x966   : > { %v14318_v33 = vmax.f32 %v21050_v54, 0.0 }
 0x968   : > { %v14319_v44 = vpack.c.bf16 %v14318_v33, %v14317_v42  ;;  %v18459_v7 = vpack.c.bf16 %v14318_v33, %v14318_v33 }
 0x96a   : > { %v14328_v49 = vrot.slane %v14319_v44, %v25021_v28  ;;  %v14335_v58 = vrot.slane %v18459_v7, %v25021_v28 }
 0x96c   : > { %v14336_v15 = vcombine.high %v14328_v49, %v14328_v49  ;;  %v14337_v3 = vcombine.high %v14335_v58, %v14335_v58  ;;  %v14344_v43 = vrot.slane %v14328_v49, %v23597_v37  ;;  %v14352_v53 = vrot.slane %v14335_v58, %v23597_v37 }
 0x96e   : > { %v14345_v26 = vcombine.high %v14344_v43, %v14344_v43  ;;  %v14353_v34 = vcombine.high %v14352_v53, %v14352_v53  ;;  %v14360_v10 = vrot.slane %v14344_v43, %v23612_v18  ;;  %v14374_v25 = vrot.slane %v14352_v53, %v23612_v18  ;;  %v14593_v43 = vld [vmem:[#allocation5 + $0x4] sm:$0x3] }
 0x96f   : > { %v14474_v13 = vrot.slane %v14336_v15, %v23597_v37  ;;  %v14482_v0 = vrot.slane %v14337_v3, %v23597_v37  ;;  %v14590_v3 = vld [vmem:[#allocation5 + $0x2] sm:$0x3] }
 0x970   : > { %v14367_v4 = vrot.slane %v14345_v26, %v23612_v18  ;;  %v14381_v8 = vrot.slane %v14353_v34, %v23612_v18  ;;  %v14388_v47 = vrot.slane %v14360_v10, %v25021_v28  ;;  %v14402_v16 = vrot.slane %v14374_v25, %v25021_v28  ;;  %v14604_v25 = vld [vmem:[#allocation5] sm:$0x1] }
 0x971   : > { %v14475_v35 = vcombine.high %v14474_v13, %v14474_v13  ;;  %v14483_v48 = vcombine.high %v14482_v0, %v14482_v0  ;;  %v14490_v61 = vrot.slane %v14474_v13, %v23612_v18  ;;  %v14504_v60 = vrot.slane %v14482_v0, %v23612_v18 }
 0x972   : > { %v14395_v20 = vrot.slane %v14367_v4, %v25021_v28  ;;  %v14409_v50 = vrot.slane %v14381_v8, %v25021_v28  ;;  %v14410_v39 = vunpack.c.l.b16 %v14388_v47  ;;  %v14412_v27 = vunpack.c.l.b16 %v14402_v16  ;;  %v21949_v8 = vld [vmem:[%s26610_s1 + $0x940] sm:$0xff]   ;;  %v21951_v16 = vld [vmem:[%s26610_s1 + $0x950] sm:$0xff]  }
 0x973   : > { %v14497_v46 = vrot.slane %v14475_v35, %v23612_v18  ;;  %v14511_v11 = vrot.slane %v14483_v48, %v23612_v18  ;;  %v14518_v9 = vrot.slane %v14490_v61, %v25021_v28  ;;  %v14532_v22 = vrot.slane %v14504_v60, %v25021_v28  ;;  %v21952_v35 = vld [vmem:[%s26610_s1 + $0x958] sm:$0xff]   ;;  %v21953_v48 = vld [vmem:[%s26610_s1 + $0x960] sm:$0xff]   ;;  %v21955_v60 = vld [vmem:[%s26610_s1 + $0x970] sm:$0xff]  }
 0x974   : > { %v14411_v52 = vunpack.c.l.b16 %v14395_v20  ;;  %v14413_v19 = vunpack.c.l.b16 %v14409_v50  ;;  %v21954_v20 = vld [vmem:[%s26610_s1 + $0x968] sm:$0xff]  }
 0x975   : > { %v14525_v5 = vrot.slane %v14497_v46, %v25021_v28  ;;  %v14539_v41 = vrot.slane %v14511_v11, %v25021_v28  ;;  %v14540_v24 = vunpack.c.l.b16 %v14518_v9  ;;  %v14542_v56 = vunpack.c.l.b16 %v14532_v22  ;;  %v14731_v50 = vld [vmem:[#allocation5 + $0x6] sm:$0x1]  ;;  %v21956_v11 = vld [vmem:[%s26610_s1 + $0x978] sm:$0xff]  }
 0x976   : > { %v14414_v31 = vrot.slane %v14411_v52, 7  ;;  %v14416_v38 = vrot.slane %v14413_v19, 7  ;;  %v21957_v19 = vld [vmem:[%s26610_s1 + $0x980] sm:$0xff]  }
 0x977   : > { %v14541_v6 = vunpack.c.l.b16 %v14525_v5  ;;  %v14543_v32 = vunpack.c.l.b16 %v14539_v41  ;;  %v21959_v5 = vld [vmem:[%s26610_s1 + $0x990] sm:$0xff]   ;;  %v18514_v41 = vld.sshfl [vmem:[#allocation5] sm:$0x11 pattern:$0x75316420] }
 0x978   : > { %v14415_v30 = vsel %vm6487_vm6, %v14414_v31, %v14410_v39  ;;  %v14417_v18 = vsel %vm6487_vm6, %v14416_v38, %v14412_v27  ;;  %v14439_v23 = vsel %vm6490_vm7, %v14414_v31, %v14410_v39  ;;  %v14440_v59 = vsel %vm6490_vm7, %v14416_v38, %v14412_v27  ;;  %v21958_v27 = vld [vmem:[%s26610_s1 + $0x988] sm:$0xff]   ;;  %v21960_v38 = vld [vmem:[%s26610_s1 + $0x998] sm:$0xff]  }
 0x979   : > { %v14418_v14 = vpack.c.b16 %v14415_v30, %v14415_v30  ;;  %v14419_v1 = vpack.c.b16 %v14417_v18, %v14417_v18  ;;  %v14441_v51 = vpack.c.b16 %v14439_v23, %v14439_v23  ;;  %v14442_v55 = vpack.c.b16 %v14440_v59, %v14440_v59  ;;  %v21962_v23 = vld [vmem:[%s26610_s1 + $0x9a8] sm:$0xff]  }
 0x97a   : > { %v14544_v2 = vrot.slane %v14541_v6, 7  ;;  %v14546_v45 = vrot.slane %v14543_v32, 7  ;;  %v14868_v9 = vcombine.high %v18514_v41, %v18514_v41  ;;  %v21961_v6 = vld [vmem:[%s26610_s1 + $0x9a0] sm:$0xff]   ;;  %v14892_v32 = vshrl.u32 %v18514_v41, 16  ;;  %v21986_v41 = vld [vmem:[%s26610_s1 + $0xa68] sm:$0xff]  }
 0x97b   : > { %18460 = vst.sshfl [vmem:[#allocation5 + $0x12] sm:$0x1 pattern:$0x76325410] %v14418_v14  ;;  %v14449_v12 = vrot.slane %v14441_v51, %v25021_v28  ;;  %v14456_v21 = vrot.slane %v14442_v55, %v25021_v28  ;;  %v21963_v55 = vld [vmem:[%s26610_s1 + $0x9b0] sm:$0xff]  }
 0x97c   : > { %18461 = vst.sshfl [vmem:[#allocation5 + $0x14] sm:$0x1 pattern:$0x76325410] %v14419_v1  ;;  %v14545_v57 = vsel %vm6487_vm6, %v14544_v2, %v14540_v24  ;;  %v14547_v54 = vsel %vm6487_vm6, %v14546_v45, %v14542_v56  ;;  %v14569_v29 = vsel %vm6490_vm7, %v14544_v2, %v14540_v24  ;;  %v14570_v42 = vsel %vm6490_vm7, %v14546_v45, %v14542_v56  ;;  %v21965_v24 = vld [vmem:[%s26610_s1 + $0x9c0] sm:$0xff]   ;;  %v21966_v2 = vld [vmem:[%s26610_s1 + $0x9c8] sm:$0xff]  }
 0x97d   : > { %v14463_v33 = vsel %vm25858_vm8, %v14449_v12, %v14462_v40  ;;  %v14466_v44 = vsel %vm25858_vm8, %v14456_v21, %v14465_v17  ;;  %v14548_v7 = vpack.c.b16 %v14545_v57, %v14545_v57  ;;  %v14549_v49 = vpack.c.b16 %v14547_v54, %v14547_v54  ;;  %v21964_v40 = vld [vmem:[%s26610_s1 + $0x9b8] sm:$0xff]   ;;  %v21967_v45 = vld [vmem:[%s26610_s1 + $0x9d0] sm:$0xff]   ;;  %v21969_v21 = vld [vmem:[%s26610_s1 + $0x9e0] sm:$0xff]  }
 0x97e   : > { %14464 = vst [vmem:[#allocation5 + $0xc] sm:$0x3] %v14463_v33  ;;  %14467 = vst [vmem:[#allocation5 + $0xe] sm:$0x3] %v14466_v44  ;;  %v14571_v58 = vpack.c.b16 %v14569_v29, %v14569_v29  ;;  %v14572_v15 = vpack.c.b16 %v14570_v42, %v14570_v42  ;;  %vm14877_vm6 = vsmask.f32 1284 }
 0x97f   : > { %18462 = vst.sshfl [vmem:[#allocation5 + $0x8] sm:$0x1 pattern:$0x76325410] %v14548_v7  ;;  %vm14878_vm7 = vmor %vm225_vm4, %vm14877_vm6  ;;  %vm14889_vm6 = vsmask.f32 7452 }
 0x980   : > { %18463 = vst.sshfl [vmem:[#allocation5 + $0xa] sm:$0x1 pattern:$0x76325410] %v14549_v49  ;;  %v14579_v53 = vrot.slane %v14571_v58, %v25021_v28  ;;  %v14586_v26 = vrot.slane %v14572_v15, %v25021_v28  ;;  %v21950_v28 = vld [vmem:[%s26610_s1 + $0x948] sm:$0xff]   ;;  %vm14880_vm0 = vmor %vm14878_vm7, %vm14879_vm12  ;;  %v14897_v30 = vshll.u32 %v14868_v9, 16 }
 0x981   : > { %vm14882_vm4 = vmor %vm14880_vm0, %vm14881_vm13  ;;  %v21968_v12 = vld [vmem:[%s26610_s1 + $0x9d8] sm:$0xff]   ;;  %v21970_v57 = vld [vmem:[%s26610_s1 + $0x9e8] sm:$0xff]  }
 0x982   : > { %v14591_v34 = vsel %vm25858_vm8, %v14579_v53, %v14590_v3  ;;  %v14594_v10 = vsel %vm25858_vm8, %v14586_v26, %v14593_v43  ;;  %vm14884_vm10 = vmor %vm14882_vm4, %vm14883_vm1  ;;  %v21971_v42 = vld [vmem:[%s26610_s1 + $0x9f0] sm:$0xff]   ;;  %v21972_v44 = vld [vmem:[%s26610_s1 + $0x9f8] sm:$0xff]  }
 0x983   : > { %14592 = vst [vmem:[#allocation5 + $0x2] sm:$0x3] %v14591_v34  ;;  %14595 = vst [vmem:[#allocation5 + $0x4] sm:$0x3] %v14594_v10  ;;  %v21973_v49 = vld [vmem:[%s26610_s1 + $0xa00] sm:$0xff]   ;;  %v21974_v15 = vld [vmem:[%s26610_s1 + $0xa08] sm:$0xff]  }
 0x984   : > { %vm14886_vm11 = vmor %vm14884_vm10, %vm14885_vm9  ;;  %v21975_v3 = vld [vmem:[%s26610_s1 + $0xa10] sm:$0xff]   ;;  %v21976_v43 = vld [vmem:[%s26610_s1 + $0xa18] sm:$0xff]  }
 0x985   : > { %vm14888_vm8 = vmor %vm14886_vm11, %vm14887_vm15  ;;  %v15031_v54 = vld [vmem:[#allocation5 + $0xc] sm:$0x1]  ;;  %v15032_v29 = vld [vmem:[#allocation5 + $0xe] sm:$0x1] }
 0x986   : > { %v14732_v61 = vld [vmem:[#allocation5 + $0x8] sm:$0x1]  ;;  %vm25942_vm7 = vmor %vm14888_vm8, %vm14889_vm6  ;;  %v15052_v33 = vcombine.low %v15031_v54, %v15032_v29  ;;  %v21977_v53 = vld [vmem:[%s26610_s1 + $0xa20] sm:$0xff]  }
 0x987   : > { %v14752_v46 = vcombine.low %v14731_v50, %v14732_v61  ;;  %v14899_v1 = vsel %vm25942_vm7, %v14892_v32, %v14897_v30  ;;  %v21978_v26 = vld [vmem:[%s26610_s1 + $0xa28] sm:$0xff]   ;;  %v15157_v34 = vld [vmem:[#allocation5 + $0x12] sm:$0x1]  ;;  %v15158_v10 = vld [vmem:[#allocation5 + $0x14] sm:$0x1] }
 0x988   : > { %v15059_v7 = vrot.slane %v15052_v33, %v23597_v37  ;;  %v18590_v50 = vld.sshfl [vmem:[#allocation5 + $0xc] sm:$0x11 pattern:$0x75316420]  ;;  %v22018_v9 = vld [vmem:[%s26610_s1 + $0xb68] sm:$0xff]   ;;  %v22025_v54 = vld [vmem:[%s26610_s1 + $0xba0] sm:$0xff]  }
 0x989   : > { %v14759_v52 = vrot.slane %v14752_v46, %v23597_v37  ;;  %v18591_v61 = vld.sshfl [vmem:[#allocation5 + $0xe] sm:$0x11 pattern:$0x75316420]  ;;  %v22016_v46 = vld [vmem:[%s26610_s1 + $0xb58] sm:$0xff]   ;;  %v21994_v29 = vld [vmem:[%s26610_s1 + $0xaa8] sm:$0xff]  }
 0x98a   : > { %v14605_v13 = vld [vmem:[#allocation5 + $0x2] sm:$0x1]  ;;  %v15066_v58 = vrot.slane %v15059_v7, %v23597_v37  ;;  %v21987_v32 = vld [vmem:[%s26610_s1 + $0xa70] sm:$0xff]   ;;  %v15444_v33 = vld [vmem:[#allocation5 + $0x4] sm:$0x1] }
 0x98b   : > { %v14625_v0 = vcombine.low %v14604_v25, %v14605_v13  ;;  %v14766_v39 = vrot.slane %v14759_v52, %v23597_v37  ;;  %v18515_v31 = vld.sshfl [vmem:[#allocation5 + $0x2] sm:$0x11 pattern:$0x75316420]  ;;  %v21979_v25 = vld [vmem:[%s26610_s1 + $0xa30] sm:$0xff]   ;;  %v15178_v13 = vcombine.low %v15157_v34, %v15158_v10  ;;  %v15302_v52 = vcombine.high %v18591_v61, %v18591_v61  ;;  %v22029_v10 = vld [vmem:[%s26610_s1 + $0xbc0] sm:$0xff]  }
 0x98c   : > { %v14876_v22 = vcombine.high %v18515_v31, %v18515_v31  ;;  %v14901_v59 = vshrl.u32 %v18515_v31, 16  ;;  %v15304_v31 = vshrl.u32 %v18590_v50, 16  ;;  %v21995_v7 = vld [vmem:[%s26610_s1 + $0xab0] sm:$0xff]   ;;  %v16001_v34 = vld [vmem:[#allocation6 + $0x2] sm:$0x1]  ;;  %vm26334_vm12 = vmand %vm224_vm3, %vm6712_vm14 }
 0x98d   : > { %v14632_v4 = vrot.slane %v14625_v0, %v23597_v37  ;;  %v21980_v0 = vld [vmem:[%s26610_s1 + $0xa38] sm:$0xff]  }
 0x98e   : > { %v14906_v18 = vshll.u32 %v14876_v22, 16 }
 0x98f   : > { %v14639_v47 = vrot.slane %v14632_v4, %v23597_v37  ;;  %v15185_v4 = vrot.slane %v15178_v13, %v23597_v37  ;;  %v22030_v13 = vld [vmem:[%s26610_s1 + $0xbc8] sm:$0xff]  }
 0x990   : > { %v25950_v51 = vsel %vm25942_vm7, %v14901_v59, %v14906_v18  ;;  %v22019_v18 = vld [vmem:[%s26610_s1 + $0xb70] sm:$0xff]  }
 0x991   : > { %20612 = vmatmul.mubr.bf16.vlgmr.msra.gmra.mrb[44].mxu1 %v14639_v47  ;;  %v14926_v63 = vcombine.low %v14899_v1, %v25950_v51  ;;  %v15192_v47 = vrot.slane %v15185_v4, %v23597_v37  ;;  %v22020_v1 = vld [vmem:[%s26610_s1 + $0xb78] sm:$0xff]   ;;  %v22031_v4 = vld [vmem:[%s26610_s1 + $0xbd0] sm:$0xff]  }
 0x992   : > { %20616 = vmatpush3.bf16.msra.mxu1 %v21949_v8  ;;  %20631 = vmatprep.mubr.msk.bf16.mxu1 %vm22180_vm2, %v22179_v62  ;;  %v21981_v8 = vld [vmem:[%s26610_s1 + $0xa40] sm:$0xff]  }
 0x993   : > { %20617 = vmatprep.subr.bf16.mxu1 %v22179_v62  ;;  %v14933_v17 = vrot.slane %v14926_v63, %v23597_v37 }
 0x995   : > { %v14940_v56 = vrot.slane %v14933_v17, %v23597_v37  ;;  %v22021_v17 = vld [vmem:[%s26610_s1 + $0xb80] sm:$0xff]  }
 0x996   : > { %20618 = vmatpush3.bf16.msra.mxu1 %v21950_v28  ;;  %v22013_v28 = vld [vmem:[%s26610_s1 + $0xb40] sm:$0xff]  }
 0x997   : > { %20619 = vmatprep.subr.bf16.mxu1 %v22179_v62  ;;  %20776 = vmatpush3.bf16.msra.mxu0 %v22013_v28  ;;  %v22001_v28 = vld [vmem:[%s26610_s1 + $0xae0] sm:$0xff]  }
 0x998   : > { %20777 = vmatprep.subr.bf16.mxu0 %v22179_v62 }
 0x99a   : > { %20620 = vmatpush3.bf16.msra.mxu1 %v21951_v16  ;;  %v21982_v16 = vld [vmem:[%s26610_s1 + $0xa48] sm:$0xff]  }
 0x99b   : > { %20621 = vmatprep.subr.bf16.mxu1 %v22179_v62 }
 0x99e   : > { %20622 = vmatpush3.bf16.msra.mxu1 %v21952_v35  ;;  %v22014_v35 = vld [vmem:[%s26610_s1 + $0xb48] sm:$0xff]  }
 0x99f   : > { %20623 = vmatprep.subr.bf16.mxu1 %v22179_v62  ;;  %20778 = vmatpush3.bf16.msra.mxu0 %v22014_v35  ;;  %v22002_v35 = vld [vmem:[%s26610_s1 + $0xae8] sm:$0xff]  }
 0x9a0   : > { %20779 = vmatprep.subr.bf16.mxu0 %v22179_v62 }
 0x9a2   : > { %20624 = vmatpush3.bf16.msra.mxu1 %v21953_v48  ;;  %v21983_v48 = vld [vmem:[%s26610_s1 + $0xa50] sm:$0xff]  }
 0x9a3   : > { %20625 = vmatprep.subr.bf16.mxu1 %v22179_v62 }
 0x9a6   : > { %20626 = vmatpush3.bf16.msra.mxu1 %v21954_v20  ;;  %v22015_v20 = vld [vmem:[%s26610_s1 + $0xb50] sm:$0xff]  }
 0x9a7   : > { %20627 = vmatprep.subr.bf16.mxu1 %v22179_v62  ;;  %20780 = vmatpush3.bf16.msra.mxu0 %v22015_v20  ;;  %v15570_v20 = vld [vmem:[#allocation5 + $0xa] sm:$0x1] }
 0x9a8   : > { %20781 = vmatprep.subr.bf16.mxu0 %v22179_v62 }
 0x9aa   : > { %20628 = vmatpush3.bf16.msra.mxu1 %v21955_v60  ;;  %v21984_v60 = vld [vmem:[%s26610_s1 + $0xa58] sm:$0xff]  }
 0x9ab   : > { %20629 = vmatprep.subr.bf16.mxu1 %v22179_v62  ;;  %20782 = vmatpush3.bf16.msra.mxu0 %v22016_v46 }
 0x9ac   : > { %20783 = vmatprep.subr.bf16.mxu0 %v22179_v62 }
 0x9ae   : > { %20630 = vmatpush3.bf16.msra.mxu1 %v21956_v11  ;;  %v15294_v11 = vcombine.high %v18590_v50, %v18590_v50  ;;  %v22034_v50 = vld [vmem:[%s26610_s1 + $0xbe8] sm:$0xff]  }
 0x9af   : > { %20635 = vmatprep.subr.bf16.mxu1 %v22179_v62 }
 0x9b1   : > { %20632 = vmatmul.mubr.bf16.vlgmr.msra.gmra.mrb[44].mxu1 %v14766_v39  ;;  %v22017_v39 = vld [vmem:[%s26610_s1 + $0xb60] sm:$0xff]  }
 0x9b2   : > { %20636 = vmatpush3.bf16.msra.mxu1 %v21957_v19  ;;  %20651 = vmatprep.mubr.msk.bf16.mxu1 %vm22180_vm2, %v22179_v62  ;;  %v21985_v19 = vld [vmem:[%s26610_s1 + $0xa60] sm:$0xff]  }
 0x9b3   : > { %20637 = vmatprep.subr.bf16.mxu1 %v22179_v62  ;;  %20784 = vmatpush3.bf16.msra.mxu0 %v22017_v39 }
 0x9b4   : > { %20785 = vmatprep.subr.bf16.mxu0 %v22179_v62 }
 0x9b6   : > { %20638 = vmatpush3.bf16.msra.mxu1 %v21958_v27  ;;  %v15309_v27 = vshll.u32 %v15294_v11, 16  ;;  %v22035_v11 = vld [vmem:[%s26610_s1 + $0xbf0] sm:$0xff]  }
 0x9b7   : > { %20639 = vmatprep.subr.bf16.mxu1 %v22179_v62  ;;  %20786 = vmatpush3.bf16.msra.mxu0 %v22018_v9  ;;  %v22006_v9 = vld [vmem:[%s26610_s1 + $0xb08] sm:$0xff]  }
 0x9b8   : > { %v15311_v22 = vsel %vm25942_vm7, %v15304_v31, %v15309_v27  ;;  %20787 = vmatprep.subr.bf16.mxu0 %v22179_v62  ;;  %v22036_v27 = vld [vmem:[%s26610_s1 + $0xbf8] sm:$0xff]  }
 0x9ba   : > { %20640 = vmatpush3.bf16.msra.mxu1 %v21959_v5  ;;  %v15318_v5 = vshll.u32 %v15302_v52, 16  ;;  %v22004_v52 = vld [vmem:[%s26610_s1 + $0xaf8] sm:$0xff]  }
 0x9bb   : > { %20641 = vmatprep.subr.bf16.mxu1 %v22179_v62  ;;  %20788 = vmatpush3.bf16.msra.mxu0 %v22019_v18  ;;  %v22008_v18 = vld [vmem:[%s26610_s1 + $0xb18] sm:$0xff]  }
 0x9bc   : > { %20789 = vmatprep.subr.bf16.mxu0 %v22179_v62 }
 0x9be   : > { %20642 = vmatpush3.bf16.msra.mxu1 %v21960_v38  ;;  %v15313_v38 = vshrl.u32 %v18591_v61, 16  ;;  %v22003_v61 = vld [vmem:[%s26610_s1 + $0xaf0] sm:$0xff]  }
 0x9bf   : > { %20643 = vmatprep.subr.bf16.mxu1 %v22179_v62  ;;  %20790 = vmatpush3.bf16.msra.mxu0 %v22020_v1  ;;  %v22009_v1 = vld [vmem:[%s26610_s1 + $0xb20] sm:$0xff]  }
 0x9c0   : > { %20795 = vmatprep.subr.bf16.mxu0 %v22179_v62 }
 0x9c2   : > { %20644 = vmatpush3.bf16.msra.mxu1 %v21961_v6  ;;  %v15320_v6 = vsel %vm25942_vm7, %v15313_v38, %v15318_v5  ;;  %v22005_v5 = vld [vmem:[%s26610_s1 + $0xb00] sm:$0xff]  }
 0x9c3   : > { %20645 = vmatprep.subr.bf16.mxu1 %v22179_v62  ;;  %v15338_v30 = vcombine.low %v15311_v22, %v15320_v6  ;;  %v22037_v38 = vld [vmem:[%s26610_s1 + $0xc00] sm:$0xff]   ;;  %v22038_v22 = vld [vmem:[%s26610_s1 + $0xc08] sm:$0xff]   ;;  %v22007_v6 = vld [vmem:[%s26610_s1 + $0xb10] sm:$0xff]  }
 0x9c5   : > { %v15345_v59 = vrot.slane %v15338_v30, %v23597_v37  ;;  %v18667_v30 = vld.sshfl [vmem:[#allocation5 + $0x4] sm:$0x11 pattern:$0x75316420] }
 0x9c6   : > { %20646 = vmatpush3.bf16.msra.mxu1 %v21962_v23  ;;  %v21988_v23 = vld [vmem:[%s26610_s1 + $0xa78] sm:$0xff]  }
 0x9c7   : > { %20647 = vmatprep.subr.bf16.mxu1 %v22179_v62  ;;  %v15352_v63 = vrot.slane %v15345_v59, %v23597_v37  ;;  %v22040_v59 = vld [vmem:[%s26610_s1 + $0xc18] sm:$0xff]  }
 0x9ca   : > { %20648 = vmatpush3.bf16.msra.mxu1 %v21963_v55  ;;  %v21989_v55 = vld [vmem:[%s26610_s1 + $0xa80] sm:$0xff]  }
 0x9cb   : > { %20649 = vmatprep.subr.bf16.mxu1 %v22179_v62 }
 0x9ce   : > { %20650 = vmatpush3.bf16.msra.mxu1 %v21964_v40  ;;  %v26111_v40 = vld [vmem:[#allocation6] sm:$0x1] }
 0x9cf   : > { %20655 = vmatprep.subr.bf16.mxu1 %v22179_v62  ;;  %20792 = vmatmul.mubr.bf16.vlgmr.msra.gmra.mrb[36].mxu0 %v26111_v40  ;;  %v16132_v46 = vrot.slane %v26111_v40, %v23597_v37  ;;  %v15725_v40 = vshrl.u32 %v18667_v30, 16 }
 0x9d0   : > { %20796 = vmatpush3.bf16.msra.mxu0 %v22021_v17  ;;  %20811 = vmatprep.mubr.msk.bf16.mxu0 %vm22180_vm2, %v22179_v62 }
 0x9d1   : > { %20652 = vmatmul.mubr.bf16.vlgmr.msra.gmra.mrb[44].mxu1 %v14940_v56  ;;  %v22022_v56 = vld [vmem:[%s26610_s1 + $0xb88] sm:$0xff]   ;;  %20797 = vmatprep.subr.bf16.mxu0 %v22179_v62  ;;  %v16139_v39 = vrot.slane %v16132_v46, %v23597_v37 }
 0x9d2   : > { %20656 = vmatpush3.bf16.msra.mxu1 %v21965_v24  ;;  %20671 = vmatprep.mubr.msk.bf16.mxu1 %vm22180_vm2, %v22179_v62  ;;  %v21990_v24 = vld [vmem:[%s26610_s1 + $0xa88] sm:$0xff]  }
 0x9d3   : > { %20657 = vmatprep.subr.bf16.mxu1 %v22179_v62  ;;  %v16141_v31 = vshrl.u32 %v16139_v39, 16  ;;  %v22055_v39 = vld [vmem:[%s26610_s1 + $0xc90] sm:$0xff]  }
 0x9d4   : > { %20798 = vmatpush3.bf16.msra.mxu0 %v22022_v56 }
 0x9d5   : > { %20799 = vmatprep.subr.bf16.mxu0 %v22179_v62 }
 0x9d6   : > { %20658 = vmatpush3.bf16.msra.mxu1 %v21966_v2  ;;  %v21991_v2 = vld [vmem:[%s26610_s1 + $0xa90] sm:$0xff]  }
 0x9d7   : > { %20659 = vmatprep.subr.bf16.mxu1 %v22179_v62 }
 0x9da   : > { %20660 = vmatpush3.bf16.msra.mxu1 %v21967_v45  ;;  %v22023_v45 = vld [vmem:[%s26610_s1 + $0xb90] sm:$0xff]  }
 0x9db   : > { %20661 = vmatprep.subr.bf16.mxu1 %v22179_v62  ;;  %20800 = vmatpush3.bf16.msra.mxu0 %v22023_v45 }
 0x9dc   : > { %20801 = vmatprep.subr.bf16.mxu0 %v22179_v62 }
 0x9de   : > { %20662 = vmatpush3.bf16.msra.mxu1 %v21968_v12  ;;  %v21992_v12 = vld [vmem:[%s26610_s1 + $0xa98] sm:$0xff]  }
 0x9df   : > { %20663 = vmatprep.subr.bf16.mxu1 %v22179_v62 }
 0x9e2   : > { %20664 = vmatpush3.bf16.msra.mxu1 %v21969_v21  ;;  %v22024_v21 = vld [vmem:[%s26610_s1 + $0xb98] sm:$0xff]  }
 0x9e3   : > { %20665 = vmatprep.subr.bf16.mxu1 %v22179_v62  ;;  %20802 = vmatpush3.bf16.msra.mxu0 %v22024_v21  ;;  %v22043_v21 = vld [vmem:[%s26610_s1 + $0xc30] sm:$0xff]  }
 0x9e4   : > { %20803 = vmatprep.subr.bf16.mxu0 %v22179_v62 }
 0x9e6   : > { %20666 = vmatpush3.bf16.msra.mxu1 %v21970_v57  ;;  %v21993_v57 = vld [vmem:[%s26610_s1 + $0xaa0] sm:$0xff]  }
 0x9e7   : > { %20667 = vmatprep.subr.bf16.mxu1 %v22179_v62  ;;  %20804 = vmatpush3.bf16.msra.mxu0 %v22025_v54  ;;  %v18465_v54 = vld [vmem:[%s26611_s2 + $0x4] ss:$0 sm:$0xff] }
 0x9e8   : > { %20805 = vmatprep.subr.bf16.mxu0 %v22179_v62 }
 0x9ea   : > { %20668 = vmatpush3.bf16.msra.mxu1 %v21971_v42  ;;  %v15443_v42 = vld [vmem:[#allocation5 + $0x2] sm:$0x1] }
 0x9eb   : > { %20669 = vmatprep.subr.bf16.mxu1 %v22179_v62 }
 0x9ee   : > { %20670 = vmatpush3.bf16.msra.mxu1 %v21972_v44  ;;  %v22026_v44 = vld [vmem:[%s26610_s1 + $0xba8] sm:$0xff]  }
 0x9ef   : > { %20675 = vmatprep.subr.bf16.mxu1 %v22179_v62  ;;  %20806 = vmatpush3.bf16.msra.mxu0 %v22026_v44 }
 0x9f0   : > { %20807 = vmatprep.subr.bf16.mxu0 %v22179_v62 }
 0x9f1   : > { %20672 = vmatmul.mubr.bf16.vlgmr.msra.gmra.mrb[44].mxu1 %v15066_v58  ;;  %v22027_v58 = vld [vmem:[%s26610_s1 + $0xbb0] sm:$0xff]  }
 0x9f2   : > { %20676 = vmatpush3.bf16.msra.mxu1 %v21973_v49  ;;  %20691 = vmatprep.mubr.msk.bf16.mxu1 %vm22180_vm2, %v22179_v62  ;;  %v15464_v49 = vcombine.low %v15443_v42, %v15444_v33 }
 0x9f3   : > { %20677 = vmatprep.subr.bf16.mxu1 %v22179_v62  ;;  %20808 = vmatpush3.bf16.msra.mxu0 %v22027_v58  ;;  %v15858_v58 = vld [vmem:[#allocation6 + $0x6] sm:$0x1] }
 0x9f4   : > { %20809 = vmatprep.subr.bf16.mxu0 %v22179_v62 }
 0x9f6   : > { %20678 = vmatpush3.bf16.msra.mxu1 %v21974_v15  ;;  %v21996_v15 = vld [vmem:[%s26610_s1 + $0xab8] sm:$0xff]  }
 0x9f7   : > { %20679 = vmatprep.subr.bf16.mxu1 %v22179_v62 }
 0x9fa   : > { %20680 = vmatpush3.bf16.msra.mxu1 %v21975_v3  ;;  %v15471_v3 = vrot.slane %v15464_v49, %v23597_v37 }
 0x9fb   : > { %20681 = vmatprep.subr.bf16.mxu1 %v22179_v62 }
 0x9fe   : > { %20682 = vmatpush3.bf16.msra.mxu1 %v21976_v43  ;;  %v22028_v43 = vld [vmem:[%s26610_s1 + $0xbb8] sm:$0xff]  }
 0x9ff   : > { %20683 = vmatprep.subr.bf16.mxu1 %v22179_v62  ;;  %20810 = vmatpush3.bf16.msra.mxu0 %v22028_v43 }
 0xa00   : > { %20815 = vmatprep.subr.bf16.mxu0 %v22179_v62 }
 0xa02   : > { %20684 = vmatpush3.bf16.msra.mxu1 %v21977_v53  ;;  %v21997_v53 = vld [vmem:[%s26610_s1 + $0xac0] sm:$0xff]   ;;  %20812 = vmatmul.mubr.bf16.vlgmr.msra.gmra.mrb[36].mxu0 %v16001_v34 }
 0xa03   : > { %20685 = vmatprep.subr.bf16.mxu1 %v22179_v62  ;;  %20816 = vmatpush3.bf16.msra.mxu0 %v22029_v10 }
 0xa04   : > { %20831 = vmatprep.mubr.msk.bf16.mxu0 %vm22180_vm2, %v22179_v62  ;;  %20817 = vmatprep.subr.bf16.mxu0 %v22179_v62 }
 0xa06   : > { %20686 = vmatpush3.bf16.msra.mxu1 %v21978_v26  ;;  %v15478_v26 = vrot.slane %v15471_v3, %v23597_v37  ;;  %v15863_v3 = vld [vmem:[#allocation6 + $0x4] sm:$0x1] }
 0xa07   : > { %20687 = vmatprep.subr.bf16.mxu1 %v22179_v62  ;;  %20818 = vmatpush3.bf16.msra.mxu0 %v22030_v13  ;;  %v15888_v13 = vld [vmem:[#allocation6 + $0x1] sm:$0x1] }
 0xa08   : > { %20819 = vmatprep.subr.bf16.mxu0 %v22179_v62 }
 0xa0a   : > { %20688 = vmatpush3.bf16.msra.mxu1 %v21979_v25  ;;  %v21998_v25 = vld [vmem:[%s26610_s1 + $0xac8] sm:$0xff]  }
 0xa0b   : > { %20689 = vmatprep.subr.bf16.mxu1 %v22179_v62  ;;  %20820 = vmatpush3.bf16.msra.mxu0 %v22031_v4 }
 0xa0c   : > { %20821 = vmatprep.subr.bf16.mxu0 %v22179_v62 }
 0xa0e   : > { %20690 = vmatpush3.bf16.msra.mxu1 %v21980_v0  ;;  %v21999_v0 = vld [vmem:[%s26610_s1 + $0xad0] sm:$0xff]  }
 0xa0f   : > { %20695 = vmatprep.subr.bf16.mxu1 %v22179_v62 }
 0xa11   : > { %20692 = vmatmul.mubr.bf16.vlgmr.msra.gmra.mrb[44].mxu1 %v15192_v47  ;;  %v22032_v47 = vld [vmem:[%s26610_s1 + $0xbd8] sm:$0xff]  }
 0xa12   : > { %20696 = vmatpush3.bf16.msra.mxu1 %v21981_v8  ;;  %20711 = vmatprep.mubr.msk.bf16.mxu1 %vm22180_vm2, %v22179_v62  ;;  %v22000_v8 = vld [vmem:[%s26610_s1 + $0xad8] sm:$0xff]  }
 0xa13   : > { %20697 = vmatprep.subr.bf16.mxu1 %v22179_v62  ;;  %20822 = vmatpush3.bf16.msra.mxu0 %v22032_v47  ;;  %v22045_v47 = vld [vmem:[%s26610_s1 + $0xc40] sm:$0xff]  }
 0xa14   : > { %20823 = vmatprep.subr.bf16.mxu0 %v22179_v62 }
 0xa16   : > { %20698 = vmatpush3.bf16.msra.mxu1 %v21982_v16  ;;  %v22033_v16 = vld [vmem:[%s26610_s1 + $0xbe0] sm:$0xff]  }
 0xa17   : > { %20699 = vmatprep.subr.bf16.mxu1 %v22179_v62  ;;  %20824 = vmatpush3.bf16.msra.mxu0 %v22033_v16  ;;  %v22046_v16 = vld [vmem:[%s26610_s1 + $0xc48] sm:$0xff]  }
 0xa18   : > { %20825 = vmatprep.subr.bf16.mxu0 %v22179_v62 }
 0xa1a   : > { %20700 = vmatpush3.bf16.msra.mxu1 %v21983_v48  ;;  %v15569_v48 = vld [vmem:[#allocation5 + $0x8] sm:$0x1] }
 0xa1b   : > { %20701 = vmatprep.subr.bf16.mxu1 %v22179_v62  ;;  %20826 = vmatpush3.bf16.msra.mxu0 %v22034_v50  ;;  %v22051_v50 = vld [vmem:[%s26610_s1 + $0xc70] sm:$0xff]  }
 0xa1c   : > { %20827 = vmatprep.subr.bf16.mxu0 %v22179_v62 }
 0xa1e   : > { %20702 = vmatpush3.bf16.msra.mxu1 %v21984_v60  ;;  %v15590_v60 = vcombine.low %v15569_v48, %v15570_v20  ;;  %v22049_v48 = vld [vmem:[%s26610_s1 + $0xc60] sm:$0xff]   ;;  %v22050_v20 = vld [vmem:[%s26610_s1 + $0xc68] sm:$0xff]  }
 0xa1f   : > { %20703 = vmatprep.subr.bf16.mxu1 %v22179_v62  ;;  %20828 = vmatpush3.bf16.msra.mxu0 %v22035_v11  ;;  %v22085_v11 = vld [vmem:[%s26612_s3] sm:$0xff]  }
 0xa20   : > { %20829 = vmatprep.subr.bf16.mxu0 %v22179_v62 }
 0xa22   : > { %20704 = vmatpush3.bf16.msra.mxu1 %v21985_v19  ;;  %v15597_v19 = vrot.slane %v15590_v60, %v23597_v37  ;;  %v22053_v60 = vld [vmem:[%s26610_s1 + $0xc80] sm:$0xff]  }
 0xa23   : > { %20705 = vmatprep.subr.bf16.mxu1 %v22179_v62  ;;  %20830 = vmatpush3.bf16.msra.mxu0 %v22036_v27  ;;  %v22087_v27 = vld [vmem:[%s26612_s3 + $0x10] sm:$0xff]  }
 0xa24   : > { %20835 = vmatprep.subr.bf16.mxu0 %v22179_v62 }
 0xa26   : > { %20706 = vmatpush3.bf16.msra.mxu1 %v21986_v41  ;;  %v15604_v41 = vrot.slane %v15597_v19, %v23597_v37  ;;  %20832 = vmatmul.mubr.bf16.vlgmr.msra.gmra.mrb[36].mxu0 %v16141_v31  ;;  %v22086_v19 = vld [vmem:[%s26612_s3 + $0x8] sm:$0xff]   ;;  %v22057_v31 = vld [vmem:[%s26610_s1 + $0xca0] sm:$0xff]  }
 0xa27   : > { %20707 = vmatprep.subr.bf16.mxu1 %v22179_v62  ;;  %20836 = vmatpush3.bf16.msra.mxu0 %v22037_v38  ;;  %v22089_v38 = vld [vmem:[%s26612_s3 + $0x20] sm:$0xff]  }
 0xa28   : > { %20851 = vmatprep.mubr.msk.bf16.mxu0 %vm22180_vm2, %v22179_v62  ;;  %20837 = vmatprep.subr.bf16.mxu0 %v22179_v62 }
 0xa2a   : > { %20708 = vmatpush3.bf16.msra.mxu1 %v21987_v32  ;;  %v22039_v32 = vld [vmem:[%s26610_s1 + $0xc10] sm:$0xff]  }
 0xa2b   : > { %20709 = vmatprep.subr.bf16.mxu1 %v22179_v62  ;;  %20838 = vmatpush3.bf16.msra.mxu0 %v22038_v22  ;;  %v22090_v22 = vld [vmem:[%s26612_s3 + $0x28] sm:$0xff]  }
 0xa2c   : > { %20839 = vmatprep.subr.bf16.mxu0 %v22179_v62 }
 0xa2e   : > { %20710 = vmatpush3.bf16.msra.mxu1 %v21988_v23  ;;  %v15714_v23 = vcombine.high %v18667_v30, %v18667_v30  ;;  %v22060_v30 = vld [vmem:[%s26610_s1 + $0xcb8] sm:$0xff]  }
 0xa2f   : > { %20715 = vmatprep.subr.bf16.mxu1 %v22179_v62  ;;  %20840 = vmatpush3.bf16.msra.mxu0 %v22039_v32 }
 0xa30   : > { %20841 = vmatprep.subr.bf16.mxu0 %v22179_v62 }
 0xa31   : > { %20712 = vmatmul.mubr.bf16.vlgmr.msra.gmra.mrb[44].mxu1 %v15352_v63  ;;  %v22010_v63 = vld [vmem:[%s26610_s1 + $0xb28] sm:$0xff]  }
 0xa32   : > { %20716 = vmatpush3.bf16.msra.mxu1 %v21989_v55  ;;  %20731 = vmatprep.mubr.msk.bf16.mxu1 %vm22180_vm2, %v22179_v62  ;;  %v15730_v55 = vshll.u32 %v15714_v23, 16  ;;  %v22061_v23 = vld [vmem:[%s26610_s1 + $0xcc0] sm:$0xff]  }
 0xa33   : > { %20717 = vmatprep.subr.bf16.mxu1 %v22179_v62  ;;  %20842 = vmatpush3.bf16.msra.mxu0 %v22040_v59 }
 0xa34   : > { %20843 = vmatprep.subr.bf16.mxu0 %v22179_v62  ;;  %v15732_v17 = vsel %vm25942_vm7, %v15725_v40, %v15730_v55  ;;  %v22063_v55 = vld [vmem:[%s26610_s1 + $0xcd0] sm:$0xff]   ;;  %v22065_v40 = vld [vmem:[%s26610_s1 + $0xce0] sm:$0xff]  }
 0xa35   : > { %v15750_v56 = vcombine.low %v25950_v51, %v15732_v17  ;;  %v22041_v51 = vld [vmem:[%s26610_s1 + $0xc20] sm:$0xff]   ;;  %v22066_v17 = vld [vmem:[%s26610_s1 + $0xce8] sm:$0xff]  }
 0xa36   : > { %20718 = vmatpush3.bf16.msra.mxu1 %v21990_v24  ;;  %v22011_v24 = vld [vmem:[%s26610_s1 + $0xb30] sm:$0xff]  }
 0xa37   : > { %20719 = vmatprep.subr.bf16.mxu1 %v22179_v62  ;;  %v15757_v45 = vrot.slane %v15750_v56, %v23597_v37  ;;  %20844 = vmatpush3.bf16.msra.mxu0 %v22041_v51  ;;  %v22068_v56 = vld [vmem:[%s26610_s1 + $0xcf8] sm:$0xff]   ;;  %v22071_v51 = vld [vmem:[%s26610_s1 + $0xd10] sm:$0xff]  }
 0xa38   : > { %20845 = vmatprep.subr.bf16.mxu0 %v22179_v62 }
 0xa39   : > { %v15764_v14 = vrot.slane %v15757_v45, %v23597_v37 }
 0xa3a   : > { %20720 = vmatpush3.bf16.msra.mxu1 %v21991_v2  ;;  %v22012_v2 = vld [vmem:[%s26610_s1 + $0xb38] sm:$0xff]  }
 0xa3b   : > { %20721 = vmatprep.subr.bf16.mxu1 %v22179_v62 }
 0xa3e   : > { %20722 = vmatpush3.bf16.msra.mxu1 %v21992_v12  ;;  %v22042_v12 = vld [vmem:[%s26610_s1 + $0xc28] sm:$0xff]  }
 0xa3f   : > { %20723 = vmatprep.subr.bf16.mxu1 %v22179_v62  ;;  %20846 = vmatpush3.bf16.msra.mxu0 %v22042_v12  ;;  %v22072_v12 = vld [vmem:[%s26610_s1 + $0xd18] sm:$0xff]  }
 0xa40   : > { %20847 = vmatprep.subr.bf16.mxu0 %v22179_v62 }
 0xa42   : > { %20724 = vmatpush3.bf16.msra.mxu1 %v21993_v57  ;;  %v22044_v57 = vld [vmem:[%s26610_s1 + $0xc38] sm:$0xff]  }
 0xa43   : > { %20725 = vmatprep.subr.bf16.mxu1 %v22179_v62  ;;  %20848 = vmatpush3.bf16.msra.mxu0 %v22043_v21  ;;  %v22073_v21 = vld [vmem:[%s26610_s1 + $0xd20] sm:$0xff]  }
 0xa44   : > { %20849 = vmatprep.subr.bf16.mxu0 %v22179_v62 }
 0xa46   : > { %20726 = vmatpush3.bf16.msra.mxu1 %v21994_v29 }
 0xa47   : > { %20727 = vmatprep.subr.bf16.mxu1 %v22179_v62  ;;  %20850 = vmatpush3.bf16.msra.mxu0 %v22044_v57  ;;  %v22074_v57 = vld [vmem:[%s26610_s1 + $0xd28] sm:$0xff]  }
 0xa48   : > { %20855 = vmatprep.subr.bf16.mxu0 %v22179_v62 }
 0xa4a   : > { %20728 = vmatpush3.bf16.msra.mxu1 %v21995_v7 }
 0xa4b   : > { %20729 = vmatprep.subr.bf16.mxu1 %v22179_v62 }
 0xa4e   : > { %20730 = vmatpush3.bf16.msra.mxu1 %v21996_v15  ;;  %v22082_v15 = vld [vmem:[%s26610_s1 + $0xd68] sm:$0xff]  }
 0xa4f   : > { %20735 = vmatprep.subr.bf16.mxu1 %v22179_v62 }
 0xa51   : > { %20732 = vmatmul.mubr.bf16.vlgmr.msra.gmra.mrb[44].mxu1 %v15478_v26 }
 0xa52   : > { %20736 = vmatpush3.bf16.msra.mxu1 %v21997_v53  ;;  %20751 = vmatprep.mubr.msk.bf16.mxu1 %vm22180_vm2, %v22179_v62 }
 0xa53   : > { %20737 = vmatprep.subr.bf16.mxu1 %v22179_v62 }
 0xa56   : > { %20738 = vmatpush3.bf16.msra.mxu1 %v21998_v25  ;;  %v15884_v25 = vld [vmem:[#allocation6 + $0x3] sm:$0x1] }
 0xa57   : > { %20739 = vmatprep.subr.bf16.mxu1 %v22179_v62 }
 0xa5a   : > { %20740 = vmatpush3.bf16.msra.mxu1 %v21999_v0 }
 0xa5b   : > { %20741 = vmatprep.subr.bf16.mxu1 %v22179_v62 }
 0xa5e   : > { %20742 = vmatpush3.bf16.msra.mxu1 %v22000_v8 }
 0xa5f   : > { %20743 = vmatprep.subr.bf16.mxu1 %v22179_v62 }
 0xa62   : > { %20744 = vmatpush3.bf16.msra.mxu1 %v22001_v28 }
 0xa63   : > { %20745 = vmatprep.subr.bf16.mxu1 %v22179_v62 }
 0xa66   : > { %20746 = vmatpush3.bf16.msra.mxu1 %v22002_v35  ;;  %v22048_v35 = vld [vmem:[%s26610_s1 + $0xc58] sm:$0xff]  }
 0xa67   : > { %20747 = vmatprep.subr.bf16.mxu1 %v22179_v62 }
 0xa6a   : > { %20748 = vmatpush3.bf16.msra.mxu1 %v22003_v61  ;;  %v22052_v61 = vld [vmem:[%s26610_s1 + $0xc78] sm:$0xff]  }
 0xa6b   : > { %20749 = vmatprep.subr.bf16.mxu1 %v22179_v62 }
 0xa6e   : > { %20750 = vmatpush3.bf16.msra.mxu1 %v22004_v52  ;;  %v22054_v52 = vld [vmem:[%s26610_s1 + $0xc88] sm:$0xff]  }
 0xa6f   : > { %20755 = vmatprep.subr.bf16.mxu1 %v22179_v62 }
 0xa71   : > { %20752 = vmatmul.mubr.bf16.vlgmr.msra.gmra.mrb[44].mxu1 %v15604_v41  ;;  %v22088_v41 = vld [vmem:[%s26612_s3 + $0x18] sm:$0xff]  }
 0xa72   : > { %20756 = vmatpush3.bf16.msra.mxu1 %v22005_v5  ;;  %20771 = vmatprep.mubr.msk.bf16.mxu1 %vm22180_vm2, %v22179_v62  ;;  %v22056_v5 = vld [vmem:[%s26610_s1 + $0xc98] sm:$0xff]  }
 0xa73   : > { %20757 = vmatprep.subr.bf16.mxu1 %v22179_v62 }
 0xa76   : > { %20758 = vmatpush3.bf16.msra.mxu1 %v22006_v9  ;;  %v22058_v9 = vld [vmem:[%s26610_s1 + $0xca8] sm:$0xff]  }
 0xa77   : > { %20759 = vmatprep.subr.bf16.mxu1 %v22179_v62 }
 0xa7a   : > { %20760 = vmatpush3.bf16.msra.mxu1 %v22007_v6  ;;  %v22059_v6 = vld [vmem:[%s26610_s1 + $0xcb0] sm:$0xff]  }
 0xa7b   : > { %20761 = vmatprep.subr.bf16.mxu1 %v22179_v62 }
 0xa7e   : > { %20762 = vmatpush3.bf16.msra.mxu1 %v22008_v18 }
 0xa7f   : > { %20763 = vmatprep.subr.bf16.mxu1 %v22179_v62 }
 0xa82   : > { %20764 = vmatpush3.bf16.msra.mxu1 %v22009_v1  ;;  %v22062_v1 = vld [vmem:[%s26610_s1 + $0xcc8] sm:$0xff]  }
 0xa83   : > { %20765 = vmatprep.subr.bf16.mxu1 %v22179_v62 }
 0xa86   : > { %20766 = vmatpush3.bf16.msra.mxu1 %v22010_v63  ;;  %v22064_v63 = vld [vmem:[%s26610_s1 + $0xcd8] sm:$0xff]  }
 0xa87   : > { %20767 = vmatprep.subr.bf16.mxu1 %v22179_v62 }
 0xa8a   : > { %20768 = vmatpush3.bf16.msra.mxu1 %v22011_v24  ;;  %v22067_v24 = vld [vmem:[%s26610_s1 + $0xcf0] sm:$0xff]  }
 0xa8b   : > { %20769 = vmatprep.subr.bf16.mxu1 %v22179_v62 }
 0xa8e   : > { %20770 = vmatpush3.bf16.msra.mxu1 %v22012_v2  ;;  %v22069_v2 = vld [vmem:[%s26610_s1 + $0xd00] sm:$0xff]  }
 0xa8f   : > { %20955 = vmatprep.subr.bf16.mxu1 %v22179_v62 }
 0xa91   : > { %20772 = vmatmul.mubr.bf16.vlgmr.msra.gmra.mrb[44].mxu1 %v15764_v14  ;;  %v22070_v14 = vld [vmem:[%s26610_s1 + $0xd08] sm:$0xff]  }
 0xa92   : > { %20971 = vmatprep.mubr.msk.bf16.mxu1 %vm22180_vm2, %v22179_v62  ;;  %20956 = vmatpush3.bf16.msra.mxu1 %v22085_v11 }
 0xa93   : > { %20957 = vmatprep.subr.bf16.mxu1 %v22179_v62 }
 0xa96   : > { %20958 = vmatpush3.bf16.msra.mxu1 %v22086_v19 }
 0xa97   : > { %20959 = vmatprep.subr.bf16.mxu1 %v22179_v62 }
 0xa9a   : > { %20960 = vmatpush3.bf16.msra.mxu1 %v22087_v27 }
 0xa9b   : > { %20961 = vmatprep.subr.bf16.mxu1 %v22179_v62 }
 0xa9e   : > { %20962 = vmatpush3.bf16.msra.mxu1 %v22088_v41 }
 0xa9f   : > { %20963 = vmatprep.subr.bf16.mxu1 %v22179_v62 }
 0xaa2   : > { %20964 = vmatpush3.bf16.msra.mxu1 %v22089_v38 }
 0xaa3   : > { %20965 = vmatprep.subr.bf16.mxu1 %v22179_v62 }
 0xaa6   : > { %20966 = vmatpush3.bf16.msra.mxu1 %v22090_v22 }
 0xaa7   : > { %20967 = vmatprep.subr.bf16.mxu1 %v22179_v62 }
 0xb64   : > { %v15848_v29 = vpop.f32.mrb[44].mxu1 }
 0xb65   : > { %v21051_v42 = vadd.f32 %v18465_v54, %v15848_v29  ;;  %v20773_v33 = vpop.f32.mrb[45].mxu1  ;;  %v22075_v54 = vld [vmem:[%s26610_s1 + $0xd30] sm:$0xff]   ;;  %v22076_v29 = vld [vmem:[%s26610_s1 + $0xd38] sm:$0xff]  }
 0xb66   : > { %v15851_v44 = vpop.f32.mrb[46].mxu1 }
 0xb67   : > { %v15855_v7 = vmax.f32 %v21051_v42, 0.0  ;;  %v20774_v49 = vpop.f32.mrb[47].mxu1  ;;  %v22077_v42 = vld [vmem:[%s26610_s1 + $0xd40] sm:$0xff]   ;;  %v22078_v44 = vld [vmem:[%s26610_s1 + $0xd48] sm:$0xff]  }
 0xb68   : > { %v22080_v49 = vld [vmem:[%s26610_s1 + $0xd58] sm:$0xff]  }
 0xb69   : > { %v15856_v43 = vpack.c.bf16 %v15855_v7, %v15855_v7  ;;  %v22079_v7 = vld [vmem:[%s26610_s1 + $0xd50] sm:$0xff]  }
 0xb6b   : > { %v15859_v53 = vsel %vm23492_vm5, %v15856_v43, %v15858_v58  ;;  %v15864_v26 = vsel %vm26334_vm12, %v15856_v43, %v15863_v3  ;;  %v15873_v34 = vrot.slane %v15856_v43, %v23597_v37  ;;  %v22081_v58 = vld [vmem:[%s26610_s1 + $0xd60] sm:$0xff]   ;;  %v22083_v3 = vld [vmem:[%s26610_s1 + $0xd70] sm:$0xff]  }
 0xb6c   : > { %15860 = vst [vmem:[#allocation6 + $0x6] sm:$0x1] %v15859_v53  ;;  %15865 = vst [vmem:[#allocation6 + $0x4] sm:$0x1] %v15864_v26  ;;  %v22084_v53 = vld [vmem:[%s26610_s1 + $0xd78] sm:$0xff]  }
 0xb6d   : > { %v15874_v10 = vcombine.high %v15873_v34, %v15873_v34 }
 0xb6f   : > { %v15881_v0 = vrot.slane %v15874_v10, %v23597_v37  ;;  %v22091_v10 = vld [vmem:[%s26612_s3 + $0x30] sm:$0xff]  }
 0xb70   : > { %20968 = vmatpush3.bf16.msra.mxu1 %v22091_v10 }
 0xb71   : > { %v15885_v4 = vsel %vm23492_vm5, %v15881_v0, %v15884_v25  ;;  %v15889_v8 = vsel %vm26334_vm12, %v15881_v0, %v15888_v13  ;;  %v22092_v25 = vld [vmem:[%s26612_s3 + $0x38] sm:$0xff]   ;;  %20969 = vmatprep.subr.bf16.mxu1 %v22179_v62 }
 0xb72   : > { %15886 = vst [vmem:[#allocation6 + $0x3] sm:$0x1] %v15885_v4  ;;  %15890 = vst [vmem:[#allocation6 + $0x1] sm:$0x1] %v15889_v8 }
 0xb73   : > { %v26351_v28 = vld [vmem:[#allocation6 + $0x4] sm:$0x1]  ;;  %v16340_v46 = vld [vmem:[#allocation6 + $0x6] sm:$0x1] }
 0xb74   : > { %20852 = vmatmul.mubr.bf16.vlgmr.msra.gmra.mrb[36].mxu0 %v26351_v28  ;;  %v16471_v32 = vrot.slane %v26351_v28, %v23597_v37  ;;  %20970 = vmatpush3.bf16.msra.mxu1 %v22092_v25 }
 0xb75   : > { %20856 = vmatpush3.bf16.msra.mxu0 %v22045_v47  ;;  %20871 = vmatprep.mubr.msk.bf16.mxu0 %vm22180_vm2, %v22179_v62 }
 0xb76   : > { %20857 = vmatprep.subr.bf16.mxu0 %v22179_v62  ;;  %v16478_v18 = vrot.slane %v16471_v32, %v23597_v37 }
 0xb78   : > { %v16480_v59 = vshrl.u32 %v16478_v18, 16 }
 0xb79   : > { %20858 = vmatpush3.bf16.msra.mxu0 %v22046_v16  ;;  %v16572_v45 = vld [vmem:[#allocation6 + $0x1] sm:$0x1]  ;;  %v16679_v33 = vld [vmem:[#allocation6 + $0x3] sm:$0x1] }
 0xb7a   : > { %20859 = vmatprep.subr.bf16.mxu0 %v22179_v62  ;;  %v16810_v43 = vrot.slane %v16572_v45, %v23597_v37 }
 0xb7c   : > { %v16817_v26 = vrot.slane %v16810_v43, %v23597_v37  ;;  %v18694_v37 = vld [vmem:[%s26611_s2 + $0x5] sm:$0x1] }
 0xb7d   : > { %20860 = vmatpush3.bf16.msra.mxu0 %v22047_v36  ;;  %v16932_v36 = vld [vmem:[%s26613_s4] sm:$0x1] }
 0xb7e   : > { %20861 = vmatprep.subr.bf16.mxu0 %v22179_v62  ;;  %v16819_v34 = vshrl.u32 %v16817_v26, 16 }
 0xb81   : > { %20862 = vmatpush3.bf16.msra.mxu0 %v22048_v35 }
 0xb82   : > { %20863 = vmatprep.subr.bf16.mxu0 %v22179_v62 }
 0xb85   : > { %20864 = vmatpush3.bf16.msra.mxu0 %v22049_v48 }
 0xb86   : > { %20865 = vmatprep.subr.bf16.mxu0 %v22179_v62 }
 0xb89   : > { %20866 = vmatpush3.bf16.msra.mxu0 %v22050_v20 }
 0xb8a   : > { %20867 = vmatprep.subr.bf16.mxu0 %v22179_v62 }
 0xb8d   : > { %20868 = vmatpush3.bf16.msra.mxu0 %v22051_v50 }
 0xb8e   : > { %20869 = vmatprep.subr.bf16.mxu0 %v22179_v62 }
 0xb91   : > { %20870 = vmatpush3.bf16.msra.mxu0 %v22052_v61 }
 0xb92   : > { %20875 = vmatprep.subr.bf16.mxu0 %v22179_v62 }
 0xb94   : > { %20872 = vmatmul.mubr.bf16.vlgmr.msra.gmra.mrb[36].mxu0 %v16340_v46 }
 0xb95   : > { %20876 = vmatpush3.bf16.msra.mxu0 %v22053_v60  ;;  %20891 = vmatprep.mubr.msk.bf16.mxu0 %vm22180_vm2, %v22179_v62 }
 0xb96   : > { %20877 = vmatprep.subr.bf16.mxu0 %v22179_v62 }
 0xb99   : > { %20878 = vmatpush3.bf16.msra.mxu0 %v22054_v52 }
 0xb9a   : > { %20879 = vmatprep.subr.bf16.mxu0 %v22179_v62 }
 0xb9d   : > { %20880 = vmatpush3.bf16.msra.mxu0 %v22055_v39 }
 0xb9e   : > { %20881 = vmatprep.subr.bf16.mxu0 %v22179_v62 }
 0xba1   : > { %20882 = vmatpush3.bf16.msra.mxu0 %v22056_v5 }
 0xba2   : > { %20883 = vmatprep.subr.bf16.mxu0 %v22179_v62 }
 0xba5   : > { %20884 = vmatpush3.bf16.msra.mxu0 %v22057_v31 }
 0xba6   : > { %20885 = vmatprep.subr.bf16.mxu0 %v22179_v62 }
 0xba9   : > { %20886 = vmatpush3.bf16.msra.mxu0 %v22058_v9 }
 0xbaa   : > { %20887 = vmatprep.subr.bf16.mxu0 %v22179_v62 }
 0xbad   : > { %20888 = vmatpush3.bf16.msra.mxu0 %v22059_v6 }
 0xbae   : > { %20889 = vmatprep.subr.bf16.mxu0 %v22179_v62 }
 0xbb1   : > { %20890 = vmatpush3.bf16.msra.mxu0 %v22060_v30 }
 0xbb2   : > { %20895 = vmatprep.subr.bf16.mxu0 %v22179_v62 }
 0xbb4   : > { %20892 = vmatmul.mubr.bf16.vlgmr.msra.gmra.mrb[36].mxu0 %v16480_v59 }
 0xbb5   : > { %20896 = vmatpush3.bf16.msra.mxu0 %v22061_v23  ;;  %20911 = vmatprep.mubr.msk.bf16.mxu0 %vm22180_vm2, %v22179_v62 }
 0xbb6   : > { %20897 = vmatprep.subr.bf16.mxu0 %v22179_v62 }
 0xbb9   : > { %20898 = vmatpush3.bf16.msra.mxu0 %v22062_v1 }
 0xbba   : > { %20899 = vmatprep.subr.bf16.mxu0 %v22179_v62 }
 0xbbd   : > { %20900 = vmatpush3.bf16.msra.mxu0 %v22063_v55 }
 0xbbe   : > { %20901 = vmatprep.subr.bf16.mxu0 %v22179_v62 }
 0xbc1   : > { %20902 = vmatpush3.bf16.msra.mxu0 %v22064_v63 }
 0xbc2   : > { %20903 = vmatprep.subr.bf16.mxu0 %v22179_v62 }
 0xbc5   : > { %20904 = vmatpush3.bf16.msra.mxu0 %v22065_v40 }
 0xbc6   : > { %20905 = vmatprep.subr.bf16.mxu0 %v22179_v62 }
 0xbc9   : > { %20906 = vmatpush3.bf16.msra.mxu0 %v22066_v17 }
 0xbca   : > { %20907 = vmatprep.subr.bf16.mxu0 %v22179_v62 }
 0xbcd   : > { %20908 = vmatpush3.bf16.msra.mxu0 %v22067_v24 }
 0xbce   : > { %20909 = vmatprep.subr.bf16.mxu0 %v22179_v62 }
 0xbd1   : > { %20910 = vmatpush3.bf16.msra.mxu0 %v22068_v56 }
 0xbd2   : > { %20915 = vmatprep.subr.bf16.mxu0 %v22179_v62 }
 0xbd4   : > { %20912 = vmatmul.mubr.bf16.vlgmr.msra.gmra.mrb[36].mxu0 %v16572_v45 }
 0xbd5   : > { %20916 = vmatpush3.bf16.msra.mxu0 %v22069_v2  ;;  %20931 = vmatprep.mubr.msk.bf16.mxu0 %vm22180_vm2, %v22179_v62 }
 0xbd6   : > { %20917 = vmatprep.subr.bf16.mxu0 %v22179_v62 }
 0xbd9   : > { %20918 = vmatpush3.bf16.msra.mxu0 %v22070_v14 }
 0xbda   : > { %20919 = vmatprep.subr.bf16.mxu0 %v22179_v62 }
 0xbdd   : > { %20920 = vmatpush3.bf16.msra.mxu0 %v22071_v51 }
 0xbde   : > { %20921 = vmatprep.subr.bf16.mxu0 %v22179_v62 }
 0xbe1   : > { %20922 = vmatpush3.bf16.msra.mxu0 %v22072_v12 }
 0xbe2   : > { %20923 = vmatprep.subr.bf16.mxu0 %v22179_v62 }
 0xbe5   : > { %20924 = vmatpush3.bf16.msra.mxu0 %v22073_v21 }
 0xbe6   : > { %20925 = vmatprep.subr.bf16.mxu0 %v22179_v62 }
 0xbe9   : > { %20926 = vmatpush3.bf16.msra.mxu0 %v22074_v57 }
 0xbea   : > { %20927 = vmatprep.subr.bf16.mxu0 %v22179_v62 }
 0xbed   : > { %20928 = vmatpush3.bf16.msra.mxu0 %v22075_v54 }
 0xbee   : > { %20929 = vmatprep.subr.bf16.mxu0 %v22179_v62 }
 0xbf1   : > { %20930 = vmatpush3.bf16.msra.mxu0 %v22076_v29 }
 0xbf2   : > { %20935 = vmatprep.subr.bf16.mxu0 %v22179_v62 }
 0xbf4   : > { %20932 = vmatmul.mubr.bf16.vlgmr.msra.gmra.mrb[36].mxu0 %v16679_v33 }
 0xbf5   : > { %20936 = vmatpush3.bf16.msra.mxu0 %v22077_v42  ;;  %20951 = vmatprep.mubr.msk.bf16.mxu0 %vm22180_vm2, %v22179_v62 }
 0xbf6   : > { %20937 = vmatprep.subr.bf16.mxu0 %v22179_v62 }
 0xbf9   : > { %20938 = vmatpush3.bf16.msra.mxu0 %v22078_v44 }
 0xbfa   : > { %20939 = vmatprep.subr.bf16.mxu0 %v22179_v62 }
 0xbfd   : > { %20940 = vmatpush3.bf16.msra.mxu0 %v22079_v7 }
 0xbfe   : > { %20941 = vmatprep.subr.bf16.mxu0 %v22179_v62 }
 0xc01   : > { %20942 = vmatpush3.bf16.msra.mxu0 %v22080_v49 }
 0xc02   : > { %20943 = vmatprep.subr.bf16.mxu0 %v22179_v62 }
 0xc05   : > { %20944 = vmatpush3.bf16.msra.mxu0 %v22081_v58 }
 0xc06   : > { %20945 = vmatprep.subr.bf16.mxu0 %v22179_v62 }
 0xc09   : > { %20946 = vmatpush3.bf16.msra.mxu0 %v22082_v15 }
 0xc0a   : > { %20947 = vmatprep.subr.bf16.mxu0 %v22179_v62 }
 0xc0d   : > { %20948 = vmatpush3.bf16.msra.mxu0 %v22083_v3 }
 0xc0e   : > { %20949 = vmatprep.subr.bf16.mxu0 %v22179_v62 }
 0xc11   : > { %20950 = vmatpush3.bf16.msra.mxu0 %v22084_v53 }
 0xc14   : > { %20952 = vmatmul.mubr.bf16.vlgmr.msra.gmra.mrb[36].mxu0 %v16819_v34 }
 0xce7   : > { %v16904_v13 = vpop.f32.mrb[36].mxu0 }
 0xce8   : > { %v21052_v0 = vadd.f32 %v18694_v37, %v16904_v13  ;;  %v20953_v4 = vpop.f32.mrb[37].mxu0 }
 0xce9   : > { %v16907_v8 = vpop.f32.mrb[38].mxu0 }
 0xcea   : > { %v16911_v47 = vmax.f32 %v21052_v0, 0.0  ;;  %v20954_v28 = vpop.f32.mrb[39].mxu0 }
 0xcec   : > { %v16915_v16 = vpack.c.bf16 %v16911_v47, %v16911_v47 }
 0xcee   : > { %20972 = vmatmul.mubr.bf16.vlgmr.msra.gmra.mrb[48].mxu1 %v16915_v16 }
 0xdc1   : > { %v17015_v62 = vpop.f32.mrb[48].mxu1 }
 0xdc2   : > { %v17016_v35 = vadd.f32 %v17015_v62, %v16932_v36  ;;  %v20973_v48 = vpop.f32.mrb[49].mxu1 }
 0xdc3   : > { %v17018_v20 = vpop.f32.mrb[50].mxu1 }
 0xdc4   : > { %17021 = vst [vmem:[%s216_s26] sm:$0x1] %v17016_v35  ;;  %v20974_v50 = vpop.f32.mrb[51].mxu1 }
 0xdc5   : > { %22125 = shalt.err (!%p22122_p3)
}
 0xdc6   : > { %s22126_s13 = scalar_lea.hbm %s26567_s8, 16  ;;  %s22130_s17 = scalar_lea.hbm %s26614_s5, 32 }
 0xdc7   : > { %p22127_p4 = scmp.ne.s32.totalorder %s26567_s8, %s22126_s13  ;;  %p22131_p9 = scmp.lt.u32.totalorder %s26567_s8, %s26614_s5 }
 0xdc8   : > { %p22132_p10 = scmp.lt.u32.totalorder %s22130_s17, %s22126_s13  ;;  %p22134_p12 = scmp.lt.u32.totalorder %s22126_s13, %s26567_s8 }
 0xdc9   : > { %p22128_p7 = pnand %p22127_p4, %p22251_p5 }
 0xdca   : > { %p22133_p11 = por %p22132_p10, %p22131_p9 }
 0xdcb   : > { %p22129_p8 = pneg %p22128_p7 }
 0xdcc   : > { %p22135_p13 = por %p22134_p12, %p22133_p11 }
 0xdce   : > { %p22136_p0 = pnand %p22135_p13, %p22129_p8 }
 0xdd0   : > { %22139 = shalt.err (!%p22136_p0)
}
 0xdd1   : > { %21470 = dma.vmem_to_hbm [thread:$0]  (%p22251_p5), %s26569_s30, 16, %s26567_s8, %s17023_s9  }
 0xdd2 PF: > { %p21476_p1 = scmp.ge.s32.totalorder %s22174_s21, 2  ;;  %s17047_s25 = sand.u32 1, %s22162_s18  }
 0xdd3   : > { %s17048_s26 = scalar_lea.sflag [#allocation8], %s17047_s25 }
 0xdd4   : > { %p21473_p2 = pnand %p21476_p1, %p22255_p6 }
 0xdd6   : > { %22157 = dma.done.wait (!%p21473_p2), %s17048_s26, 16  }
 0xdd7   : > { %22159 = vsyncadd (!%p21473_p2), %s17048_s26, 4294967280  ;;  %p15_p3 = scmp.ge.s32.totalorder %s22238_s24, 4   ;;  %s26699_s18 = smov %s22166_s19 }
 0xdd8   : > { %s26700_s19 = smov %s22170_s20  ;;  %s26701_s20 = smov %s22249_s27 }
 0xdd9   : > { %s26702_s21 = smov %s22238_s24  ;;  %17 = sbr.rel (!%p15_p3) target bundleno = 3 (0x3), region = 160 }
 0xde0   :  { %17052 = vsyncpa [#allocation8], 1 }
 0xde1   :  { %17054 = vsyncpa [#allocation8 + $0x1], 1 }

</bundles_post_ra>
